<compile_context>
chip_gen: v5e
topology: v5e:2x2
jax: 0.10.0
libtpu: 0.0.40
codegen_flags: <defaults>
</compile_context>

<pallas_src>
import jax
import jax.numpy as jnp
import numpy as np
from jax.experimental import pallas as pl
from jax.experimental.pallas import tpu as pltpu

BN1_EPS = 1e-3   # nn.BatchNorm2d(c2, eps=0.001) inside CBL
BN2_EPS = 1e-5   # default eps of the BatchNorm2d inside FReLU


def _cbl_frelu_kernel(x_ref, w1_ref, wd_ref, bn_ref, o_ref, pad_ref):
    """One grid step processes a tile of TC output channels.

    x_ref  : (M, C1)             full input (M = N*H*W), grid-invariant block
    w1_ref : (C1, TC)            1x1 conv weight slice
    wd_ref : (3, 3, TC)          depthwise 3x3 weight slice
    bn_ref : (4, TC)             rows: gamma1, beta1, gamma2, beta2
    o_ref  : (N, H, W, TC)       output slice
    pad_ref: (N, H+2, W+2, TC)   scratch, zero-padded funnel input
    """
    N, H, W, TC = o_ref.shape
    M, C1 = x_ref.shape

    # ---- 1x1 conv (groups=1, stride=1, pad=0, no bias) == channel contraction
    x2 = x_ref[...]
    w1 = w1_ref[...]
    if C1 >= 64:
        # Deep input channels: use the MXU.
        y = jnp.dot(x2, w1, preferred_element_type=jnp.float32)        # (M, TC)
    else:
        # Shallow input (e.g. C1=3/4): C1 broadcast multiply-adds on the VPU
        # (MXU contraction dim would be ~3% utilised).
        y = x2[:, 0:1] * w1[0:1, :]
        for c in range(1, C1):
            y = y + x2[:, c:c + 1] * w1[c:c + 1, :]

    # ---- BatchNorm #1 (training-mode batch stats, per channel), single pass,
    # folded into scale/shift: y_bn = y * scale1 + shift1
    m1 = jnp.mean(y, axis=0, keepdims=True)                            # (1, TC)
    q1 = jnp.mean(y * y, axis=0, keepdims=True)                        # (1, TC)
    scale1 = bn_ref[0:1, :] * jax.lax.rsqrt(q1 - m1 * m1 + BN1_EPS)
    shift1 = bn_ref[1:2, :] - m1 * scale1

    # Zero only the halo strips of the padded scratch (interior is fully
    # overwritten below) -- much cheaper than zeroing the whole buffer.
    # Done every step (not only at program_id==0) so it stays correct when the
    # "parallel" axis is sharded across cores -- VMEM scratch is per-core.
    zrow = jnp.zeros((N, 1, W + 2, TC), jnp.float32)
    pad_ref[:, 0:1, :, :] = zrow
    pad_ref[:, H + 1:H + 2, :, :] = zrow
    zcol = jnp.zeros((N, H + 2, 1, TC), jnp.float32)
    pad_ref[:, :, 0:1, :] = zcol
    pad_ref[:, :, W + 1:W + 2, :] = zcol

    # The normalised 1x1-conv output lives only inside pad_ref from here on;
    # it is re-read below for the final max, so no (M, TC) value stays live
    # across the depthwise / BN2 section.
    pad_ref[:, 1:H + 1, 1:W + 1, :] = (y * scale1 + shift1).reshape(N, H, W, TC)

    # ---- FReLU funnel: depthwise 3x3 conv, stride 1, pad 1, no bias
    wd = wd_ref[...]                                                   # (3,3,TC)
    z = None
    for kh in range(3):
        for kw in range(3):
            tap = pad_ref[:, kh:kh + H, kw:kw + W, :]                  # (N,H,W,TC)
            term = tap * wd[kh, kw, :].reshape(1, 1, 1, TC)
            z = term if z is None else z + term

    # ---- BatchNorm #2 (inside FReLU): same single-pass, folded form
    z2 = z.reshape(M, TC)
    m2 = jnp.mean(z2, axis=0, keepdims=True)
    q2 = jnp.mean(z2 * z2, axis=0, keepdims=True)
    scale2 = bn_ref[2:3, :] * jax.lax.rsqrt(q2 - m2 * m2 + BN2_EPS)
    shift2 = bn_ref[3:4, :] - m2 * scale2

    # ---- FReLU: elementwise max of identity branch (re-read from pad_ref)
    # and the normalised funnel branch.
    y_bn = pad_ref[:, 1:H + 1, 1:W + 1, :]
    o_ref[...] = jnp.maximum(
        y_bn, (z2 * scale2 + shift2).reshape(N, H, W, TC)).astype(o_ref.dtype)


def cbl_forward(x_nchw, w1, wd, gamma1, beta1, gamma2, beta2, *, tc=128):
    """CBL forward.  x_nchw: (N, C1, H, W) -> (N, C2, H, W).

    tc: output-channel tile (lane) width.  128 works on every TPU generation;
    use 256 on v6e/v7x when C2 % 256 == 0 and the VMEM budget allows.
    """
    N, C1, H, W = x_nchw.shape
    C2 = w1.shape[1]
    assert C2 % tc == 0, "channel tile must divide C2"
    M = N * H * W

    # TODO(synk): for real CSPDarknet spatial sizes (H = W >= 104) the full
    # (N, H, W) extent of one channel tile no longer fits in VMEM; that needs a
    # spatially tiled two-pass scheme (pass 1 accumulates per-channel sum /
    # sum-of-squares across spatial tiles, pass 2 normalises + funnel + max).

    x2d = jnp.transpose(x_nchw, (0, 2, 3, 1)).astype(jnp.float32).reshape(M, C1)
    bn = jnp.stack([gamma1, beta1, gamma2, beta2], axis=0).astype(jnp.float32)

    # Explicit VMEM budget: pad scratch + resident x block + double-buffered
    # output block + headroom for the big y / z temporaries.
    def rup(v, m):
        return (v + m - 1) // m * m

    est = 4 * (N * (H + 2) * rup(W + 2, 8) * tc     # pad_ref scratch
               + 2 * rup(M, 8) * rup(C1, 128)       # x block (pipeline buffers)
               + 2 * N * H * rup(W, 8) * tc         # output block (double buffered)
               + 6 * rup(M, 8) * tc                 # y / z temporaries
               + 64 * tc)                           # weight / bn blocks
    vmem_limit = int(min(max(2 * est, 16 * 2 ** 20), 48 * 2 ** 20))

    out_nhwc = pl.pallas_call(
        _cbl_frelu_kernel,
        out_shape=jax.ShapeDtypeStruct((N, H, W, C2), jnp.float32),
        grid_spec=pltpu.PrefetchScalarGridSpec(
            num_scalar_prefetch=0,
            grid=(C2 // tc,),
            in_specs=[
                pl.BlockSpec((M, C1), lambda j: (0, 0)),        # x, grid-invariant
                pl.BlockSpec((C1, tc), lambda j: (0, j)),       # w1 tile
                pl.BlockSpec((3, 3, tc), lambda j: (0, 0, j)),  # wd tile
                pl.BlockSpec((4, tc), lambda j: (0, j)),        # bn params tile
            ],
            out_specs=pl.BlockSpec((N, H, W, tc), lambda j: (0, 0, 0, j)),
            scratch_shapes=[
                pltpu.VMEM((N, H + 2, W + 2, tc), jnp.float32), # padded funnel in
            ],
        ),
        compiler_params=pltpu.CompilerParams(
            dimension_semantics=("parallel",),   # channel tiles are independent
            vmem_limit_bytes=vmem_limit,
        ),
    )(x2d, w1.astype(jnp.float32), wd.astype(jnp.float32), bn)

    return jnp.transpose(out_nhwc, (0, 3, 1, 2))                       # NCHW


def cbl_reference(x_nchw, w1, wd, gamma1, beta1, gamma2, beta2):
    """Pure-JAX reference (f32, two-pass BN) for correctness checking."""
    x = jnp.transpose(x_nchw, (0, 2, 3, 1)).astype(jnp.float32)
    C1, C2 = w1.shape

    def bn(t, g, b, eps):
        m = jnp.mean(t, axis=(0, 1, 2), keepdims=True)
        v = jnp.mean((t - m) ** 2, axis=(0, 1, 2), keepdims=True)
        return (t - m) * jax.lax.rsqrt(v + eps) * g + b

    k1 = w1.reshape(1, 1, C1, C2)
    y = jax.lax.conv_general_dilated(
        x, k1, (1, 1), "VALID", dimension_numbers=("NHWC", "HWIO", "NHWC"))
    y = bn(y, gamma1, beta1, BN1_EPS)

    kd = wd.reshape(3, 3, 1, C2)
    z = jax.lax.conv_general_dilated(
        y, kd, (1, 1), ((1, 1), (1, 1)),
        dimension_numbers=("NHWC", "HWIO", "NHWC"), feature_group_count=C2)
    z = bn(z, gamma2, beta2, BN2_EPS)

    out = jnp.maximum(y, z)
    return jnp.transpose(out, (0, 3, 1, 2))


if __name__ == "__main__":
    # Small, deterministic problem: N=2, C1=4, H=W=16, C2=256 (2 channel tiles,
    # so the multi-step "parallel" grid path and per-step halo logic are hit).
    N, C1, H, W = 2, 4, 16, 16
    C2 = 256

    key = jax.random.PRNGKey(0)
    kx, kw1, kwd, kg1, kb1, kg2, kb2 = jax.random.split(key, 7)

    x = jax.random.normal(kx, (N, C1, H, W), jnp.float32)
    # Conv weights (PyTorch layouts transposed for NHWC):
    #   nn.Conv2d(c1, c2, 1): weight (C2, C1, 1, 1) -> stored here as (C1, C2)
    #   FReLU depthwise conv: weight (C2, 1, 3, 3)  -> stored here as (3, 3, C2)
    w1 = 0.2 * jax.random.normal(kw1, (C1, C2), jnp.float32)
    wd = 0.2 * jax.random.normal(kwd, (3, 3, C2), jnp.float32)
    # BatchNorm affine params (PyTorch init is gamma=1, beta=0; perturbed so
    # the affine transform is actually exercised).
    gamma1 = 1.0 + 0.1 * jax.random.normal(kg1, (C2,), jnp.float32)
    beta1 = 0.1 * jax.random.normal(kb1, (C2,), jnp.float32)
    gamma2 = 1.0 + 0.1 * jax.random.normal(kg2, (C2,), jnp.float32)
    beta2 = 0.1 * jax.random.normal(kb2, (C2,), jnp.float32)

    out = cbl_forward(x, w1, wd, gamma1, beta1, gamma2, beta2)
    out = jax.block_until_ready(out)

    ref = jax.block_until_ready(
        cbl_reference(x, w1, wd, gamma1, beta1, gamma2, beta2))

    np.testing.assert_allclose(np.asarray(out), np.asarray(ref),
                               rtol=5e-3, atol=5e-3)
    print("KERNEL_OK")
</pallas_src>

<mosaic_0001>
module attributes {stable_mosaic.version = 11 : i64} {
  func.func @_cbl_frelu_kernel(%arg0: i32, %arg1: memref<512x4xf32, #tpu.memory_space<vmem>>, %arg2: memref<4x128xf32, #tpu.memory_space<vmem>>, %arg3: memref<3x3x128xf32, #tpu.memory_space<vmem>>, %arg4: memref<4x128xf32, #tpu.memory_space<vmem>>, %arg5: memref<2x16x16x128xf32, #tpu.memory_space<vmem>>, %arg6: memref<2x18x18x128xf32, #tpu.memory_space<vmem>>) attributes {dimension_semantics = [#tpu.dimension_semantics<parallel>], iteration_bounds = array<i64: 2>, scalar_prefetch = 0 : i64, scratch_operands = 1 : i64, tpu.core_type = #tpu.core_type<tc>, window_params = [{pipeline_mode = #tpu.pipeline_mode<synchronous>, transform_indices = @transform_0, window_bounds = array<i64: 512, 4>}, {transform_indices = @transform_1, window_bounds = array<i64: 4, 128>}, {transform_indices = @transform_2, window_bounds = array<i64: 3, 3, 128>}, {transform_indices = @transform_3, window_bounds = array<i64: 4, 128>}, {transform_indices = @transform_4, window_bounds = array<i64: 2, 16, 16, 128>}]} {
    %c0 = arith.constant 0 : index
    %c0_0 = arith.constant 0 : index
    %0 = vector.load %arg1[%c0, %c0_0] : memref<512x4xf32, #tpu.memory_space<vmem>>, vector<512x4xf32>
    %c0_1 = arith.constant 0 : index
    %c0_2 = arith.constant 0 : index
    %1 = vector.load %arg2[%c0_1, %c0_2] : memref<4x128xf32, #tpu.memory_space<vmem>>, vector<4x128xf32>
    %2 = vector.extract_strided_slice %0 {offsets = [0, 0], sizes = [512, 1], strides = [1, 1]} : vector<512x4xf32> to vector<512x1xf32>
    %3 = vector.extract_strided_slice %1 {offsets = [0, 0], sizes = [1, 128], strides = [1, 1]} : vector<4x128xf32> to vector<1x128xf32>
    %4 = vector.broadcast %2 : vector<512x1xf32> to vector<512x128xf32>
    %5 = vector.broadcast %3 : vector<1x128xf32> to vector<512x128xf32>
    %6 = arith.mulf %4, %5 : vector<512x128xf32>
    %7 = vector.extract_strided_slice %0 {offsets = [0, 1], sizes = [512, 1], strides = [1, 1]} : vector<512x4xf32> to vector<512x1xf32>
    %8 = vector.extract_strided_slice %1 {offsets = [1, 0], sizes = [1, 128], strides = [1, 1]} : vector<4x128xf32> to vector<1x128xf32>
    %9 = vector.broadcast %7 : vector<512x1xf32> to vector<512x128xf32>
    %10 = vector.broadcast %8 : vector<1x128xf32> to vector<512x128xf32>
    %11 = arith.mulf %9, %10 : vector<512x128xf32>
    %12 = arith.addf %6, %11 : vector<512x128xf32>
    %13 = vector.extract_strided_slice %0 {offsets = [0, 2], sizes = [512, 1], strides = [1, 1]} : vector<512x4xf32> to vector<512x1xf32>
    %14 = vector.extract_strided_slice %1 {offsets = [2, 0], sizes = [1, 128], strides = [1, 1]} : vector<4x128xf32> to vector<1x128xf32>
    %15 = vector.broadcast %13 : vector<512x1xf32> to vector<512x128xf32>
    %16 = vector.broadcast %14 : vector<1x128xf32> to vector<512x128xf32>
    %17 = arith.mulf %15, %16 : vector<512x128xf32>
    %18 = arith.addf %12, %17 : vector<512x128xf32>
    %19 = vector.extract_strided_slice %0 {offsets = [0, 3], sizes = [512, 1], strides = [1, 1]} : vector<512x4xf32> to vector<512x1xf32>
    %20 = vector.extract_strided_slice %1 {offsets = [3, 0], sizes = [1, 128], strides = [1, 1]} : vector<4x128xf32> to vector<1x128xf32>
    %21 = vector.broadcast %19 : vector<512x1xf32> to vector<512x128xf32>
    %22 = vector.broadcast %20 : vector<1x128xf32> to vector<512x128xf32>
    %23 = arith.mulf %21, %22 : vector<512x128xf32>
    %24 = arith.addf %18, %23 : vector<512x128xf32>
    %cst = arith.constant dense<0.000000e+00> : vector<128xf32>
    %25 = vector.multi_reduction <add>, %24, %cst [0] : vector<512x128xf32> to vector<128xf32>
    %26 = vector.shape_cast %25 : vector<128xf32> to vector<1x128xf32>
    %cst_3 = arith.constant 5.120000e+02 : f32
    %27 = vector.broadcast %cst_3 : f32 to vector<1x128xf32>
    %28 = arith.divf %26, %27 : vector<1x128xf32>
    %29 = arith.mulf %24, %24 : vector<512x128xf32>
    %cst_4 = arith.constant dense<0.000000e+00> : vector<128xf32>
    %30 = vector.multi_reduction <add>, %29, %cst_4 [0] : vector<512x128xf32> to vector<128xf32>
    %31 = vector.shape_cast %30 : vector<128xf32> to vector<1x128xf32>
    %cst_5 = arith.constant 5.120000e+02 : f32
    %32 = vector.broadcast %cst_5 : f32 to vector<1x128xf32>
    %33 = arith.divf %31, %32 : vector<1x128xf32>
    %c0_6 = arith.constant 0 : index
    %c0_7 = arith.constant 0 : index
    %34 = vector.load %arg4[%c0_6, %c0_7] : memref<4x128xf32, #tpu.memory_space<vmem>>, vector<1x128xf32>
    %35 = arith.mulf %28, %28 : vector<1x128xf32>
    %36 = arith.subf %33, %35 : vector<1x128xf32>
    %cst_8 = arith.constant 1.000000e-03 : f32
    %37 = vector.broadcast %cst_8 : f32 to vector<1x128xf32>
    %38 = arith.addf %36, %37 : vector<1x128xf32>
    %39 = math.rsqrt %38 : vector<1x128xf32>
    %40 = arith.mulf %34, %39 : vector<1x128xf32>
    %c1 = arith.constant 1 : index
    %c0_9 = arith.constant 0 : index
    %41 = vector.load %arg4[%c1, %c0_9] : memref<4x128xf32, #tpu.memory_space<vmem>>, vector<1x128xf32>
    %42 = arith.mulf %28, %40 : vector<1x128xf32>
    %43 = arith.subf %41, %42 : vector<1x128xf32>
    %cst_10 = arith.constant 0.000000e+00 : f32
    %44 = vector.broadcast %cst_10 : f32 to vector<2x1x18x128xf32>
    %c0_11 = arith.constant 0 : index
    %c0_12 = arith.constant 0 : index
    %c0_13 = arith.constant 0 : index
    %c0_14 = arith.constant 0 : index
    %45 = vector.load %arg6[%c0_11, %c0_12, %c0_13, %c0_14] : memref<2x18x18x128xf32, #tpu.memory_space<vmem>>, vector<2x1x18x128xf32>
    tpu.vector_store %arg6[%c0_11, %c0_12, %c0_13, %c0_14], %44 {strides = array<i32>} : memref<2x18x18x128xf32, #tpu.memory_space<vmem>>, vector<2x1x18x128xf32>,
    %c0_15 = arith.constant 0 : index
    %c17 = arith.constant 17 : index
    %c0_16 = arith.constant 0 : index
    %c0_17 = arith.constant 0 : index
    %46 = vector.load %arg6[%c0_15, %c17, %c0_16, %c0_17] : memref<2x18x18x128xf32, #tpu.memory_space<vmem>>, vector<2x1x18x128xf32>
    tpu.vector_store %arg6[%c0_15, %c17, %c0_16, %c0_17], %44 {strides = array<i32>} : memref<2x18x18x128xf32, #tpu.memory_space<vmem>>, vector<2x1x18x128xf32>,
    %cst_18 = arith.constant 0.000000e+00 : f32
    %47 = vector.broadcast %cst_18 : f32 to vector<2x18x1x128xf32>
    %c0_19 = arith.constant 0 : index
    %c0_20 = arith.constant 0 : index
    %c0_21 = arith.constant 0 : index
    %c0_22 = arith.constant 0 : index
    %48 = vector.load %arg6[%c0_19, %c0_20, %c0_21, %c0_22] : memref<2x18x18x128xf32, #tpu.memory_space<vmem>>, vector<2x18x1x128xf32>
    tpu.vector_store %arg6[%c0_19, %c0_20, %c0_21, %c0_22], %47 {strides = array<i32>} : memref<2x18x18x128xf32, #tpu.memory_space<vmem>>, vector<2x18x1x128xf32>,
    %c0_23 = arith.constant 0 : index
    %c0_24 = arith.constant 0 : index
    %c17_25 = arith.constant 17 : index
    %c0_26 = arith.constant 0 : index
    %49 = vector.load %arg6[%c0_23, %c0_24, %c17_25, %c0_26] : memref<2x18x18x128xf32, #tpu.memory_space<vmem>>, vector<2x18x1x128xf32>
    tpu.vector_store %arg6[%c0_23, %c0_24, %c17_25, %c0_26], %47 {strides = array<i32>} : memref<2x18x18x128xf32, #tpu.memory_space<vmem>>, vector<2x18x1x128xf32>,
    %50 = vector.broadcast %40 : vector<1x128xf32> to vector<512x128xf32>
    %51 = arith.mulf %24, %50 : vector<512x128xf32>
    %52 = vector.broadcast %43 : vector<1x128xf32> to vector<512x128xf32>
    %53 = arith.addf %51, %52 : vector<512x128xf32>
    %54 = vector.shape_cast %53 : vector<512x128xf32> to vector<2x16x16x128xf32>
    %c0_27 = arith.constant 0 : index
    %c1_28 = arith.constant 1 : index
    %c1_29 = arith.constant 1 : index
    %c0_30 = arith.constant 0 : index
    %55 = vector.load %arg6[%c0_27, %c1_28, %c1_29, %c0_30] : memref<2x18x18x128xf32, #tpu.memory_space<vmem>>, vector<2x16x16x128xf32>
    tpu.vector_store %arg6[%c0_27, %c1_28, %c1_29, %c0_30], %54 {strides = array<i32>} : memref<2x18x18x128xf32, #tpu.memory_space<vmem>>, vector<2x16x16x128xf32>,
    %c0_31 = arith.constant 0 : index
    %c0_32 = arith.constant 0 : index
    %c0_33 = arith.constant 0 : index
    %56 = vector.load %arg3[%c0_31, %c0_32, %c0_33] : memref<3x3x128xf32, #tpu.memory_space<vmem>>, vector<3x3x128xf32>
    %c0_34 = arith.constant 0 : index
    %c0_35 = arith.constant 0 : index
    %c0_36 = arith.constant 0 : index
    %c0_37 = arith.constant 0 : index
    %57 = vector.load %arg6[%c0_34, %c0_35, %c0_36, %c0_37] : memref<2x18x18x128xf32, #tpu.memory_space<vmem>>, vector<2x16x16x128xf32>
    %58 = vector.extract_strided_slice %56 {offsets = [0, 0, 0], sizes = [1, 1, 128], strides = [1, 1, 1]} : vector<3x3x128xf32> to vector<1x1x128xf32>
    %59 = vector.shape_cast %58 : vector<1x1x128xf32> to vector<128xf32>
    %60 = vector.shape_cast %59 : vector<128xf32> to vector<1x1x1x128xf32>
    %61 = vector.broadcast %60 : vector<1x1x1x128xf32> to vector<2x16x16x128xf32>
    %62 = arith.mulf %57, %61 : vector<2x16x16x128xf32>
    %c0_38 = arith.constant 0 : index
    %c0_39 = arith.constant 0 : index
    %c1_40 = arith.constant 1 : index
    %c0_41 = arith.constant 0 : index
    %63 = vector.load %arg6[%c0_38, %c0_39, %c1_40, %c0_41] : memref<2x18x18x128xf32, #tpu.memory_space<vmem>>, vector<2x16x16x128xf32>
    %64 = vector.extract_strided_slice %56 {offsets = [0, 1, 0], sizes = [1, 1, 128], strides = [1, 1, 1]} : vector<3x3x128xf32> to vector<1x1x128xf32>
    %65 = vector.shape_cast %64 : vector<1x1x128xf32> to vector<128xf32>
    %66 = vector.shape_cast %65 : vector<128xf32> to vector<1x1x1x128xf32>
    %67 = vector.broadcast %66 : vector<1x1x1x128xf32> to vector<2x16x16x128xf32>
    %68 = arith.mulf %63, %67 : vector<2x16x16x128xf32>
    %69 = arith.addf %62, %68 : vector<2x16x16x128xf32>
    %c0_42 = arith.constant 0 : index
    %c0_43 = arith.constant 0 : index
    %c2 = arith.constant 2 : index
    %c0_44 = arith.constant 0 : index
    %70 = vector.load %arg6[%c0_42, %c0_43, %c2, %c0_44] : memref<2x18x18x128xf32, #tpu.memory_space<vmem>>, vector<2x16x16x128xf32>
    %71 = vector.extract_strided_slice %56 {offsets = [0, 2, 0], sizes = [1, 1, 128], strides = [1, 1, 1]} : vector<3x3x128xf32> to vector<1x1x128xf32>
    %72 = vector.shape_cast %71 : vector<1x1x128xf32> to vector<128xf32>
    %73 = vector.shape_cast %72 : vector<128xf32> to vector<1x1x1x128xf32>
    %74 = vector.broadcast %73 : vector<1x1x1x128xf32> to vector<2x16x16x128xf32>
    %75 = arith.mulf %70, %74 : vector<2x16x16x128xf32>
    %76 = arith.addf %69, %75 : vector<2x16x16x128xf32>
    %c0_45 = arith.constant 0 : index
    %c1_46 = arith.constant 1 : index
    %c0_47 = arith.constant 0 : index
    %c0_48 = arith.constant 0 : index
    %77 = vector.load %arg6[%c0_45, %c1_46, %c0_47, %c0_48] : memref<2x18x18x128xf32, #tpu.memory_space<vmem>>, vector<2x16x16x128xf32>
    %78 = vector.extract_strided_slice %56 {offsets = [1, 0, 0], sizes = [1, 1, 128], strides = [1, 1, 1]} : vector<3x3x128xf32> to vector<1x1x128xf32>
    %79 = vector.shape_cast %78 : vector<1x1x128xf32> to vector<128xf32>
    %80 = vector.shape_cast %79 : vector<128xf32> to vector<1x1x1x128xf32>
    %81 = vector.broadcast %80 : vector<1x1x1x128xf32> to vector<2x16x16x128xf32>
    %82 = arith.mulf %77, %81 : vector<2x16x16x128xf32>
    %83 = arith.addf %76, %82 : vector<2x16x16x128xf32>
    %c0_49 = arith.constant 0 : index
    %c1_50 = arith.constant 1 : index
    %c1_51 = arith.constant 1 : index
    %c0_52 = arith.constant 0 : index
    %84 = vector.load %arg6[%c0_49, %c1_50, %c1_51, %c0_52] : memref<2x18x18x128xf32, #tpu.memory_space<vmem>>, vector<2x16x16x128xf32>
    %85 = vector.extract_strided_slice %56 {offsets = [1, 1, 0], sizes = [1, 1, 128], strides = [1, 1, 1]} : vector<3x3x128xf32> to vector<1x1x128xf32>
    %86 = vector.shape_cast %85 : vector<1x1x128xf32> to vector<128xf32>
    %87 = vector.shape_cast %86 : vector<128xf32> to vector<1x1x1x128xf32>
    %88 = vector.broadcast %87 : vector<1x1x1x128xf32> to vector<2x16x16x128xf32>
    %89 = arith.mulf %84, %88 : vector<2x16x16x128xf32>
    %90 = arith.addf %83, %89 : vector<2x16x16x128xf32>
    %c0_53 = arith.constant 0 : index
    %c1_54 = arith.constant 1 : index
    %c2_55 = arith.constant 2 : index
    %c0_56 = arith.constant 0 : index
    %91 = vector.load %arg6[%c0_53, %c1_54, %c2_55, %c0_56] : memref<2x18x18x128xf32, #tpu.memory_space<vmem>>, vector<2x16x16x128xf32>
    %92 = vector.extract_strided_slice %56 {offsets = [1, 2, 0], sizes = [1, 1, 128], strides = [1, 1, 1]} : vector<3x3x128xf32> to vector<1x1x128xf32>
    %93 = vector.shape_cast %92 : vector<1x1x128xf32> to vector<128xf32>
    %94 = vector.shape_cast %93 : vector<128xf32> to vector<1x1x1x128xf32>
    %95 = vector.broadcast %94 : vector<1x1x1x128xf32> to vector<2x16x16x128xf32>
    %96 = arith.mulf %91, %95 : vector<2x16x16x128xf32>
    %97 = arith.addf %90, %96 : vector<2x16x16x128xf32>
    %c0_57 = arith.constant 0 : index
    %c2_58 = arith.constant 2 : index
    %c0_59 = arith.constant 0 : index
    %c0_60 = arith.constant 0 : index
    %98 = vector.load %arg6[%c0_57, %c2_58, %c0_59, %c0_60] : memref<2x18x18x128xf32, #tpu.memory_space<vmem>>, vector<2x16x16x128xf32>
    %99 = vector.extract_strided_slice %56 {offsets = [2, 0, 0], sizes = [1, 1, 128], strides = [1, 1, 1]} : vector<3x3x128xf32> to vector<1x1x128xf32>
    %100 = vector.shape_cast %99 : vector<1x1x128xf32> to vector<128xf32>
    %101 = vector.shape_cast %100 : vector<128xf32> to vector<1x1x1x128xf32>
    %102 = vector.broadcast %101 : vector<1x1x1x128xf32> to vector<2x16x16x128xf32>
    %103 = arith.mulf %98, %102 : vector<2x16x16x128xf32>
    %104 = arith.addf %97, %103 : vector<2x16x16x128xf32>
    %c0_61 = arith.constant 0 : index
    %c2_62 = arith.constant 2 : index
    %c1_63 = arith.constant 1 : index
    %c0_64 = arith.constant 0 : index
    %105 = vector.load %arg6[%c0_61, %c2_62, %c1_63, %c0_64] : memref<2x18x18x128xf32, #tpu.memory_space<vmem>>, vector<2x16x16x128xf32>
    %106 = vector.extract_strided_slice %56 {offsets = [2, 1, 0], sizes = [1, 1, 128], strides = [1, 1, 1]} : vector<3x3x128xf32> to vector<1x1x128xf32>
    %107 = vector.shape_cast %106 : vector<1x1x128xf32> to vector<128xf32>
    %108 = vector.shape_cast %107 : vector<128xf32> to vector<1x1x1x128xf32>
    %109 = vector.broadcast %108 : vector<1x1x1x128xf32> to vector<2x16x16x128xf32>
    %110 = arith.mulf %105, %109 : vector<2x16x16x128xf32>
    %111 = arith.addf %104, %110 : vector<2x16x16x128xf32>
    %c0_65 = arith.constant 0 : index
    %c2_66 = arith.constant 2 : index
    %c2_67 = arith.constant 2 : index
    %c0_68 = arith.constant 0 : index
    %112 = vector.load %arg6[%c0_65, %c2_66, %c2_67, %c0_68] : memref<2x18x18x128xf32, #tpu.memory_space<vmem>>, vector<2x16x16x128xf32>
    %113 = vector.extract_strided_slice %56 {offsets = [2, 2, 0], sizes = [1, 1, 128], strides = [1, 1, 1]} : vector<3x3x128xf32> to vector<1x1x128xf32>
    %114 = vector.shape_cast %113 : vector<1x1x128xf32> to vector<128xf32>
    %115 = vector.shape_cast %114 : vector<128xf32> to vector<1x1x1x128xf32>
    %116 = vector.broadcast %115 : vector<1x1x1x128xf32> to vector<2x16x16x128xf32>
    %117 = arith.mulf %112, %116 : vector<2x16x16x128xf32>
    %118 = arith.addf %111, %117 : vector<2x16x16x128xf32>
    %119 = vector.shape_cast %118 : vector<2x16x16x128xf32> to vector<512x128xf32>
    %cst_69 = arith.constant dense<0.000000e+00> : vector<128xf32>
    %120 = vector.multi_reduction <add>, %119, %cst_69 [0] : vector<512x128xf32> to vector<128xf32>
    %121 = vector.shape_cast %120 : vector<128xf32> to vector<1x128xf32>
    %cst_70 = arith.constant 5.120000e+02 : f32
    %122 = vector.broadcast %cst_70 : f32 to vector<1x128xf32>
    %123 = arith.divf %121, %122 : vector<1x128xf32>
    %124 = arith.mulf %119, %119 : vector<512x128xf32>
    %cst_71 = arith.constant dense<0.000000e+00> : vector<128xf32>
    %125 = vector.multi_reduction <add>, %124, %cst_71 [0] : vector<512x128xf32> to vector<128xf32>
    %126 = vector.shape_cast %125 : vector<128xf32> to vector<1x128xf32>
    %cst_72 = arith.constant 5.120000e+02 : f32
    %127 = vector.broadcast %cst_72 : f32 to vector<1x128xf32>
    %128 = arith.divf %126, %127 : vector<1x128xf32>
    %c2_73 = arith.constant 2 : index
    %c0_74 = arith.constant 0 : index
    %129 = vector.load %arg4[%c2_73, %c0_74] : memref<4x128xf32, #tpu.memory_space<vmem>>, vector<1x128xf32>
    %130 = arith.mulf %123, %123 : vector<1x128xf32>
    %131 = arith.subf %128, %130 : vector<1x128xf32>
    %cst_75 = arith.constant 9.99999974E-6 : f32
    %132 = vector.broadcast %cst_75 : f32 to vector<1x128xf32>
    %133 = arith.addf %131, %132 : vector<1x128xf32>
    %134 = math.rsqrt %133 : vector<1x128xf32>
    %135 = arith.mulf %129, %134 : vector<1x128xf32>
    %c3 = arith.constant 3 : index
    %c0_76 = arith.constant 0 : index
    %136 = vector.load %arg4[%c3, %c0_76] : memref<4x128xf32, #tpu.memory_space<vmem>>, vector<1x128xf32>
    %137 = arith.mulf %123, %135 : vector<1x128xf32>
    %138 = arith.subf %136, %137 : vector<1x128xf32>
    %c0_77 = arith.constant 0 : index
    %c1_78 = arith.constant 1 : index
    %c1_79 = arith.constant 1 : index
    %c0_80 = arith.constant 0 : index
    %139 = vector.load %arg6[%c0_77, %c1_78, %c1_79, %c0_80] : memref<2x18x18x128xf32, #tpu.memory_space<vmem>>, vector<2x16x16x128xf32>
    %140 = vector.broadcast %135 : vector<1x128xf32> to vector<512x128xf32>
    %141 = arith.mulf %119, %140 : vector<512x128xf32>
    %142 = vector.broadcast %138 : vector<1x128xf32> to vector<512x128xf32>
    %143 = arith.addf %141, %142 : vector<512x128xf32>
    %144 = vector.shape_cast %143 : vector<512x128xf32> to vector<2x16x16x128xf32>
    %145 = arith.maximumf %139, %144 : vector<2x16x16x128xf32>
    %c0_81 = arith.constant 0 : index
    %c0_82 = arith.constant 0 : index
    %c0_83 = arith.constant 0 : index
    %c0_84 = arith.constant 0 : index
    %146 = vector.load %arg5[%c0_81, %c0_82, %c0_83, %c0_84] : memref<2x16x16x128xf32, #tpu.memory_space<vmem>>, vector<2x16x16x128xf32>
    tpu.vector_store %arg5[%c0_81, %c0_82, %c0_83, %c0_84], %145 {strides = array<i32>} : memref<2x16x16x128xf32, #tpu.memory_space<vmem>>, vector<2x16x16x128xf32>,
    return
  }
  func.func @transform_0(%arg0: i32) -> (i32, i32) {
    %c0_i32 = arith.constant 0 : i32
    %c0_i32_0 = arith.constant 0 : i32
    %c0_i32_1 = arith.constant 0 : i32
    return %c0_i32, %c0_i32_0 : i32, i32
  }
  func.func @transform_1(%arg0: i32) -> (i32, i32) {
    %c0_i32 = arith.constant 0 : i32
    %c0_i32_0 = arith.constant 0 : i32
    return %c0_i32, %arg0 : i32, i32
  }
  func.func @transform_2(%arg0: i32) -> (i32, i32, i32) {
    %c0_i32 = arith.constant 0 : i32
    %c0_i32_0 = arith.constant 0 : i32
    %c0_i32_1 = arith.constant 0 : i32
    return %c0_i32, %c0_i32_0, %arg0 : i32, i32, i32
  }
  func.func @transform_3(%arg0: i32) -> (i32, i32) {
    %c0_i32 = arith.constant 0 : i32
    %c0_i32_0 = arith.constant 0 : i32
    return %c0_i32, %arg0 : i32, i32
  }
  func.func @transform_4(%arg0: i32) -> (i32, i32, i32, i32) {
    %c0_i32 = arith.constant 0 : i32
    %c0_i32_0 = arith.constant 0 : i32
    %c0_i32_1 = arith.constant 0 : i32
    %c0_i32_2 = arith.constant 0 : i32
    return %c0_i32, %c0_i32_0, %c0_i32_1, %arg0 : i32, i32, i32, i32
  }
}

</mosaic_0001>

<bundles_post_ra>
// kernel: tpu_custom_call.1
= control target key start
LH: loop header
LB: loop body
LE: loop exit
PB: predicated region body
PF: predicated region fallthrough
CT: control target
= control target key end

     0   :  { %9 = vsyncpa [#allocation5], 0  ;;  %s10350_s0 = inlined_call_operand.vmem [shape: f32[512,4], index: 0, kind: input, shape index: {}]   ;;  %s10351_s1 = inlined_call_operand.vmem [shape: f32[4,256], index: 1, kind: input, shape index: {}]   ;;  %s10352_s2 = inlined_call_operand.vmem [shape: f32[3,3,256], index: 2, kind: input, shape index: {}]   ;;  %s10353_s3 = inlined_call_operand.vmem [shape: f32[4,256], index: 3, kind: input, shape index: {}]   ;;  %s10354_s4 = inlined_call_operand.hbm [shape: f32[2,16,16,256], index: 4, kind: output, shape index: {}]  }
   0x1   :  { %11 = vsyncpa [#allocation5 + $0x1], 0  ;;  %s4966_s15 = smov 0   ;;  %s4968_s16 = smov 0  }
   0x2   :  { %s4970_s17 = smov 0   ;;  %s4972_s18 = smov 0  }
   0x3 LB: > { %s4987_s19 = sadd.s32 4294967295, %s4930_s18   ;;  %s4659_s20 = sadd.s32 4294967294, %s4930_s18   ;;  %s4930_s18 = sphi %s4972_s18, %s11549_s18   ;;  %s4926_s17 = sphi %s4970_s17, %s11548_s17   ;;  %s4922_s16 = sphi %s4968_s16, %s11547_s16   ;;  %s4918_s15 = sphi %s4966_s15, %s11546_s15  }
   0x4   : > { %s4991_s21 = sadd.s32 1, %s4930_s18   ;;  %s71_s22 = sadd.s32 1, %s4926_s17 }
   0x5   : > { %s68_s23 = ssub.s32 %s4930_s18, %s4991_s21  ;;  %p78_p0 = scmp.ne.s32.totalorder %s4926_s17, %s4922_s16 }
   0x6   : > { %p69_p1 = scmp.eq.s32.totalorder %s68_s23, 0  ;;  %p79_p2 = scmp.eq.s32.totalorder %s4930_s18, 0 }
   0x7   : > { %p134_p3 = scmp.eq.s32.totalorder %s4987_s19, 1  ;;  %p139_p4 = scmp.ne.s32.totalorder %s4922_s16, %s4918_s15 }
   0x8   : > { %s5003_s24 = scalar_select %p69_p1, %s4926_s17, %s71_s22  }
   0x9   : > { %p80_p5 = por %p79_p2, %p78_p0  ;;  %p5005_p6 = por %p134_p3, %p78_p0 }
   0xa   : > { %p140_p7 = scmp.eq.s32.totalorder %s4659_s20, 1  ;;  %p4661_p9 = scmp.ge.s32.totalorder %s4930_s18, 2 }
   0xc   : > { %p5009_p8 = por %p140_p7, %p139_p4  ;;  %159 = sbr.rel (%p4661_p9) target bundleno = 25 (0x19), region = 20 }
  0x11   : > { %169 = sbr.rel (!%p80_p5) target bundleno = 25 (0x19), region = 28  ;;  %s171_s27 = sand.u32 (%p80_p5), 1, %s4926_s17  }
  0x12   : > { %s4662_s28 = sshll.u32 (%p80_p5), %s4930_s18, 2  ;;  %s4671_s29 = smul.u32 (%p80_p5), 12, %s171_s27 }
  0x13   : > { %s175_s6 = scalar_lea.vmem (%p80_p5), %s10352_s2, %s4662_s28 }
  0x14   : > { %v192_v0 = vld [vmem:[%s175_s6] sm:$0xf] (%p80_p5)  ;;  %v194_v1 = vld [vmem:[%s175_s6 + $0x8] sm:$0xf] (%p80_p5)  ;;  %v196_v2 = vld [vmem:[%s175_s6 + $0x10] sm:$0xf] (%p80_p5) }
  0x15   : > { %s173_s7 = scalar_lea.vmem (%p80_p5), [#allocation3], %s4671_s29 }
  0x16   : > { %193 = vst [vmem:[%s173_s7] sm:$0xf] %v192_v0 }
  0x17   : > { %195 = vst [vmem:[%s173_s7 + $0x4] sm:$0xf] %v194_v1 }
  0x18   : > { %197 = vst [vmem:[%s173_s7 + $0x8] sm:$0xf] %v196_v2 }
  0x19 PF: > { %p4663_p10 = scmp.ge.s32.totalorder %s4930_s18, 1  ;;  %p233_p11 = scmp.lt.s32.totalorder %s4930_s18, 3 }
  0x1b   : > { %p234_p12 = pnand %p4663_p10, %p233_p11 }
  0x1d   : > { %237 = sbr.rel (%p234_p12) target bundleno = 1571 (0x623), region = 73 }
  0x22   : > { %v5026_v3 = vld [vmem:[%s10350_s0 + $0x20] sm:$0xff]  ;;  %v5031_v4 = vld [vmem:[%s10350_s0 + $0x10] sm:$0xff]  ;;  %v4932_v6 = vmov 0   ;;  %v5044_v7 = vld [vmem:[%s10350_s0 + $0x28] sm:$0xff]  ;;  %p273_p13 = scmp.lt.s32.totalorder %s4987_s19, 1  ;;  %s4668_s5 = sshll.u32 %s4987_s19, 3 }
  0x23   : > { %v5036_v5 = vld [vmem:[%s10350_s0] sm:$0xff]  ;;  %4723 = vset.pattern.permute.xlu2 %v4932_v6  ;;  %4722 = vset.pattern.permute.xlu1 %v4932_v6  ;;  %v5049_v8 = vld [vmem:[%s10350_s0 + $0x18] sm:$0xff]  ;;  %v5054_v9 = vld [vmem:[%s10350_s0 + $0x8] sm:$0xff]  ;;  %s4888_s20 = scalar_lea.hbm %s10354_s4, 1024 }
  0x24   : > { %4721 = vset.pattern.permute.xlu0 %v4932_v6  ;;  %368 = vperm.xlu2 %4723, %v5026_v3   ;;  %10524 = vst [vmem:[#allocation7_spill] sm:$0xff] %v5054_v9  ;;  %v5062_v10 = vld [vmem:[%s10350_s0 + $0x40] sm:$0xff]  ;;  %v5067_v11 = vld [vmem:[%s10350_s0 + $0x38] sm:$0xff]  ;;  %v5072_v12 = vld [vmem:[%s10350_s0 + $0x30] sm:$0xff]  ;;  %s5860_s23 = scalar_select %p273_p13, %s4987_s19, 1 }
  0x25   : > { %358 = vperm.xlu1 %4722, %v5031_v4   ;;  %348 = vperm.xlu0 %4721, %v5036_v5   ;;  %v5080_v13 = vld [vmem:[%s10350_s0 + $0x58] sm:$0xff]  ;;  %v5085_v14 = vld [vmem:[%s10350_s0 + $0x50] sm:$0xff]  ;;  %v5090_v15 = vld [vmem:[%s10350_s0 + $0x48] sm:$0xff]  ;;  %s4563_s19 = scalar_lea.hbm %s10354_s4, %s4668_s5 }
  0x26   : > { %v5098_v16 = vld [vmem:[%s10350_s0 + $0x70] sm:$0xff]  ;;  %v5103_v17 = vld [vmem:[%s10350_s0 + $0x68] sm:$0xff]  ;;  %v5108_v18 = vld [vmem:[%s10350_s0 + $0x60] sm:$0xff]  ;;  %s4665_s27 = sshll.u32 %s5860_s23, 2  ;;  %s7247_s23 = sand.u32 1, %s4922_s16  }
  0x27   : > { %v5116_v19 = vld [vmem:[%s10350_s0 + $0x88] sm:$0xff]  ;;  %v5121_v20 = vld [vmem:[%s10350_s0 + $0x80] sm:$0xff]  ;;  %v5126_v21 = vld [vmem:[%s10350_s0 + $0x78] sm:$0xff]  ;;  %s276_s30 = scalar_lea.vmem %s10351_s1, %s4665_s27  ;;  %s6955_s22 = scalar_lea.vmem %s10353_s3, %s4665_s27 }
  0x28   : > { %v5134_v22 = vld [vmem:[%s10350_s0 + $0xa0] sm:$0xff]  ;;  %v5139_v23 = vld [vmem:[%s10350_s0 + $0x98] sm:$0xff]  ;;  %v5144_v24 = vld [vmem:[%s10350_s0 + $0x90] sm:$0xff]  ;;  %s4672_s27 = smul.u32 12, %s7247_s23  ;;  %s4664_s29 = sshll.u32 %s7247_s23, 9 }
  0x29   : > { %v5152_v25 = vld [vmem:[%s10350_s0 + $0xb8] sm:$0xff]  ;;  %v5157_v26 = vld [vmem:[%s10350_s0 + $0xb0] sm:$0xff]  ;;  %v5162_v27 = vld [vmem:[%s10350_s0 + $0xa8] sm:$0xff]  ;;  %s4566_s9 = sshll.u32 %s4563_s19, 4  ;;  %s4553_s10 = scalar_lea.sflag [#allocation5], %s7247_s23  ;;  %s4567_s9 = int_to_ptr.hbm [resolvable:$true] %s4566_s9 }
  0x2a   : > { %v5170_v28 = vld [vmem:[%s10350_s0 + $0xd0] sm:$0xff]  ;;  %v5175_v29 = vld [vmem:[%s10350_s0 + $0xc8] sm:$0xff]  ;;  %v5180_v30 = vld [vmem:[%s10350_s0 + $0xc0] sm:$0xff]  ;;  %s7251_s28 = scalar_lea.vmem [#allocation3], %s4672_s27  ;;  %s4882_s11 = sshra.s32 %s4567_s9, 4  ;;  %s4883_s11 = int_to_ptr.hbm [resolvable:$true] %s4882_s11 }
  0x2b   : > { %v5188_v31 = vld [vmem:[%s10350_s0 + $0xe8] sm:$0xff]  ;;  %v5193_v32 = vld [vmem:[%s10350_s0 + $0xe0] sm:$0xff]  ;;  %v5198_v33 = vld [vmem:[%s10350_s0 + $0xd8] sm:$0xff]  ;;  %s4884_s12 = scalar_lea.hbm %s4883_s11, 512  ;;  %p4889_p3 = scmp.lt.s32.totalorder %s4883_s11, %s10354_s4 }
  0x2c   : > { %373 = vperm.xlu2 %4723, %v5044_v7   ;;  %10525 = vst [vmem:[#allocation8_spill] sm:$0xff] %v5193_v32  ;;  %v5206_v34 = vld [vmem:[%s10350_s0 + $0x100] sm:$0xff]  ;;  %v5211_v35 = vld [vmem:[%s10350_s0 + $0xf8] sm:$0xff]  ;;  %v5216_v36 = vld [vmem:[%s10350_s0 + $0xf0] sm:$0xff]  ;;  %p4885_p0 = scmp.ne.s32.totalorder %s4883_s11, %s4884_s12  ;;  %p4890_p4 = scmp.lt.s32.totalorder %s4888_s20, %s4884_s12 }
  0x2d   : > { %363 = vperm.xlu1 %4722, %v5049_v8   ;;  %353 = vperm.xlu0 %4721, %v5054_v9   ;;  %10526 = vst [vmem:[#allocation9_spill] sm:$0xff] %v5206_v34  ;;  %v5224_v37 = vld [vmem:[%s10350_s0 + $0x118] sm:$0xff]  ;;  %v5229_v38 = vld [vmem:[%s10350_s0 + $0x110] sm:$0xff]  ;;  %v5234_v39 = vld [vmem:[%s10350_s0 + $0x108] sm:$0xff] }
  0x2e   : > { %10527 = vst [vmem:[#allocation10_spill] sm:$0xff] %v5211_v35  ;;  %v5244_v41 = vld [vmem:[%s10350_s0 + $0x130] sm:$0xff]  ;;  %v5249_v42 = vld [vmem:[%s10350_s0 + $0x128] sm:$0xff]  ;;  %v5254_v43 = vld [vmem:[%s10350_s0 + $0x120] sm:$0xff]  ;;  %p4886_p1 = pnand %p4885_p0, %p5005_p6  ;;  %p4891_p5 = por %p4890_p4, %p4889_p3 }
  0x2f   : > { %10528 = vst [vmem:[#allocation11_spill] sm:$0xff] %v5224_v37  ;;  %v5264_v45 = vld [vmem:[%s10350_s0 + $0x148] sm:$0xff]  ;;  %v5269_v46 = vld [vmem:[%s10350_s0 + $0x140] sm:$0xff]  ;;  %v5274_v47 = vld [vmem:[%s10350_s0 + $0x138] sm:$0xff] }
  0x30   : > { %10529 = vst [vmem:[#allocation12_spill] sm:$0xff] %v5229_v38  ;;  %v5284_v49 = vld [vmem:[%s10350_s0 + $0x160] sm:$0xff]  ;;  %v5289_v50 = vld [vmem:[%s10350_s0 + $0x158] sm:$0xff]  ;;  %v5294_v51 = vld [vmem:[%s10350_s0 + $0x150] sm:$0xff]  ;;  %p4887_p2 = pneg %p4886_p1 }
  0x31   : > { %10531 = vst [vmem:[#allocation14_spill] sm:$0xff] %v5244_v41  ;;  %v5308_v55 = vld [vmem:[%s10350_s0 + $0x178] sm:$0xff]  ;;  %v5313_v56 = vld [vmem:[%s10350_s0 + $0x170] sm:$0xff]  ;;  %v5318_v57 = vld [vmem:[%s10350_s0 + $0x168] sm:$0xff] }
  0x32   : > { %v5332_v61 = vld [vmem:[%s10350_s0 + $0x190] sm:$0xff]  ;;  %v5337_v62 = vld [vmem:[%s10350_s0 + $0x188] sm:$0xff]  ;;  %v5342_v63 = vld [vmem:[%s10350_s0 + $0x180] sm:$0xff]  ;;  %p4892_p7 = pnand %p4891_p5, %p4887_p2 }
  0x33   : > { %v5356_v6 = vld [vmem:[%s10350_s0 + $0x1a8] sm:$0xff] }
  0x34   : > { %388 = vperm.xlu2 %4723, %v5062_v10  }
  0x35   : > { %383 = vperm.xlu1 %4722, %v5067_v11   ;;  %378 = vperm.xlu0 %4721, %v5072_v12  }
  0x3c   : > { %403 = vperm.xlu2 %4723, %v5080_v13  }
  0x3d   : > { %398 = vperm.xlu1 %4722, %v5085_v14   ;;  %393 = vperm.xlu0 %4721, %v5090_v15  }
  0x44   : > { %418 = vperm.xlu2 %4723, %v5098_v16  }
  0x45   : > { %413 = vperm.xlu1 %4722, %v5103_v17   ;;  %408 = vperm.xlu0 %4721, %v5108_v18  }
  0x4c   : > { %433 = vperm.xlu2 %4723, %v5116_v19  }
  0x4d   : > { %428 = vperm.xlu1 %4722, %v5121_v20   ;;  %423 = vperm.xlu0 %4721, %v5126_v21  }
  0x54   : > { %448 = vperm.xlu2 %4723, %v5134_v22  }
  0x55   : > { %443 = vperm.xlu1 %4722, %v5139_v23   ;;  %438 = vperm.xlu0 %4721, %v5144_v24  }
  0x5c   : > { %463 = vperm.xlu2 %4723, %v5152_v25  }
  0x5d   : > { %458 = vperm.xlu1 %4722, %v5157_v26   ;;  %453 = vperm.xlu0 %4721, %v5162_v27  }
  0x64   : > { %478 = vperm.xlu2 %4723, %v5170_v28  }
  0x65   : > { %473 = vperm.xlu1 %4722, %v5175_v29   ;;  %468 = vperm.xlu0 %4721, %v5180_v30  }
  0x6c   : > { %493 = vperm.xlu2 %4723, %v5188_v31  }
  0x6d   : > { %488 = vperm.xlu1 %4722, %v5193_v32   ;;  %483 = vperm.xlu0 %4721, %v5198_v33  }
  0x74   : > { %508 = vperm.xlu2 %4723, %v5206_v34  }
  0x75   : > { %503 = vperm.xlu1 %4722, %v5211_v35   ;;  %498 = vperm.xlu0 %4721, %v5216_v36  }
  0x7c   : > { %523 = vperm.xlu2 %4723, %v5224_v37  }
  0x7d   : > { %518 = vperm.xlu1 %4722, %v5229_v38   ;;  %513 = vperm.xlu0 %4721, %v5234_v39  }
  0x7e   : > { %v5239_v40 = vpop.permute.xlu2 %368 }
  0x7f   : > { %10530 = vst [vmem:[#allocation13_spill] sm:$0xff] %v5239_v40  ;;  %v5404_v40 = vld [vmem:[%s10350_s0 + $0x1d8] sm:$0xff] }
  0x80   : > { %10553 = vst [vmem:[#allocation36_spill] sm:$0xff] %v5404_v40 }
  0x84   : > { %538 = vperm.xlu2 %4723, %v5244_v41  }
  0x85   : > { %533 = vperm.xlu1 %4722, %v5249_v42   ;;  %528 = vperm.xlu0 %4721, %v5254_v43  }
  0x86   : > { %v5259_v44 = vpop.permute.xlu2 %373 }
  0x87   : > { %10532 = vst [vmem:[#allocation15_spill] sm:$0xff] %v5259_v44  ;;  %v5390_v44 = vld [vmem:[%s10350_s0 + $0x1b0] sm:$0xff] }
  0x88   : > { %10549 = vst [vmem:[#allocation32_spill] sm:$0xff] %v5390_v44 }
  0x8c   : > { %553 = vperm.xlu2 %4723, %v5264_v45  }
  0x8d   : > { %548 = vperm.xlu1 %4722, %v5269_v46   ;;  %543 = vperm.xlu0 %4721, %v5274_v47  }
  0x8e   : > { %v5279_v48 = vpop.permute.xlu2 %388 }
  0x8f   : > { %10533 = vst [vmem:[#allocation16_spill] sm:$0xff] %v5279_v48  ;;  %v5380_v48 = vld [vmem:[%s10350_s0 + $0x1c0] sm:$0xff] }
  0x90   : > { %10547 = vst [vmem:[#allocation30_spill] sm:$0xff] %v5380_v48 }
  0x94   : > { %568 = vperm.xlu2 %4723, %v5284_v49  }
  0x95   : > { %563 = vperm.xlu1 %4722, %v5289_v50   ;;  %558 = vperm.xlu0 %4721, %v5294_v51  }
  0x96   : > { %v5299_v52 = vpop.permute.xlu2 %403 }
  0x97   : > { %10534 = vst [vmem:[#allocation17_spill] sm:$0xff] %v5299_v52  ;;  %v5301_v53 = vpop.permute.xlu1 %358  ;;  %v5303_v54 = vpop.permute.xlu0 %348  ;;  %v5366_v52 = vld [vmem:[%s10350_s0 + $0x198] sm:$0xff] }
  0x98   : > { %10535 = vst [vmem:[#allocation18_spill] sm:$0xff] %v5301_v53  ;;  %v5409_v53 = vld [vmem:[%s10350_s0 + $0x1d0] sm:$0xff] }
  0x99   : > { %10536 = vst [vmem:[#allocation19_spill] sm:$0xff] %v5303_v54  ;;  %v5414_v54 = vld [vmem:[%s10350_s0 + $0x1c8] sm:$0xff] }
  0x9a   : > { %10543 = vst [vmem:[#allocation26_spill] sm:$0xff] %v5366_v52 }
  0x9b   : > { %10554 = vst [vmem:[#allocation37_spill] sm:$0xff] %v5409_v53 }
  0x9c   : > { %583 = vperm.xlu2 %4723, %v5308_v55   ;;  %10555 = vst [vmem:[#allocation38_spill] sm:$0xff] %v5414_v54 }
  0x9d   : > { %578 = vperm.xlu1 %4722, %v5313_v56   ;;  %573 = vperm.xlu0 %4721, %v5318_v57  }
  0x9e   : > { %v5323_v58 = vpop.permute.xlu2 %418 }
  0x9f   : > { %10537 = vst [vmem:[#allocation20_spill] sm:$0xff] %v5323_v58  ;;  %v5325_v59 = vpop.permute.xlu1 %363  ;;  %v5327_v60 = vpop.permute.xlu0 %353  ;;  %v5361_v58 = vld [vmem:[%s10350_s0 + $0x1a0] sm:$0xff] }
  0xa0   : > { %10538 = vst [vmem:[#allocation21_spill] sm:$0xff] %v5325_v59  ;;  %v5385_v59 = vld [vmem:[%s10350_s0 + $0x1b8] sm:$0xff] }
  0xa1   : > { %10539 = vst [vmem:[#allocation22_spill] sm:$0xff] %v5327_v60  ;;  %v5428_v60 = vld [vmem:[%s10350_s0 + $0x1f0] sm:$0xff] }
  0xa2   : > { %10548 = vst [vmem:[#allocation31_spill] sm:$0xff] %v5385_v59 }
  0xa3   : > { %10559 = vst [vmem:[#allocation42_spill] sm:$0xff] %v5428_v60 }
  0xa4   : > { %598 = vperm.xlu2 %4723, %v5332_v61  }
  0xa5   : > { %593 = vperm.xlu1 %4722, %v5337_v62   ;;  %588 = vperm.xlu0 %4721, %v5342_v63  }
  0xa6   : > { %v5347_v0 = vpop.permute.xlu2 %433 }
  0xa7   : > { %10540 = vst [vmem:[#allocation23_spill] sm:$0xff] %v5347_v0  ;;  %v5349_v1 = vpop.permute.xlu1 %383  ;;  %v5351_v2 = vpop.permute.xlu0 %378 }
  0xa8   : > { %10541 = vst [vmem:[#allocation24_spill] sm:$0xff] %v5349_v1 }
  0xa9   : > { %10542 = vst [vmem:[#allocation25_spill] sm:$0xff] %v5351_v2 }
  0xac   : > { %613 = vperm.xlu2 %4723, %v5356_v6  }
  0xad   : > { %608 = vperm.xlu1 %4722, %v5361_v58   ;;  %603 = vperm.xlu0 %4721, %v5366_v52  }
  0xae   : > { %v5371_v0 = vpop.permute.xlu2 %448 }
  0xaf   : > { %10544 = vst [vmem:[#allocation27_spill] sm:$0xff] %v5371_v0  ;;  %v5373_v2 = vpop.permute.xlu1 %398  ;;  %v5375_v1 = vpop.permute.xlu0 %393 }
  0xb0   : > { %10545 = vst [vmem:[#allocation28_spill] sm:$0xff] %v5373_v2 }
  0xb1   : > { %10546 = vst [vmem:[#allocation29_spill] sm:$0xff] %v5375_v1 }
  0xb4   : > { %628 = vperm.xlu2 %4723, %v5380_v48   ;;  %v5433_v48 = vld [vmem:[%s10350_s0 + $0x1e8] sm:$0xff] }
  0xb5   : > { %623 = vperm.xlu1 %4722, %v5385_v59   ;;  %618 = vperm.xlu0 %4721, %v5390_v44  }
  0xb6   : > { %v5395_v0 = vpop.permute.xlu2 %463 }
  0xb7   : > { %10550 = vst [vmem:[#allocation33_spill] sm:$0xff] %v5395_v0  ;;  %v5397_v1 = vpop.permute.xlu1 %413  ;;  %v5399_v2 = vpop.permute.xlu0 %408 }
  0xb8   : > { %10551 = vst [vmem:[#allocation34_spill] sm:$0xff] %v5397_v1 }
  0xb9   : > { %10552 = vst [vmem:[#allocation35_spill] sm:$0xff] %v5399_v2 }
  0xbc   : > { %643 = vperm.xlu2 %4723, %v5404_v40   ;;  %v5438_v40 = vld [vmem:[%s10350_s0 + $0x1e0] sm:$0xff] }
  0xbd   : > { %638 = vperm.xlu1 %4722, %v5409_v53   ;;  %633 = vperm.xlu0 %4721, %v5414_v54   ;;  %v5452_v53 = vld [vmem:[%s10350_s0 + $0x1f8] sm:$0xff]  ;;  %v4933_v54 = vmov 1  }
  0xbe   : > { %v5419_v0 = vpop.permute.xlu2 %478  ;;  %10563 = vst [vmem:[#allocation46_spill] sm:$0xff] %v5452_v53 }
  0xbf   : > { %10556 = vst [vmem:[#allocation39_spill] sm:$0xff] %v5419_v0  ;;  %v5421_v2 = vpop.permute.xlu1 %428  ;;  %v5423_v1 = vpop.permute.xlu0 %423 }
  0xc0   : > { %10557 = vst [vmem:[#allocation40_spill] sm:$0xff] %v5421_v2 }
  0xc1   : > { %10558 = vst [vmem:[#allocation41_spill] sm:$0xff] %v5423_v1 }
  0xc4   : > { %658 = vperm.xlu2 %4723, %v5428_v60  }
  0xc5   : > { %653 = vperm.xlu1 %4722, %v5433_v48   ;;  %648 = vperm.xlu0 %4721, %v5438_v40  }
  0xc6   : > { %v5443_v0 = vpop.permute.xlu2 %493 }
  0xc7   : > { %10560 = vst [vmem:[#allocation43_spill] sm:$0xff] %v5443_v0  ;;  %v5445_v1 = vpop.permute.xlu1 %443  ;;  %v5447_v2 = vpop.permute.xlu0 %438 }
  0xc8   : > { %10561 = vst [vmem:[#allocation44_spill] sm:$0xff] %v5445_v1 }
  0xc9   : > { %10562 = vst [vmem:[#allocation45_spill] sm:$0xff] %v5447_v2 }
  0xcc   : > { %4725 = vset.pattern.permute.xlu2 %v4933_v54 }
  0xcd   : > { %4724 = vset.pattern.permute.xlu1 %v4933_v54  ;;  %663 = vperm.xlu0 %4721, %v5452_v53  }
  0xce   : > { %736 = vperm.xlu2 %4725, %v5054_v9   ;;  %732 = vperm.xlu1 %4724, %v5036_v5   ;;  %v5457_v60 = vpop.permute.xlu2 %508 }
  0xcf   : > { %10564 = vst [vmem:[#allocation47_spill] sm:$0xff] %v5457_v60  ;;  %v5459_v0 = vpop.permute.xlu1 %458  ;;  %v5461_v1 = vpop.permute.xlu0 %453 }
  0xd0   : > { %10565 = vst [vmem:[#allocation48_spill] sm:$0xff] %v5459_v0 }
  0xd1   : > { %10566 = vst [vmem:[#allocation49_spill] sm:$0xff] %v5461_v1 }
  0xd5   : > { %4726 = vset.pattern.permute.xlu0 %v4933_v54 }
  0xd6   : > { %748 = vperm.xlu2 %4725, %v5026_v3   ;;  %744 = vperm.xlu1 %4724, %v5049_v8   ;;  %v5465_v2 = vpop.permute.xlu2 %523 }
  0xd7   : > { %10567 = vst [vmem:[#allocation50_spill] sm:$0xff] %v5465_v2  ;;  %740 = vperm.xlu0 %4726, %v5031_v4   ;;  %v5468_v53 = vpop.permute.xlu1 %473  ;;  %v5470_v9 = vpop.permute.xlu0 %468 }
  0xd8   : > { %10568 = vst [vmem:[#allocation51_spill] sm:$0xff] %v5468_v53 }
  0xd9   : > { %10569 = vst [vmem:[#allocation52_spill] sm:$0xff] %v5470_v9 }
  0xde   : > { %756 = vperm.xlu2 %4725, %v5072_v12   ;;  %752 = vperm.xlu1 %4724, %v5044_v7   ;;  %v5474_v60 = vpop.permute.xlu2 %538 }
  0xdf   : > { %10570 = vst [vmem:[#allocation53_spill] sm:$0xff] %v5474_v60  ;;  %760 = vperm.xlu0 %4726, %v5067_v11   ;;  %v5477_v54 = vpop.permute.xlu1 %488  ;;  %v5479_v1 = vpop.permute.xlu0 %483 }
  0xe0   : > { %10571 = vst [vmem:[#allocation54_spill] sm:$0xff] %v5477_v54 }
  0xe1   : > { %10572 = vst [vmem:[#allocation55_spill] sm:$0xff] %v5479_v1 }
  0xe6   : > { %768 = vperm.xlu2 %4725, %v5090_v15   ;;  %764 = vperm.xlu1 %4724, %v5062_v10   ;;  %v5483_v2 = vpop.permute.xlu2 %553 }
  0xe7   : > { %10573 = vst [vmem:[#allocation56_spill] sm:$0xff] %v5483_v2  ;;  %772 = vperm.xlu0 %4726, %v5085_v14   ;;  %v5486_v9 = vpop.permute.xlu1 %503  ;;  %v5488_v53 = vpop.permute.xlu0 %498 }
  0xe8   : > { %10574 = vst [vmem:[#allocation57_spill] sm:$0xff] %v5486_v9 }
  0xe9   : > { %10575 = vst [vmem:[#allocation58_spill] sm:$0xff] %v5488_v53 }
  0xee   : > { %780 = vperm.xlu2 %4725, %v5108_v18   ;;  %776 = vperm.xlu1 %4724, %v5080_v13   ;;  %v5492_v60 = vpop.permute.xlu2 %568 }
  0xef   : > { %10576 = vst [vmem:[#allocation59_spill] sm:$0xff] %v5492_v60  ;;  %784 = vperm.xlu0 %4726, %v5103_v17   ;;  %v5495_v1 = vpop.permute.xlu1 %518  ;;  %v5497_v54 = vpop.permute.xlu0 %513 }
  0xf0   : > { %10577 = vst [vmem:[#allocation60_spill] sm:$0xff] %v5495_v1 }
  0xf1   : > { %10578 = vst [vmem:[#allocation61_spill] sm:$0xff] %v5497_v54 }
  0xf6   : > { %792 = vperm.xlu2 %4725, %v5126_v21   ;;  %788 = vperm.xlu1 %4724, %v5098_v16   ;;  %v5501_v2 = vpop.permute.xlu2 %583 }
  0xf7   : > { %10579 = vst [vmem:[#allocation62_spill] sm:$0xff] %v5501_v2  ;;  %796 = vperm.xlu0 %4726, %v5121_v20   ;;  %v5504_v53 = vpop.permute.xlu1 %533  ;;  %v5506_v9 = vpop.permute.xlu0 %528 }
  0xf8   : > { %10580 = vst [vmem:[#allocation63_spill] sm:$0xff] %v5504_v53 }
  0xf9   : > { %10581 = vst [vmem:[#allocation64_spill] sm:$0xff] %v5506_v9 }
  0xfe   : > { %804 = vperm.xlu2 %4725, %v5144_v24   ;;  %800 = vperm.xlu1 %4724, %v5116_v19   ;;  %v5510_v60 = vpop.permute.xlu2 %598 }
  0xff   : > { %10582 = vst [vmem:[#allocation65_spill] sm:$0xff] %v5510_v60  ;;  %808 = vperm.xlu0 %4726, %v5139_v23   ;;  %v5513_v1 = vpop.permute.xlu1 %548  ;;  %v5515_v54 = vpop.permute.xlu0 %543 }
 0x100   : > { %10583 = vst [vmem:[#allocation66_spill] sm:$0xff] %v5513_v1  ;;  %v10621_v1 = vld [vmem:[#allocation38_spill] sm:$0xff] }
 0x101   : > { %10584 = vst [vmem:[#allocation67_spill] sm:$0xff] %v5515_v54 }
 0x106   : > { %816 = vperm.xlu2 %4725, %v5162_v27   ;;  %812 = vperm.xlu1 %4724, %v5134_v22   ;;  %v5519_v2 = vpop.permute.xlu2 %613 }
 0x107   : > { %10585 = vst [vmem:[#allocation68_spill] sm:$0xff] %v5519_v2  ;;  %820 = vperm.xlu0 %4726, %v5157_v26   ;;  %v5522_v53 = vpop.permute.xlu1 %563  ;;  %v5524_v9 = vpop.permute.xlu0 %558 }
 0x108   : > { %10586 = vst [vmem:[#allocation69_spill] sm:$0xff] %v5522_v53 }
 0x109   : > { %10587 = vst [vmem:[#allocation70_spill] sm:$0xff] %v5524_v9 }
 0x10e   : > { %828 = vperm.xlu2 %4725, %v5180_v30   ;;  %824 = vperm.xlu1 %4724, %v5152_v25   ;;  %v5528_v0 = vpop.permute.xlu2 %628 }
 0x10f   : > { %10588 = vst [vmem:[#allocation71_spill] sm:$0xff] %v5528_v0  ;;  %832 = vperm.xlu0 %4726, %v5175_v29   ;;  %v5531_v54 = vpop.permute.xlu1 %578  ;;  %v5533_v60 = vpop.permute.xlu0 %573 }
 0x110   : > { %10589 = vst [vmem:[#allocation72_spill] sm:$0xff] %v5531_v54 }
 0x111   : > { %10590 = vst [vmem:[#allocation73_spill] sm:$0xff] %v5533_v60 }
 0x116   : > { %840 = vperm.xlu2 %4725, %v5198_v33   ;;  %836 = vperm.xlu1 %4724, %v5170_v28   ;;  %v5537_v2 = vpop.permute.xlu2 %643 }
 0x117   : > { %10591 = vst [vmem:[#allocation74_spill] sm:$0xff] %v5537_v2  ;;  %844 = vperm.xlu0 %4726, %v5193_v32   ;;  %v5540_v9 = vpop.permute.xlu1 %593  ;;  %v5542_v53 = vpop.permute.xlu0 %588 }
 0x118   : > { %10592 = vst [vmem:[#allocation75_spill] sm:$0xff] %v5540_v9 }
 0x119   : > { %10593 = vst [vmem:[#allocation76_spill] sm:$0xff] %v5542_v53 }
 0x11e   : > { %852 = vperm.xlu2 %4725, %v5216_v36   ;;  %848 = vperm.xlu1 %4724, %v5188_v31   ;;  %v5546_v0 = vpop.permute.xlu2 %658 }
 0x11f   : > { %10594 = vst [vmem:[#allocation77_spill] sm:$0xff] %v5546_v0  ;;  %856 = vperm.xlu0 %4726, %v5211_v35   ;;  %v5549_v60 = vpop.permute.xlu1 %608  ;;  %v5551_v54 = vpop.permute.xlu0 %603 }
 0x120   : > { %10595 = vst [vmem:[#allocation78_spill] sm:$0xff] %v5549_v60 }
 0x121   : > { %10596 = vst [vmem:[#allocation79_spill] sm:$0xff] %v5551_v54 }
 0x126   : > { %864 = vperm.xlu2 %4725, %v5234_v39   ;;  %860 = vperm.xlu1 %4724, %v5206_v34  }
 0x127   : > { %868 = vperm.xlu0 %4726, %v5229_v38   ;;  %v5556_v2 = vpop.permute.xlu1 %623  ;;  %v5558_v53 = vpop.permute.xlu0 %618 }
 0x128   : > { %10597 = vst [vmem:[#allocation80_spill] sm:$0xff] %v5556_v2  ;;  %v5560_v9 = vpop.permute.xlu2 %736 }
 0x129   : > { %10598 = vst [vmem:[#allocation81_spill] sm:$0xff] %v5558_v53 }
 0x12a   : > { %10599 = vst [vmem:[#allocation82_spill] sm:$0xff] %v5560_v9 }
 0x12e   : > { %876 = vperm.xlu2 %4725, %v5254_v43   ;;  %872 = vperm.xlu1 %4724, %v5224_v37  }
 0x12f   : > { %880 = vperm.xlu0 %4726, %v5249_v42   ;;  %v5565_v0 = vpop.permute.xlu1 %638  ;;  %v5567_v54 = vpop.permute.xlu0 %633 }
 0x130   : > { %10600 = vst [vmem:[#allocation83_spill] sm:$0xff] %v5565_v0  ;;  %v5569_v60 = vpop.permute.xlu2 %748 }
 0x131   : > { %10601 = vst [vmem:[#allocation84_spill] sm:$0xff] %v5567_v54 }
 0x132   : > { %10602 = vst [vmem:[#allocation85_spill] sm:$0xff] %v5569_v60 }
 0x136   : > { %888 = vperm.xlu2 %4725, %v5274_v47   ;;  %884 = vperm.xlu1 %4724, %v5244_v41  }
 0x137   : > { %892 = vperm.xlu0 %4726, %v5269_v46   ;;  %v5574_v53 = vpop.permute.xlu1 %653  ;;  %v5576_v9 = vpop.permute.xlu0 %648 }
 0x138   : > { %10603 = vst [vmem:[#allocation86_spill] sm:$0xff] %v5574_v53  ;;  %v5578_v2 = vpop.permute.xlu2 %756 }
 0x139   : > { %10604 = vst [vmem:[#allocation87_spill] sm:$0xff] %v5576_v9 }
 0x13a   : > { %10605 = vst [vmem:[#allocation88_spill] sm:$0xff] %v5578_v2 }
 0x13e   : > { %900 = vperm.xlu2 %4725, %v5294_v51   ;;  %896 = vperm.xlu1 %4724, %v5264_v45  }
 0x13f   : > { %904 = vperm.xlu0 %4726, %v5289_v50   ;;  %v5583_v54 = vpop.permute.xlu0 %663 }
 0x140   : > { %10606 = vst [vmem:[#allocation89_spill] sm:$0xff] %v5583_v54  ;;  %v5585_v60 = vpop.permute.xlu2 %768  ;;  %v5587_v0 = vpop.permute.xlu1 %732 }
 0x141   : > { %10607 = vst [vmem:[#allocation90_spill] sm:$0xff] %v5585_v60 }
 0x142   : > { %10608 = vst [vmem:[#allocation91_spill] sm:$0xff] %v5587_v0 }
 0x146   : > { %912 = vperm.xlu2 %4725, %v5318_v57   ;;  %908 = vperm.xlu1 %4724, %v5284_v49  }
 0x147   : > { %916 = vperm.xlu0 %4726, %v5313_v56  }
 0x148   : > { %v5592_v9 = vpop.permute.xlu2 %780  ;;  %v5594_v2 = vpop.permute.xlu1 %744 }
 0x149   : > { %10609 = vst [vmem:[#allocation92_spill] sm:$0xff] %v5592_v9  ;;  %v5596_v53 = vpop.permute.xlu0 %740 }
 0x14a   : > { %10610 = vst [vmem:[#allocation93_spill] sm:$0xff] %v5594_v2 }
 0x14b   : > { %10611 = vst [vmem:[#allocation94_spill] sm:$0xff] %v5596_v53 }
 0x14e   : > { %924 = vperm.xlu2 %4725, %v5342_v63   ;;  %920 = vperm.xlu1 %4724, %v5308_v55  }
 0x14f   : > { %928 = vperm.xlu0 %4726, %v5337_v62  }
 0x150   : > { %v5601_v54 = vpop.permute.xlu2 %792  ;;  %v5603_v60 = vpop.permute.xlu1 %752 }
 0x151   : > { %10612 = vst [vmem:[#allocation95_spill] sm:$0xff] %v5601_v54  ;;  %v5605_v0 = vpop.permute.xlu0 %760 }
 0x152   : > { %10613 = vst [vmem:[#allocation96_spill] sm:$0xff] %v5603_v60 }
 0x153   : > { %10614 = vst [vmem:[#allocation97_spill] sm:$0xff] %v5605_v0 }
 0x156   : > { %936 = vperm.xlu2 %4725, %v5366_v52   ;;  %932 = vperm.xlu1 %4724, %v5332_v61   ;;  %v10622_v52 = vld [vmem:[#allocation30_spill] sm:$0xff] }
 0x157   : > { %940 = vperm.xlu0 %4726, %v5361_v58  }
 0x158   : > { %v5610_v9 = vpop.permute.xlu2 %804  ;;  %v5612_v2 = vpop.permute.xlu1 %764 }
 0x159   : > { %10615 = vst [vmem:[#allocation98_spill] sm:$0xff] %v5610_v9  ;;  %v5614_v53 = vpop.permute.xlu0 %772  ;;  %v10623_v9 = vld [vmem:[#allocation37_spill] sm:$0xff] }
 0x15a   : > { %10616 = vst [vmem:[#allocation99_spill] sm:$0xff] %v5612_v2 }
 0x15b   : > { %10617 = vst [vmem:[#allocation100_spill] sm:$0xff] %v5614_v53 }
 0x15e   : > { %948 = vperm.xlu2 %4725, %v5390_v44   ;;  %944 = vperm.xlu1 %4724, %v5356_v6  }
 0x15f   : > { %952 = vperm.xlu0 %4726, %v5385_v59   ;;  %v10627_v59 = vld [vmem:[#allocation36_spill] sm:$0xff] }
 0x160   : > { %v5619_v54 = vpop.permute.xlu2 %816  ;;  %v5621_v0 = vpop.permute.xlu1 %776 }
 0x161   : > { %10618 = vst [vmem:[#allocation101_spill] sm:$0xff] %v5619_v54  ;;  %v5623_v60 = vpop.permute.xlu0 %784 }
 0x162   : > { %10619 = vst [vmem:[#allocation102_spill] sm:$0xff] %v5621_v0 }
 0x163   : > { %10620 = vst [vmem:[#allocation103_spill] sm:$0xff] %v5623_v60 }
 0x166   : > { %960 = vperm.xlu2 %4725, %v10621_v1   ;;  %956 = vperm.xlu1 %4724, %v10622_v52   ;;  %v10631_v1 = vld [vmem:[#allocation46_spill] sm:$0xff] }
 0x167   : > { %964 = vperm.xlu0 %4726, %v10623_v9   ;;  %v10632_v9 = vld [vmem:[#allocation42_spill] sm:$0xff] }
 0x168   : > { %v5628_v2 = vpop.permute.xlu2 %828  ;;  %v5630_v53 = vpop.permute.xlu1 %788 }
 0x169   : > { %10624 = vst [vmem:[#allocation30_spill] sm:$0xff] %v5628_v2  ;;  %v5632_v44 = vpop.permute.xlu0 %796  ;;  %v10369_v2 = vmov 2  }
 0x16a   : > { %10625 = vst [vmem:[#allocation104_spill] sm:$0xff] %v5630_v53 }
 0x16b   : > { %10626 = vst [vmem:[#allocation105_spill] sm:$0xff] %v5632_v44 }
 0x16e   : > { %972 = vperm.xlu2 %4725, %v5438_v40   ;;  %968 = vperm.xlu1 %4724, %v10627_v59  }
 0x16f   : > { %976 = vperm.xlu0 %4726, %v5433_v48  }
 0x170   : > { %v5637_v54 = vpop.permute.xlu2 %840  ;;  %v5639_v60 = vpop.permute.xlu1 %800 }
 0x171   : > { %10628 = vst [vmem:[#allocation36_spill] sm:$0xff] %v5637_v54  ;;  %v5641_v0 = vpop.permute.xlu0 %808 }
 0x172   : > { %10629 = vst [vmem:[#allocation106_spill] sm:$0xff] %v5639_v60 }
 0x173   : > { %10630 = vst [vmem:[#allocation107_spill] sm:$0xff] %v5641_v0 }
 0x176   : > { %984 = vperm.xlu2 %4725, %v10631_v1   ;;  %980 = vperm.xlu1 %4724, %v10632_v9   ;;  %v10636_v1 = vld [vmem:[#allocation7_spill] sm:$0xff] }
 0x177   : > { %4727 = vset.pattern.permute.xlu0 %v10369_v2 }
 0x178   : > { %1117 = vperm.xlu0 %4727, %v5036_v5   ;;  %v5647_v40 = vpop.permute.xlu2 %852  ;;  %v5649_v59 = vpop.permute.xlu1 %812 }
 0x179   : > { %10633 = vst [vmem:[#allocation46_spill] sm:$0xff] %v5647_v40  ;;  %v5651_v44 = vpop.permute.xlu0 %820 }
 0x17a   : > { %10634 = vst [vmem:[#allocation42_spill] sm:$0xff] %v5649_v59 }
 0x17b   : > { %10635 = vst [vmem:[#allocation108_spill] sm:$0xff] %v5651_v44 }
 0x17e   : > { %4729 = vset.pattern.permute.xlu2 %v10369_v2  ;;  %4728 = vset.pattern.permute.xlu1 %v10369_v2 }
 0x17f   : > { %1125 = vperm.xlu2 %4729, %v5031_v4   ;;  %1121 = vperm.xlu1 %4728, %v10636_v1  }
 0x180   : > { %1137 = vperm.xlu0 %4727, %v5044_v7   ;;  %v5658_v9 = vpop.permute.xlu2 %864  ;;  %v5660_v54 = vpop.permute.xlu1 %824 }
 0x181   : > { %10637 = vst [vmem:[#allocation7_spill] sm:$0xff] %v5658_v9  ;;  %v5662_v0 = vpop.permute.xlu0 %832 }
 0x182   : > { %10638 = vst [vmem:[#allocation109_spill] sm:$0xff] %v5660_v54 }
 0x183   : > { %10639 = vst [vmem:[#allocation110_spill] sm:$0xff] %v5662_v0 }
 0x187   : > { %1133 = vperm.xlu2 %4729, %v5026_v3   ;;  %1129 = vperm.xlu1 %4728, %v5049_v8  }
 0x188   : > { %1149 = vperm.xlu0 %4727, %v5062_v10   ;;  %v5667_v40 = vpop.permute.xlu2 %876  ;;  %v5669_v2 = vpop.permute.xlu1 %836 }
 0x189   : > { %10640 = vst [vmem:[#allocation111_spill] sm:$0xff] %v5667_v40  ;;  %v5671_v44 = vpop.permute.xlu0 %844 }
 0x18a   : > { %10641 = vst [vmem:[#allocation112_spill] sm:$0xff] %v5669_v2 }
 0x18b   : > { %10642 = vst [vmem:[#allocation113_spill] sm:$0xff] %v5671_v44 }
 0x18f   : > { %1145 = vperm.xlu2 %4729, %v5067_v11   ;;  %1141 = vperm.xlu1 %4728, %v5072_v12  }
 0x190   : > { %1161 = vperm.xlu0 %4727, %v5080_v13   ;;  %v5676_v9 = vpop.permute.xlu2 %888  ;;  %v5678_v0 = vpop.permute.xlu1 %848 }
 0x191   : > { %10643 = vst [vmem:[#allocation114_spill] sm:$0xff] %v5676_v9  ;;  %v5680_v54 = vpop.permute.xlu0 %856 }
 0x192   : > { %10644 = vst [vmem:[#allocation115_spill] sm:$0xff] %v5678_v0 }
 0x193   : > { %10645 = vst [vmem:[#allocation116_spill] sm:$0xff] %v5680_v54 }
 0x197   : > { %1157 = vperm.xlu2 %4729, %v5085_v14   ;;  %1153 = vperm.xlu1 %4728, %v5090_v15  }
 0x198   : > { %1173 = vperm.xlu0 %4727, %v5098_v16   ;;  %v5685_v40 = vpop.permute.xlu2 %900  ;;  %v5687_v44 = vpop.permute.xlu1 %860 }
 0x199   : > { %10646 = vst [vmem:[#allocation117_spill] sm:$0xff] %v5685_v40  ;;  %v5689_v2 = vpop.permute.xlu0 %868 }
 0x19a   : > { %10647 = vst [vmem:[#allocation118_spill] sm:$0xff] %v5687_v44 }
 0x19b   : > { %10648 = vst [vmem:[#allocation119_spill] sm:$0xff] %v5689_v2 }
 0x19f   : > { %1169 = vperm.xlu2 %4729, %v5103_v17   ;;  %1165 = vperm.xlu1 %4728, %v5108_v18  }
 0x1a0   : > { %1185 = vperm.xlu0 %4727, %v5116_v19   ;;  %v5694_v9 = vpop.permute.xlu2 %912  ;;  %v5696_v54 = vpop.permute.xlu1 %872 }
 0x1a1   : > { %10649 = vst [vmem:[#allocation120_spill] sm:$0xff] %v5694_v9  ;;  %v5698_v0 = vpop.permute.xlu0 %880 }
 0x1a2   : > { %10650 = vst [vmem:[#allocation121_spill] sm:$0xff] %v5696_v54 }
 0x1a3   : > { %10651 = vst [vmem:[#allocation122_spill] sm:$0xff] %v5698_v0 }
 0x1a7   : > { %1181 = vperm.xlu2 %4729, %v5121_v20   ;;  %1177 = vperm.xlu1 %4728, %v5126_v21  }
 0x1a8   : > { %1197 = vperm.xlu0 %4727, %v5134_v22   ;;  %v5703_v40 = vpop.permute.xlu2 %924  ;;  %v5705_v2 = vpop.permute.xlu1 %884 }
 0x1a9   : > { %10652 = vst [vmem:[#allocation123_spill] sm:$0xff] %v5703_v40  ;;  %v5707_v44 = vpop.permute.xlu0 %892 }
 0x1aa   : > { %10653 = vst [vmem:[#allocation124_spill] sm:$0xff] %v5705_v2 }
 0x1af   : > { %1193 = vperm.xlu2 %4729, %v5139_v23   ;;  %1189 = vperm.xlu1 %4728, %v5144_v24  }
 0x1b0   : > { %1209 = vperm.xlu0 %4727, %v5152_v25   ;;  %v5712_v9 = vpop.permute.xlu2 %936  ;;  %v5714_v0 = vpop.permute.xlu1 %896 }
 0x1b1   : > { %10654 = vst [vmem:[#allocation125_spill] sm:$0xff] %v5712_v9  ;;  %v5716_v54 = vpop.permute.xlu0 %904 }
 0x1b2   : > { %10655 = vst [vmem:[#allocation126_spill] sm:$0xff] %v5714_v0 }
 0x1b7   : > { %1205 = vperm.xlu2 %4729, %v5157_v26   ;;  %1201 = vperm.xlu1 %4728, %v5162_v27  }
 0x1b8   : > { %1221 = vperm.xlu0 %4727, %v5170_v28   ;;  %v5721_v2 = vpop.permute.xlu2 %948  ;;  %v5723_v59 = vpop.permute.xlu1 %908 }
 0x1b9   : > { %10656 = vst [vmem:[#allocation127_spill] sm:$0xff] %v5721_v2  ;;  %v5725_v60 = vpop.permute.xlu0 %916 }
 0x1ba   : > { %10657 = vst [vmem:[#allocation128_spill] sm:$0xff] %v5723_v59 }
 0x1bf   : > { %1217 = vperm.xlu2 %4729, %v5175_v29   ;;  %1213 = vperm.xlu1 %4728, %v5180_v30  }
 0x1c0   : > { %1233 = vperm.xlu0 %4727, %v5188_v31   ;;  %v5730_v0 = vpop.permute.xlu2 %960  ;;  %v5732_v53 = vpop.permute.xlu1 %920 }
 0x1c1   : > { %10658 = vst [vmem:[#allocation129_spill] sm:$0xff] %v5730_v0  ;;  %v5734_v9 = vpop.permute.xlu0 %928 }
 0x1c2   : > { %10659 = vst [vmem:[#allocation130_spill] sm:$0xff] %v5732_v53 }
 0x1c7   : > { %1229 = vperm.xlu2 %4729, %v5193_v32   ;;  %1225 = vperm.xlu1 %4728, %v5198_v33  }
 0x1c8   : > { %1245 = vperm.xlu0 %4727, %v5206_v34   ;;  %v5739_v59 = vpop.permute.xlu2 %972  ;;  %v5741_v2 = vpop.permute.xlu1 %932 }
 0x1c9   : > { %10660 = vst [vmem:[#allocation131_spill] sm:$0xff] %v5739_v59  ;;  %v5743_v40 = vpop.permute.xlu0 %940 }
 0x1cf   : > { %1241 = vperm.xlu2 %4729, %v5211_v35   ;;  %1237 = vperm.xlu1 %4728, %v5216_v36  }
 0x1d0   : > { %1257 = vperm.xlu0 %4727, %v5224_v37   ;;  %v5748_v53 = vpop.permute.xlu2 %984  ;;  %v5750_v0 = vpop.permute.xlu1 %944 }
 0x1d1   : > { %10661 = vst [vmem:[#allocation132_spill] sm:$0xff] %v5748_v53  ;;  %v5752_v32 = vpop.permute.xlu0 %952 }
 0x1d7   : > { %1253 = vperm.xlu2 %4729, %v5229_v38   ;;  %1249 = vperm.xlu1 %4728, %v5234_v39  }
 0x1d8   : > { %1269 = vperm.xlu0 %4727, %v5244_v41   ;;  %v5757_v59 = vpop.permute.xlu1 %956 }
 0x1d9   : > { %v5759_v34 = vpop.permute.xlu0 %964  ;;  %v5761_v35 = vpop.permute.xlu2 %1125 }
 0x1da   : > { %10662 = vst [vmem:[#allocation133_spill] sm:$0xff] %v5761_v35 }
 0x1df   : > { %1265 = vperm.xlu2 %4729, %v5249_v42   ;;  %1261 = vperm.xlu1 %4728, %v5254_v43  }
 0x1e0   : > { %1281 = vperm.xlu0 %4727, %v5264_v45   ;;  %v5766_v53 = vpop.permute.xlu1 %968 }
 0x1e1   : > { %10663 = vst [vmem:[#allocation134_spill] sm:$0xff] %v5766_v53  ;;  %v5768_v37 = vpop.permute.xlu0 %976  ;;  %v5770_v38 = vpop.permute.xlu2 %1133 }
 0x1e7   : > { %1277 = vperm.xlu2 %4729, %v5269_v46   ;;  %1273 = vperm.xlu1 %4728, %v5274_v47  }
 0x1e8   : > { %1293 = vperm.xlu0 %4727, %v5284_v49   ;;  %v5775_v41 = vpop.permute.xlu1 %980 }
 0x1e9   : > { %10664 = vst [vmem:[#allocation135_spill] sm:$0xff] %v5775_v41  ;;  %v5777_v35 = vpop.permute.xlu2 %1145 }
 0x1ea   : > { %v5779_v42 = vpop.permute.xlu0 %1117 }
 0x1ef   : > { %1289 = vperm.xlu2 %4729, %v5289_v50   ;;  %1285 = vperm.xlu1 %4728, %v5294_v51  }
 0x1f0   : > { %1305 = vperm.xlu0 %4727, %v5308_v55  }
 0x1f1   : > { %v5784_v43 = vpop.permute.xlu2 %1157  ;;  %v5786_v45 = vpop.permute.xlu1 %1121 }
 0x1f2   : > { %v5788_v46 = vpop.permute.xlu0 %1137 }
 0x1f7   : > { %1301 = vperm.xlu2 %4729, %v5313_v56   ;;  %1297 = vperm.xlu1 %4728, %v5318_v57   ;;  %v10666_v57 = vld [vmem:[#allocation26_spill] sm:$0xff] }
 0x1f8   : > { %1317 = vperm.xlu0 %4727, %v5332_v61  }
 0x1f9   : > { %v5793_v47 = vpop.permute.xlu2 %1169  ;;  %v5795_v49 = vpop.permute.xlu1 %1129 }
 0x1fa   : > { %v5797_v50 = vpop.permute.xlu0 %1149 }
 0x1ff   : > { %1313 = vperm.xlu2 %4729, %v5337_v62   ;;  %1309 = vperm.xlu1 %4728, %v5342_v63   ;;  %v10668_v63 = vld [vmem:[#allocation31_spill] sm:$0xff] }
 0x200   : > { %1329 = vperm.xlu0 %4727, %v5356_v6   ;;  %v10669_v6 = vld [vmem:[#allocation32_spill] sm:$0xff] }
 0x201   : > { %v5802_v51 = vpop.permute.xlu2 %1181  ;;  %v5804_v55 = vpop.permute.xlu1 %1141 }
 0x202   : > { %10665 = vst [vmem:[#allocation136_spill] sm:$0xff] %v5802_v51  ;;  %v5806_v56 = vpop.permute.xlu0 %1161 }
 0x207   : > { %1325 = vperm.xlu2 %4729, %v5361_v58   ;;  %1321 = vperm.xlu1 %4728, %v10666_v57   ;;  %v10670_v57 = vld [vmem:[#allocation37_spill] sm:$0xff] }
 0x208   : > { %1341 = vperm.xlu0 %4727, %v10622_v52   ;;  %v10671_v52 = vld [vmem:[#allocation38_spill] sm:$0xff] }
 0x209   : > { %v5811_v61 = vpop.permute.xlu2 %1193  ;;  %v5813_v41 = vpop.permute.xlu1 %1153 }
 0x20a   : > { %10667 = vst [vmem:[#allocation26_spill] sm:$0xff] %v5811_v61  ;;  %v5815_v62 = vpop.permute.xlu0 %1173  ;;  %v10377_v61 = vmov 3  }
 0x20f   : > { %1337 = vperm.xlu2 %4729, %v10668_v63   ;;  %1333 = vperm.xlu1 %4728, %v10669_v6  }
 0x210   : > { %1361 = vperm.xlu0 %4727, %v5433_v48  }
 0x211   : > { %v5820_v53 = vpop.permute.xlu2 %1205  ;;  %v5822_v51 = vpop.permute.xlu1 %1165 }
 0x212   : > { %v5824_v58 = vpop.permute.xlu0 %1185 }
 0x217   : > { %1349 = vperm.xlu2 %4729, %v10670_v57   ;;  %1345 = vperm.xlu1 %4728, %v10671_v52  }
 0x218   : > { %4735 = vset.pattern.permute.xlu0 %v10377_v61 }
 0x219   : > { %1502 = vperm.xlu0 %4735, %v5036_v5   ;;  %v5830_v63 = vpop.permute.xlu2 %1217  ;;  %v5832_v6 = vpop.permute.xlu1 %1177 }
 0x21a   : > { %10672 = vst [vmem:[#allocation31_spill] sm:$0xff] %v5830_v63  ;;  %v5834_v48 = vpop.permute.xlu0 %1197 }
 0x21f   : > { %4731 = vset.pattern.permute.xlu2 %v10377_v61  ;;  %4730 = vset.pattern.permute.xlu1 %v10377_v61 }
 0x220   : > { %1510 = vperm.xlu2 %4731, %v5031_v4   ;;  %1506 = vperm.xlu1 %4730, %v10636_v1  }
 0x221   : > { %1522 = vperm.xlu0 %4735, %v5044_v7   ;;  %v5841_v57 = vpop.permute.xlu2 %1229  ;;  %v5843_v5 = vpop.permute.xlu1 %1189 }
 0x222   : > { %10673 = vst [vmem:[#allocation32_spill] sm:$0xff] %v5841_v57  ;;  %v5845_v52 = vpop.permute.xlu0 %1209 }
 0x228   : > { %1518 = vperm.xlu2 %4731, %v5026_v3   ;;  %1514 = vperm.xlu1 %4730, %v5049_v8  }
 0x229   : > { %1534 = vperm.xlu0 %4735, %v5062_v10   ;;  %v5850_v61 = vpop.permute.xlu2 %1241  ;;  %v5852_v63 = vpop.permute.xlu1 %1201 }
 0x22a   : > { %10674 = vst [vmem:[#allocation37_spill] sm:$0xff] %v5850_v61  ;;  %v5854_v4 = vpop.permute.xlu0 %1221 }
 0x22b   : > { %10675 = vst [vmem:[#allocation38_spill] sm:$0xff] %v5854_v4  ;;  %v10682_v4 = vld [vmem:[#allocation69_spill] sm:$0xff] }
 0x230   : > { %1530 = vperm.xlu2 %4731, %v5067_v11   ;;  %1526 = vperm.xlu1 %4730, %v5072_v12  }
 0x231   : > { %1546 = vperm.xlu0 %4735, %v5080_v13   ;;  %v5863_v3 = vpop.permute.xlu2 %1253  ;;  %v5865_v7 = vpop.permute.xlu1 %1213  ;;  %v5884_v13 = vld [vmem:[%s276_s30] sm:$0xf]  ;;  %s9902_s30 = scalar_lea.vmem [#allocation4], %s4664_s29 }
 0x232   : > { %10676 = vst [vmem:[#allocation137_spill] sm:$0xff] %v5863_v3  ;;  %v5867_v8 = vpop.permute.xlu0 %1233  ;;  %v5887_v1 = vperm.slane %v5884_v13, 1  ;;  %v5890_v3 = vperm.slane %v5884_v13, 0  ;;  %s4564_s8 = sshll.u32 %s9902_s30, 4  ;;  %s4565_s8 = int_to_ptr.vmem [resolvable:$true] %s4564_s8 }
 0x233   : > { %10677 = vst [vmem:[#allocation138_spill] sm:$0xff] %v5867_v8 }
 0x238   : > { %1542 = vperm.xlu2 %4731, %v5085_v14   ;;  %1538 = vperm.xlu1 %4730, %v5090_v15   ;;  %v1028_v14 = vmul.f32 %v5887_v1, %v5707_v44  ;;  %v10681_v15 = vld [vmem:[#allocation66_spill] sm:$0xff] }
 0x239   : > { %1558 = vperm.xlu0 %4735, %v5098_v16   ;;  %v5878_v10 = vpop.permute.xlu2 %1265  ;;  %v5880_v11 = vpop.permute.xlu1 %1225  ;;  %v707_v16 = vmul.f32 %v5890_v3, %v10681_v15  ;;  %v1031_v15 = vmul.f32 %v5887_v1, %v5716_v54  ;;  %v1034_v54 = vmul.f32 %v5887_v1, %v5725_v60  ;;  %v1037_v60 = vmul.f32 %v5887_v1, %v5734_v9 }
 0x23a   : > { %10678 = vst [vmem:[#allocation139_spill] sm:$0xff] %v5878_v10  ;;  %v5882_v12 = vpop.permute.xlu0 %1245  ;;  %v5897_v10 = vperm.slane %v5884_v13, 2  ;;  %v1040_v9 = vmul.f32 %v5887_v1, %v5743_v40 }
 0x23b   : > { %10679 = vst [vmem:[#allocation140_spill] sm:$0xff] %v5880_v11  ;;  %v1092_v8 = vadd.f32 %v1028_v14, %v707_v16 }
 0x23c   : > { %10680 = vst [vmem:[#allocation141_spill] sm:$0xff] %v5882_v12 }
 0x240   : > { %1554 = vperm.xlu2 %4731, %v5103_v17   ;;  %1550 = vperm.xlu1 %4730, %v5108_v18   ;;  %v710_v17 = vmul.f32 %v5890_v3, %v10682_v4  ;;  %v10683_v4 = vld [vmem:[#allocation72_spill] sm:$0xff] }
 0x241   : > { %1570 = vperm.xlu0 %4735, %v5116_v19   ;;  %v1278_v12 = vpop.permute.xlu2 %1277  ;;  %v5902_v61 = vpop.permute.xlu1 %1237 }
 0x242   : > { %v1413_v11 = vmul.f32 %v5897_v10, %v1278_v12  ;;  %v5905_v57 = vpop.permute.xlu0 %1257  ;;  %v1095_v12 = vadd.f32 %v1031_v15, %v710_v17 }
 0x244   : > { %v5907_v44 = vadd.f32 %v1413_v11, %v1092_v8 }
 0x248   : > { %1566 = vperm.xlu2 %4731, %v5121_v20   ;;  %1562 = vperm.xlu1 %4730, %v5126_v21   ;;  %v713_v20 = vmul.f32 %v5890_v3, %v10683_v4 }
 0x249   : > { %1582 = vperm.xlu0 %4735, %v5134_v22   ;;  %v1290_v18 = vpop.permute.xlu2 %1289  ;;  %v5916_v19 = vpop.permute.xlu1 %1249 }
 0x24a   : > { %v1416_v14 = vmul.f32 %v5897_v10, %v1290_v18  ;;  %v5919_v8 = vpop.permute.xlu0 %1269  ;;  %v1098_v16 = vadd.f32 %v1034_v54, %v713_v20 }
 0x24c   : > { %v5921_v11 = vadd.f32 %v1416_v14, %v1095_v12  ;;  %v10685_v12 = vld [vmem:[#allocation75_spill] sm:$0xff] }
 0x250   : > { %1578 = vperm.xlu2 %4731, %v5139_v23   ;;  %1574 = vperm.xlu1 %4730, %v5144_v24   ;;  %v716_v23 = vmul.f32 %v5890_v3, %v10685_v12  ;;  %v10690_v12 = vld [vmem:[#allocation80_spill] sm:$0xff] }
 0x251   : > { %1594 = vperm.xlu0 %4735, %v5152_v25   ;;  %v1302_v21 = vpop.permute.xlu2 %1301  ;;  %v5930_v22 = vpop.permute.xlu1 %1261 }
 0x252   : > { %v1419_v15 = vmul.f32 %v5897_v10, %v1302_v21  ;;  %v5933_v17 = vpop.permute.xlu0 %1281  ;;  %v1101_v14 = vadd.f32 %v1037_v60, %v716_v23  ;;  %v4936_v21 = vmov 0.0   ;;  %v722_v23 = vmul.f32 %v5890_v3, %v10690_v12 }
 0x253   : > { %2130 = vst [vmem:[#allocation2 + $0x30] sm:$0x1] %v4936_v21 }
 0x254   : > { %v5935_v18 = vadd.f32 %v1419_v15, %v1098_v16  ;;  %2115 = vst [vmem:[#allocation2] sm:$0xff] %v4936_v21 }
 0x255   : > { %2116 = vst [vmem:[#allocation2 + $0x8] sm:$0xff] %v4936_v21 }
 0x256   : > { %10684 = vst [vmem:[#allocation66_spill] sm:$0xff] %v5935_v18 }
 0x257   : > { %2117 = vst [vmem:[#allocation2 + $0x10] sm:$0x3] %v4936_v21 }
 0x258   : > { %1590 = vperm.xlu2 %4731, %v5157_v26   ;;  %1586 = vperm.xlu1 %4730, %v5162_v27   ;;  %v10687_v26 = vld [vmem:[#allocation78_spill] sm:$0xff]  ;;  %2118 = vst [vmem:[#allocation2 + $0x1b0] sm:$0xff] %v4936_v21 }
 0x259   : > { %1606 = vperm.xlu0 %4735, %v5170_v28   ;;  %v1314_v24 = vpop.permute.xlu2 %1313  ;;  %v5944_v25 = vpop.permute.xlu1 %1273  ;;  %v719_v27 = vmul.f32 %v5890_v3, %v10687_v26  ;;  %2119 = vst [vmem:[#allocation2 + $0x1b8] sm:$0xff] %v4936_v21 }
 0x25a   : > { %v1422_v54 = vmul.f32 %v5897_v10, %v1314_v24  ;;  %v5947_v4 = vpop.permute.xlu0 %1293  ;;  %2120 = vst [vmem:[#allocation2 + $0x1c0] sm:$0x3] %v4936_v21  ;;  %v10691_v24 = vld [vmem:[#allocation8_spill] sm:$0xff] }
 0x25b   : > { %v1104_v40 = vadd.f32 %v1040_v9, %v719_v27  ;;  %2122 = vst [vmem:[#allocation2 + $0x198] sm:$0xff] %v4936_v21 }
 0x25c   : > { %v5949_v20 = vadd.f32 %v1422_v54, %v1101_v14  ;;  %2123 = vst [vmem:[#allocation2 + $0x1a0] sm:$0xff] %v4936_v21  ;;  %v10692_v14 = vld [vmem:[#allocation65_spill] sm:$0xff] }
 0x25d   : > { %2124 = vst [vmem:[#allocation2 + $0x1a8] sm:$0x3] %v4936_v21  ;;  %v717_v54 = vmul.f32 %v5890_v3, %v10692_v14  ;;  %v10697_v14 = vld [vmem:[#allocation76_spill] sm:$0xff] }
 0x25e   : > { %10686 = vst [vmem:[#allocation69_spill] sm:$0xff] %v5949_v20 }
 0x25f   : > { %2125 = vst [vmem:[#allocation2 + $0x348] sm:$0xff] %v4936_v21 }
 0x260   : > { %1602 = vperm.xlu2 %4731, %v5175_v29   ;;  %1598 = vperm.xlu1 %4730, %v5180_v30   ;;  %v1043_v30 = vmul.f32 %v5887_v1, %v5752_v32  ;;  %v10693_v32 = vld [vmem:[#allocation9_spill] sm:$0xff]  ;;  %2126 = vst [vmem:[#allocation2 + $0x350] sm:$0xff] %v4936_v21 }
 0x261   : > { %1618 = vperm.xlu0 %4735, %v5188_v31   ;;  %v1326_v28 = vpop.permute.xlu2 %1325  ;;  %v5961_v16 = vpop.permute.xlu1 %1285  ;;  %v1038_v31 = vmul.f32 %v5887_v1, %v5741_v2  ;;  %2127 = vst [vmem:[#allocation2 + $0x358] sm:$0x3] %v4936_v21 }
 0x262   : > { %v1425_v15 = vmul.f32 %v5897_v10, %v1326_v28  ;;  %v5965_v60 = vpop.permute.xlu0 %1305  ;;  %v1107_v2 = vadd.f32 %v1043_v30, %v722_v23  ;;  %2129 = vst [vmem:[#allocation2 + $0x18] sm:$0x1] %v4936_v21  ;;  %v1046_v23 = vmul.f32 %v5887_v1, %v5759_v34  ;;  %v10700_v34 = vld [vmem:[#allocation68_spill] sm:$0xff] }
 0x263   : > { %10688 = vst [vmem:[#allocation72_spill] sm:$0xff] %v5965_v60 }
 0x264   : > { %v5969_v29 = vadd.f32 %v1425_v15, %v1104_v40  ;;  %v1102_v40 = vadd.f32 %v1038_v31, %v717_v54  ;;  %2131 = vst [vmem:[#allocation2 + $0x48] sm:$0x1] %v4936_v21  ;;  %v1041_v31 = vmul.f32 %v5887_v1, %v5750_v0  ;;  %v715_v54 = vmul.f32 %v5890_v3, %v10697_v14 }
 0x265   : > { %2132 = vst [vmem:[#allocation2 + $0x60] sm:$0x1] %v4936_v21 }
 0x266   : > { %10689 = vst [vmem:[#allocation75_spill] sm:$0xff] %v5969_v29 }
 0x267   : > { %2133 = vst [vmem:[#allocation2 + $0x78] sm:$0x1] %v4936_v21 }
 0x268   : > { %1614 = vperm.xlu2 %4731, %v10691_v24   ;;  %1610 = vperm.xlu1 %4730, %v5198_v33   ;;  %v10696_v24 = vld [vmem:[#allocation123_spill] sm:$0xff]  ;;  %2134 = vst [vmem:[#allocation2 + $0x90] sm:$0x1] %v4936_v21 }
 0x269   : > { %1630 = vperm.xlu0 %4735, %v10693_v32   ;;  %v1338_v9 = vpop.permute.xlu2 %1337  ;;  %v5987_v26 = vpop.permute.xlu1 %1297  ;;  %v1036_v30 = vmul.f32 %v5887_v1, %v10696_v24  ;;  %v10698_v32 = vld [vmem:[#allocation83_spill] sm:$0xff]  ;;  %2135 = vst [vmem:[#allocation2 + $0xa8] sm:$0x1] %v4936_v21 }
 0x26a   : > { %v1428_v27 = vmul.f32 %v5897_v10, %v1338_v9  ;;  %v1318_v28 = vpop.permute.xlu0 %1317  ;;  %v725_v9 = vmul.f32 %v5890_v3, %v10698_v32  ;;  %2136 = vst [vmem:[#allocation2 + $0xc0] sm:$0x1] %v4936_v21 }
 0x26b   : > { %v1423_v33 = vmul.f32 %v5897_v10, %v1318_v28  ;;  %v10701_v28 = vld [vmem:[#allocation11_spill] sm:$0xff]  ;;  %2137 = vst [vmem:[#allocation2 + $0xd8] sm:$0x1] %v4936_v21 }
 0x26c   : > { %v5994_v15 = vadd.f32 %v1428_v27, %v1107_v2  ;;  %v10699_v2 = vld [vmem:[#allocation10_spill] sm:$0xff]  ;;  %v720_v27 = vmul.f32 %v5890_v3, %v10700_v34  ;;  %v1110_v24 = vadd.f32 %v1046_v23, %v725_v9  ;;  %2138 = vst [vmem:[#allocation2 + $0xf0] sm:$0x1] %v4936_v21  ;;  %v10705_v23 = vld [vmem:[#allocation125_spill] sm:$0xff]  ;;  %v10706_v9 = vld [vmem:[#allocation79_spill] sm:$0xff] }
 0x26d   : > { %v5997_v12 = vadd.f32 %v1423_v33, %v1102_v40  ;;  %v1100_v33 = vadd.f32 %v1036_v30, %v715_v54  ;;  %2139 = vst [vmem:[#allocation2 + $0x108] sm:$0x1] %v4936_v21  ;;  %v1039_v54 = vmul.f32 %v5887_v1, %v10705_v23 }
 0x26e   : > { %10694 = vst [vmem:[#allocation78_spill] sm:$0xff] %v5994_v15 }
 0x26f   : > { %10695 = vst [vmem:[#allocation80_spill] sm:$0xff] %v5997_v12  ;;  %v10729_v12 = vld [vmem:[#allocation93_spill] sm:$0xff] }
 0x270   : > { %1626 = vperm.xlu2 %4731, %v10699_v2   ;;  %1622 = vperm.xlu1 %4730, %v5216_v36   ;;  %v1105_v36 = vadd.f32 %v1041_v31, %v720_v27  ;;  %2140 = vst [vmem:[#allocation2 + $0x120] sm:$0x1] %v4936_v21  ;;  %v1044_v31 = vmul.f32 %v5887_v1, %v5757_v59 }
 0x271   : > { %1642 = vperm.xlu0 %4735, %v10701_v28   ;;  %v1350_v0 = vpop.permute.xlu2 %1349  ;;  %v1310_v40 = vpop.permute.xlu1 %1309  ;;  %2141 = vst [vmem:[#allocation2 + $0x138] sm:$0x1] %v4936_v21  ;;  %v718_v27 = vmul.f32 %v5890_v3, %v10706_v9 }
 0x272   : > { %v1431_v14 = vmul.f32 %v5897_v10, %v1350_v0  ;;  %v1421_v32 = vmul.f32 %v5897_v10, %v1310_v40  ;;  %v1330_v2 = vpop.permute.xlu0 %1329  ;;  %2142 = vst [vmem:[#allocation2 + $0x150] sm:$0x1] %v4936_v21  ;;  %v10707_v0 = vld [vmem:[#allocation12_spill] sm:$0xff] }
 0x273   : > { %v1426_v15 = vmul.f32 %v5897_v10, %v1330_v2  ;;  %2143 = vst [vmem:[#allocation2 + $0x168] sm:$0x1] %v4936_v21  ;;  %v1103_v59 = vadd.f32 %v1039_v54, %v718_v27  ;;  %v10712_v54 = vld [vmem:[#allocation127_spill] sm:$0xff] }
 0x274   : > { %v6024_v34 = vadd.f32 %v1431_v14, %v1110_v24  ;;  %v6026_v28 = vadd.f32 %v1421_v32, %v1100_v33  ;;  %v10709_v33 = vld [vmem:[#allocation14_spill] sm:$0xff]  ;;  %2144 = vst [vmem:[#allocation2 + $0x180] sm:$0x1] %v4936_v21  ;;  %v1042_v27 = vmul.f32 %v5887_v1, %v10712_v54 }
 0x275   : > { %v6029_v30 = vadd.f32 %v1426_v15, %v1105_v36  ;;  %v10708_v15 = vld [vmem:[#allocation71_spill] sm:$0xff]  ;;  %2147 = vst [vmem:[#allocation2 + $0x1c8] sm:$0x1] %v4936_v21 }
 0x276   : > { %10702 = vst [vmem:[#allocation8_spill] sm:$0xff] %v6024_v34  ;;  %v723_v40 = vmul.f32 %v5890_v3, %v10708_v15 }
 0x277   : > { %10703 = vst [vmem:[#allocation65_spill] sm:$0xff] %v6026_v28 }
 0x278   : > { %10704 = vst [vmem:[#allocation9_spill] sm:$0xff] %v6029_v30  ;;  %1638 = vperm.xlu2 %4731, %v10707_v0   ;;  %1634 = vperm.xlu1 %4730, %v5234_v39   ;;  %v1108_v36 = vadd.f32 %v1044_v31, %v723_v40  ;;  %v1049_v31 = vmul.f32 %v5887_v1, %v5768_v37  ;;  %v10713_v0 = vld [vmem:[#allocation81_spill] sm:$0xff] }
 0x279   : > { %1654 = vperm.xlu0 %4735, %v10709_v33   ;;  %v1322_v24 = vpop.permute.xlu1 %1321  ;;  %2148 = vst [vmem:[#allocation2 + $0x1e0] sm:$0x1] %v4936_v21  ;;  %v721_v15 = vmul.f32 %v5890_v3, %v10713_v0  ;;  %v4744_v40 = vld [vmem:[%s10350_s0 + $0x128] sm:$0xff]  ;;  %v4745_v33 = vld [vmem:[%s10350_s0 + $0x120] sm:$0xff] }
 0x27a   : > { %v1424_v14 = vmul.f32 %v5897_v10, %v1322_v24  ;;  %v1342_v32 = vpop.permute.xlu0 %1341  ;;  %v6048_v2 = vpop.permute.xlu2 %1510  ;;  %2149 = vst [vmem:[#allocation2 + $0x1f8] sm:$0x1] %v4936_v21  ;;  %v10714_v24 = vld [vmem:[#allocation86_spill] sm:$0xff] }
 0x27b   : > { %v1429_v39 = vmul.f32 %v5897_v10, %v1342_v32  ;;  %2150 = vst [vmem:[#allocation2 + $0x210] sm:$0x1] %v4936_v21  ;;  %v728_v37 = vmul.f32 %v5890_v3, %v10714_v24  ;;  %v1106_v32 = vadd.f32 %v1042_v27, %v721_v15  ;;  %v10717_v27 = vld [vmem:[#allocation129_spill] sm:$0xff] }
 0x27c   : > { %v6053_v23 = vadd.f32 %v1424_v14, %v1103_v59  ;;  %2151 = vst [vmem:[#allocation2 + $0x228] sm:$0x1] %v4936_v21  ;;  %v4746_v59 = vld [vmem:[%s10350_s0 + $0x148] sm:$0xff]  ;;  %v1045_v15 = vmul.f32 %v5887_v1, %v10717_v27 }
 0x27d   : > { %v6056_v9 = vadd.f32 %v1429_v39, %v1108_v36  ;;  %2152 = vst [vmem:[#allocation2 + $0x240] sm:$0x1] %v4936_v21  ;;  %v1113_v0 = vadd.f32 %v1049_v31, %v728_v37  ;;  %v10718_v31 = vld [vmem:[#allocation84_spill] sm:$0xff] }
 0x27e   : > { %10710 = vst [vmem:[#allocation123_spill] sm:$0xff] %v6053_v23  ;;  %v724_v37 = vmul.f32 %v5890_v3, %v10718_v31  ;;  %v10719_v31 = vld [vmem:[#allocation82_spill] sm:$0xff]  ;;  %v10728_v23 = vld [vmem:[#allocation13_spill] sm:$0xff] }
 0x27f   : > { %10711 = vst [vmem:[#allocation76_spill] sm:$0xff] %v6056_v9  ;;  %v10726_v9 = vld [vmem:[#allocation85_spill] sm:$0xff] }
 0x280   : > { %2153 = vst [vmem:[#allocation2 + $0x258] sm:$0x1] %v4936_v21  ;;  %1650 = vperm.xlu2 %4731, %v4744_v40   ;;  %1646 = vperm.xlu1 %4730, %v4745_v33  }
 0x281   : > { %2154 = vst [vmem:[#allocation2 + $0x270] sm:$0x1] %v4936_v21  ;;  %1666 = vperm.xlu0 %4735, %v4746_v59   ;;  %v1334_v14 = vpop.permute.xlu1 %1333  ;;  %v4747_v59 = vld [vmem:[%s10350_s0 + $0x140] sm:$0xff] }
 0x282   : > { %2155 = vst [vmem:[#allocation2 + $0x288] sm:$0x1] %v4936_v21  ;;  %v1427_v36 = vmul.f32 %v5897_v10, %v1334_v14  ;;  %v1362_v39 = vpop.permute.xlu0 %1361  ;;  %v6082_v54 = vpop.permute.xlu2 %1518  ;;  %v4748_v14 = vld [vmem:[%s10350_s0 + $0x138] sm:$0xff] }
 0x283   : > { %2156 = vst [vmem:[#allocation2 + $0x2a0] sm:$0x1] %v4936_v21  ;;  %v1434_v40 = vmul.f32 %v5897_v10, %v1362_v39  ;;  %v1109_v39 = vadd.f32 %v1045_v15, %v724_v37  ;;  %v10722_v15 = vld [vmem:[#allocation22_spill] sm:$0xff] }
 0x284   : > { %2157 = vst [vmem:[#allocation2 + $0x2b8] sm:$0x1] %v4936_v21  ;;  %v6087_v33 = vadd.f32 %v1427_v36, %v1106_v32  ;;  %v4749_v32 = vld [vmem:[%s10350_s0 + $0x160] sm:$0xff]  ;;  %v668_v37 = vmul.f32 %v5890_v3, %v10722_v15  ;;  %v4750_v15 = vld [vmem:[%s10350_s0 + $0x158] sm:$0xff] }
 0x285   : > { %2158 = vst [vmem:[#allocation2 + $0x2d0] sm:$0x1] %v4936_v21  ;;  %v6090_v24 = vadd.f32 %v1434_v40, %v1113_v0 }
 0x286   : > { %10715 = vst [vmem:[#allocation83_spill] sm:$0xff] %v6087_v33  ;;  %v992_v33 = vmul.f32 %v5887_v1, %v10726_v9  ;;  %v991_v9 = vmul.f32 %v5887_v1, %v10729_v12  ;;  %v1377_v12 = vmul.f32 %v5897_v10, %v5770_v38 }
 0x287   : > { %10716 = vst [vmem:[#allocation10_spill] sm:$0xff] %v6090_v24  ;;  %v10721_v24 = vld [vmem:[#allocation91_spill] sm:$0xff] }
 0x288   : > { %2159 = vst [vmem:[#allocation2 + $0x2e8] sm:$0x1] %v4936_v21  ;;  %1662 = vperm.xlu2 %4731, %v4747_v59   ;;  %1658 = vperm.xlu1 %4730, %v4748_v14   ;;  %v989_v59 = vmul.f32 %v5887_v1, %v10719_v31  ;;  %v1373_v31 = vmul.f32 %v5897_v10, %v5779_v42  ;;  %v4751_v42 = vld [vmem:[%s10350_s0 + $0x150] sm:$0xff] }
 0x289   : > { %2160 = vst [vmem:[#allocation2 + $0x300] sm:$0x1] %v4936_v21  ;;  %1678 = vperm.xlu0 %4735, %v4749_v32   ;;  %v1346_v36 = vpop.permute.xlu1 %1345  ;;  %v988_v32 = vmul.f32 %v5887_v1, %v10721_v24 }
 0x28a   : > { %2161 = vst [vmem:[#allocation2 + $0x318] sm:$0x1] %v4936_v21  ;;  %v1430_v0 = vmul.f32 %v5897_v10, %v1346_v36  ;;  %v6111_v40 = vpop.permute.xlu2 %1530  ;;  %v10723_v36 = vld [vmem:[#allocation19_spill] sm:$0xff]  ;;  %v1053_v24 = vadd.f32 %v989_v59, %v668_v37 }
 0x28b   : > { %2162 = vst [vmem:[#allocation2 + $0x330] sm:$0x1] %v4936_v21  ;;  %v1503_v27 = vpop.permute.xlu0 %1502  ;;  %v667_v34 = vmul.f32 %v5890_v3, %v10723_v36  ;;  %v4752_v37 = vld [vmem:[%s10350_s0 + $0x178] sm:$0xff] }
 0x28c   : > { %2165 = vst [vmem:[#allocation2 + $0x29] sm:$0x1] %v4936_v21  ;;  %v6117_v14 = vadd.f32 %v1430_v0, %v1109_v39  ;;  %v1374_v39 = vmul.f32 %v5897_v10, %v5786_v45  ;;  %v6132_v0 = vperm.slane %v5884_v13, 3  ;;  %v10724_v45 = vld [vmem:[#allocation94_spill] sm:$0xff] }
 0x28d   : > { %2166 = vst [vmem:[#allocation2 + $0x41] sm:$0x1] %v4936_v21  ;;  %v1052_v36 = vadd.f32 %v988_v32, %v667_v34  ;;  %v990_v13 = vmul.f32 %v5887_v1, %v10724_v45 }
 0x28e   : > { %2167 = vst [vmem:[#allocation2 + $0x59] sm:$0x1] %v4936_v21  ;;  %v1758_v59 = vmul.f32 %v6132_v0, %v1503_v27  ;;  %v1438_v30 = vadd.f32 %v1374_v39, %v1053_v24  ;;  %v1760_v28 = vmul.f32 %v6132_v0, %v6048_v2  ;;  %v10732_v24 = vld [vmem:[#allocation15_spill] sm:$0xff]  ;;  %v1376_v2 = vmul.f32 %v5897_v10, %v5795_v49  ;;  %v4754_v49 = vld [vmem:[%s10350_s0 + $0x168] sm:$0xff] }
 0x28f   : > { %10720 = vst [vmem:[#allocation68_spill] sm:$0xff] %v6117_v14  ;;  %v10725_v14 = vld [vmem:[#allocation18_spill] sm:$0xff]  ;;  %v1437_v27 = vadd.f32 %v1373_v31, %v1052_v36  ;;  %v672_v36 = vmul.f32 %v5890_v3, %v10732_v24  ;;  %v1762_v38 = vmul.f32 %v6132_v0, %v6082_v54  ;;  %v10736_v24 = vld [vmem:[#allocation97_spill] sm:$0xff] }
 0x290   : > { %2168 = vst [vmem:[#allocation2 + $0x71] sm:$0x1] %v4936_v21  ;;  %1674 = vperm.xlu2 %4731, %v4750_v15   ;;  %1670 = vperm.xlu1 %4730, %v4751_v42   ;;  %v669_v15 = vmul.f32 %v5890_v3, %v10725_v14  ;;  %v10727_v42 = vld [vmem:[#allocation133_spill] sm:$0xff]  ;;  %v671_v14 = vmul.f32 %v5890_v3, %v10728_v23 }
 0x291   : > { %2169 = vst [vmem:[#allocation2 + $0x89] sm:$0x1] %v4936_v21  ;;  %1690 = vperm.xlu0 %4735, %v4752_v37   ;;  %v1375_v45 = vmul.f32 %v5897_v10, %v10727_v42  ;;  %v6168_v31 = vadd.f32 %v1758_v59, %v1437_v27  ;;  %v10734_v42 = vld [vmem:[#allocation96_spill] sm:$0xff] }
 0x292   : > { %2170 = vst [vmem:[#allocation2 + $0xa1] sm:$0x1] %v4936_v21  ;;  %v6154_v34 = vpop.permute.xlu2 %1542  ;;  %v1507_v32 = vpop.permute.xlu1 %1506  ;;  %v1054_v20 = vadd.f32 %v990_v13, %v669_v15  ;;  %v1056_v13 = vadd.f32 %v992_v33, %v671_v14  ;;  %v993_v27 = vmul.f32 %v5887_v1, %v10734_v42  ;;  %v10735_v14 = vld [vmem:[#allocation88_spill] sm:$0xff] }
 0x293   : > { %2171 = vst [vmem:[#allocation2 + $0xb9] sm:$0x1] %v4936_v21  ;;  %v1759_v37 = vmul.f32 %v6132_v0, %v1507_v32  ;;  %v1523_v29 = vpop.permute.xlu0 %1522  ;;  %v10733_v32 = vld [vmem:[#allocation21_spill] sm:$0xff] }
 0x294   : > { %2172 = vst [vmem:[#allocation2 + $0xd1] sm:$0x1] %v4936_v21  ;;  %v670_v23 = vmul.f32 %v5890_v3, %v10733_v32  ;;  %v1439_v15 = vadd.f32 %v1375_v45, %v1054_v20  ;;  %v4753_v20 = vld [vmem:[%s10350_s0 + $0x170] sm:$0xff]  ;;  %v1963_v45 = vmul.f32 %v6168_v31, %v6168_v31  ;;  %v1441_v32 = vadd.f32 %v1377_v12, %v1056_v13  ;;  %v10739_v13 = vld [vmem:[#allocation25_spill] sm:$0xff] }
 0x295   : > { %2173 = vst [vmem:[#allocation2 + $0xe9] sm:$0x1] %v4936_v21  ;;  %v6170_v39 = vadd.f32 %v1759_v37, %v1438_v30  ;;  %v4755_v37 = vld [vmem:[%s10350_s0 + $0x190] sm:$0xff]  ;;  %v1057_v18 = vadd.f32 %v993_v27, %v672_v36  ;;  %v1380_v36 = vmul.f32 %v5897_v10, %v5777_v35 }
 0x296   : > { %2174 = vst [vmem:[#allocation2 + $0x101] sm:$0x1] %v4936_v21  ;;  %v1055_v59 = vadd.f32 %v991_v9, %v670_v23  ;;  %v6195_v33 = vadd.f32 %v1760_v28, %v1439_v15  ;;  %v994_v9 = vmul.f32 %v5887_v1, %v10735_v14  ;;  %v995_v28 = vmul.f32 %v5887_v1, %v10736_v24  ;;  %v10738_v24 = vld [vmem:[#allocation24_spill] sm:$0xff] }
 0x297   : > { %2175 = vst [vmem:[#allocation2 + $0x119] sm:$0x1] %v4936_v21  ;;  %v1964_v30 = vmul.f32 %v6170_v39, %v6170_v39  ;;  %v1886_v54 = vadd.f32 %v6170_v39, %v6168_v31  ;;  %v1378_v23 = vmul.f32 %v5897_v10, %v5788_v46  ;;  %v674_v12 = vmul.f32 %v5890_v3, %v10738_v24  ;;  %v10741_v24 = vld [vmem:[#allocation90_spill] sm:$0xff] }
 0x298   : > { %2176 = vst [vmem:[#allocation2 + $0x131] sm:$0x1] %v4936_v21  ;;  %1686 = vperm.xlu2 %4731, %v4753_v20   ;;  %1682 = vperm.xlu1 %4730, %v4754_v49   ;;  %v10737_v20 = vld [vmem:[#allocation16_spill] sm:$0xff]  ;;  %v673_v46 = vmul.f32 %v5890_v3, %v10739_v13  ;;  %v6223_v60 = vadd.f32 %v1762_v38, %v1441_v32 }
 0x299   : > { %10730 = vst [vmem:[#allocation11_spill] sm:$0xff] %v6168_v31  ;;  %1702 = vperm.xlu0 %4735, %v4755_v37   ;;  %v675_v49 = vmul.f32 %v5890_v3, %v10737_v20  ;;  %v2027_v37 = vadd.f32 %v1964_v30, %v1963_v45  ;;  %v1763_v30 = vmul.f32 %v6132_v0, %v1523_v29  ;;  %v10742_v13 = vld [vmem:[#allocation100_spill] sm:$0xff] }
 0x29a   : > { %10731 = vst [vmem:[#allocation125_spill] sm:$0xff] %v6170_v39  ;;  %v6212_v15 = vpop.permute.xlu2 %1554  ;;  %v1515_v42 = vpop.permute.xlu1 %1514  ;;  %v1440_v39 = vadd.f32 %v1376_v2, %v1055_v59  ;;  %v1965_v2 = vmul.f32 %v6195_v33, %v6195_v33  ;;  %v1887_v45 = vadd.f32 %v1886_v54, %v6195_v33  ;;  %v1059_v20 = vadd.f32 %v995_v28, %v674_v12  ;;  %v10740_v54 = vld [vmem:[#allocation99_spill] sm:$0xff]  ;;  %v4757_v28 = vld [vmem:[%s10350_s0 + $0x180] sm:$0xff] }
 0x29b   : > { %2177 = vst [vmem:[#allocation2 + $0x149] sm:$0x1] %v4936_v21  ;;  %v1761_v14 = vmul.f32 %v6132_v0, %v1515_v42  ;;  %v1535_v31 = vpop.permute.xlu0 %1534  ;;  %v1058_v42 = vadd.f32 %v994_v9, %v673_v46  ;;  %v1442_v27 = vadd.f32 %v1378_v23, %v1057_v18  ;;  %v1379_v38 = vmul.f32 %v5897_v10, %v5804_v55  ;;  %v4756_v55 = vld [vmem:[%s10350_s0 + $0x188] sm:$0xff] }
 0x29c   : > { %2178 = vst [vmem:[#allocation2 + $0x161] sm:$0x1] %v4936_v21  ;;  %v996_v9 = vmul.f32 %v5887_v1, %v10740_v54  ;;  %v1967_v35 = vmul.f32 %v6223_v60, %v6223_v60  ;;  %v1765_v18 = vmul.f32 %v6132_v0, %v6111_v40  ;;  %v4758_v40 = vld [vmem:[%s10350_s0 + $0x1a8] sm:$0xff]  ;;  %v997_v12 = vmul.f32 %v5887_v1, %v10741_v24 }
 0x29d   : > { %2179 = vst [vmem:[#allocation2 + $0x179] sm:$0x1] %v4936_v21  ;;  %v6229_v59 = vadd.f32 %v1761_v14, %v1440_v39  ;;  %v2028_v39 = vadd.f32 %v2027_v37, %v1965_v2  ;;  %v6255_v23 = vadd.f32 %v1763_v30, %v1442_v27  ;;  %v998_v46 = vmul.f32 %v5887_v1, %v10742_v13 }
 0x29e   : > { %2180 = vst [vmem:[#allocation2 + $0x191] sm:$0x1] %v4936_v21  ;;  %v1444_v2 = vadd.f32 %v1380_v36, %v1059_v20  ;;  %v10745_v36 = vld [vmem:[#allocation29_spill] sm:$0xff]  ;;  %v1060_v24 = vadd.f32 %v996_v9, %v675_v49  ;;  %v1383_v49 = vmul.f32 %v5897_v10, %v5784_v43 }
 0x29f   : > { %2183 = vst [vmem:[#allocation2 + $0x1d9] sm:$0x1] %v4936_v21  ;;  %v1888_v32 = vadd.f32 %v1887_v45, %v6229_v59  ;;  %v1966_v29 = vmul.f32 %v6229_v59, %v6229_v59  ;;  %v1381_v45 = vmul.f32 %v5897_v10, %v5797_v50  ;;  %v676_v50 = vmul.f32 %v5890_v3, %v10745_v36 }
 0x2a0   : > { %2184 = vst [vmem:[#allocation2 + $0x1f1] sm:$0x1] %v4936_v21  ;;  %1698 = vperm.xlu2 %4731, %v4756_v55   ;;  %1694 = vperm.xlu1 %4730, %v4757_v28   ;;  %v6279_v13 = vadd.f32 %v1765_v18, %v1444_v2  ;;  %v1382_v18 = vmul.f32 %v5897_v10, %v5813_v41  ;;  %v4759_v41 = vld [vmem:[%s10350_s0 + $0x1a0] sm:$0xff] }
 0x2a1   : > { %2185 = vst [vmem:[#allocation2 + $0x209] sm:$0x1] %v4936_v21  ;;  %v1889_v37 = vadd.f32 %v1888_v32, %v6223_v60  ;;  %v2029_v14 = vadd.f32 %v2028_v39, %v1966_v29  ;;  %1714 = vperm.xlu0 %4735, %v4758_v40   ;;  %v10743_v32 = vld [vmem:[#allocation17_spill] sm:$0xff]  ;;  %v1443_v39 = vadd.f32 %v1379_v38, %v1058_v42  ;;  %v10744_v40 = vld [vmem:[#allocation28_spill] sm:$0xff] }
 0x2a2   : > { %2186 = vst [vmem:[#allocation2 + $0x221] sm:$0x1] %v4936_v21  ;;  %v6268_v30 = vpop.permute.xlu2 %1566  ;;  %v1527_v27 = vpop.permute.xlu1 %1526  ;;  %v678_v29 = vmul.f32 %v5890_v3, %v10743_v32  ;;  %v677_v20 = vmul.f32 %v5890_v3, %v10744_v40  ;;  %v1968_v42 = vmul.f32 %v6255_v23, %v6255_v23  ;;  %v1766_v38 = vmul.f32 %v6132_v0, %v1535_v31 }
 0x2a3   : > { %2187 = vst [vmem:[#allocation2 + $0x239] sm:$0x1] %v4936_v21  ;;  %v2030_v54 = vadd.f32 %v2029_v14, %v1967_v35  ;;  %v1764_v55 = vmul.f32 %v6132_v0, %v1527_v27  ;;  %v1547_v28 = vpop.permute.xlu0 %1546  ;;  %v1890_v14 = vadd.f32 %v1889_v37, %v6255_v23  ;;  %v1061_v27 = vadd.f32 %v997_v12, %v676_v50  ;;  %v10746_v37 = vld [vmem:[#allocation102_spill] sm:$0xff]  ;;  %v10748_v50 = vld [vmem:[#allocation103_spill] sm:$0xff] }
 0x2a4   : > { %2188 = vst [vmem:[#allocation2 + $0x251] sm:$0x1] %v4936_v21  ;;  %v1062_v32 = vadd.f32 %v998_v46, %v677_v20  ;;  %v1445_v9 = vadd.f32 %v1381_v45, %v1060_v24  ;;  %v999_v12 = vmul.f32 %v5887_v1, %v10746_v37  ;;  %v1970_v43 = vmul.f32 %v6279_v13, %v6279_v13  ;;  %v4760_v45 = vld [vmem:[%s10350_s0 + $0x198] sm:$0xff]  ;;  %v10747_v20 = vld [vmem:[#allocation92_spill] sm:$0xff] }
 0x2a5   : > { %2189 = vst [vmem:[#allocation2 + $0x269] sm:$0x1] %v4936_v21  ;;  %v6285_v35 = vadd.f32 %v1764_v55, %v1443_v39  ;;  %v2031_v39 = vadd.f32 %v2030_v54, %v1968_v42  ;;  %v1768_v46 = vmul.f32 %v6132_v0, %v6154_v34  ;;  %v4761_v34 = vld [vmem:[%s10350_s0 + $0x1c0] sm:$0xff]  ;;  %v1000_v36 = vmul.f32 %v5887_v1, %v10747_v20 }
 0x2a6   : > { %2190 = vst [vmem:[#allocation2 + $0x281] sm:$0x1] %v4936_v21  ;;  %v6311_v54 = vadd.f32 %v1766_v38, %v1445_v9  ;;  %v1001_v24 = vmul.f32 %v5887_v1, %v10748_v50  ;;  %v1447_v42 = vadd.f32 %v1383_v49, %v1062_v32  ;;  %v10751_v49 = vld [vmem:[#allocation35_spill] sm:$0xff]  ;;  %v1063_v20 = vadd.f32 %v999_v12, %v678_v29 }
 0x2a7   : > { %2191 = vst [vmem:[#allocation2 + $0x299] sm:$0x1] %v4936_v21  ;;  %v1891_v2 = vadd.f32 %v1890_v14, %v6285_v35  ;;  %v1969_v31 = vmul.f32 %v6285_v35, %v6285_v35  ;;  %v1384_v14 = vmul.f32 %v5897_v10, %v5806_v56  ;;  %v679_v56 = vmul.f32 %v5890_v3, %v10751_v49 }
 0x2a8   : > { %2192 = vst [vmem:[#allocation2 + $0x2b1] sm:$0x1] %v4936_v21  ;;  %1710 = vperm.xlu2 %4731, %v4759_v41   ;;  %1706 = vperm.xlu1 %4730, %v4760_v45   ;;  %v6335_v50 = vadd.f32 %v1768_v46, %v1447_v42  ;;  %v1386_v29 = vmul.f32 %v5897_v10, %v5793_v47 }
 0x2a9   : > { %2193 = vst [vmem:[#allocation2 + $0x2c9] sm:$0x1] %v4936_v21  ;;  %v1892_v55 = vadd.f32 %v1891_v2, %v6279_v13  ;;  %v2032_v40 = vadd.f32 %v2031_v39, %v1969_v31  ;;  %1726 = vperm.xlu0 %4735, %v4761_v34   ;;  %v10749_v2 = vld [vmem:[#allocation20_spill] sm:$0xff]  ;;  %v1446_v39 = vadd.f32 %v1382_v18, %v1061_v27  ;;  %v10750_v34 = vld [vmem:[#allocation34_spill] sm:$0xff] }
 0x2aa   : > { %2194 = vst [vmem:[#allocation2 + $0x2e1] sm:$0x1] %v4936_v21  ;;  %v6324_v38 = vpop.permute.xlu2 %1578  ;;  %v1539_v9 = vpop.permute.xlu1 %1538  ;;  %v681_v31 = vmul.f32 %v5890_v3, %v10749_v2  ;;  %v680_v32 = vmul.f32 %v5890_v3, %v10750_v34  ;;  %v1971_v27 = vmul.f32 %v6311_v54, %v6311_v54  ;;  %v1769_v18 = vmul.f32 %v6132_v0, %v1547_v28 }
 0x2ab   : > { %2195 = vst [vmem:[#allocation2 + $0x2f9] sm:$0x1] %v4936_v21  ;;  %v2033_v37 = vadd.f32 %v2032_v40, %v1970_v43  ;;  %v1767_v41 = vmul.f32 %v6132_v0, %v1539_v9  ;;  %v1559_v45 = vpop.permute.xlu0 %1558  ;;  %v1893_v40 = vadd.f32 %v1892_v55, %v6311_v54  ;;  %v1064_v9 = vadd.f32 %v1000_v36, %v679_v56  ;;  %v10752_v55 = vld [vmem:[#allocation104_spill] sm:$0xff]  ;;  %v10755_v56 = vld [vmem:[#allocation105_spill] sm:$0xff] }
 0x2ac   : > { %2196 = vst [vmem:[#allocation2 + $0x311] sm:$0x1] %v4936_v21  ;;  %v1065_v2 = vadd.f32 %v1001_v24, %v680_v32  ;;  %v1448_v12 = vadd.f32 %v1384_v14, %v1063_v20  ;;  %v1385_v46 = vmul.f32 %v5897_v10, %v5822_v51  ;;  %v1002_v36 = vmul.f32 %v5887_v1, %v10752_v55  ;;  %v4762_v51 = vld [vmem:[%s10350_s0 + $0x1b8] sm:$0xff]  ;;  %v4763_v14 = vld [vmem:[%s10350_s0 + $0x1b0] sm:$0xff]  ;;  %v10756_v55 = vld [vmem:[#allocation40_spill] sm:$0xff] }
 0x2ad   : > { %2197 = vst [vmem:[#allocation2 + $0x329] sm:$0x1] %v4936_v21  ;;  %v6341_v43 = vadd.f32 %v1767_v41, %v1446_v39  ;;  %v2034_v39 = vadd.f32 %v2033_v37, %v1971_v27  ;;  %v1973_v47 = vmul.f32 %v6335_v50, %v6335_v50  ;;  %v1771_v24 = vmul.f32 %v6132_v0, %v6212_v15  ;;  %v4764_v15 = vld [vmem:[%s10350_s0 + $0x1d0] sm:$0xff]  ;;  %v10754_v32 = vld [vmem:[#allocation95_spill] sm:$0xff] }
 0x2ae   : > { %2198 = vst [vmem:[#allocation2 + $0x341] sm:$0x1] %v4936_v21  ;;  %v6367_v37 = vadd.f32 %v1769_v18, %v1448_v12  ;;  %v1003_v49 = vmul.f32 %v5887_v1, %v10754_v32  ;;  %v1004_v20 = vmul.f32 %v5887_v1, %v10755_v56  ;;  %v1450_v27 = vadd.f32 %v1386_v29, %v1065_v2 }
 0x2af   : > { %2128 = vst [vmem:[#allocation2] sm:$0x1] %v4936_v21  ;;  %v1894_v42 = vadd.f32 %v1893_v40, %v6341_v43  ;;  %v1972_v28 = vmul.f32 %v6341_v43, %v6341_v43  ;;  %v1449_v12 = vadd.f32 %v1385_v46, %v1064_v9  ;;  %v1066_v32 = vadd.f32 %v1002_v36, %v681_v31 }
 0x2b0   : > { %2145 = vst [vmem:[#allocation2 + $0x198] sm:$0x1] %v4936_v21  ;;  %1722 = vperm.xlu2 %4731, %v4762_v51   ;;  %1718 = vperm.xlu1 %4730, %v4763_v14   ;;  %v683_v51 = vmul.f32 %v5890_v3, %v10756_v55  ;;  %v10757_v14 = vld [vmem:[#allocation41_spill] sm:$0xff]  ;;  %v6386_v56 = vadd.f32 %v1771_v24, %v1450_v27 }
 0x2b1   : > { %2146 = vst [vmem:[#allocation2 + $0x1b0] sm:$0x1] %v4936_v21  ;;  %v1895_v41 = vadd.f32 %v1894_v42, %v6335_v50  ;;  %v2035_v34 = vadd.f32 %v2034_v39, %v1972_v28  ;;  %1734 = vperm.xlu0 %4735, %v4764_v15   ;;  %v682_v15 = vmul.f32 %v5890_v3, %v10757_v14  ;;  %v10763_v14 = vld [vmem:[#allocation23_spill] sm:$0xff] }
 0x2b2   : > { %2163 = vst [vmem:[#allocation2 + $0x348] sm:$0x1] %v4936_v21  ;;  %v6379_v18 = vpop.permute.xlu2 %1590  ;;  %v1551_v40 = vpop.permute.xlu1 %1550  ;;  %v1772_v2 = vmul.f32 %v6132_v0, %v1559_v45  ;;  %v1388_v31 = vmul.f32 %v5897_v10, %v5832_v6  ;;  %v10761_v45 = vld [vmem:[#allocation106_spill] sm:$0xff]  ;;  %v4765_v6 = vld [vmem:[%s10350_s0 + $0x1c8] sm:$0xff] }
 0x2b3   : > { %2164 = vst [vmem:[#allocation2 + $0x11] sm:$0x1] %v4936_v21  ;;  %v2036_v42 = vadd.f32 %v2035_v34, %v1973_v47  ;;  %v1770_v28 = vmul.f32 %v6132_v0, %v1551_v40  ;;  %v1571_v39 = vpop.permute.xlu0 %1570  ;;  %v1896_v9 = vadd.f32 %v1895_v41, %v6367_v37  ;;  %v1067_v46 = vadd.f32 %v1003_v49, %v682_v15  ;;  %v10760_v34 = vld [vmem:[#allocation136_spill] sm:$0xff] }
 0x2b4   : > { %2181 = vst [vmem:[#allocation2 + $0x1a9] sm:$0x1] %v4936_v21  ;;  %v1068_v47 = vadd.f32 %v1004_v20, %v683_v51  ;;  %v1389_v40 = vmul.f32 %v5897_v10, %v10760_v34  ;;  %v1976_v41 = vmul.f32 %v6386_v56, %v6386_v56  ;;  %v1774_v49 = vmul.f32 %v6132_v0, %v6268_v30  ;;  %v6417_v51 = vld [vmem:[%s10350_s0 + $0x1f0] sm:$0xff]  ;;  %v4767_v30 = vld [vmem:[%s10350_s0 + $0x1d8] sm:$0xff] }
 0x2b5   : > { %2182 = vst [vmem:[#allocation2 + $0x1c1] sm:$0x1] %v4936_v21  ;;  %v6391_v29 = vadd.f32 %v1770_v28, %v1449_v12  ;;  %v1005_v12 = vmul.f32 %v5887_v1, %v10761_v45  ;;  %v10762_v20 = vmov 2   ;;  %v684_v15 = vmul.f32 %v5890_v3, %v10763_v14  ;;  %v10766_v14 = vld [vmem:[#allocation107_spill] sm:$0xff] }
 0x2b6   : > { %2199 = vst [vmem:[#allocation2 + $0x359] sm:$0x1] %v4936_v21  ;;  %v1387_v21 = vmul.f32 %v5897_v10, %v5815_v62  ;;  %v1974_v62 = vmul.f32 %v6367_v37, %v6367_v37 }
 0x2b7   : > { %10753 = vst [vmem:[#allocation79_spill] sm:$0xff] %v6367_v37  ;;  %v1897_v36 = vadd.f32 %v1896_v9, %v6391_v29  ;;  %v1975_v24 = vmul.f32 %v6391_v29, %v6391_v29  ;;  %v1390_v9 = vmul.f32 %v5897_v10, %v5824_v58  ;;  %v1007_v37 = vmul.f32 %v5887_v1, %v10766_v14 }
 0x2b8   : > { %10758 = vst [vmem:[#allocation12_spill] sm:$0xff] %v6386_v56  ;;  %v1451_v55 = vadd.f32 %v1387_v21, %v1066_v32  ;;  %v2037_v27 = vadd.f32 %v2036_v42, %v1974_v62  ;;  %4732 = vset.pattern.permute.xlu2 %v10762_v20  ;;  %1730 = vperm.xlu1 %4730, %v4765_v6   ;;  %v10764_v32 = vld [vmem:[#allocation98_spill] sm:$0xff]  ;;  %v10765_v6 = vld [vmem:[#allocation45_spill] sm:$0xff]  ;;  %v10772_v14 = vmov 3  }
 0x2b9   : > { %10759 = vst [vmem:[#allocation71_spill] sm:$0xff] %v6391_v29  ;;  %v1898_v42 = vadd.f32 %v1897_v36, %v6386_v56  ;;  %1750 = vperm.xlu0 %4735, %v6417_v51   ;;  %1353 = vperm.xlu2 %4732, %v4767_v30   ;;  %v1006_v62 = vmul.f32 %v5887_v1, %v10764_v32 }
 0x2ba   : > { %v6411_v21 = vadd.f32 %v1772_v2, %v1451_v55  ;;  %v2038_v28 = vadd.f32 %v2037_v27, %v1975_v24  ;;  %v1453_v2 = vadd.f32 %v1389_v40, %v1068_v47  ;;  %v6429_v34 = vpop.permute.xlu2 %1602  ;;  %v1563_v55 = vpop.permute.xlu1 %1562  ;;  %v1452_v36 = vadd.f32 %v1388_v31, %v1067_v46  ;;  %v10769_v31 = vld [vmem:[#allocation44_spill] sm:$0xff] }
 0x2bb   : > { %v1773_v27 = vmul.f32 %v6132_v0, %v1563_v55  ;;  %v1583_v45 = vpop.permute.xlu0 %1582  ;;  %v685_v56 = vmul.f32 %v5890_v3, %v10765_v6  ;;  %v1069_v29 = vadd.f32 %v1005_v12, %v684_v15  ;;  %v1775_v47 = vmul.f32 %v6132_v0, %v1571_v39  ;;  %v10770_v55 = vld [vmem:[#allocation26_spill] sm:$0xff] }
 0x2bc   : > { %v2039_v24 = vadd.f32 %v2038_v28, %v1976_v41  ;;  %v6436_v32 = vadd.f32 %v1774_v49, %v1453_v2  ;;  %v1977_v58 = vmul.f32 %v6411_v21, %v6411_v21  ;;  %v1899_v46 = vadd.f32 %v1898_v42, %v6411_v21  ;;  %v10771_v6 = vld [vmem:[#allocation42_spill] sm:$0xff] }
 0x2bd   : > { %v6441_v40 = vadd.f32 %v1773_v27, %v1452_v36  ;;  %v686_v41 = vmul.f32 %v5890_v3, %v10769_v31  ;;  %v1070_v28 = vadd.f32 %v1006_v62, %v685_v56  ;;  %v1392_v12 = vmul.f32 %v5897_v10, %v10770_v55 }
 0x2be   : > { %10767 = vst [vmem:[#allocation14_spill] sm:$0xff] %v6436_v32  ;;  %v1454_v15 = vadd.f32 %v1390_v9, %v1069_v29  ;;  %v1391_v49 = vmul.f32 %v5897_v10, %v5843_v5  ;;  %v2040_v36 = vadd.f32 %v2039_v24, %v1977_v58  ;;  %v1008_v42 = vmul.f32 %v5887_v1, %v10771_v6  ;;  %v10773_v24 = vld [vmem:[#allocation27_spill] sm:$0xff]  ;;  %v10775_v6 = vld [vmem:[#allocation108_spill] sm:$0xff] }
 0x2bf   : > { %10768 = vst [vmem:[#allocation127_spill] sm:$0xff] %v6441_v40  ;;  %v1900_v2 = vadd.f32 %v1899_v46, %v6441_v40  ;;  %v1978_v39 = vmul.f32 %v6441_v40, %v6441_v40  ;;  %v1071_v27 = vadd.f32 %v1007_v37, %v686_v41  ;;  %v1979_v56 = vmul.f32 %v6436_v32, %v6436_v32  ;;  %v4768_v37 = vld [vmem:[%s10350_s0 + $0x1e0] sm:$0xff] }
 0x2c0   : > { %v1777_v62 = vmul.f32 %v6132_v0, %v6324_v38  ;;  %4733 = vset.pattern.permute.xlu1 %v10762_v20  ;;  %v6460_v29 = vadd.f32 %v1775_v47, %v1454_v15  ;;  %v687_v58 = vmul.f32 %v5890_v3, %v10773_v24  ;;  %v1393_v38 = vmul.f32 %v5897_v10, %v5834_v48 }
 0x2c1   : > { %v1901_v5 = vadd.f32 %v1900_v2, %v6436_v32  ;;  %v2041_v9 = vadd.f32 %v2040_v36, %v1978_v39  ;;  %4734 = vset.pattern.permute.xlu2 %v10772_v14  ;;  %1357 = vperm.xlu1 %4733, %v4768_v37   ;;  %v1456_v46 = vadd.f32 %v1392_v12, %v1071_v27  ;;  %v10774_v2 = vld [vmem:[#allocation101_spill] sm:$0xff]  ;;  %v10776_v27 = vld [vmem:[#allocation48_spill] sm:$0xff] }
 0x2c2   : > { %1738 = vperm.xlu2 %4734, %v4767_v30   ;;  %v1575_v47 = vpop.permute.xlu1 %1574  ;;  %v1455_v31 = vadd.f32 %v1391_v49, %v1070_v28  ;;  %v1009_v39 = vmul.f32 %v5887_v1, %v10774_v2  ;;  %v1072_v36 = vadd.f32 %v1008_v42, %v687_v58  ;;  %v1010_v32 = vmul.f32 %v5887_v1, %v10775_v6  ;;  %v6478_v12 = vpop.permute.xlu2 %1614  ;;  %v10777_v42 = vld [vmem:[#allocation49_spill] sm:$0xff] }
 0x2c3   : > { %v2042_v41 = vadd.f32 %v2041_v9, %v1979_v56  ;;  %v1776_v55 = vmul.f32 %v6132_v0, %v1575_v47  ;;  %v1595_v15 = vpop.permute.xlu0 %1594  ;;  %v6476_v40 = vadd.f32 %v1777_v62, %v1456_v46  ;;  %v1980_v48 = vmul.f32 %v6460_v29, %v6460_v29 }
 0x2c4   : > { %v1778_v30 = vmul.f32 %v6132_v0, %v1583_v45  ;;  %v1902_v49 = vadd.f32 %v1901_v5, %v6460_v29  ;;  %v689_v56 = vmul.f32 %v5890_v3, %v10776_v27  ;;  %v688_v9 = vmul.f32 %v5890_v3, %v10777_v42  ;;  %v10780_v42 = vld [vmem:[#allocation30_spill] sm:$0xff] }
 0x2c5   : > { %v6483_v28 = vadd.f32 %v1776_v55, %v1455_v31  ;;  %v1395_v62 = vmul.f32 %v5897_v10, %v5820_v53  ;;  %v1457_v24 = vadd.f32 %v1393_v38, %v1072_v36  ;;  %v1394_v58 = vmul.f32 %v5897_v10, %v5852_v63  ;;  %v10778_v55 = vld [vmem:[#allocation109_spill] sm:$0xff] }
 0x2c6   : > { %v2043_v47 = vadd.f32 %v2042_v41, %v1980_v48  ;;  %v1073_v5 = vadd.f32 %v1009_v39, %v688_v9  ;;  %v1074_v31 = vadd.f32 %v1010_v32, %v689_v56  ;;  %v1011_v2 = vmul.f32 %v5887_v1, %v10778_v55 }
 0x2c7   : > { %v1903_v46 = vadd.f32 %v1902_v49, %v6483_v28  ;;  %v1981_v45 = vmul.f32 %v6483_v28, %v6483_v28  ;;  %v1780_v6 = vmul.f32 %v6132_v0, %v6379_v18  ;;  %v1982_v53 = vmul.f32 %v6476_v40, %v6476_v40  ;;  %v10779_v49 = vld [vmem:[#allocation33_spill] sm:$0xff] }
 0x2c8   : > { %v6503_v38 = vadd.f32 %v1778_v30, %v1457_v24  ;;  %v690_v41 = vmul.f32 %v5890_v3, %v10779_v49  ;;  %v1459_v32 = vadd.f32 %v1395_v62, %v1074_v31  ;;  %v1396_v39 = vmul.f32 %v5897_v10, %v5845_v52  ;;  %v10781_v24 = vld [vmem:[#allocation110_spill] sm:$0xff]  ;;  %v10784_v31 = vld [vmem:[#allocation31_spill] sm:$0xff] }
 0x2c9   : > { %v1904_v63 = vadd.f32 %v1903_v46, %v6476_v40  ;;  %v2044_v36 = vadd.f32 %v2043_v47, %v1981_v45  ;;  %4736 = vset.pattern.permute.xlu1 %v10772_v14  ;;  %v1458_v48 = vadd.f32 %v1394_v58, %v1073_v5  ;;  %v1012_v14 = vmul.f32 %v5887_v1, %v10780_v42  ;;  %v10782_v45 = vld [vmem:[#allocation51_spill] sm:$0xff]  ;;  %v10783_v47 = vld [vmem:[#allocation52_spill] sm:$0xff] }
 0x2ca   : > { %4737 = vset.pattern.permute.xlu2 %v10762_v20  ;;  %1742 = vperm.xlu1 %4736, %v4768_v37   ;;  %v1587_v18 = vpop.permute.xlu1 %1586  ;;  %v1075_v9 = vadd.f32 %v1011_v2, %v690_v41  ;;  %v1013_v62 = vmul.f32 %v5887_v1, %v10781_v24  ;;  %v6518_v46 = vadd.f32 %v1780_v6, %v1459_v32  ;;  %v6532_v6 = vpop.permute.xlu2 %1626  ;;  %v10785_v32 = vld [vmem:[#allocation112_spill] sm:$0xff] }
 0x2cb   : > { %v2045_v27 = vadd.f32 %v2044_v36, %v1982_v53  ;;  %v1779_v30 = vmul.f32 %v6132_v0, %v1587_v18  ;;  %v1607_v56 = vpop.permute.xlu0 %1606  ;;  %1365 = vperm.xlu2 %4737, %v6417_v51   ;;  %v1983_v52 = vmul.f32 %v6503_v38, %v6503_v38  ;;  %v1781_v20 = vmul.f32 %v6132_v0, %v1595_v15 }
 0x2cc   : > { %v1905_v58 = vadd.f32 %v1904_v63, %v6503_v38  ;;  %v692_v51 = vmul.f32 %v5890_v3, %v10782_v45  ;;  %v691_v5 = vmul.f32 %v5890_v3, %v10783_v47  ;;  %v1398_v55 = vmul.f32 %v5897_v10, %v10784_v31  ;;  %v10788_v47 = vld [vmem:[#allocation36_spill] sm:$0xff] }
 0x2cd   : > { %v6523_v37 = vadd.f32 %v1779_v30, %v1458_v48  ;;  %v1460_v2 = vadd.f32 %v1396_v39, %v1075_v9  ;;  %v1397_v53 = vmul.f32 %v5897_v10, %v5865_v7  ;;  %v2046_v36 = vadd.f32 %v2045_v27, %v1983_v52  ;;  %v10786_v9 = vld [vmem:[#allocation39_spill] sm:$0xff]  ;;  %v4769_v52 = vld [vmem:[%s10350_s0 + $0x1e8] sm:$0xff] }
 0x2ce   : > { %v1076_v49 = vadd.f32 %v1012_v14, %v691_v5  ;;  %v1077_v41 = vadd.f32 %v1013_v62, %v692_v51  ;;  %v1014_v18 = vmul.f32 %v5887_v1, %v10785_v32  ;;  %v1783_v48 = vmul.f32 %v6132_v0, %v6429_v34  ;;  %v10787_v14 = vld [vmem:[#allocation38_spill] sm:$0xff]  ;;  %v4770_v51 = vld [vmem:[%s10350_s0 + $0x1f8] sm:$0xff] }
 0x2cf   : > { %v1906_v15 = vadd.f32 %v1905_v58, %v6523_v37  ;;  %v1984_v63 = vmul.f32 %v6523_v37, %v6523_v37  ;;  %v1985_v39 = vmul.f32 %v6518_v46, %v6518_v46  ;;  %v6545_v30 = vadd.f32 %v1781_v20, %v1460_v2  ;;  %v10791_v32 = vld [vmem:[#allocation54_spill] sm:$0xff] }
 0x2d0   : > { %v693_v24 = vmul.f32 %v5890_v3, %v10786_v9  ;;  %v1462_v27 = vadd.f32 %v1398_v55, %v1077_v41  ;;  %v1399_v62 = vmul.f32 %v5897_v10, %v10787_v14  ;;  %v1461_v58 = vadd.f32 %v1397_v53, %v1076_v49  ;;  %v10789_v55 = vld [vmem:[#allocation113_spill] sm:$0xff]  ;;  %v10793_v9 = vld [vmem:[#allocation32_spill] sm:$0xff] }
 0x2d1   : > { %v1907_v7 = vadd.f32 %v1906_v15, %v6518_v46  ;;  %v2047_v42 = vadd.f32 %v2046_v36, %v1984_v63  ;;  %v1015_v5 = vmul.f32 %v5887_v1, %v10788_v47  ;;  %v1016_v2 = vmul.f32 %v5887_v1, %v10789_v55 }
 0x2d2   : > { %1746 = vperm.xlu1 %4736, %v4769_v52   ;;  %v1599_v34 = vpop.permute.xlu1 %1598  ;;  %v1078_v31 = vadd.f32 %v1014_v18, %v693_v24  ;;  %v6563_v15 = vadd.f32 %v1783_v48, %v1462_v27  ;;  %v1986_v53 = vmul.f32 %v6545_v30, %v6545_v30  ;;  %v1784_v36 = vmul.f32 %v6132_v0, %v1607_v56  ;;  %v10794_v27 = vld [vmem:[#allocation140_spill] sm:$0xff] }
 0x2d3   : > { %v2048_v45 = vadd.f32 %v2047_v42, %v1985_v39  ;;  %v1782_v20 = vmul.f32 %v6132_v0, %v1599_v34  ;;  %1369 = vperm.xlu2 %4737, %v4770_v51   ;;  %v1619_v63 = vpop.permute.xlu0 %1618  ;;  %v1908_v41 = vadd.f32 %v1907_v7, %v6545_v30  ;;  %v695_v39 = vmul.f32 %v5890_v3, %v10791_v32  ;;  %v10792_v42 = vld [vmem:[#allocation55_spill] sm:$0xff]  ;;  %v6586_v32 = vpop.permute.xlu2 %1638 }
 0x2d4   : > { %v694_v18 = vmul.f32 %v5890_v3, %v10792_v42  ;;  %v1401_v48 = vmul.f32 %v5897_v10, %v10793_v9  ;;  %v1463_v24 = vadd.f32 %v1399_v62, %v1078_v31  ;;  %v1400_v14 = vmul.f32 %v5897_v10, %v10794_v27  ;;  %v10796_v9 = vld [vmem:[#allocation43_spill] sm:$0xff] }
 0x2d5   : > { %v6568_v49 = vadd.f32 %v1782_v20, %v1461_v58  ;;  %v2049_v34 = vadd.f32 %v2048_v45, %v1986_v53  ;;  %v1080_v58 = vadd.f32 %v1016_v2, %v695_v39  ;;  %v10795_v20 = vld [vmem:[#allocation115_spill] sm:$0xff]  ;;  %v1786_v55 = vmul.f32 %v6132_v0, %v6478_v12  ;;  %v10797_v2 = vld [vmem:[#allocation138_spill] sm:$0xff] }
 0x2d6   : > { %v1079_v7 = vadd.f32 %v1015_v5, %v694_v18  ;;  %v1017_v47 = vmul.f32 %v5887_v1, %v10795_v20  ;;  %v1988_v62 = vmul.f32 %v6563_v15, %v6563_v15  ;;  %v6590_v31 = vadd.f32 %v1784_v36, %v1463_v24  ;;  %v10798_v20 = vld [vmem:[#allocation46_spill] sm:$0xff] }
 0x2d7   : > { %10790 = vst [vmem:[#allocation81_spill] sm:$0xff] %v6568_v49  ;;  %v1909_v52 = vadd.f32 %v1908_v41, %v6568_v49  ;;  %v1987_v56 = vmul.f32 %v6568_v49, %v6568_v49  ;;  %v696_v45 = vmul.f32 %v5890_v3, %v10796_v9  ;;  %v1465_v5 = vadd.f32 %v1401_v48, %v1080_v58  ;;  %v10799_v49 = vld [vmem:[#allocation116_spill] sm:$0xff] }
 0x2d8   : > { %v1402_v53 = vmul.f32 %v5897_v10, %v10797_v2  ;;  %v1464_v12 = vadd.f32 %v1400_v14, %v1079_v7  ;;  %v1018_v36 = vmul.f32 %v5887_v1, %v10798_v20  ;;  %v1989_v48 = vmul.f32 %v6590_v31, %v6590_v31  ;;  %v10800_v7 = vld [vmem:[#allocation57_spill] sm:$0xff] }
 0x2d9   : > { %v1910_v41 = vadd.f32 %v1909_v52, %v6563_v15  ;;  %v2050_v42 = vadd.f32 %v2049_v34, %v1987_v56  ;;  %v1081_v24 = vadd.f32 %v1017_v47, %v696_v45  ;;  %v1019_v52 = vmul.f32 %v5887_v1, %v10799_v49 }
 0x2da   : > { %1754 = vperm.xlu1 %4736, %v4770_v51   ;;  %v1611_v39 = vpop.permute.xlu1 %1610  ;;  %v6602_v56 = vadd.f32 %v1786_v55, %v1465_v5  ;;  %v1787_v34 = vmul.f32 %v6132_v0, %v1619_v63  ;;  %v698_v58 = vmul.f32 %v5890_v3, %v10800_v7  ;;  %v1403_v45 = vmul.f32 %v5897_v10, %v5902_v61  ;;  %v10804_v7 = vld [vmem:[#allocation47_spill] sm:$0xff] }
 0x2db   : > { %v2051_v18 = vadd.f32 %v2050_v42, %v1988_v62  ;;  %v1785_v27 = vmul.f32 %v6132_v0, %v1611_v39  ;;  %v1911_v14 = vadd.f32 %v1910_v41, %v6590_v31  ;;  %v10801_v62 = vld [vmem:[#allocation58_spill] sm:$0xff]  ;;  %v10802_v42 = vld [vmem:[#allocation37_spill] sm:$0xff]  ;;  %v1466_v55 = vadd.f32 %v1402_v53, %v1081_v24  ;;  %v1631_v9 = vpop.permute.xlu0 %1630 }
 0x2dc   : > { %v697_v47 = vmul.f32 %v5890_v3, %v10801_v62  ;;  %v1404_v49 = vmul.f32 %v5897_v10, %v10802_v42  ;;  %v1083_v39 = vadd.f32 %v1019_v52, %v698_v58  ;;  %v1789_v20 = vmul.f32 %v6132_v0, %v6532_v6 }
 0x2dd   : > { %v6607_v51 = vadd.f32 %v1785_v27, %v1464_v12  ;;  %v2052_v41 = vadd.f32 %v2051_v18, %v1989_v48  ;;  %v10803_v12 = vld [vmem:[#allocation118_spill] sm:$0xff]  ;;  %v1991_v53 = vmul.f32 %v6602_v56, %v6602_v56  ;;  %v6627_v24 = vadd.f32 %v1787_v34, %v1466_v55  ;;  %v6634_v48 = vpop.permute.xlu2 %1650 }
 0x2de   : > { %v1082_v2 = vadd.f32 %v1018_v36, %v697_v47  ;;  %v1020_v27 = vmul.f32 %v5887_v1, %v10803_v12  ;;  %v699_v62 = vmul.f32 %v5890_v3, %v10804_v7  ;;  %v1468_v18 = vadd.f32 %v1404_v49, %v1083_v39  ;;  %v10805_v36 = vld [vmem:[#allocation141_spill] sm:$0xff]  ;;  %v10806_v12 = vld [vmem:[#allocation7_spill] sm:$0xff] }
 0x2df   : > { %v1912_v63 = vadd.f32 %v1911_v14, %v6607_v51  ;;  %v1990_v5 = vmul.f32 %v6607_v51, %v6607_v51  ;;  %v1405_v52 = vmul.f32 %v5897_v10, %v10805_v36  ;;  %v1021_v34 = vmul.f32 %v5887_v1, %v10806_v12  ;;  %v10808_v7 = vld [vmem:[#allocation61_spill] sm:$0xff] }
 0x2e0   : > { %v1467_v47 = vadd.f32 %v1403_v45, %v1082_v2  ;;  %v1084_v55 = vadd.f32 %v1020_v27, %v699_v62  ;;  %v1790_v49 = vmul.f32 %v6132_v0, %v1631_v9  ;;  %v700_v45 = vmul.f32 %v5890_v3, %v10808_v7  ;;  %v10809_v2 = vld [vmem:[#allocation119_spill] sm:$0xff]  ;;  %v10812_v7 = vld [vmem:[#allocation121_spill] sm:$0xff] }
 0x2e1   : > { %v1913_v61 = vadd.f32 %v1912_v63, %v6602_v56  ;;  %v2053_v14 = vadd.f32 %v2052_v41, %v1990_v5  ;;  %v6639_v63 = vadd.f32 %v1789_v20, %v1468_v18  ;;  %v1992_v5 = vmul.f32 %v6627_v24, %v6627_v24  ;;  %v10810_v18 = vld [vmem:[#allocation60_spill] sm:$0xff] }
 0x2e2   : > { %v1623_v58 = vpop.permute.xlu1 %1622  ;;  %v1406_v27 = vmul.f32 %v5897_v10, %v5916_v19  ;;  %v701_v36 = vmul.f32 %v5890_v3, %v10810_v18 }
 0x2e3   : > { %v2054_v6 = vadd.f32 %v2053_v14, %v1991_v53  ;;  %v1788_v42 = vmul.f32 %v6132_v0, %v1623_v58  ;;  %v1914_v39 = vadd.f32 %v1913_v61, %v6627_v24  ;;  %v1022_v53 = vmul.f32 %v5887_v1, %v10809_v2  ;;  %v10811_v58 = vld [vmem:[#allocation137_spill] sm:$0xff] }
 0x2e4   : > { %v1469_v14 = vadd.f32 %v1405_v52, %v1084_v55  ;;  %v1085_v61 = vadd.f32 %v1021_v34, %v700_v45  ;;  %v1994_v52 = vmul.f32 %v6639_v63, %v6639_v63 }
 0x2e5   : > { %v6644_v41 = vadd.f32 %v1788_v42, %v1467_v47  ;;  %v2055_v9 = vadd.f32 %v2054_v6, %v1992_v5  ;;  %v1407_v47 = vmul.f32 %v5897_v10, %v10811_v58  ;;  %v1643_v42 = vpop.permute.xlu0 %1642  ;;  %v1023_v6 = vmul.f32 %v5887_v1, %v10812_v7  ;;  %v10813_v58 = vld [vmem:[#allocation50_spill] sm:$0xff] }
 0x2e6   : > { %v6662_v12 = vadd.f32 %v1790_v49, %v1469_v14  ;;  %v1792_v5 = vmul.f32 %v6132_v0, %v6586_v32  ;;  %v1470_v45 = vadd.f32 %v1406_v27, %v1085_v61  ;;  %v10814_v49 = vld [vmem:[#allocation111_spill] sm:$0xff] }
 0x2e7   : > { %10807 = vst [vmem:[#allocation86_spill] sm:$0xff] %v6644_v41  ;;  %v1915_v20 = vadd.f32 %v1914_v39, %v6644_v41  ;;  %v1993_v62 = vmul.f32 %v6644_v41, %v6644_v41  ;;  %v1086_v39 = vadd.f32 %v1022_v53, %v701_v36  ;;  %v702_v41 = vmul.f32 %v5890_v3, %v10813_v58  ;;  %v10816_v36 = vld [vmem:[#allocation64_spill] sm:$0xff] }
 0x2e8   : > { %v1024_v14 = vmul.f32 %v5887_v1, %v10814_v49  ;;  %v1408_v53 = vmul.f32 %v5897_v10, %v5905_v57  ;;  %v703_v61 = vmul.f32 %v5890_v3, %v10816_v36 }
 0x2e9   : > { %v1916_v19 = vadd.f32 %v1915_v20, %v6639_v63  ;;  %v2056_v55 = vadd.f32 %v2055_v9, %v1993_v62  ;;  %v1471_v20 = vadd.f32 %v1407_v47, %v1086_v39  ;;  %v1663_v62 = vpop.permute.xlu2 %1662  ;;  %v1995_v9 = vmul.f32 %v6662_v12, %v6662_v12 }
 0x2ea   : > { %v1635_v34 = vpop.permute.xlu1 %1634  ;;  %v1793_v47 = vmul.f32 %v6132_v0, %v1643_v42 }
 0x2eb   : > { %v2057_v2 = vadd.f32 %v2056_v55, %v1994_v52  ;;  %v1791_v18 = vmul.f32 %v6132_v0, %v1635_v34  ;;  %v1917_v27 = vadd.f32 %v1916_v19, %v6662_v12  ;;  %v1087_v52 = vadd.f32 %v1023_v6, %v702_v41  ;;  %v10819_v41 = vld [vmem:[#allocation63_spill] sm:$0xff] }
 0x2ec   : > { %v1409_v55 = vmul.f32 %v5897_v10, %v5930_v22  ;;  %v6685_v7 = vadd.f32 %v1792_v5, %v1471_v20  ;;  %v704_v6 = vmul.f32 %v5890_v3, %v10819_v41  ;;  %v10820_v22 = vld [vmem:[#allocation139_spill] sm:$0xff] }
 0x2ed   : > { %v6678_v32 = vadd.f32 %v1791_v18, %v1470_v45  ;;  %v2058_v34 = vadd.f32 %v2057_v2, %v1995_v9  ;;  %v1088_v45 = vadd.f32 %v1024_v14, %v703_v61  ;;  %v10818_v18 = vld [vmem:[#allocation122_spill] sm:$0xff]  ;;  %v1472_v58 = vadd.f32 %v1408_v53, %v1087_v52  ;;  %v1655_v42 = vpop.permute.xlu0 %1654  ;;  %v10823_v52 = vld [vmem:[#allocation124_spill] sm:$0xff] }
 0x2ee   : > { %10817 = vst [vmem:[#allocation84_spill] sm:$0xff] %v6685_v7  ;;  %v1025_v19 = vmul.f32 %v5887_v1, %v10818_v18  ;;  %v1410_v5 = vmul.f32 %v5897_v10, %v10820_v22  ;;  %v10822_v53 = vld [vmem:[#allocation114_spill] sm:$0xff]  ;;  %v10824_v18 = vld [vmem:[#allocation53_spill] sm:$0xff]  ;;  %v1411_v22 = vmul.f32 %v5897_v10, %v5919_v8 }
 0x2ef   : > { %10815 = vst [vmem:[#allocation129_spill] sm:$0xff] %v6678_v32  ;;  %v1918_v57 = vadd.f32 %v1917_v27, %v6678_v32  ;;  %v1996_v39 = vmul.f32 %v6678_v32, %v6678_v32  ;;  %v1473_v20 = vadd.f32 %v1409_v55, %v1088_v45  ;;  %v1997_v27 = vmul.f32 %v6685_v7, %v6685_v7 }
 0x2f0   : > { %v6699_v32 = vadd.f32 %v1793_v47, %v1472_v58  ;;  %v1027_v9 = vmul.f32 %v5887_v1, %v10822_v53  ;;  %v1089_v61 = vadd.f32 %v1025_v19, %v704_v6  ;;  %v1795_v55 = vmul.f32 %v6132_v0, %v6634_v48  ;;  %v10825_v58 = vld [vmem:[#allocation67_spill] sm:$0xff] }
 0x2f1   : > { %v2059_v49 = vadd.f32 %v2058_v34, %v1996_v39  ;;  %v1919_v2 = vadd.f32 %v1918_v57, %v6685_v7  ;;  %v1026_v39 = vmul.f32 %v5887_v1, %v10823_v52  ;;  %v705_v47 = vmul.f32 %v5890_v3, %v10824_v18  ;;  %v1675_v19 = vpop.permute.xlu2 %1674 }
 0x2f2   : > { %v1647_v36 = vpop.permute.xlu1 %1646  ;;  %10821 = vst [vmem:[#allocation82_spill] sm:$0xff] %v6699_v32  ;;  %v706_v57 = vmul.f32 %v5890_v3, %v10825_v58  ;;  %v1474_v41 = vadd.f32 %v1410_v5, %v1089_v61  ;;  %v1412_v6 = vmul.f32 %v5897_v10, %v5944_v25  ;;  %v1998_v48 = vmul.f32 %v6699_v32, %v6699_v32 }
 0x2f3   : > { %v1794_v14 = vmul.f32 %v6132_v0, %v1647_v36  ;;  %v2060_v34 = vadd.f32 %v2059_v49, %v1997_v27  ;;  %v1920_v49 = vadd.f32 %v1919_v2, %v6699_v32  ;;  %v1090_v27 = vadd.f32 %v1026_v39, %v705_v47 }
 0x2f4   : > { %v1091_v36 = vadd.f32 %v1027_v9, %v706_v57  ;;  %v1796_v5 = vmul.f32 %v6132_v0, %v1655_v42  ;;  %v10826_v42 = vld [vmem:[#allocation117_spill] sm:$0xff]  ;;  %v1798_v57 = vmul.f32 %v6132_v0, %v1663_v62 }
 0x2f5   : > { %v6709_v45 = vadd.f32 %v1794_v14, %v1473_v20  ;;  %v6724_v14 = vadd.f32 %v1795_v55, %v1474_v41  ;;  %v2061_v53 = vadd.f32 %v2060_v34, %v1998_v48  ;;  %v1475_v52 = vadd.f32 %v1411_v22, %v1090_v27  ;;  %v1667_v7 = vpop.permute.xlu0 %1666  ;;  %v10827_v34 = vld [vmem:[#allocation126_spill] sm:$0xff]  ;;  %v10828_v22 = vld [vmem:[#allocation56_spill] sm:$0xff] }
 0x2f6   : > { %v1476_v25 = vadd.f32 %v1412_v6, %v1091_v36  ;;  %v1030_v55 = vmul.f32 %v5887_v1, %v10826_v42  ;;  %v1029_v47 = vmul.f32 %v5887_v1, %v10827_v34  ;;  %v708_v6 = vmul.f32 %v5890_v3, %v10828_v22  ;;  %v10829_v48 = vld [vmem:[#allocation70_spill] sm:$0xff] }
 0x2f7   : > { %v1999_v20 = vmul.f32 %v6709_v45, %v6709_v45  ;;  %v1921_v8 = vadd.f32 %v1920_v49, %v6709_v45  ;;  %v2000_v2 = vmul.f32 %v6724_v14, %v6724_v14  ;;  %v6731_v32 = vadd.f32 %v1796_v5, %v1475_v52 }
 0x2f8   : > { %v709_v49 = vmul.f32 %v5890_v3, %v10829_v48  ;;  %v1415_v27 = vmul.f32 %v5897_v10, %v5961_v16  ;;  %v6755_v52 = vadd.f32 %v1798_v57, %v5907_v44  ;;  %v10831_v57 = vld [vmem:[#allocation120_spill] sm:$0xff]  ;;  %v1801_v48 = vmul.f32 %v6132_v0, %v1675_v19 }
 0x2f9   : > { %v2062_v18 = vadd.f32 %v2061_v53, %v1999_v20  ;;  %v1922_v9 = vadd.f32 %v1921_v8, %v6724_v14  ;;  %v1414_v20 = vmul.f32 %v5897_v10, %v5933_v17  ;;  %v1687_v36 = vpop.permute.xlu2 %1686  ;;  %v2001_v5 = vmul.f32 %v6731_v32, %v6731_v32 }
 0x2fa   : > { %v1659_v61 = vpop.permute.xlu1 %1658  ;;  %v1094_v53 = vadd.f32 %v1030_v55, %v709_v49  ;;  %v1799_v17 = vmul.f32 %v6132_v0, %v1667_v7  ;;  %v2003_v22 = vmul.f32 %v6755_v52, %v6755_v52  ;;  %v1033_v7 = vmul.f32 %v5887_v1, %v10831_v57 }
 0x2fb   : > { %v1797_v58 = vmul.f32 %v6132_v0, %v1659_v61  ;;  %v2063_v41 = vadd.f32 %v2062_v18, %v2000_v2  ;;  %v1923_v8 = vadd.f32 %v1922_v9, %v6731_v32  ;;  %v1093_v61 = vadd.f32 %v1029_v47, %v708_v6  ;;  %v10832_v6 = vld [vmem:[#allocation128_spill] sm:$0xff] }
 0x2fc   : > { %v1479_v42 = vadd.f32 %v1415_v27, %v1094_v53 }
 0x2fd   : > { %v6734_v39 = vadd.f32 %v1797_v58, %v1476_v25  ;;  %v2064_v58 = vadd.f32 %v2063_v41, %v2001_v5  ;;  %v1478_v2 = vadd.f32 %v1414_v20, %v1093_v61  ;;  %v1679_v9 = vpop.permute.xlu0 %1678  ;;  %v1032_v41 = vmul.f32 %v5887_v1, %v10832_v6  ;;  %v10833_v20 = vld [vmem:[#allocation59_spill] sm:$0xff]  ;;  %v10834_v5 = vld [vmem:[#allocation73_spill] sm:$0xff] }
 0x2fe   : > { %v711_v27 = vmul.f32 %v5890_v3, %v10833_v20 }
 0x2ff   : > { %v2002_v62 = vmul.f32 %v6734_v39, %v6734_v39  ;;  %v1924_v18 = vadd.f32 %v1923_v8, %v6734_v39  ;;  %v6762_v55 = vadd.f32 %v1799_v17, %v1478_v2  ;;  %v712_v8 = vmul.f32 %v5890_v3, %v10834_v5 }
 0x300   : > { %v6786_v2 = vadd.f32 %v1801_v48, %v5921_v11  ;;  %v1804_v48 = vmul.f32 %v6132_v0, %v1687_v36 }
 0x301   : > { %v2065_v34 = vadd.f32 %v2064_v58, %v2002_v62  ;;  %v1925_v44 = vadd.f32 %v1924_v18, %v6755_v52  ;;  %v1417_v62 = vmul.f32 %v5897_v10, %v5947_v4  ;;  %v1699_v53 = vpop.permute.xlu2 %1698  ;;  %v2004_v17 = vmul.f32 %v6762_v55, %v6762_v55 }
 0x302   : > { %v1671_v25 = vpop.permute.xlu1 %1670  ;;  %v1097_v58 = vadd.f32 %v1033_v7, %v712_v8  ;;  %10835 = vst [vmem:[#allocation22_spill] sm:$0xff] %v6786_v2  ;;  %v1802_v4 = vmul.f32 %v6132_v0, %v1679_v9  ;;  %v10839_v8 = vld [vmem:[#allocation62_spill] sm:$0xff] }
 0x303   : > { %v1800_v16 = vmul.f32 %v6132_v0, %v1671_v25  ;;  %v2066_v49 = vadd.f32 %v2065_v34, %v2003_v22  ;;  %v1418_v25 = vmul.f32 %v5897_v10, %v5987_v26  ;;  %v1926_v19 = vadd.f32 %v1925_v44, %v6762_v55 }
 0x304   : > { %v2006_v44 = vmul.f32 %v6786_v2, %v6786_v2 }
 0x305   : > { %v6765_v47 = vadd.f32 %v1800_v16, %v1479_v42  ;;  %v1096_v16 = vadd.f32 %v1032_v41, %v711_v27  ;;  %v2067_v34 = vadd.f32 %v2066_v49, %v2004_v17  ;;  %v1482_v57 = vadd.f32 %v1418_v25, %v1097_v58  ;;  %v1691_v20 = vpop.permute.xlu0 %1690  ;;  %v10838_v41 = vld [vmem:[#allocation130_spill] sm:$0xff]  ;;  %v10840_v25 = vld [vmem:[#allocation72_spill] sm:$0xff] }
 0x306   : > { %v1035_v9 = vmul.f32 %v5887_v1, %v10838_v41  ;;  %v1420_v17 = vmul.f32 %v5897_v10, %v10840_v25 }
 0x307   : > { %10830 = vst [vmem:[#allocation91_spill] sm:$0xff] %v6765_v47  ;;  %v2005_v18 = vmul.f32 %v6765_v47, %v6765_v47  ;;  %v1927_v42 = vadd.f32 %v1926_v19, %v6765_v47  ;;  %v1481_v22 = vadd.f32 %v1417_v62, %v1096_v16  ;;  %v714_v62 = vmul.f32 %v5890_v3, %v10839_v8 }
 0x309   : > { %v2068_v6 = vadd.f32 %v2067_v34, %v2005_v18  ;;  %v6793_v5 = vadd.f32 %v1802_v4, %v1481_v22  ;;  %v1928_v7 = vadd.f32 %v1927_v42, %v6786_v2  ;;  %v1099_v16 = vadd.f32 %v1035_v9, %v714_v62  ;;  %v10841_v4 = vld [vmem:[#allocation66_spill] sm:$0xff] }
 0x30a   : > { %v1683_v61 = vpop.permute.xlu1 %1682  ;;  %v6811_v36 = vadd.f32 %v1804_v48, %v10841_v4  ;;  %v1805_v42 = vmul.f32 %v6132_v0, %v1691_v20  ;;  %v10844_v48 = vld [vmem:[#allocation65_spill] sm:$0xff]  ;;  %v1807_v20 = vmul.f32 %v6132_v0, %v1699_v53 }
 0x30b   : > { %v1803_v26 = vmul.f32 %v6132_v0, %v1683_v61  ;;  %10836 = vst [vmem:[#allocation19_spill] sm:$0xff] %v6793_v5  ;;  %v2069_v27 = vadd.f32 %v2068_v6, %v2006_v44  ;;  %v1711_v61 = vpop.permute.xlu2 %1710  ;;  %v2007_v19 = vmul.f32 %v6793_v5, %v6793_v5  ;;  %v1929_v18 = vadd.f32 %v1928_v7, %v6793_v5 }
 0x30c   : > { %10842 = vst [vmem:[#allocation18_spill] sm:$0xff] %v6811_v36  ;;  %v2009_v7 = vmul.f32 %v6811_v36, %v6811_v36 }
 0x30d   : > { %v6796_v11 = vadd.f32 %v1803_v26, %v1482_v57  ;;  %v2070_v26 = vadd.f32 %v2069_v27, %v2007_v19  ;;  %v1484_v57 = vadd.f32 %v1420_v17, %v1099_v16  ;;  %v1703_v44 = vpop.permute.xlu0 %1702 }
 0x30e   : > { %v1808_v16 = vmul.f32 %v6132_v0, %v1703_v44  ;;  %v1810_v44 = vmul.f32 %v6132_v0, %v1711_v61 }
 0x30f   : > { %10837 = vst [vmem:[#allocation94_spill] sm:$0xff] %v6796_v11  ;;  %v2008_v58 = vmul.f32 %v6796_v11, %v6796_v11  ;;  %v1930_v34 = vadd.f32 %v1929_v18, %v6796_v11  ;;  %v6818_v8 = vadd.f32 %v1805_v42, %v1484_v57  ;;  %v10846_v18 = vld [vmem:[#allocation69_spill] sm:$0xff] }
 0x311   : > { %v2071_v6 = vadd.f32 %v2070_v26, %v2008_v58  ;;  %10843 = vst [vmem:[#allocation85_spill] sm:$0xff] %v6818_v8  ;;  %v1931_v9 = vadd.f32 %v1930_v34, %v6811_v36  ;;  %v6831_v58 = vadd.f32 %v1807_v20, %v10846_v18  ;;  %v10852_v18 = vld [vmem:[#allocation75_spill] sm:$0xff] }
 0x312   : > { %v1695_v49 = vpop.permute.xlu1 %1694 }
 0x313   : > { %v1806_v22 = vmul.f32 %v6132_v0, %v1695_v49  ;;  %v2072_v25 = vadd.f32 %v2071_v6, %v2009_v7  ;;  %v1723_v27 = vpop.permute.xlu2 %1722  ;;  %v2010_v49 = vmul.f32 %v6818_v8, %v6818_v8  ;;  %v1932_v17 = vadd.f32 %v1931_v9, %v6818_v8  ;;  %10847 = vst [vmem:[#allocation13_spill] sm:$0xff] %v6831_v58  ;;  %v10848_v6 = vld [vmem:[#allocation80_spill] sm:$0xff] }
 0x314   : > { %v2012_v57 = vmul.f32 %v6831_v58, %v6831_v58  ;;  %v6839_v7 = vadd.f32 %v1808_v16, %v10848_v6  ;;  %v6852_v16 = vadd.f32 %v1810_v44, %v10852_v18  ;;  %v10856_v44 = vld [vmem:[#allocation83_spill] sm:$0xff] }
 0x315   : > { %v6822_v62 = vadd.f32 %v1806_v22, %v10844_v48  ;;  %v2073_v42 = vadd.f32 %v2072_v25, %v2010_v49  ;;  %v1715_v22 = vpop.permute.xlu0 %1714  ;;  %v10850_v48 = vld [vmem:[#allocation123_spill] sm:$0xff] }
 0x316   : > { %10849 = vst [vmem:[#allocation93_spill] sm:$0xff] %v6839_v7 }
 0x317   : > { %10845 = vst [vmem:[#allocation133_spill] sm:$0xff] %v6822_v62  ;;  %v2011_v19 = vmul.f32 %v6822_v62, %v6822_v62  ;;  %v1933_v4 = vadd.f32 %v1932_v17, %v6822_v62 }
 0x318   : > { %10853 = vst [vmem:[#allocation21_spill] sm:$0xff] %v6852_v16 }
 0x319   : > { %v2074_v26 = vadd.f32 %v2073_v42, %v2011_v19  ;;  %v1934_v9 = vadd.f32 %v1933_v4, %v6831_v58  ;;  %v1811_v4 = vmul.f32 %v6132_v0, %v1715_v22  ;;  %v1813_v22 = vmul.f32 %v6132_v0, %v1723_v27 }
 0x31a   : > { %v1707_v41 = vpop.permute.xlu1 %1706 }
 0x31b   : > { %v1809_v53 = vmul.f32 %v6132_v0, %v1707_v41  ;;  %v2075_v17 = vadd.f32 %v2074_v26, %v2012_v57  ;;  %v1354_v25 = vpop.permute.xlu2 %1353  ;;  %v2013_v41 = vmul.f32 %v6839_v7, %v6839_v7  ;;  %v1935_v49 = vadd.f32 %v1934_v9, %v6839_v7  ;;  %v10854_v9 = vld [vmem:[#allocation9_spill] sm:$0xff] }
 0x31c   : > { %v6860_v7 = vadd.f32 %v1811_v4, %v10854_v9  ;;  %v10858_v4 = vld [vmem:[#allocation78_spill] sm:$0xff] }
 0x31d   : > { %v6843_v20 = vadd.f32 %v1809_v53, %v10850_v48  ;;  %v2076_v6 = vadd.f32 %v2075_v17, %v2013_v41  ;;  %v1727_v57 = vpop.permute.xlu0 %1726  ;;  %v2015_v48 = vmul.f32 %v6852_v16, %v6852_v16 }
 0x31e   : > { %10855 = vst [vmem:[#allocation96_spill] sm:$0xff] %v6860_v7 }
 0x31f   : > { %10851 = vst [vmem:[#allocation15_spill] sm:$0xff] %v6843_v20  ;;  %v2014_v19 = vmul.f32 %v6843_v20, %v6843_v20  ;;  %v1936_v53 = vadd.f32 %v1935_v49, %v6843_v20  ;;  %v10862_v20 = vld [vmem:[#allocation68_spill] sm:$0xff] }
 0x321   : > { %v2077_v26 = vadd.f32 %v2076_v6, %v2014_v19  ;;  %v1937_v58 = vadd.f32 %v1936_v53, %v6852_v16  ;;  %v6873_v6 = vadd.f32 %v1813_v22, %v10858_v4  ;;  %v1814_v53 = vmul.f32 %v6132_v0, %v1727_v57  ;;  %v10863_v4 = vld [vmem:[#allocation131_spill] sm:$0xff] }
 0x322   : > { %v1719_v34 = vpop.permute.xlu1 %1718  ;;  %v1048_v57 = vmul.f32 %v5887_v1, %v10863_v4 }
 0x323   : > { %v1812_v61 = vmul.f32 %v6132_v0, %v1719_v34  ;;  %v2078_v62 = vadd.f32 %v2077_v26, %v2015_v48  ;;  %v1739_v49 = vpop.permute.xlu2 %1738  ;;  %v2016_v34 = vmul.f32 %v6860_v7, %v6860_v7  ;;  %v1938_v17 = vadd.f32 %v1937_v58, %v6860_v7  ;;  %10859 = vst [vmem:[#allocation97_spill] sm:$0xff] %v6873_v6  ;;  %v10860_v58 = vld [vmem:[#allocation76_spill] sm:$0xff] }
 0x324   : > { %v6881_v7 = vadd.f32 %v1814_v53, %v10860_v58 }
 0x325   : > { %v6864_v18 = vadd.f32 %v1812_v61, %v10856_v44  ;;  %v2079_v9 = vadd.f32 %v2078_v62, %v2016_v34  ;;  %v1735_v48 = vpop.permute.xlu0 %1734  ;;  %v2018_v44 = vmul.f32 %v6873_v6, %v6873_v6 }
 0x326   : > { %10861 = vst [vmem:[#allocation16_spill] sm:$0xff] %v6881_v7  ;;  %v1816_v34 = vmul.f32 %v6132_v0, %v1735_v48 }
 0x327   : > { %10857 = vst [vmem:[#allocation88_spill] sm:$0xff] %v6864_v18  ;;  %v2017_v41 = vmul.f32 %v6864_v18, %v6864_v18  ;;  %v1939_v61 = vadd.f32 %v1938_v17, %v6864_v18  ;;  %v10864_v17 = vld [vmem:[#allocation134_spill] sm:$0xff]  ;;  %v10866_v18 = vld [vmem:[#allocation87_spill] sm:$0xff] }
 0x328   : > { %v1047_v62 = vmul.f32 %v5887_v1, %v10864_v17  ;;  %v727_v53 = vmul.f32 %v5890_v3, %v10866_v18 }
 0x329   : > { %v2080_v26 = vadd.f32 %v2079_v9, %v2017_v41  ;;  %v1940_v16 = vadd.f32 %v1939_v61, %v6873_v6  ;;  %v10865_v41 = vld [vmem:[#allocation74_spill] sm:$0xff]  ;;  %v1432_v61 = vmul.f32 %v5897_v10, %v1354_v25  ;;  %v10867_v6 = vld [vmem:[#allocation8_spill] sm:$0xff] }
 0x32a   : > { %v1731_v42 = vpop.permute.xlu1 %1730  ;;  %v726_v9 = vmul.f32 %v5890_v3, %v10865_v41  ;;  %v1817_v41 = vmul.f32 %v6132_v0, %v1739_v49  ;;  %v6905_v18 = vadd.f32 %v1816_v34, %v10867_v6 }
 0x32b   : > { %v1815_v27 = vmul.f32 %v6132_v0, %v1731_v42  ;;  %v2081_v42 = vadd.f32 %v2080_v26, %v2018_v44  ;;  %v1366_v58 = vpop.permute.xlu2 %1365  ;;  %v1941_v4 = vadd.f32 %v1940_v16, %v6881_v7  ;;  %v1112_v44 = vadd.f32 %v1048_v57, %v727_v53 }
 0x32c   : > { %v1111_v17 = vadd.f32 %v1047_v62, %v726_v9  ;;  %v4937_v57 = vmov 512.0   ;;  %v10869_v62 = vld [vmem:[#allocation77_spill] sm:$0xff] }
 0x32d   : > { %v6885_v22 = vadd.f32 %v1815_v27, %v10862_v20  ;;  %v2019_v27 = vmul.f32 %v6881_v7, %v6881_v7  ;;  %v10868_v7 = vld [vmem:[#allocation135_spill] sm:$0xff]  ;;  %4738 = vrcp.f32 %v4937_v57  ;;  %v1751_v34 = vpop.permute.xlu0 %1750 }
 0x32e   : > { %v1496_v11 = vadd.f32 %v1432_v61, %v1111_v17  ;;  %v1050_v2 = vmul.f32 %v5887_v1, %v10868_v7  ;;  %v10870_v7 = vld [vmem:[#allocation132_spill] sm:$0xff] }
 0x32f   : > { %v2020_v26 = vmul.f32 %v6885_v22, %v6885_v22  ;;  %v1942_v25 = vadd.f32 %v1941_v4, %v6885_v22  ;;  %v2082_v8 = vadd.f32 %v2081_v42, %v2019_v27  ;;  %v729_v42 = vmul.f32 %v5890_v3, %v10869_v62 }
 0x330   : > { %v6911_v47 = vadd.f32 %v1817_v41, %v1496_v11  ;;  %v1051_v61 = vmul.f32 %v5887_v1, %v10870_v7  ;;  %v1820_v4 = vmul.f32 %v6132_v0, %v1751_v34 }
 0x331   : > { %v2083_v5 = vadd.f32 %v2082_v8, %v2020_v26  ;;  %v1943_v49 = vadd.f32 %v1942_v25, %v6905_v18  ;;  %v1435_v8 = vmul.f32 %v5897_v10, %v1366_v58 }
 0x333   : > { %v1358_v19 = vpop.permute.xlu1 %1357  ;;  %v1370_v27 = vpop.permute.xlu2 %1369  ;;  %v1944_v26 = vadd.f32 %v1943_v49, %v6911_v47 }
 0x334   : > { %v1433_v48 = vmul.f32 %v5897_v10, %v1358_v19  ;;  %v2021_v19 = vmul.f32 %v6905_v18, %v6905_v18  ;;  %v4739_v1 = vpop.eup %4738 }
 0x335   : > { %v1956_v34 = vmul.f32 512.0, %v4739_v1  ;;  %vm1960_vm0 = vweird.f32 %v4739_v1 }
 0x336   : > { %v1497_v16 = vadd.f32 %v1433_v48, %v1112_v44  ;;  %v2084_v53 = vadd.f32 %v2083_v5, %v2021_v19  ;;  %v10871_v48 = vld [vmem:[#allocation10_spill] sm:$0xff]  ;;  %v10872_v5 = vld [vmem:[#allocation89_spill] sm:$0xff] }
 0x337   : > { %v730_v17 = vmul.f32 %v5890_v3, %v10872_v5 }
 0x339   : > { %v1115_v49 = vadd.f32 %v1051_v61, %v730_v17 }
 0x33c   : > { %v1743_v20 = vpop.permute.xlu1 %1742 }
 0x33d   : > { %v1818_v36 = vmul.f32 %v6132_v0, %v1743_v20  ;;  %v1114_v20 = vadd.f32 %v1050_v2, %v729_v42  ;;  %v1436_v2 = vmul.f32 %v5897_v10, %v1370_v27 }
 0x33f   : > { %v6916_v6 = vadd.f32 %v1818_v36, %v1497_v16  ;;  %v2022_v36 = vmul.f32 %v6911_v47, %v6911_v47  ;;  %v1499_v41 = vadd.f32 %v1435_v8, %v1114_v20  ;;  %v1957_v20 = vsub.f32 1.0, %v1956_v34 }
 0x341   : > { %v2023_v58 = vmul.f32 %v6916_v6, %v6916_v6  ;;  %v1945_v25 = vadd.f32 %v1944_v26, %v6916_v6  ;;  %v2085_v16 = vadd.f32 %v2084_v53, %v2022_v36  ;;  %v6939_v57 = vadd.f32 %v1820_v4, %v1499_v41 }
 0x343   : > { %v2086_v62 = vadd.f32 %v2085_v16, %v2023_v58  ;;  %v2025_v10 = vmul.f32 %v6939_v57, %v6939_v57  ;;  %v1958_v58 = vmul.f32 %v4739_v1, %v1957_v20 }
 0x344   : > { %v1747_v9 = vpop.permute.xlu1 %1746 }
 0x345   : > { %v1819_v11 = vmul.f32 %v6132_v0, %v1747_v9 }
 0x347   : > { %v6931_v44 = vadd.f32 %v1819_v11, %v10871_v48  ;;  %v1500_v11 = vadd.f32 %v1436_v2, %v1115_v49  ;;  %v1959_v2 = vadd.f32 %v4739_v1, %v1958_v58 }
 0x349   : > { %v2024_v19 = vmul.f32 %v6931_v44, %v6931_v44  ;;  %v1946_v42 = vadd.f32 %v1945_v25, %v6931_v44  ;;  %v6946_v49 = vsel %vm1960_vm0, %v4739_v1, %v1959_v2  ;;  %v2097_v1 = vld [vmem:[%s6955_s22] sm:$0x1]  ;;  %v10874_v2 = vld [vmem:[#allocation11_spill] sm:$0xff] }
 0x34a   : > { %10873 = vst [vmem:[#allocation24_spill] sm:$0xff] %v6946_v49 }
 0x34b   : > { %v2087_v3 = vadd.f32 %v2086_v62, %v2024_v19  ;;  %v1947_v53 = vadd.f32 %v1946_v42, %v6939_v57 }
 0x34c   : > { %v1755_v9 = vpop.permute.xlu1 %1754 }
 0x34d   : > { %v1821_v8 = vmul.f32 %v6132_v0, %v1755_v9  ;;  %v2088_v27 = vadd.f32 %v2087_v3, %v2025_v10 }
 0x34f   : > { %v1885_v7 = vadd.f32 %v1821_v8, %v1500_v11 }
 0x351   : > { %v1948_v36 = vadd.f32 %v1947_v53, %v1885_v7  ;;  %v2026_v61 = vmul.f32 %v1885_v7, %v1885_v7 }
 0x353   : > { %v1949_v4 = vrot.slane %v1948_v36, 4  ;;  %v2089_v26 = vadd.f32 %v2088_v27, %v2026_v61 }
 0x355   : > { %v1950_v48 = vadd.f32 %v1949_v4, %v1948_v36  ;;  %v2090_v5 = vrot.slane %v2089_v26, 4 }
 0x357   : > { %v1951_v17 = vrot.slane %v1950_v48, 2  ;;  %v2091_v41 = vadd.f32 %v2090_v5, %v2089_v26  ;;  %v2112_v5 = vld [vmem:[%s6955_s22 + $0x1] sm:$0x1] }
 0x359   : > { %v1952_v0 = vadd.f32 %v1951_v17, %v1950_v48  ;;  %v2092_v25 = vrot.slane %v2091_v41, 2 }
 0x35b   : > { %v1953_v16 = vrot.slane %v1952_v0, 1  ;;  %v2093_v19 = vadd.f32 %v2092_v25, %v2091_v41  ;;  %v10875_v25 = vld [vmem:[#allocation125_spill] sm:$0xff] }
 0x35d   : > { %v1954_v62 = vadd.f32 %v1953_v16, %v1952_v0  ;;  %v2094_v42 = vrot.slane %v2093_v19, 1 }
 0x35f   : > { %v1962_v34 = vmul.f32 %v6946_v49, %v1954_v62  ;;  %v2095_v9 = vadd.f32 %v2094_v42, %v2093_v19 }
 0x361   : > { %v2096_v11 = vmul.f32 %v2095_v9, %v6946_v49  ;;  %v2098_v3 = vmul.f32 %v1962_v34, %v1962_v34 }
 0x363   : > { %v2099_v8 = vsub.f32 %v2096_v11, %v2098_v3 }
 0x365   : > { %v2100_v10 = vadd.f32 0.001, %v2099_v8 }
 0x367   : > { %4740 = vrsqrt.f32 %v2100_v10  ;;  %vm2107_vm2 = vweird.f32 %v2100_v10 }
 0x36d   : > { %v4741_v53 = vpop.eup %4740 }
 0x36e   : > { %v2102_v20 = vmul.f32 %v4741_v53, %v2100_v10  ;;  %vm2108_vm1 = vweird.f32 %v4741_v53 }
 0x36f   : > { %vm2109_vm3 = vmor %vm2107_vm2, %vm2108_vm1 }
 0x370   : > { %v2103_v36 = vmul.f32 %v4741_v53, %v2102_v20 }
 0x372   : > { %v2104_v61 = vmul.f32 0.5, %v2103_v36 }
 0x374   : > { %v2105_v27 = vsub.f32 1.5, %v2104_v61 }
 0x376   : > { %v2106_v4 = vmul.f32 %v4741_v53, %v2105_v27  ;;  %v10876_v27 = vld [vmem:[#allocation79_spill] sm:$0xff] }
 0x378   : > { %v2110_v26 = vsel %vm2109_vm3, %v4741_v53, %v2106_v4 }
 0x379   : > { %v2111_v58 = vmul.f32 %v2110_v26, %v2097_v1  ;;  %v10877_v1 = vld [vmem:[#allocation71_spill] sm:$0xff] }
 0x37b   : > { %v2113_v48 = vmul.f32 %v2111_v58, %v1962_v34  ;;  %v6959_v17 = vperm.slane %v2111_v58, 0  ;;  %v10878_v58 = vld [vmem:[#allocation12_spill] sm:$0xff] }
 0x37d   : > { %v2114_v41 = vsub.f32 %v2112_v5, %v2113_v48  ;;  %v2201_v0 = vmul.f32 %v6959_v17, %v10874_v2  ;;  %v2202_v16 = vmul.f32 %v6959_v17, %v10875_v25  ;;  %v2203_v19 = vmul.f32 %v6959_v17, %v6195_v33  ;;  %v10879_v2 = vld [vmem:[#allocation127_spill] sm:$0xff] }
 0x37e   : > { %v2264_v62 = vmul.f32 %v6959_v17, %v1885_v7  ;;  %v2204_v34 = vmul.f32 %v6959_v17, %v6229_v59  ;;  %v2205_v9 = vmul.f32 %v6959_v17, %v6223_v60  ;;  %v2206_v10 = vmul.f32 %v6959_v17, %v6255_v23 }
 0x37f   : > { %v6968_v42 = vperm.slane %v2114_v41, 0  ;;  %v2207_v7 = vmul.f32 %v6959_v17, %v6285_v35  ;;  %v2208_v60 = vmul.f32 %v6959_v17, %v6279_v13  ;;  %v2209_v20 = vmul.f32 %v6959_v17, %v6311_v54 }
 0x380   : > { %v2210_v23 = vmul.f32 %v6959_v17, %v6341_v43  ;;  %v2211_v61 = vmul.f32 %v6959_v17, %v6335_v50  ;;  %v2212_v4 = vmul.f32 %v6959_v17, %v10876_v27  ;;  %v2213_v26 = vmul.f32 %v6959_v17, %v10877_v1 }
 0x381   : > { %v2266_v11 = vadd.f32 %v6968_v42, %v2201_v0  ;;  %v2267_v3 = vadd.f32 %v6968_v42, %v2202_v16  ;;  %v2268_v8 = vadd.f32 %v6968_v42, %v2203_v19  ;;  %v2269_v33 = vadd.f32 %v6968_v42, %v2204_v34  ;;  %v10880_v16 = vld [vmem:[#allocation14_spill] sm:$0xff] }
 0x382   : > { %v2270_v53 = vadd.f32 %v6968_v42, %v2205_v9  ;;  %v2271_v59 = vadd.f32 %v6968_v42, %v2206_v10  ;;  %v2272_v36 = vadd.f32 %v6968_v42, %v2207_v7  ;;  %v2273_v35 = vadd.f32 %v6968_v42, %v2208_v60 }
 0x383   : > { %2331 = vst [vmem:[#allocation2 + $0x19] sm:$0xff] %v2266_v11  ;;  %v2274_v13 = vadd.f32 %v6968_v42, %v2209_v20  ;;  %v2275_v54 = vadd.f32 %v6968_v42, %v2210_v23  ;;  %v2276_v43 = vadd.f32 %v6968_v42, %v2211_v61  ;;  %v2214_v48 = vmul.f32 %v6959_v17, %v10878_v58 }
 0x384   : > { %2332 = vst [vmem:[#allocation2 + $0x21] sm:$0xff] %v2267_v3  ;;  %v2277_v50 = vadd.f32 %v6968_v42, %v2212_v4  ;;  %v2215_v5 = vmul.f32 %v6959_v17, %v6411_v21  ;;  %v2278_v41 = vadd.f32 %v6968_v42, %v2213_v26  ;;  %v2216_v0 = vmul.f32 %v6959_v17, %v10879_v2  ;;  %v10882_v4 = vld [vmem:[#allocation86_spill] sm:$0xff] }
 0x385   : > { %2333 = vst [vmem:[#allocation2 + $0x31] sm:$0xff] %v2268_v8  ;;  %v2279_v25 = vadd.f32 %v6968_v42, %v2214_v48  ;;  %v2217_v19 = vmul.f32 %v6959_v17, %v10880_v16  ;;  %v2218_v9 = vmul.f32 %v6959_v17, %v6460_v29  ;;  %v2219_v11 = vmul.f32 %v6959_v17, %v6483_v28 }
 0x386   : > { %2334 = vst [vmem:[#allocation2 + $0x39] sm:$0xff] %v2269_v33  ;;  %v2280_v34 = vadd.f32 %v6968_v42, %v2215_v5  ;;  %v2281_v21 = vadd.f32 %v6968_v42, %v2216_v0  ;;  %v2220_v8 = vmul.f32 %v6959_v17, %v6476_v40  ;;  %v7023_v33 = vadd.f32 %v6968_v42, %v2264_v62 }
 0x387   : > { %2335 = vst [vmem:[#allocation2 + $0x49] sm:$0xff] %v2270_v53  ;;  %v2282_v3 = vadd.f32 %v6968_v42, %v2217_v19  ;;  %v2283_v10 = vadd.f32 %v6968_v42, %v2218_v9  ;;  %v2221_v29 = vmul.f32 %v6959_v17, %v6503_v38  ;;  %v2284_v7 = vadd.f32 %v6968_v42, %v2219_v11 }
 0x388   : > { %2336 = vst [vmem:[#allocation2 + $0x51] sm:$0xff] %v2271_v59  ;;  %v2222_v28 = vmul.f32 %v6959_v17, %v6523_v37  ;;  %v2285_v53 = vadd.f32 %v6968_v42, %v2220_v8  ;;  %v2223_v40 = vmul.f32 %v6959_v17, %v6518_v46  ;;  %v2224_v62 = vmul.f32 %v6959_v17, %v6545_v30  ;;  %v10881_v59 = vld [vmem:[#allocation81_spill] sm:$0xff] }
 0x389   : > { %2337 = vst [vmem:[#allocation2 + $0x61] sm:$0xff] %v2272_v36  ;;  %v2286_v60 = vadd.f32 %v6968_v42, %v2221_v29  ;;  %v2225_v20 = vmul.f32 %v6959_v17, %v10881_v59  ;;  %v2226_v36 = vmul.f32 %v6959_v17, %v6563_v15  ;;  %v2227_v23 = vmul.f32 %v6959_v17, %v6590_v31 }
 0x38a   : > { %2338 = vst [vmem:[#allocation2 + $0x69] sm:$0xff] %v2273_v35  ;;  %v2287_v38 = vadd.f32 %v6968_v42, %v2222_v28  ;;  %v2288_v37 = vadd.f32 %v6968_v42, %v2223_v40  ;;  %v2289_v46 = vadd.f32 %v6968_v42, %v2224_v62  ;;  %v2228_v35 = vmul.f32 %v6959_v17, %v6607_v51  ;;  %v10889_v40 = vld [vmem:[#allocation94_spill] sm:$0xff] }
 0x38b   : > { %2339 = vst [vmem:[#allocation2 + $0x79] sm:$0xff] %v2274_v13  ;;  %v2290_v30 = vadd.f32 %v6968_v42, %v2225_v20  ;;  %v2291_v61 = vadd.f32 %v6968_v42, %v2226_v36  ;;  %v2229_v13 = vmul.f32 %v6959_v17, %v6602_v56  ;;  %v2292_v15 = vadd.f32 %v6968_v42, %v2227_v23  ;;  %v10892_v23 = vld [vmem:[#allocation133_spill] sm:$0xff] }
 0x38c   : > { %2340 = vst [vmem:[#allocation2 + $0x81] sm:$0xff] %v2275_v54  ;;  %v2230_v27 = vmul.f32 %v6959_v17, %v6627_v24  ;;  %v2293_v31 = vadd.f32 %v6968_v42, %v2228_v35  ;;  %v2231_v54 = vmul.f32 %v6959_v17, %v10882_v4  ;;  %v2232_v1 = vmul.f32 %v6959_v17, %v6639_v63 }
 0x38d   : > { %2341 = vst [vmem:[#allocation2 + $0x91] sm:$0xff] %v2276_v43  ;;  %v2294_v51 = vadd.f32 %v6968_v42, %v2229_v13  ;;  %v2233_v26 = vmul.f32 %v6959_v17, %v6662_v12  ;;  %v10883_v43 = vld [vmem:[#allocation129_spill] sm:$0xff]  ;;  %v2237_v0 = vmul.f32 %v6959_v17, %v6709_v45  ;;  %v2238_v16 = vmul.f32 %v6959_v17, %v6724_v14 }
 0x38e   : > { %2342 = vst [vmem:[#allocation2 + $0x99] sm:$0xff] %v2277_v50  ;;  %v2295_v56 = vadd.f32 %v6968_v42, %v2230_v27  ;;  %v2296_v24 = vadd.f32 %v6968_v42, %v2231_v54  ;;  %v2234_v58 = vmul.f32 %v6959_v17, %v10883_v43  ;;  %v2297_v48 = vadd.f32 %v6968_v42, %v2232_v1  ;;  %v10884_v50 = vld [vmem:[#allocation84_spill] sm:$0xff]  ;;  %v10894_v27 = vld [vmem:[#allocation93_spill] sm:$0xff]  ;;  %v10895_v54 = vld [vmem:[#allocation15_spill] sm:$0xff] }
 0x38f   : > { %2343 = vst [vmem:[#allocation2 + $0xa9] sm:$0xff] %v2278_v41  ;;  %v2235_v5 = vmul.f32 %v6959_v17, %v10884_v50  ;;  %v7070_v63 = vadd.f32 %v6968_v42, %v2233_v26  ;;  %v10885_v41 = vld [vmem:[#allocation82_spill] sm:$0xff]  ;;  %v7090_v9 = vadd.f32 %v6968_v42, %v2237_v0  ;;  %v2240_v45 = vmul.f32 %v6959_v17, %v6734_v39  ;;  %v10886_v39 = vld [vmem:[#allocation91_spill] sm:$0xff]  ;;  %v10897_v43 = vld [vmem:[#allocation96_spill] sm:$0xff] }
 0x390   : > { %2344 = vst [vmem:[#allocation2 + $0xb1] sm:$0xff] %v2279_v25  ;;  %v2236_v2 = vmul.f32 %v6959_v17, %v10885_v41  ;;  %v7075_v12 = vadd.f32 %v6968_v42, %v2234_v58  ;;  %v2241_v14 = vmul.f32 %v6959_v17, %v6755_v52  ;;  %v2243_v8 = vmul.f32 %v6959_v17, %v10886_v39  ;;  %v10887_v52 = vld [vmem:[#allocation22_spill] sm:$0xff]  ;;  %v10898_v50 = vld [vmem:[#allocation88_spill] sm:$0xff] }
 0x391   : > { %2345 = vst [vmem:[#allocation2 + $0xc1] sm:$0xff] %v2280_v34  ;;  %v7080_v25 = vadd.f32 %v6968_v42, %v2235_v5  ;;  %v2239_v34 = vmul.f32 %v6959_v17, %v6731_v32  ;;  %v2242_v32 = vmul.f32 %v6959_v17, %v6762_v55  ;;  %v2244_v29 = vmul.f32 %v6959_v17, %v10887_v52  ;;  %v10888_v55 = vld [vmem:[#allocation19_spill] sm:$0xff] }
 0x392   : > { %2346 = vst [vmem:[#allocation2 + $0xc9] sm:$0xff] %v2281_v21  ;;  %v7085_v19 = vadd.f32 %v6968_v42, %v2236_v2  ;;  %v7096_v21 = vadd.f32 %v6968_v42, %v2238_v16  ;;  %v2245_v28 = vmul.f32 %v6959_v17, %v10888_v55  ;;  %v2254_v58 = vmul.f32 %v6959_v17, %v10897_v43  ;;  %v10899_v2 = vld [vmem:[#allocation97_spill] sm:$0xff] }
 0x393   : > { %2347 = vst [vmem:[#allocation2 + $0xd9] sm:$0xff] %v2282_v3  ;;  %v7102_v11 = vadd.f32 %v6968_v42, %v2239_v34  ;;  %v7108_v3 = vadd.f32 %v6968_v42, %v2240_v45  ;;  %v7132_v62 = vadd.f32 %v6968_v42, %v2244_v29  ;;  %v2255_v5 = vmul.f32 %v6959_v17, %v10898_v50  ;;  %v10900_v34 = vld [vmem:[#allocation16_spill] sm:$0xff] }
 0x394   : > { %2348 = vst [vmem:[#allocation2 + $0xe1] sm:$0xff] %v2283_v10  ;;  %v7114_v10 = vadd.f32 %v6968_v42, %v2241_v14  ;;  %v7138_v20 = vadd.f32 %v6968_v42, %v2245_v28  ;;  %v2256_v0 = vmul.f32 %v6959_v17, %v10899_v2  ;;  %v7192_v16 = vadd.f32 %v6968_v42, %v2254_v58 }
 0x395   : > { %2349 = vst [vmem:[#allocation2 + $0xf1] sm:$0xff] %v2284_v7  ;;  %v7120_v7 = vadd.f32 %v6968_v42, %v2242_v32  ;;  %v2257_v45 = vmul.f32 %v6959_v17, %v10900_v34  ;;  %v7198_v14 = vadd.f32 %v6968_v42, %v2255_v5  ;;  %v2258_v32 = vmul.f32 %v6959_v17, %v6885_v22 }
 0x396   : > { %2350 = vst [vmem:[#allocation2 + $0xf9] sm:$0xff] %v2285_v53  ;;  %v7126_v53 = vadd.f32 %v6968_v42, %v2243_v8  ;;  %v7204_v39 = vadd.f32 %v6968_v42, %v2256_v0  ;;  %v2259_v8 = vmul.f32 %v6959_v17, %v6905_v18  ;;  %v2260_v29 = vmul.f32 %v6959_v17, %v6911_v47 }
 0x397   : > { %2351 = vst [vmem:[#allocation2 + $0x109] sm:$0xff] %v2286_v60  ;;  %v2246_v60 = vmul.f32 %v6959_v17, %v10889_v40  ;;  %v7210_v52 = vadd.f32 %v6968_v42, %v2257_v45  ;;  %v7216_v55 = vadd.f32 %v6968_v42, %v2258_v32  ;;  %v2261_v22 = vmul.f32 %v6959_v17, %v6916_v6 }
 0x398   : > { %2352 = vst [vmem:[#allocation2 + $0x111] sm:$0xff] %v2287_v38  ;;  %v10890_v38 = vld [vmem:[#allocation18_spill] sm:$0xff]  ;;  %v7222_v28 = vadd.f32 %v6968_v42, %v2259_v8  ;;  %v2262_v18 = vmul.f32 %v6959_v17, %v6931_v44  ;;  %v7228_v40 = vadd.f32 %v6968_v42, %v2260_v29  ;;  %v2263_v47 = vmul.f32 %v6959_v17, %v6939_v57  ;;  %v2395_v57 = vld [vmem:[%s7251_s28] sm:$0x7] }
 0x399   : > { %2353 = vst [vmem:[#allocation2 + $0x121] sm:$0xff] %v2288_v37  ;;  %v2247_v59 = vmul.f32 %v6959_v17, %v10890_v38  ;;  %v10891_v37 = vld [vmem:[#allocation85_spill] sm:$0xff]  ;;  %v7256_v38 = vperm.slane %v2395_v57, 1 }
 0x39a   : > { %2354 = vst [vmem:[#allocation2 + $0x129] sm:$0xff] %v2289_v46  ;;  %v2248_v36 = vmul.f32 %v6959_v17, %v10891_v37  ;;  %v7144_v46 = vadd.f32 %v6968_v42, %v2246_v60  ;;  %v7234_v60 = vadd.f32 %v6968_v42, %v2261_v22  ;;  %v7238_v6 = vadd.f32 %v6968_v42, %v2262_v18  ;;  %v7260_v37 = vld [vmem:[#allocation2 + $0x8] sm:$0xff] }
 0x39b   : > { %2355 = vst [vmem:[#allocation2 + $0x139] sm:$0xff] %v2290_v30  ;;  %v2249_v30 = vmul.f32 %v6959_v17, %v10892_v23  ;;  %v7150_v35 = vadd.f32 %v6968_v42, %v2247_v59  ;;  %v2328_v44 = vadd.f32 %v6968_v42, %v2263_v47  ;;  %v7258_v59 = vperm.slane %v2395_v57, 2  ;;  %v2753_v23 = vld [vmem:[#allocation2 + $0x1ba] sm:$0xff] }
 0x39c   : > { %2356 = vst [vmem:[#allocation2 + $0x141] sm:$0xff] %v2291_v61  ;;  %v10893_v61 = vld [vmem:[#allocation13_spill] sm:$0xff]  ;;  %v7354_v49 = vmul.f32 %v7256_v38, %v7085_v19 }
 0x39d   : > { %2357 = vst [vmem:[#allocation2 + $0x151] sm:$0xff] %v2292_v15  ;;  %v2250_v13 = vmul.f32 %v6959_v17, %v10893_v61  ;;  %v7156_v15 = vadd.f32 %v6968_v42, %v2248_v36  ;;  %v7162_v4 = vadd.f32 %v6968_v42, %v2249_v30  ;;  %v2818_v61 = vmul.f32 %v7258_v59, %v2753_v23 }
 0x39e   : > { %2358 = vst [vmem:[#allocation2 + $0x159] sm:$0xff] %v2293_v31  ;;  %v2251_v31 = vmul.f32 %v6959_v17, %v10894_v27  ;;  %v7340_v23 = vmul.f32 %v7256_v38, %v7075_v12 }
 0x39f   : > { %2359 = vst [vmem:[#allocation2 + $0x169] sm:$0xff] %v2294_v51  ;;  %v2252_v51 = vmul.f32 %v6959_v17, %v10895_v54  ;;  %v7168_v1 = vadd.f32 %v6968_v42, %v2250_v13 }
 0x3a0   : > { %2360 = vst [vmem:[#allocation2 + $0x171] sm:$0xff] %v2295_v56  ;;  %v10896_v56 = vld [vmem:[#allocation21_spill] sm:$0xff] }
 0x3a1   : > { %2361 = vst [vmem:[#allocation2 + $0x181] sm:$0xff] %v2296_v24  ;;  %v2253_v26 = vmul.f32 %v6959_v17, %v10896_v56  ;;  %v7174_v24 = vadd.f32 %v6968_v42, %v2251_v31  ;;  %v7254_v17 = vperm.slane %v2395_v57, 0 }
 0x3a2   : > { %2362 = vst [vmem:[#allocation2 + $0x189] sm:$0xff] %v2297_v48  ;;  %v7180_v48 = vadd.f32 %v6968_v42, %v2252_v51 }
 0x3a3   : > { %2363 = vst [vmem:[#allocation2 + $0x1c9] sm:$0xff] %v7070_v63  ;;  %v7186_v41 = vadd.f32 %v6968_v42, %v2253_v26  ;;  %v2560_v42 = vld [vmem:[#allocation2 + $0x1b9] sm:$0xff]  ;;  %v7264_v36 = vmul.f32 %v7260_v37, %v7254_v17 }
 0x3a4   : > { %2364 = vst [vmem:[#allocation2 + $0x1d1] sm:$0xff] %v7075_v12  ;;  %v7362_v12 = vmul.f32 %v7256_v38, %v7096_v21 }
 0x3a5   : > { %2365 = vst [vmem:[#allocation2 + $0x1e1] sm:$0xff] %v7080_v25 }
 0x3a6   : > { %2366 = vst [vmem:[#allocation2 + $0x1e9] sm:$0xff] %v7085_v19  ;;  %v7376_v19 = vmul.f32 %v7256_v38, %v7108_v3 }
 0x3a7   : > { %2367 = vst [vmem:[#allocation2 + $0x1f9] sm:$0xff] %v7090_v9 }
 0x3a8   : > { %2368 = vst [vmem:[#allocation2 + $0x201] sm:$0xff] %v7096_v21 }
 0x3a9   : > { %2369 = vst [vmem:[#allocation2 + $0x211] sm:$0xff] %v7102_v11 }
 0x3aa   : > { %2370 = vst [vmem:[#allocation2 + $0x219] sm:$0xff] %v7108_v3  ;;  %v2432_v13 = vld [vmem:[#allocation2 + $0x1c8] sm:$0xff]  ;;  %v2637_v3 = vmul.f32 %v7256_v38, %v7132_v62 }
 0x3ab   : > { %2371 = vst [vmem:[#allocation2 + $0x229] sm:$0xff] %v7114_v10  ;;  %v7269_v27 = vld [vmem:[#allocation2 + $0x1d0] sm:$0xff]  ;;  %v7290_v2 = vmul.f32 %v7254_v17, %v2432_v13 }
 0x3ac   : > { %2372 = vst [vmem:[#allocation2 + $0x231] sm:$0xff] %v7120_v7  ;;  %v7271_v31 = vld [vmem:[#allocation2 + $0x1e0] sm:$0xff]  ;;  %v7296_v34 = vmul.f32 %v7254_v17, %v7269_v27 }
 0x3ad   : > { %2373 = vst [vmem:[#allocation2 + $0x241] sm:$0xff] %v7126_v53  ;;  %v7273_v54 = vld [vmem:[#allocation2 + $0x1e8] sm:$0xff]  ;;  %v7300_v45 = vmul.f32 %v7254_v17, %v7271_v31 }
 0x3ae   : > { %2374 = vst [vmem:[#allocation2 + $0x249] sm:$0xff] %v7132_v62  ;;  %v7275_v51 = vld [vmem:[#allocation2 + $0x1f8] sm:$0xff]  ;;  %v7304_v32 = vmul.f32 %v7254_v17, %v7273_v54  ;;  %v2641_v62 = vmul.f32 %v7256_v38, %v7156_v15 }
 0x3af   : > { %2375 = vst [vmem:[#allocation2 + $0x259] sm:$0xff] %v7138_v20  ;;  %v7277_v56 = vld [vmem:[#allocation2 + $0x200] sm:$0xff]  ;;  %v7308_v8 = vmul.f32 %v7254_v17, %v7275_v51 }
 0x3b0   : > { %2376 = vst [vmem:[#allocation2 + $0x261] sm:$0xff] %v7144_v46  ;;  %v7279_v26 = vld [vmem:[#allocation2 + $0x210] sm:$0xff]  ;;  %v7314_v22 = vmul.f32 %v7254_v17, %v7277_v56 }
 0x3b1   : > { %2377 = vst [vmem:[#allocation2 + $0x271] sm:$0xff] %v7150_v35  ;;  %v7281_v43 = vld [vmem:[#allocation2 + $0x218] sm:$0xff]  ;;  %v7318_v18 = vmul.f32 %v7254_v17, %v7279_v26 }
 0x3b2   : > { %2378 = vst [vmem:[#allocation2 + $0x279] sm:$0xff] %v7156_v15  ;;  %v7283_v58 = vld [vmem:[#allocation2 + $0x228] sm:$0xff]  ;;  %v7322_v47 = vmul.f32 %v7254_v17, %v7281_v43  ;;  %v2645_v15 = vmul.f32 %v7256_v38, %v7180_v48 }
 0x3b3   : > { %2379 = vst [vmem:[#allocation2 + $0x289] sm:$0xff] %v7162_v4  ;;  %v7287_v5 = vld [vmem:[#allocation2 + $0x230] sm:$0xff] }
 0x3b4   : > { %2380 = vst [vmem:[#allocation2 + $0x291] sm:$0xff] %v7168_v1  ;;  %v7292_v0 = vld [vmem:[#allocation2 + $0x240] sm:$0xff] }
 0x3b5   : > { %2381 = vst [vmem:[#allocation2 + $0x2a1] sm:$0xff] %v7174_v24  ;;  %v7310_v29 = vld [vmem:[#allocation2 + $0x248] sm:$0xff]  ;;  %v7350_v13 = vmul.f32 %v7254_v17, %v7292_v0 }
 0x3b6   : > { %2382 = vst [vmem:[#allocation2 + $0x2a9] sm:$0xff] %v7180_v48  ;;  %v7328_v57 = vld [vmem:[#allocation2 + $0x258] sm:$0xff]  ;;  %v2649_v48 = vmul.f32 %v7256_v38, %v7204_v39 }
 0x3b7   : > { %2383 = vst [vmem:[#allocation2 + $0x2b9] sm:$0xff] %v7186_v41 }
 0x3b8   : > { %2384 = vst [vmem:[#allocation2 + $0x2c1] sm:$0xff] %v7192_v16 }
 0x3b9   : > { %2385 = vst [vmem:[#allocation2 + $0x2d1] sm:$0xff] %v7198_v14  ;;  %v7382_v21 = vld [vmem:[#allocation2 + $0x278] sm:$0xff] }
 0x3ba   : > { %2386 = vst [vmem:[#allocation2 + $0x2d9] sm:$0xff] %v7204_v39 }
 0x3bb   : > { %2387 = vst [vmem:[#allocation2 + $0x2e9] sm:$0xff] %v7210_v52 }
 0x3bc   : > { %2388 = vst [vmem:[#allocation2 + $0x2f1] sm:$0xff] %v7216_v55 }
 0x3bd   : > { %2389 = vst [vmem:[#allocation2 + $0x301] sm:$0xff] %v7222_v28 }
 0x3be   : > { %2390 = vst [vmem:[#allocation2 + $0x309] sm:$0xff] %v7228_v40 }
 0x3bf   : > { %2391 = vst [vmem:[#allocation2 + $0x319] sm:$0xff] %v7234_v60 }
 0x3c0   : > { %2392 = vst [vmem:[#allocation2 + $0x321] sm:$0xff] %v7238_v6 }
 0x3c1   : > { %2393 = vst [vmem:[#allocation2 + $0x331] sm:$0xff] %v2328_v44  ;;  %v7326_v44 = vmul.f32 %v7254_v17, %v7283_v58 }
 0x3c2   : > { %2394 = vst [vmem:[#allocation2 + $0x339] sm:$0xff] %v7023_v33  ;;  %v2625_v33 = vmul.f32 %v7256_v38, %v2560_v42  ;;  %v7332_v42 = vmul.f32 %v7254_v17, %v7287_v5 }
 0x3c3   : > { %10901 = vst [vmem:[#allocation25_spill] sm:$0xff] %v7254_v17 }
 0x3c4   : > { %10902 = vst [vmem:[#allocation99_spill] sm:$0xff] %v7256_v38  ;;  %v2689_v30 = vadd.f32 %v2625_v33, %v7264_v36  ;;  %v7336_v33 = vmul.f32 %v7256_v38, %v7070_v63  ;;  %v7358_v63 = vmul.f32 %v7256_v38, %v7090_v9  ;;  %v7380_v9 = vmul.f32 %v7256_v38, %v7114_v10 }
 0x3c5   : > { %10903 = vst [vmem:[#allocation90_spill] sm:$0xff] %v7258_v59 }
 0x3c6   : > { %10904 = vst [vmem:[#allocation100_spill] sm:$0xff] %v7260_v37  ;;  %v7285_v50 = vadd.f32 %v2818_v61, %v2689_v30  ;;  %v7344_v30 = vmul.f32 %v7256_v38, %v7080_v25  ;;  %v7346_v61 = vld [vmem:[#allocation2 + $0x260] sm:$0xff]  ;;  %v7364_v25 = vld [vmem:[#allocation2 + $0x270] sm:$0xff]  ;;  %v7368_v37 = vmul.f32 %v7254_v17, %v7310_v29  ;;  %v7462_v39 = vld [vmem:[#allocation2 + $0x318] sm:$0xff] }
 0x3c7   : > { %10905 = vst [vmem:[#allocation17_spill] sm:$0xff] %v7264_v36  ;;  %v7372_v36 = vmul.f32 %v7256_v38, %v7102_v11  ;;  %v2636_v11 = vmul.f32 %v7256_v38, %v7126_v53  ;;  %v7398_v10 = vmul.f32 %v7254_v17, %v7346_v61  ;;  %v2511_v53 = vmul.f32 %v7254_v17, %v7364_v25 }
 0x3c8   : > { %10906 = vst [vmem:[#allocation28_spill] sm:$0xff] %v7269_v27  ;;  %v7450_v27 = vld [vmem:[#allocation2 + $0x300] sm:$0xff] }
 0x3c9   : > { %10907 = vst [vmem:[#allocation29_spill] sm:$0xff] %v7271_v31  ;;  %v7446_v31 = vld [vmem:[#allocation2 + $0x2e8] sm:$0xff] }
 0x3ca   : > { %10908 = vst [vmem:[#allocation102_spill] sm:$0xff] %v7273_v54 }
 0x3cb   : > { %10909 = vst [vmem:[#allocation92_spill] sm:$0xff] %v7275_v51  ;;  %v7436_v51 = vld [vmem:[#allocation2 + $0x2d8] sm:$0xff] }
 0x3cc   : > { %10910 = vst [vmem:[#allocation103_spill] sm:$0xff] %v7277_v56  ;;  %v7434_v56 = vld [vmem:[#allocation2 + $0x2d0] sm:$0xff] }
 0x3cd   : > { %10911 = vst [vmem:[#allocation20_spill] sm:$0xff] %v7279_v26  ;;  %v2512_v26 = vmul.f32 %v7254_v17, %v7382_v21 }
 0x3ce   : > { %10912 = vst [vmem:[#allocation34_spill] sm:$0xff] %v7281_v43  ;;  %v7418_v43 = vld [vmem:[#allocation2 + $0x2a0] sm:$0xff] }
 0x3cf   : > { %10913 = vst [vmem:[#allocation35_spill] sm:$0xff] %v7283_v58  ;;  %v7406_v58 = vld [vmem:[#allocation2 + $0x290] sm:$0xff] }
 0x3d0   : > { %10914 = vst [vmem:[#allocation104_spill] sm:$0xff] %v7285_v50  ;;  %v7386_v50 = vmul.f32 %v7254_v17, %v7328_v57  ;;  %v2514_v59 = vmul.f32 %v7254_v17, %v7406_v58 }
 0x3d1   : > { %10915 = vst [vmem:[#allocation95_spill] sm:$0xff] %v7287_v5  ;;  %v2638_v5 = vmul.f32 %v7256_v38, %v7138_v20  ;;  %v7416_v20 = vmul.f32 %v7256_v38, %v7168_v1  ;;  %v7432_v1 = vld [vmem:[#allocation2 + $0x2c0] sm:$0xff] }
 0x3d2   : > { %10916 = vst [vmem:[#allocation105_spill] sm:$0xff] %v7292_v0  ;;  %v7394_v0 = vld [vmem:[#allocation2 + $0x288] sm:$0xff] }
 0x3d3   : > { %10917 = vst [vmem:[#allocation40_spill] sm:$0xff] %v7310_v29  ;;  %v2635_v29 = vmul.f32 %v7256_v38, %v7120_v7  ;;  %v2640_v7 = vmul.f32 %v7256_v38, %v7150_v35  ;;  %v7422_v35 = vld [vmem:[#allocation2 + $0x2b8] sm:$0xff]  ;;  %v2513_v54 = vmul.f32 %v7254_v17, %v7394_v0 }
 0x3d4   : > { %10918 = vst [vmem:[#allocation41_spill] sm:$0xff] %v7328_v57  ;;  %v2639_v57 = vmul.f32 %v7256_v38, %v7144_v46  ;;  %v7420_v46 = vld [vmem:[#allocation2 + $0x2a8] sm:$0xff] }
 0x3d5   : > { %10919 = vst [vmem:[#allocation136_spill] sm:$0xff] %v7346_v61  ;;  %v2642_v61 = vmul.f32 %v7256_v38, %v7162_v4  ;;  %v2646_v4 = vmul.f32 %v7256_v38, %v7186_v41  ;;  %v7448_v41 = vld [vmem:[#allocation2 + $0x2f0] sm:$0xff] }
 0x3d6   : > { %10920 = vst [vmem:[#allocation106_spill] sm:$0xff] %v7364_v25  ;;  %v2644_v25 = vmul.f32 %v7256_v38, %v7174_v24  ;;  %v2648_v24 = vmul.f32 %v7256_v38, %v7198_v14  ;;  %v2652_v14 = vmul.f32 %v7256_v38, %v7222_v28  ;;  %v2516_v28 = vmul.f32 %v7254_v17, %v7420_v46 }
 0x3d7   : > { %10921 = vst [vmem:[#allocation23_spill] sm:$0xff] %v7368_v37  ;;  %v2517_v37 = vmul.f32 %v7254_v17, %v7422_v35 }
 0x3d8   : > { %10922 = vst [vmem:[#allocation98_spill] sm:$0xff] %v7382_v21  ;;  %v2647_v21 = vmul.f32 %v7256_v38, %v7192_v16  ;;  %v2651_v16 = vmul.f32 %v7256_v38, %v7216_v55  ;;  %v7472_v55 = vld [vmem:[#allocation2 + $0x320] sm:$0xff] }
 0x3d9   : > { %10923 = vst [vmem:[#allocation45_spill] sm:$0xff] %v7386_v50  ;;  %v2653_v50 = vmul.f32 %v7256_v38, %v7228_v40  ;;  %v2519_v40 = vmul.f32 %v7254_v17, %v7434_v56 }
 0x3da   : > { %10924 = vst [vmem:[#allocation107_spill] sm:$0xff] %v7394_v0  ;;  %v2650_v0 = vmul.f32 %v7256_v38, %v7210_v52  ;;  %v2655_v52 = vmul.f32 %v7256_v38, %v7238_v6  ;;  %v2521_v6 = vmul.f32 %v7254_v17, %v7446_v31 }
 0x3db   : > { %10925 = vst [vmem:[#allocation44_spill] sm:$0xff] %v7398_v10  ;;  %v2515_v10 = vmul.f32 %v7254_v17, %v7418_v43 }
 0x3dc   : > { %10926 = vst [vmem:[#allocation26_spill] sm:$0xff] %v7406_v58  ;;  %v2654_v58 = vmul.f32 %v7256_v38, %v7234_v60  ;;  %v2520_v60 = vmul.f32 %v7254_v17, %v7436_v51  ;;  %v2522_v38 = vmul.f32 %v7254_v17, %v7448_v41 }
 0x3dd   : > { %10927 = vst [vmem:[#allocation42_spill] sm:$0xff] %v7416_v20  ;;  %v7460_v20 = vld [vmem:[#allocation2 + $0x308] sm:$0xff] }
 0x3de   : > { %10928 = vst [vmem:[#allocation27_spill] sm:$0xff] %v7418_v43  ;;  %v2518_v43 = vmul.f32 %v7254_v17, %v7432_v1 }
 0x3df   : > { %10929 = vst [vmem:[#allocation101_spill] sm:$0xff] %v7420_v46  ;;  %v2523_v46 = vmul.f32 %v7254_v17, %v7450_v27 }
 0x3e0   : > { %10930 = vst [vmem:[#allocation108_spill] sm:$0xff] %v7422_v35  ;;  %v2524_v35 = vmul.f32 %v7254_v17, %v7460_v20 }
 0x3e1   : > { %10931 = vst [vmem:[#allocation48_spill] sm:$0xff] %v7432_v1  ;;  %v2525_v1 = vmul.f32 %v7254_v17, %v7462_v39 }
 0x3e2   : > { %10932 = vst [vmem:[#allocation49_spill] sm:$0xff] %v7434_v56  ;;  %v7496_v56 = vadd.f32 %v7336_v33, %v7290_v2  ;;  %v7518_v2 = vadd.f32 %v7362_v12, %v7314_v22  ;;  %v10940_v22 = vld [vmem:[#allocation23_spill] sm:$0xff] }
 0x3e3   : > { %10933 = vst [vmem:[#allocation109_spill] sm:$0xff] %v7436_v51  ;;  %v7500_v51 = vadd.f32 %v7340_v23, %v7296_v34  ;;  %v7522_v34 = vadd.f32 %v7372_v36, %v7318_v18  ;;  %v7539_v33 = vadd.f32 %v2637_v3, %v10940_v22  ;;  %v10941_v23 = vld [vmem:[#allocation45_spill] sm:$0xff]  ;;  %v7558_v22 = vadd.f32 %v2645_v15, %v2516_v28 }
 0x3e4   : > { %10934 = vst [vmem:[#allocation33_spill] sm:$0xff] %v7446_v31  ;;  %v7542_v36 = vadd.f32 %v2638_v5, %v10941_v23  ;;  %v2754_v18 = vld [vmem:[#allocation2 + $0x1ca] sm:$0xff]  ;;  %v7556_v5 = vadd.f32 %v2644_v25, %v2515_v10  ;;  %v7560_v23 = vadd.f32 %v2646_v4, %v2517_v37  ;;  %v7570_v25 = vadd.f32 %v2651_v16, %v2522_v38  ;;  %v2766_v4 = vld [vmem:[#allocation2 + $0x25a] sm:$0xff] }
 0x3e5   : > { %10935 = vst [vmem:[#allocation30_spill] sm:$0xff] %v7448_v41  ;;  %v2526_v41 = vmul.f32 %v7254_v17, %v7472_v55  ;;  %v7572_v10 = vadd.f32 %v2652_v14, %v2523_v46  ;;  %v7574_v37 = vadd.f32 %v2653_v50, %v2524_v35  ;;  %v7576_v15 = vadd.f32 %v2654_v58, %v2525_v1  ;;  %v2770_v28 = vld [vmem:[#allocation2 + $0x28a] sm:$0xff]  ;;  %v2772_v46 = vld [vmem:[#allocation2 + $0x2a2] sm:$0xff]  ;;  %v2774_v50 = vld [vmem:[#allocation2 + $0x2ba] sm:$0xff] }
 0x3e6   : > { %10936 = vst [vmem:[#allocation110_spill] sm:$0xff] %v7450_v27  ;;  %v7506_v27 = vadd.f32 %v7344_v30, %v7300_v45  ;;  %v7526_v45 = vadd.f32 %v7376_v19, %v7322_v47  ;;  %v2755_v30 = vld [vmem:[#allocation2 + $0x1d2] sm:$0xff]  ;;  %v2756_v47 = vld [vmem:[#allocation2 + $0x1e2] sm:$0xff]  ;;  %v7549_v19 = vadd.f32 %v2641_v62, %v2512_v26  ;;  %v7564_v26 = vadd.f32 %v2648_v24, %v2519_v40  ;;  %v2773_v16 = vld [vmem:[#allocation2 + $0x2aa] sm:$0xff] }
 0x3e7   : > { %10937 = vst [vmem:[#allocation51_spill] sm:$0xff] %v7460_v20  ;;  %v7510_v20 = vadd.f32 %v7354_v49, %v7304_v32  ;;  %v7530_v49 = vadd.f32 %v7380_v9, %v7326_v44  ;;  %v7533_v32 = vadd.f32 %v2635_v29, %v7332_v42  ;;  %v7547_v44 = vadd.f32 %v2640_v7, %v2511_v53  ;;  %v2757_v42 = vld [vmem:[#allocation2 + $0x1ea] sm:$0xff]  ;;  %v2759_v9 = vld [vmem:[#allocation2 + $0x202] sm:$0xff]  ;;  %v2763_v62 = vld [vmem:[#allocation2 + $0x232] sm:$0xff] }
 0x3e8   : > { %10938 = vst [vmem:[#allocation52_spill] sm:$0xff] %v7462_v39  ;;  %v7514_v39 = vadd.f32 %v7358_v63, %v7308_v8  ;;  %v7536_v8 = vadd.f32 %v2636_v11, %v7350_v13  ;;  %v10942_v63 = vld [vmem:[#allocation44_spill] sm:$0xff]  ;;  %v7551_v29 = vadd.f32 %v2642_v61, %v2513_v54  ;;  %v10943_v11 = vld [vmem:[#allocation42_spill] sm:$0xff]  ;;  %v7562_v53 = vadd.f32 %v2647_v21, %v2518_v43 }
 0x3e9   : > { %10939 = vst [vmem:[#allocation31_spill] sm:$0xff] %v7472_v55  ;;  %v7545_v12 = vadd.f32 %v2639_v57, %v10942_v63  ;;  %v2758_v13 = vld [vmem:[#allocation2 + $0x1fa] sm:$0xff]  ;;  %v7554_v3 = vadd.f32 %v10943_v11, %v2514_v59  ;;  %v2760_v57 = vld [vmem:[#allocation2 + $0x212] sm:$0xff]  ;;  %v2762_v7 = vld [vmem:[#allocation2 + $0x22a] sm:$0xff]  ;;  %v7566_v54 = vadd.f32 %v2649_v48, %v2520_v60  ;;  %v7568_v61 = vadd.f32 %v2650_v0, %v2521_v6 }
 0x3ea   : > { %v2761_v63 = vld [vmem:[#allocation2 + $0x21a] sm:$0xff]  ;;  %v2764_v59 = vld [vmem:[#allocation2 + $0x242] sm:$0xff]  ;;  %v2765_v11 = vld [vmem:[#allocation2 + $0x24a] sm:$0xff]  ;;  %10946 = vst [vmem:[#allocation38_spill] sm:$0xff] %v7570_v25  ;;  %v7578_v24 = vadd.f32 %v2655_v52, %v2526_v41 }
 0x3eb   : > { %10944 = vst [vmem:[#allocation112_spill] sm:$0xff] %v7566_v54  ;;  %v2767_v43 = vld [vmem:[#allocation2 + $0x262] sm:$0xff]  ;;  %v2768_v21 = vld [vmem:[#allocation2 + $0x272] sm:$0xff]  ;;  %v2769_v48 = vld [vmem:[#allocation2 + $0x27a] sm:$0xff] }
 0x3ec   : > { %10945 = vst [vmem:[#allocation39_spill] sm:$0xff] %v7568_v61  ;;  %v2771_v0 = vld [vmem:[#allocation2 + $0x292] sm:$0xff]  ;;  %v2775_v14 = vld [vmem:[#allocation2 + $0x2c2] sm:$0xff]  ;;  %v2777_v17 = vld [vmem:[#allocation2 + $0x2da] sm:$0xff] }
 0x3ed   : > { %10947 = vst [vmem:[#allocation36_spill] sm:$0xff] %v7572_v10  ;;  %v10951_v40 = vld [vmem:[#allocation90_spill] sm:$0xff]  ;;  %v2782_v10 = vld [vmem:[#allocation2 + $0x31a] sm:$0xff] }
 0x3ee   : > { %10948 = vst [vmem:[#allocation113_spill] sm:$0xff] %v7574_v37  ;;  %v2819_v60 = vmul.f32 %v10951_v40, %v2754_v18  ;;  %v2820_v6 = vmul.f32 %v10951_v40, %v2755_v30  ;;  %v2821_v38 = vmul.f32 %v10951_v40, %v2756_v47  ;;  %v2822_v58 = vmul.f32 %v10951_v40, %v2757_v42  ;;  %v2776_v52 = vld [vmem:[#allocation2 + $0x2d2] sm:$0xff]  ;;  %v2778_v31 = vld [vmem:[#allocation2 + $0x2ea] sm:$0xff]  ;;  %v2780_v42 = vld [vmem:[#allocation2 + $0x302] sm:$0xff] }
 0x3ef   : > { %10949 = vst [vmem:[#allocation54_spill] sm:$0xff] %v7576_v15  ;;  %v2823_v35 = vmul.f32 %v10951_v40, %v2758_v13  ;;  %v2824_v1 = vmul.f32 %v10951_v40, %v2759_v9  ;;  %v2825_v41 = vmul.f32 %v10951_v40, %v2760_v57  ;;  %v2826_v18 = vmul.f32 %v10951_v40, %v2761_v63  ;;  %v2781_v37 = vld [vmem:[#allocation2 + $0x30a] sm:$0xff]  ;;  %v2783_v63 = vld [vmem:[#allocation2 + $0x322] sm:$0xff] }
 0x3f0   : > { %10950 = vst [vmem:[#allocation55_spill] sm:$0xff] %v7578_v24  ;;  %v2827_v30 = vmul.f32 %v10951_v40, %v2762_v7  ;;  %v2828_v47 = vmul.f32 %v10951_v40, %v2763_v62  ;;  %v2829_v55 = vmul.f32 %v10951_v40, %v2764_v59  ;;  %v2779_v24 = vld [vmem:[#allocation2 + $0x2f2] sm:$0xff]  ;;  %v2830_v13 = vmul.f32 %v10951_v40, %v2765_v11 }
 0x3f1   : > { %v2831_v9 = vmul.f32 %v10951_v40, %v2766_v4  ;;  %v2832_v57 = vmul.f32 %v10951_v40, %v2767_v43  ;;  %v2833_v15 = vmul.f32 %v10951_v40, %v2768_v21  ;;  %v2834_v7 = vmul.f32 %v10951_v40, %v2769_v48 }
 0x3f2   : > { %v2835_v62 = vmul.f32 %v10951_v40, %v2770_v28  ;;  %v2836_v59 = vmul.f32 %v10951_v40, %v2771_v0  ;;  %v2837_v25 = vmul.f32 %v10951_v40, %v2772_v46  ;;  %v2838_v11 = vmul.f32 %v10951_v40, %v2773_v16 }
 0x3f3   : > { %v2839_v4 = vmul.f32 %v10951_v40, %v2774_v50  ;;  %v2840_v43 = vmul.f32 %v10951_v40, %v2775_v14  ;;  %v2841_v21 = vmul.f32 %v10951_v40, %v2776_v52  ;;  %v2842_v61 = vmul.f32 %v10951_v40, %v2777_v17  ;;  %v7614_v14 = vld [vmem:[%s7251_s28 + $0x4] sm:$0x7] }
 0x3f4   : > { %v2843_v54 = vmul.f32 %v10951_v40, %v2778_v31  ;;  %v2844_v48 = vmul.f32 %v10951_v40, %v2779_v24  ;;  %v2845_v28 = vmul.f32 %v10951_v40, %v2780_v42  ;;  %v2846_v0 = vmul.f32 %v10951_v40, %v2781_v37  ;;  %10952 = vst [vmem:[#allocation32_spill] sm:$0xff] %v7614_v14 }
 0x3f5   : > { %v2847_v46 = vmul.f32 %v10951_v40, %v2782_v10  ;;  %v2848_v16 = vmul.f32 %v10951_v40, %v2783_v63  ;;  %v7611_v50 = vadd.f32 %v2819_v60, %v7496_v56  ;;  %v7617_v52 = vadd.f32 %v2820_v6, %v7500_v51 }
 0x3f6   : > { %v7620_v17 = vadd.f32 %v2821_v38, %v7506_v27  ;;  %v7623_v31 = vadd.f32 %v2822_v58, %v7510_v20  ;;  %v7626_v37 = vadd.f32 %v2823_v35, %v7514_v39  ;;  %v7629_v10 = vadd.f32 %v2824_v1, %v7518_v2 }
 0x3f7   : > { %v7632_v56 = vadd.f32 %v2825_v41, %v7522_v34  ;;  %v7635_v24 = vadd.f32 %v2826_v18, %v7526_v45  ;;  %v7638_v51 = vadd.f32 %v2827_v30, %v7530_v49  ;;  %v7641_v27 = vadd.f32 %v2828_v47, %v7533_v32  ;;  %v10970_v18 = vld [vmem:[#allocation102_spill] sm:$0xff]  ;;  %v10971_v47 = vld [vmem:[#allocation92_spill] sm:$0xff] }
 0x3f8   : > { %v7644_v20 = vadd.f32 %v2829_v55, %v7536_v8  ;;  %v7647_v39 = vadd.f32 %v2830_v13, %v7539_v33  ;;  %v7650_v2 = vadd.f32 %v2831_v9, %v7542_v36  ;;  %v7653_v34 = vadd.f32 %v2832_v57, %v7545_v12  ;;  %v10972_v13 = vld [vmem:[#allocation103_spill] sm:$0xff]  ;;  %v10973_v57 = vld [vmem:[#allocation20_spill] sm:$0xff] }
 0x3f9   : > { %v7656_v45 = vadd.f32 %v2833_v15, %v7547_v44  ;;  %v7659_v49 = vadd.f32 %v2834_v7, %v7549_v19  ;;  %v7662_v32 = vperm.slane %v7614_v14, 0  ;;  %v7665_v55 = vadd.f32 %v2835_v62, %v7551_v29  ;;  %v10954_v29 = vld [vmem:[#allocation112_spill] sm:$0xff]  ;;  %v10974_v7 = vld [vmem:[#allocation34_spill] sm:$0xff] }
 0x3fa   : > { %v7668_v8 = vadd.f32 %v2836_v59, %v7554_v3  ;;  %v7671_v33 = vadd.f32 %v2837_v25, %v7556_v5  ;;  %v7674_v36 = vadd.f32 %v2838_v11, %v7558_v22  ;;  %v7677_v12 = vadd.f32 %v2839_v4, %v7560_v23  ;;  %v10956_v3 = vld [vmem:[#allocation39_spill] sm:$0xff]  ;;  %v10958_v5 = vld [vmem:[#allocation38_spill] sm:$0xff]  ;;  %v10960_v22 = vld [vmem:[#allocation36_spill] sm:$0xff] }
 0x3fb   : > { %10953 = vst [vmem:[#allocation140_spill] sm:$0xff] %v7662_v32  ;;  %v7680_v44 = vadd.f32 %v2840_v43, %v7562_v53  ;;  %v7683_v19 = vadd.f32 %v2841_v21, %v7564_v26  ;;  %v7686_v15 = vadd.f32 %v2842_v61, %v10954_v29  ;;  %v7689_v60 = vadd.f32 %v2843_v54, %v10956_v3  ;;  %v10962_v23 = vld [vmem:[#allocation113_spill] sm:$0xff]  ;;  %v10964_v53 = vld [vmem:[#allocation54_spill] sm:$0xff]  ;;  %v10966_v26 = vld [vmem:[#allocation55_spill] sm:$0xff] }
 0x3fc   : > { %v7692_v25 = vadd.f32 %v2844_v48, %v10958_v5  ;;  %v7695_v6 = vadd.f32 %v2845_v28, %v10960_v22  ;;  %v7698_v38 = vadd.f32 %v2846_v0, %v10962_v23  ;;  %v7701_v58 = vadd.f32 %v2847_v46, %v10964_v53  ;;  %v10968_v61 = vld [vmem:[#allocation28_spill] sm:$0xff]  ;;  %v10969_v54 = vld [vmem:[#allocation29_spill] sm:$0xff]  ;;  %v10975_v59 = vld [vmem:[#allocation35_spill] sm:$0xff] }
 0x3fd   : > { %10955 = vst [vmem:[#allocation115_spill] sm:$0xff] %v7686_v15  ;;  %v7704_v35 = vadd.f32 %v2848_v16, %v10966_v26  ;;  %v3011_v1 = vmul.f32 %v7662_v32, %v10968_v61  ;;  %v3012_v41 = vmul.f32 %v7662_v32, %v10969_v54  ;;  %v3013_v30 = vmul.f32 %v7662_v32, %v10970_v18  ;;  %v10976_v4 = vld [vmem:[#allocation95_spill] sm:$0xff]  ;;  %v10977_v21 = vld [vmem:[#allocation105_spill] sm:$0xff]  ;;  %v10978_v28 = vld [vmem:[#allocation40_spill] sm:$0xff] }
 0x3fe   : > { %10957 = vst [vmem:[#allocation43_spill] sm:$0xff] %v7689_v60  ;;  %v3014_v42 = vmul.f32 %v7662_v32, %v10971_v47  ;;  %v3015_v9 = vmul.f32 %v7662_v32, %v10972_v13  ;;  %v3016_v63 = vmul.f32 %v7662_v32, %v10973_v57  ;;  %v3017_v62 = vmul.f32 %v7662_v32, %v10974_v7  ;;  %v10979_v46 = vld [vmem:[#allocation41_spill] sm:$0xff]  ;;  %v10980_v29 = vld [vmem:[#allocation136_spill] sm:$0xff]  ;;  %v10981_v5 = vld [vmem:[#allocation106_spill] sm:$0xff] }
 0x3ff   : > { %10959 = vst [vmem:[#allocation138_spill] sm:$0xff] %v7692_v25  ;;  %v3018_v11 = vmul.f32 %v7662_v32, %v10975_v59  ;;  %v3019_v43 = vmul.f32 %v7662_v32, %v10976_v4  ;;  %v3020_v48 = vmul.f32 %v7662_v32, %v10977_v21  ;;  %v3021_v0 = vmul.f32 %v7662_v32, %v10978_v28  ;;  %v2975_v23 = vld [vmem:[#allocation2 + $0x330] sm:$0xff]  ;;  %v10983_v61 = vld [vmem:[#allocation107_spill] sm:$0xff]  ;;  %v10986_v59 = vld [vmem:[#allocation101_spill] sm:$0xff] }
 0x400   : > { %10961 = vst [vmem:[#allocation46_spill] sm:$0xff] %v7695_v6  ;;  %v3022_v16 = vmul.f32 %v7662_v32, %v10979_v46  ;;  %v3023_v3 = vmul.f32 %v7662_v32, %v10980_v29  ;;  %v3024_v22 = vmul.f32 %v7662_v32, %v10981_v5  ;;  %v10982_v53 = vld [vmem:[#allocation98_spill] sm:$0xff]  ;;  %v3026_v54 = vmul.f32 %v7662_v32, %v10983_v61  ;;  %v10985_v13 = vld [vmem:[#allocation27_spill] sm:$0xff]  ;;  %v10987_v21 = vld [vmem:[#allocation108_spill] sm:$0xff] }
 0x401   : > { %10963 = vst [vmem:[#allocation116_spill] sm:$0xff] %v7698_v38  ;;  %v3025_v26 = vmul.f32 %v7662_v32, %v10982_v53  ;;  %v10984_v18 = vld [vmem:[#allocation26_spill] sm:$0xff]  ;;  %v3028_v57 = vmul.f32 %v7662_v32, %v10985_v13  ;;  %v2976_v7 = vld [vmem:[#allocation2 + $0x338] sm:$0xff]  ;;  %v3029_v4 = vmul.f32 %v7662_v32, %v10986_v59  ;;  %v3030_v28 = vmul.f32 %v7662_v32, %v10987_v21  ;;  %v10988_v46 = vld [vmem:[#allocation48_spill] sm:$0xff] }
 0x402   : > { %10965 = vst [vmem:[#allocation57_spill] sm:$0xff] %v7701_v58  ;;  %v3027_v47 = vmul.f32 %v7662_v32, %v10984_v18  ;;  %v3031_v29 = vmul.f32 %v7662_v32, %v10988_v46  ;;  %v10989_v5 = vld [vmem:[#allocation49_spill] sm:$0xff]  ;;  %v10992_v13 = vld [vmem:[#allocation30_spill] sm:$0xff]  ;;  %v10994_v38 = vld [vmem:[#allocation51_spill] sm:$0xff]  ;;  %v3041_v60 = vmul.f32 %v7662_v32, %v2976_v7 }
 0x403   : > { %10967 = vst [vmem:[#allocation58_spill] sm:$0xff] %v7704_v35  ;;  %v3032_v53 = vmul.f32 %v7662_v32, %v10989_v5  ;;  %v10990_v61 = vld [vmem:[#allocation109_spill] sm:$0xff]  ;;  %v3035_v35 = vmul.f32 %v7662_v32, %v10992_v13  ;;  %v10993_v58 = vld [vmem:[#allocation110_spill] sm:$0xff]  ;;  %v3037_v21 = vmul.f32 %v7662_v32, %v10994_v38  ;;  %v10995_v6 = vld [vmem:[#allocation52_spill] sm:$0xff]  ;;  %v7770_v13 = vadd.f32 %v3012_v41, %v7611_v50 }
 0x404   : > { %v3033_v40 = vmul.f32 %v7662_v32, %v10990_v61  ;;  %v10991_v18 = vld [vmem:[#allocation33_spill] sm:$0xff]  ;;  %v3036_v59 = vmul.f32 %v7662_v32, %v10993_v58  ;;  %v3038_v46 = vmul.f32 %v7662_v32, %v10995_v6  ;;  %v10996_v25 = vld [vmem:[#allocation31_spill] sm:$0xff]  ;;  %v3040_v61 = vmul.f32 %v7662_v32, %v2975_v23 }
 0x405   : > { %v3034_v14 = vmul.f32 %v7662_v32, %v10991_v18  ;;  %v3039_v5 = vmul.f32 %v7662_v32, %v10996_v25  ;;  %v10997_v18 = vld [vmem:[#allocation104_spill] sm:$0xff]  ;;  %v7773_v58 = vadd.f32 %v3013_v30, %v7617_v52  ;;  %v7776_v38 = vadd.f32 %v3014_v42, %v7620_v17  ;;  %v3157_v32 = vld [vmem:[#allocation2 + $0x2a9] sm:$0xff] }
 0x406   : > { %v7767_v15 = vadd.f32 %v3011_v1, %v10997_v18  ;;  %v7779_v6 = vadd.f32 %v3015_v9, %v7623_v31  ;;  %v7782_v25 = vadd.f32 %v3016_v63, %v7626_v37  ;;  %v7785_v23 = vadd.f32 %v3017_v62, %v7629_v10  ;;  %v2527_v62 = vld [vmem:[#allocation2 + $0x1] sm:$0xff]  ;;  %v3145_v7 = vld [vmem:[#allocation2 + $0x219] sm:$0xff] }
 0x407   : > { %v7788_v1 = vadd.f32 %v3018_v11, %v7632_v56  ;;  %v7791_v50 = vadd.f32 %v3019_v43, %v7635_v24  ;;  %v7794_v52 = vadd.f32 %v3020_v48, %v7638_v51  ;;  %v7797_v17 = vadd.f32 %v3021_v0, %v7641_v27  ;;  %v2528_v11 = vld [vmem:[#allocation2 + $0x9] sm:$0xff]  ;;  %v2559_v48 = vld [vmem:[#allocation2 + $0x1b1] sm:$0xff]  ;;  %v3151_v18 = vld [vmem:[#allocation2 + $0x261] sm:$0xff] }
 0x408   : > { %v7800_v31 = vadd.f32 %v3022_v16, %v7644_v20  ;;  %v7803_v37 = vadd.f32 %v3023_v3, %v7647_v39  ;;  %v7806_v10 = vadd.f32 %v3024_v22, %v7650_v2  ;;  %v7809_v56 = vadd.f32 %v3025_v26, %v7653_v34  ;;  %v2430_v43 = vld [vmem:[#allocation2 + $0x1b0] sm:$0xff]  ;;  %v3140_v16 = vld [vmem:[#allocation2 + $0x1e1] sm:$0xff]  ;;  %v3142_v22 = vld [vmem:[#allocation2 + $0x1f9] sm:$0xff] }
 0x409   : > { %v7812_v24 = vadd.f32 %v3026_v54, %v7656_v45  ;;  %v7815_v51 = vadd.f32 %v3027_v47, %v7659_v49  ;;  %v7818_v27 = vadd.f32 %v3028_v57, %v7665_v55  ;;  %v7821_v20 = vadd.f32 %v3029_v4, %v7668_v8  ;;  %v11000_v55 = vld [vmem:[#allocation115_spill] sm:$0xff]  ;;  %v3141_v3 = vld [vmem:[#allocation2 + $0x1e9] sm:$0xff]  ;;  %v3143_v26 = vld [vmem:[#allocation2 + $0x201] sm:$0xff] }
 0x40a   : > { %v7824_v39 = vadd.f32 %v3030_v28, %v7671_v33  ;;  %v7827_v2 = vadd.f32 %v3031_v29, %v7674_v36  ;;  %v7830_v34 = vadd.f32 %v3032_v53, %v7677_v12  ;;  %v7833_v45 = vadd.f32 %v3033_v40, %v7680_v44  ;;  %v11002_v8 = vld [vmem:[#allocation43_spill] sm:$0xff]  ;;  %v11004_v33 = vld [vmem:[#allocation138_spill] sm:$0xff]  ;;  %v11008_v12 = vld [vmem:[#allocation116_spill] sm:$0xff] }
 0x40b   : > { %v7836_v49 = vadd.f32 %v3034_v14, %v7683_v19  ;;  %v7839_v41 = vadd.f32 %v3035_v35, %v11000_v55  ;;  %v7842_v30 = vadd.f32 %v3036_v59, %v11002_v8  ;;  %v7845_v42 = vadd.f32 %v3037_v21, %v11004_v33  ;;  %v11006_v36 = vld [vmem:[#allocation46_spill] sm:$0xff]  ;;  %v11010_v40 = vld [vmem:[#allocation57_spill] sm:$0xff]  ;;  %v2398_v35 = vld [vmem:[#allocation2] sm:$0xff] }
 0x40c   : > { %10998 = vst [vmem:[#allocation37_spill] sm:$0xff] %v7833_v45  ;;  %v7848_v9 = vadd.f32 %v3038_v46, %v11006_v36  ;;  %v7851_v63 = vadd.f32 %v3039_v5, %v11008_v12  ;;  %v7854_v44 = vadd.f32 %v3040_v61, %v11010_v40  ;;  %v11012_v14 = vld [vmem:[#allocation58_spill] sm:$0xff]  ;;  %v11014_v47 = vld [vmem:[#allocation32_spill] sm:$0xff]  ;;  %v11016_v59 = vld [vmem:[#allocation25_spill] sm:$0xff] }
 0x40d   : > { %10999 = vst [vmem:[#allocation118_spill] sm:$0xff] %v7836_v49  ;;  %v7857_v19 = vadd.f32 %v3041_v60, %v11012_v14  ;;  %v3139_v0 = vld [vmem:[#allocation2 + $0x1d1] sm:$0xff]  ;;  %v7860_v57 = vperm.slane %v11014_v47, 1  ;;  %v3146_v4 = vld [vmem:[#allocation2 + $0x229] sm:$0xff]  ;;  %v3148_v29 = vld [vmem:[#allocation2 + $0x241] sm:$0xff]  ;;  %v7863_v21 = vmul.f32 %v11016_v59, %v2398_v35  ;;  %v7872_v33 = vmul.f32 %v11016_v59, %v2430_v43 }
 0x40e   : > { %11001 = vst [vmem:[#allocation47_spill] sm:$0xff] %v7839_v41  ;;  %v3144_v54 = vld [vmem:[#allocation2 + $0x211] sm:$0xff]  ;;  %v3149_v60 = vld [vmem:[#allocation2 + $0x249] sm:$0xff]  ;;  %v3150_v53 = vld [vmem:[#allocation2 + $0x259] sm:$0xff] }
 0x40f   : > { %11003 = vst [vmem:[#allocation141_spill] sm:$0xff] %v7842_v30  ;;  %v3147_v28 = vld [vmem:[#allocation2 + $0x231] sm:$0xff]  ;;  %v3153_v8 = vld [vmem:[#allocation2 + $0x279] sm:$0xff]  ;;  %v3154_v12 = vld [vmem:[#allocation2 + $0x289] sm:$0xff]  ;;  %v3204_v35 = vmul.f32 %v7860_v57, %v3139_v0  ;;  %v3208_v43 = vmul.f32 %v7860_v57, %v3143_v26  ;;  %v3209_v59 = vmul.f32 %v7860_v57, %v3144_v54  ;;  %v3211_v0 = vmul.f32 %v7860_v57, %v3146_v4 }
 0x410   : > { %11005 = vst [vmem:[#allocation7_spill] sm:$0xff] %v7845_v42  ;;  %v11018_v46 = vld [vmem:[#allocation99_spill] sm:$0xff]  ;;  %v3156_v14 = vld [vmem:[#allocation2 + $0x2a1] sm:$0xff]  ;;  %v3215_v26 = vmul.f32 %v7860_v57, %v3150_v53  ;;  %v3216_v54 = vmul.f32 %v7860_v57, %v3151_v18  ;;  %v3218_v4 = vmul.f32 %v7860_v57, %v3153_v8 }
 0x411   : > { %11007 = vst [vmem:[#allocation61_spill] sm:$0xff] %v7848_v9  ;;  %v7866_v5 = vmul.f32 %v11018_v46, %v2527_v62  ;;  %v7869_v61 = vmul.f32 %v11018_v46, %v2528_v11  ;;  %v3152_v55 = vld [vmem:[#allocation2 + $0x271] sm:$0xff]  ;;  %v7875_v36 = vmul.f32 %v11018_v46, %v2559_v48  ;;  %v3205_v62 = vmul.f32 %v7860_v57, %v3140_v16  ;;  %v3158_v47 = vld [vmem:[#allocation2 + $0x2b9] sm:$0xff]  ;;  %v3159_v11 = vld [vmem:[#allocation2 + $0x2c1] sm:$0xff] }
 0x412   : > { %11009 = vst [vmem:[#allocation119_spill] sm:$0xff] %v7851_v63  ;;  %v3155_v40 = vld [vmem:[#allocation2 + $0x291] sm:$0xff]  ;;  %v3161_v46 = vld [vmem:[#allocation2 + $0x2d9] sm:$0xff]  ;;  %v3212_v16 = vmul.f32 %v7860_v57, %v3147_v28  ;;  %v3217_v63 = vmul.f32 %v7860_v57, %v3152_v55  ;;  %v3167_v42 = vld [vmem:[#allocation2 + $0x321] sm:$0xff]  ;;  %v3219_v28 = vmul.f32 %v7860_v57, %v3154_v12  ;;  %v3221_v30 = vmul.f32 %v7860_v57, %v3156_v14 }
 0x413   : > { %11011 = vst [vmem:[#allocation60_spill] sm:$0xff] %v7854_v44  ;;  %v3160_v48 = vld [vmem:[#allocation2 + $0x2d1] sm:$0xff]  ;;  %v3164_v44 = vld [vmem:[#allocation2 + $0x301] sm:$0xff]  ;;  %v3166_v9 = vld [vmem:[#allocation2 + $0x319] sm:$0xff]  ;;  %v3223_v53 = vmul.f32 %v7860_v57, %v3158_v47  ;;  %v3224_v18 = vmul.f32 %v7860_v57, %v3159_v11  ;;  %v3226_v49 = vmul.f32 %v7860_v57, %v3161_v46  ;;  %v7912_v46 = vadd.f32 %v3205_v62, %v7770_v13 }
 0x414   : > { %11013 = vst [vmem:[#allocation137_spill] sm:$0xff] %v7857_v19  ;;  %v3163_v19 = vld [vmem:[#allocation2 + $0x2f1] sm:$0xff]  ;;  %v3169_v41 = vld [vmem:[#allocation2 + $0x339] sm:$0xff]  ;;  %v3225_v55 = vmul.f32 %v7860_v57, %v3160_v48  ;;  %v3229_v12 = vmul.f32 %v7860_v57, %v3164_v44  ;;  %v3231_v14 = vmul.f32 %v7860_v57, %v3166_v9  ;;  %v7909_v48 = vadd.f32 %v3204_v35, %v7767_v15 }
 0x415   : > { %11015 = vst [vmem:[#allocation121_spill] sm:$0xff] %v7860_v57  ;;  %v3228_v8 = vmul.f32 %v7860_v57, %v3163_v19  ;;  %v3234_v11 = vmul.f32 %v7860_v57, %v3169_v41  ;;  %v7921_v9 = vadd.f32 %v3208_v43, %v7779_v6  ;;  %v7930_v15 = vadd.f32 %v3211_v0, %v7788_v1 }
 0x416   : > { %11017 = vst [vmem:[#allocation50_spill] sm:$0xff] %v7863_v21  ;;  %v3213_v21 = vmul.f32 %v7860_v57, %v3148_v29  ;;  %v3220_v29 = vmul.f32 %v7860_v57, %v3155_v40  ;;  %v7933_v13 = vadd.f32 %v3212_v16, %v7791_v50  ;;  %v7942_v6 = vadd.f32 %v3215_v26, %v7800_v31  ;;  %v11043_v26 = vld [vmem:[#allocation90_spill] sm:$0xff] }
 0x417   : > { %11019 = vst [vmem:[#allocation111_spill] sm:$0xff] %v7866_v5  ;;  %v3207_v5 = vmul.f32 %v7860_v57, %v3142_v22  ;;  %v3214_v22 = vmul.f32 %v7860_v57, %v3149_v60  ;;  %v3222_v60 = vmul.f32 %v7860_v57, %v3157_v32  ;;  %v3232_v32 = vmul.f32 %v7860_v57, %v3167_v42 }
 0x418   : > { %11020 = vst [vmem:[#allocation64_spill] sm:$0xff] %v7869_v61  ;;  %v3206_v61 = vmul.f32 %v7860_v57, %v3141_v3  ;;  %v3165_v3 = vld [vmem:[#allocation2 + $0x309] sm:$0xff]  ;;  %v7924_v42 = vadd.f32 %v3209_v59, %v7782_v25  ;;  %v7945_v25 = vadd.f32 %v3216_v54, %v7803_v37  ;;  %v7951_v1 = vadd.f32 %v3218_v4, %v7809_v56 }
 0x419   : > { %11021 = vst [vmem:[#allocation122_spill] sm:$0xff] %v7872_v33  ;;  %v3210_v33 = vmul.f32 %v7860_v57, %v3145_v7  ;;  %v3168_v7 = vld [vmem:[#allocation2 + $0x331] sm:$0xff]  ;;  %v3230_v40 = vmul.f32 %v7860_v57, %v3165_v3  ;;  %v7918_v44 = vadd.f32 %v3207_v5, %v7776_v38  ;;  %v7939_v38 = vadd.f32 %v3214_v22, %v7797_v17  ;;  %v2720_v37 = vld [vmem:[#allocation2 + $0x2] sm:$0xff] }
 0x41a   : > { %11022 = vst [vmem:[#allocation63_spill] sm:$0xff] %v7875_v36  ;;  %v3162_v36 = vld [vmem:[#allocation2 + $0x2e9] sm:$0xff]  ;;  %v3233_v47 = vmul.f32 %v7860_v57, %v3168_v7  ;;  %v7915_v19 = vadd.f32 %v3206_v61, %v7773_v58  ;;  %v7936_v58 = vadd.f32 %v3213_v21, %v7794_v52  ;;  %v7954_v50 = vadd.f32 %v3219_v28, %v7812_v24  ;;  %v11035_v35 = vld [vmem:[#allocation119_spill] sm:$0xff]  ;;  %v11037_v62 = vld [vmem:[#allocation60_spill] sm:$0xff] }
 0x41b   : > { %v3227_v45 = vmul.f32 %v7860_v57, %v3162_v36  ;;  %v7927_v41 = vadd.f32 %v3210_v33, %v7785_v23  ;;  %v7948_v23 = vadd.f32 %v3217_v63, %v7806_v10  ;;  %v7957_v52 = vadd.f32 %v3220_v29, %v7815_v51  ;;  %v11023_v24 = vld [vmem:[#allocation37_spill] sm:$0xff]  ;;  %v11031_v33 = vld [vmem:[#allocation7_spill] sm:$0xff] }
 0x41c   : > { %v7960_v17 = vadd.f32 %v3221_v30, %v7818_v27  ;;  %v7963_v31 = vadd.f32 %v3222_v60, %v7821_v20  ;;  %v7966_v59 = vadd.f32 %v3223_v53, %v7824_v39  ;;  %v7969_v10 = vadd.f32 %v3224_v18, %v7827_v2  ;;  %v2721_v63 = vld [vmem:[#allocation2 + $0xa] sm:$0xff]  ;;  %v2752_v27 = vld [vmem:[#allocation2 + $0x1b2] sm:$0xff] }
 0x41d   : > { %v7972_v56 = vadd.f32 %v3225_v55, %v7830_v34  ;;  %v7975_v51 = vadd.f32 %v3226_v49, %v11023_v24  ;;  %v11025_v30 = vld [vmem:[#allocation118_spill] sm:$0xff]  ;;  %v11027_v20 = vld [vmem:[#allocation47_spill] sm:$0xff]  ;;  %v11029_v39 = vld [vmem:[#allocation141_spill] sm:$0xff]  ;;  %v7987_v2 = vadd.f32 %v3230_v40, %v11031_v33  ;;  %v7993_v49 = vadd.f32 %v3232_v32, %v11035_v35 }
 0x41e   : > { %v7978_v21 = vadd.f32 %v3227_v45, %v11025_v30  ;;  %v7981_v5 = vadd.f32 %v3228_v8, %v11027_v20  ;;  %v7984_v61 = vadd.f32 %v3229_v12, %v11029_v39  ;;  %v11033_v36 = vld [vmem:[#allocation61_spill] sm:$0xff]  ;;  %v7996_v43 = vadd.f32 %v3233_v47, %v11037_v62  ;;  %v11041_v16 = vld [vmem:[#allocation50_spill] sm:$0xff]  ;;  %v11042_v3 = vld [vmem:[#allocation111_spill] sm:$0xff] }
 0x41f   : > { %11024 = vst [vmem:[#allocation139_spill] sm:$0xff] %v7975_v51  ;;  %v7990_v34 = vadd.f32 %v3231_v14, %v11033_v36  ;;  %v11039_v45 = vld [vmem:[#allocation137_spill] sm:$0xff]  ;;  %v2656_v22 = vadd.f32 %v11042_v3, %v11041_v16  ;;  %v2785_v54 = vmul.f32 %v11043_v26, %v2720_v37  ;;  %v11045_v28 = vld [vmem:[#allocation64_spill] sm:$0xff]  ;;  %v2786_v60 = vmul.f32 %v11043_v26, %v2721_v63  ;;  %v3523_v12 = vld [vmem:[#allocation2 + $0x198] sm:$0xff] }
 0x420   : > { %11026 = vst [vmem:[#allocation114_spill] sm:$0xff] %v7978_v21  ;;  %v7999_v0 = vadd.f32 %v3234_v11, %v11039_v45  ;;  %v2397_v7 = vld [vmem:[%s7251_s28 + $0x8] sm:$0x7]  ;;  %v2817_v8 = vmul.f32 %v11043_v26, %v2752_v27  ;;  %v3716_v40 = vld [vmem:[#allocation2 + $0x199] sm:$0xff] }
 0x421   : > { %11028 = vst [vmem:[#allocation124_spill] sm:$0xff] %v7981_v5  ;;  %v11044_v4 = vld [vmem:[#allocation17_spill] sm:$0xff]  ;;  %v11046_v53 = vld [vmem:[#allocation122_spill] sm:$0xff]  ;;  %v11047_v18 = vld [vmem:[#allocation63_spill] sm:$0xff]  ;;  %v8011_v11 = vperm.slane %v2397_v7, 0  ;;  %v8013_v24 = vadd.f32 %v2785_v54, %v2656_v22  ;;  %v8015_v37 = vperm.slane %v2397_v7, 1 }
 0x422   : > { %11030 = vst [vmem:[#allocation53_spill] sm:$0xff] %v7984_v61  ;;  %v2657_v29 = vadd.f32 %v11045_v28, %v11044_v4  ;;  %v2688_v55 = vadd.f32 %v11047_v18, %v11046_v53  ;;  %v3717_v14 = vld [vmem:[#allocation2 + $0x1a1] sm:$0xff]  ;;  %v8017_v30 = vperm.slane %v2397_v7, 2  ;;  %v8042_v16 = vld [vmem:[#allocation2 + $0x18] sm:$0xff]  ;;  %v8046_v22 = vld [vmem:[#allocation2 + $0x30] sm:$0xff] }
 0x423   : > { %11032 = vst [vmem:[#allocation67_spill] sm:$0xff] %v7987_v2  ;;  %v3909_v32 = vld [vmem:[#allocation2 + $0x19a] sm:$0xff]  ;;  %v3910_v47 = vld [vmem:[#allocation2 + $0x1a2] sm:$0xff]  ;;  %v8024_v39 = vmul.f32 %v8011_v11, %v3523_v12  ;;  %v8031_v36 = vmul.f32 %v8015_v37, %v3716_v40  ;;  %v8034_v35 = vmul.f32 %v8015_v37, %v3717_v14  ;;  %v4774_v53 = vld [vmem:[#allocation2 + $0x31] sm:$0xff] }
 0x424   : > { %11034 = vst [vmem:[#allocation117_spill] sm:$0xff] %v7990_v34  ;;  %v8019_v20 = vadd.f32 %v2786_v60, %v2657_v29  ;;  %v8021_v63 = vadd.f32 %v2817_v8, %v2688_v55  ;;  %v11055_v27 = vld [vmem:[#allocation100_spill] sm:$0xff]  ;;  %v8037_v62 = vmul.f32 %v8017_v30, %v3909_v32  ;;  %v8040_v45 = vmul.f32 %v8017_v30, %v3910_v47  ;;  %v8048_v54 = vld [vmem:[#allocation2 + $0x38] sm:$0xff]  ;;  %v8062_v12 = vld [vmem:[#allocation2 + $0x48] sm:$0xff] }
 0x425   : > { %11036 = vst [vmem:[#allocation126_spill] sm:$0xff] %v7993_v49  ;;  %v8028_v33 = vmul.f32 %v11055_v27, %v8011_v11  ;;  %v8044_v3 = vld [vmem:[#allocation2 + $0x20] sm:$0xff]  ;;  %v11065_v4 = vld [vmem:[#allocation99_spill] sm:$0xff]  ;;  %v8064_v40 = vld [vmem:[#allocation2 + $0x50] sm:$0xff] }
 0x426   : > { %11038 = vst [vmem:[#allocation56_spill] sm:$0xff] %v7996_v43  ;;  %v4772_v7 = vld [vmem:[#allocation2 + $0x19] sm:$0xff]  ;;  %v4773_v29 = vld [vmem:[#allocation2 + $0x21] sm:$0xff]  ;;  %v8057_v18 = vmul.f32 %v4774_v53, %v11065_v4  ;;  %v4776_v47 = vld [vmem:[#allocation2 + $0x49] sm:$0xff] }
 0x427   : > { %11040 = vst [vmem:[#allocation70_spill] sm:$0xff] %v7999_v0  ;;  %v8051_v28 = vmul.f32 %v4772_v7, %v11065_v4  ;;  %v8054_v60 = vmul.f32 %v4773_v29, %v11065_v4  ;;  %v4775_v55 = vld [vmem:[#allocation2 + $0x39] sm:$0xff]  ;;  %v8068_v32 = vld [vmem:[#allocation2 + $0x68] sm:$0xff]  ;;  %v8071_v27 = vmul.f32 %v4776_v47, %v11065_v4  ;;  %v4777_v7 = vld [vmem:[#allocation2 + $0x51] sm:$0xff] }
 0x428   : > { %11048 = vst [vmem:[#allocation120_spill] sm:$0xff] %v8011_v11  ;;  %v8060_v8 = vmul.f32 %v4775_v55, %v11065_v4  ;;  %v8066_v14 = vld [vmem:[#allocation2 + $0x60] sm:$0xff]  ;;  %v8074_v29 = vmul.f32 %v4777_v7, %v11065_v4  ;;  %v8100_v57 = vld [vmem:[#allocation2 + $0x98] sm:$0xff] }
 0x429   : > { %11049 = vst [vmem:[#allocation128_spill] sm:$0xff] %v8013_v24  ;;  %v4778_v53 = vld [vmem:[#allocation2 + $0x61] sm:$0xff]  ;;  %v4780_v47 = vld [vmem:[#allocation2 + $0x79] sm:$0xff]  ;;  %v4784_v24 = vld [vmem:[#allocation2 + $0xa9] sm:$0xff] }
 0x42a   : > { %11050 = vst [vmem:[#allocation59_spill] sm:$0xff] %v8015_v37  ;;  %v8077_v55 = vmul.f32 %v4778_v53, %v11065_v4  ;;  %v4781_v7 = vld [vmem:[#allocation2 + $0x81] sm:$0xff]  ;;  %v4782_v53 = vld [vmem:[#allocation2 + $0x91] sm:$0xff] }
 0x42b   : > { %11051 = vst [vmem:[#allocation73_spill] sm:$0xff] %v8017_v30  ;;  %v8092_v30 = vmul.f32 %v4781_v7, %v11065_v4  ;;  %v8095_v37 = vmul.f32 %v4782_v53, %v11065_v4  ;;  %v8109_v7 = vmul.f32 %v4784_v24, %v11065_v4  ;;  %v4785_v26 = vld [vmem:[#allocation2 + $0xb1] sm:$0xff]  ;;  %v3357_v43 = vld [vmem:[#allocation2 + $0x302] sm:$0xff]  ;;  %v3359_v34 = vld [vmem:[#allocation2 + $0x31a] sm:$0xff] }
 0x42c   : > { %11052 = vst [vmem:[#allocation130_spill] sm:$0xff] %v8019_v20  ;;  %v8104_v20 = vld [vmem:[#allocation2 + $0xb0] sm:$0xff]  ;;  %v8112_v53 = vmul.f32 %v4785_v26, %v11065_v4  ;;  %v3360_v2 = vld [vmem:[#allocation2 + $0x322] sm:$0xff]  ;;  %v3362_v5 = vld [vmem:[#allocation2 + $0x33a] sm:$0xff] }
 0x42d   : > { %11053 = vst [vmem:[#allocation62_spill] sm:$0xff] %v8021_v63  ;;  %v8102_v63 = vld [vmem:[#allocation2 + $0xa8] sm:$0xff]  ;;  %v8126_v24 = vld [vmem:[#allocation2 + $0xf0] sm:$0xff] }
 0x42e   : > { %11054 = vst [vmem:[#allocation72_spill] sm:$0xff] %v8024_v39  ;;  %v8089_v39 = vmul.f32 %v4780_v47, %v11065_v4  ;;  %v8106_v47 = vld [vmem:[#allocation2 + $0xc0] sm:$0xff]  ;;  %v3356_v0 = vld [vmem:[#allocation2 + $0x2f2] sm:$0xff] }
 0x42f   : > { %11056 = vst [vmem:[#allocation66_spill] sm:$0xff] %v8028_v33  ;;  %v8086_v33 = vld [vmem:[#allocation2 + $0x90] sm:$0xff] }
 0x430   : > { %11057 = vst [vmem:[#allocation65_spill] sm:$0xff] %v8031_v36  ;;  %v8084_v36 = vld [vmem:[#allocation2 + $0x80] sm:$0xff] }
 0x431   : > { %11058 = vst [vmem:[#allocation69_spill] sm:$0xff] %v8034_v35  ;;  %v8082_v35 = vld [vmem:[#allocation2 + $0x78] sm:$0xff] }
 0x432   : > { %11059 = vst [vmem:[#allocation80_spill] sm:$0xff] %v8037_v62 }
 0x433   : > { %11060 = vst [vmem:[#allocation123_spill] sm:$0xff] %v8040_v45  ;;  %v4779_v45 = vld [vmem:[#allocation2 + $0x69] sm:$0xff] }
 0x434   : > { %11061 = vst [vmem:[#allocation75_spill] sm:$0xff] %v8042_v16  ;;  %v8080_v62 = vmul.f32 %v4779_v45, %v11065_v4  ;;  %v4783_v45 = vld [vmem:[#allocation2 + $0x99] sm:$0xff] }
 0x435   : > { %11062 = vst [vmem:[#allocation9_spill] sm:$0xff] %v8044_v3  ;;  %v8098_v11 = vmul.f32 %v4783_v45, %v11065_v4 }
 0x436   : > { %11063 = vst [vmem:[#allocation83_spill] sm:$0xff] %v8046_v22 }
 0x437   : > { %11064 = vst [vmem:[#allocation78_spill] sm:$0xff] %v8048_v54 }
 0x438   : > { %11066 = vst [vmem:[#allocation76_spill] sm:$0xff] %v8051_v28 }
 0x439   : > { %11067 = vst [vmem:[#allocation68_spill] sm:$0xff] %v8054_v60 }
 0x43a   : > { %11068 = vst [vmem:[#allocation131_spill] sm:$0xff] %v8057_v18  ;;  %v8144_v18 = vld [vmem:[#allocation2 + $0x110] sm:$0xff] }
 0x43b   : > { %11069 = vst [vmem:[#allocation134_spill] sm:$0xff] %v8060_v8  ;;  %v8142_v8 = vld [vmem:[#allocation2 + $0x108] sm:$0xff] }
 0x43c   : > { %11070 = vst [vmem:[#allocation74_spill] sm:$0xff] %v8062_v12 }
 0x43d   : > { %11071 = vst [vmem:[#allocation87_spill] sm:$0xff] %v8064_v40 }
 0x43e   : > { %11072 = vst [vmem:[#allocation8_spill] sm:$0xff] %v8066_v14 }
 0x43f   : > { %11073 = vst [vmem:[#allocation135_spill] sm:$0xff] %v8068_v32 }
 0x440   : > { %11074 = vst [vmem:[#allocation77_spill] sm:$0xff] %v8071_v27  ;;  %v8140_v27 = vld [vmem:[#allocation2 + $0xf8] sm:$0xff] }
 0x441   : > { %11075 = vst [vmem:[#allocation132_spill] sm:$0xff] %v8074_v29 }
 0x442   : > { %11076 = vst [vmem:[#allocation10_spill] sm:$0xff] %v8077_v55  ;;  %v8124_v55 = vld [vmem:[#allocation2 + $0xe0] sm:$0xff] }
 0x443   : > { %11077 = vst [vmem:[#allocation89_spill] sm:$0xff] %v8080_v62  ;;  %v8122_v62 = vld [vmem:[#allocation2 + $0xd8] sm:$0xff] }
 0x444   : > { %11078 = vst [vmem:[#allocation11_spill] sm:$0xff] %v8082_v35 }
 0x445   : > { %11079 = vst [vmem:[#allocation125_spill] sm:$0xff] %v8084_v36 }
 0x446   : > { %11080 = vst [vmem:[#allocation79_spill] sm:$0xff] %v8086_v33 }
 0x447   : > { %11081 = vst [vmem:[#allocation71_spill] sm:$0xff] %v8089_v39  ;;  %v8120_v39 = vld [vmem:[#allocation2 + $0xc8] sm:$0xff] }
 0x448   : > { %11082 = vst [vmem:[#allocation12_spill] sm:$0xff] %v8092_v30 }
 0x449   : > { %11083 = vst [vmem:[#allocation127_spill] sm:$0xff] %v8095_v37  ;;  %v4786_v37 = vld [vmem:[#allocation2 + $0xc1] sm:$0xff] }
 0x44a   : > { %11084 = vst [vmem:[#allocation14_spill] sm:$0xff] %v8098_v11  ;;  %v8115_v45 = vmul.f32 %v4786_v37, %v11065_v4  ;;  %v4787_v11 = vld [vmem:[#allocation2 + $0xc9] sm:$0xff] }
 0x44b   : > { %11085 = vst [vmem:[#allocation81_spill] sm:$0xff] %v8100_v57  ;;  %v8118_v30 = vmul.f32 %v4787_v11, %v11065_v4 }
 0x44c   : > { %11086 = vst [vmem:[#allocation86_spill] sm:$0xff] %v8102_v63 }
 0x44d   : > { %11087 = vst [vmem:[#allocation129_spill] sm:$0xff] %v8104_v20 }
 0x44e   : > { %11088 = vst [vmem:[#allocation84_spill] sm:$0xff] %v8106_v47 }
 0x44f   : > { %11089 = vst [vmem:[#allocation82_spill] sm:$0xff] %v8109_v7  ;;  %v4788_v7 = vld [vmem:[#allocation2 + $0xd9] sm:$0xff] }
 0x450   : > { %11090 = vst [vmem:[#allocation91_spill] sm:$0xff] %v8112_v53  ;;  %v8129_v26 = vmul.f32 %v4788_v7, %v11065_v4  ;;  %v4789_v53 = vld [vmem:[#allocation2 + $0xe1] sm:$0xff] }
 0x451   : > { %11091 = vst [vmem:[#allocation22_spill] sm:$0xff] %v8115_v45  ;;  %v8132_v37 = vmul.f32 %v4789_v53, %v11065_v4  ;;  %v4790_v45 = vld [vmem:[#allocation2 + $0xf1] sm:$0xff]  ;;  %v8146_v7 = vld [vmem:[#allocation2 + $0x120] sm:$0xff] }
 0x452   : > { %11092 = vst [vmem:[#allocation19_spill] sm:$0xff] %v8118_v30  ;;  %v8135_v11 = vmul.f32 %v4790_v45, %v11065_v4  ;;  %v4791_v30 = vld [vmem:[#allocation2 + $0xf9] sm:$0xff] }
 0x453   : > { %11093 = vst [vmem:[#allocation94_spill] sm:$0xff] %v8120_v39  ;;  %v8138_v29 = vmul.f32 %v4791_v30, %v11065_v4 }
 0x454   : > { %11094 = vst [vmem:[#allocation18_spill] sm:$0xff] %v8122_v62 }
 0x455   : > { %11095 = vst [vmem:[#allocation85_spill] sm:$0xff] %v8124_v55 }
 0x456   : > { %11096 = vst [vmem:[#allocation133_spill] sm:$0xff] %v8126_v24 }
 0x457   : > { %11097 = vst [vmem:[#allocation13_spill] sm:$0xff] %v8129_v26  ;;  %v11105_v26 = vld [vmem:[#allocation25_spill] sm:$0xff] }
 0x458   : > { %11098 = vst [vmem:[#allocation93_spill] sm:$0xff] %v8132_v37  ;;  %v8150_v53 = vmul.f32 %v11105_v26, %v8042_v16  ;;  %v8154_v45 = vmul.f32 %v11105_v26, %v8044_v3  ;;  %v8158_v30 = vmul.f32 %v11105_v26, %v8046_v22  ;;  %v8166_v37 = vld [vmem:[#allocation2 + $0x138] sm:$0xff]  ;;  %v8170_v16 = vmul.f32 %v11105_v26, %v8062_v12 }
 0x459   : > { %11099 = vst [vmem:[#allocation15_spill] sm:$0xff] %v8135_v11  ;;  %v8164_v11 = vld [vmem:[#allocation2 + $0x128] sm:$0xff]  ;;  %v8174_v3 = vmul.f32 %v11105_v26, %v8064_v40  ;;  %v8178_v22 = vmul.f32 %v11105_v26, %v8066_v14  ;;  %v8186_v60 = vmul.f32 %v11105_v26, %v8082_v35  ;;  %v8190_v12 = vmul.f32 %v11105_v26, %v8084_v36 }
 0x45a   : > { %11100 = vst [vmem:[#allocation21_spill] sm:$0xff] %v8138_v29  ;;  %v8162_v29 = vmul.f32 %v11105_v26, %v8048_v54  ;;  %v8182_v54 = vmul.f32 %v11105_v26, %v8068_v32  ;;  %v8194_v40 = vmul.f32 %v11105_v26, %v8086_v33  ;;  %v3334_v14 = vld [vmem:[#allocation2 + $0x1ea] sm:$0xff]  ;;  %v11119_v32 = vld [vmem:[#allocation32_spill] sm:$0xff]  ;;  %v8205_v35 = vmul.f32 %v11105_v26, %v8102_v63 }
 0x45b   : > { %11101 = vst [vmem:[#allocation96_spill] sm:$0xff] %v8140_v27  ;;  %v8209_v36 = vmul.f32 %v11105_v26, %v8104_v20  ;;  %v8213_v33 = vmul.f32 %v11105_v26, %v8106_v47  ;;  %v8225_v63 = vmul.f32 %v11105_v26, %v8124_v55  ;;  %v8229_v20 = vmul.f32 %v11105_v26, %v8126_v24  ;;  %v3341_v47 = vld [vmem:[#allocation2 + $0x242] sm:$0xff] }
 0x45c   : > { %11102 = vst [vmem:[#allocation88_spill] sm:$0xff] %v8142_v8  ;;  %v8245_v55 = vmul.f32 %v11105_v26, %v8146_v7  ;;  %v3344_v24 = vld [vmem:[#allocation2 + $0x262] sm:$0xff] }
 0x45d   : > { %11103 = vst [vmem:[#allocation97_spill] sm:$0xff] %v8144_v18 }
 0x45e   : > { %11104 = vst [vmem:[#allocation16_spill] sm:$0xff] %v8146_v7  ;;  %v3350_v7 = vld [vmem:[#allocation2 + $0x2aa] sm:$0xff] }
 0x45f   : > { %11106 = vst [vmem:[#allocation23_spill] sm:$0xff] %v8150_v53  ;;  %v3355_v53 = vld [vmem:[#allocation2 + $0x2ea] sm:$0xff] }
 0x460   : > { %11107 = vst [vmem:[#allocation45_spill] sm:$0xff] %v8154_v45  ;;  %v8201_v45 = vmul.f32 %v11105_v26, %v8100_v57  ;;  %v8221_v57 = vmul.f32 %v11105_v26, %v8122_v62  ;;  %v8241_v62 = vmul.f32 %v11105_v26, %v8144_v18 }
 0x461   : > { %11108 = vst [vmem:[#allocation44_spill] sm:$0xff] %v8158_v30  ;;  %v3333_v30 = vld [vmem:[#allocation2 + $0x1e2] sm:$0xff] }
 0x462   : > { %11109 = vst [vmem:[#allocation42_spill] sm:$0xff] %v8162_v29  ;;  %v3332_v29 = vld [vmem:[#allocation2 + $0x1d2] sm:$0xff] }
 0x463   : > { %11110 = vst [vmem:[#allocation112_spill] sm:$0xff] %v8164_v11 }
 0x464   : > { %11111 = vst [vmem:[#allocation39_spill] sm:$0xff] %v8166_v37 }
 0x465   : > { %11112 = vst [vmem:[#allocation38_spill] sm:$0xff] %v8170_v16  ;;  %v3337_v16 = vld [vmem:[#allocation2 + $0x212] sm:$0xff] }
 0x466   : > { %11113 = vst [vmem:[#allocation36_spill] sm:$0xff] %v8174_v3  ;;  %v3336_v3 = vld [vmem:[#allocation2 + $0x202] sm:$0xff] }
 0x467   : > { %11114 = vst [vmem:[#allocation113_spill] sm:$0xff] %v8178_v22  ;;  %v3335_v22 = vld [vmem:[#allocation2 + $0x1fa] sm:$0xff] }
 0x468   : > { %11115 = vst [vmem:[#allocation54_spill] sm:$0xff] %v8182_v54  ;;  %v8197_v54 = vperm.slane %v11119_v32, 2  ;;  %v3340_v32 = vld [vmem:[#allocation2 + $0x232] sm:$0xff] }
 0x469   : > { %11116 = vst [vmem:[#allocation55_spill] sm:$0xff] %v8186_v60  ;;  %v8217_v60 = vmul.f32 %v11105_v26, %v8120_v39  ;;  %v8237_v39 = vmul.f32 %v11105_v26, %v8142_v8  ;;  %v3347_v8 = vld [vmem:[#allocation2 + $0x28a] sm:$0xff] }
 0x46a   : > { %11117 = vst [vmem:[#allocation28_spill] sm:$0xff] %v8190_v12  ;;  %v3339_v12 = vld [vmem:[#allocation2 + $0x22a] sm:$0xff]  ;;  %v3397_v18 = vmul.f32 %v8197_v54, %v3332_v29  ;;  %v3400_v28 = vmul.f32 %v8197_v54, %v3335_v22  ;;  %v3420_v51 = vmul.f32 %v8197_v54, %v3355_v53 }
 0x46b   : > { %11118 = vst [vmem:[#allocation29_spill] sm:$0xff] %v8194_v40  ;;  %v3338_v40 = vld [vmem:[#allocation2 + $0x21a] sm:$0xff]  ;;  %v3404_v29 = vmul.f32 %v8197_v54, %v3339_v12  ;;  %v11172_v53 = vld [vmem:[#allocation117_spill] sm:$0xff] }
 0x46c   : > { %11120 = vst [vmem:[#allocation102_spill] sm:$0xff] %v8197_v54  ;;  %v3403_v4 = vmul.f32 %v8197_v54, %v3338_v40  ;;  %v3361_v40 = vld [vmem:[#allocation2 + $0x332] sm:$0xff] }
 0x46d   : > { %11121 = vst [vmem:[#allocation92_spill] sm:$0xff] %v8201_v45  ;;  %v3399_v45 = vmul.f32 %v8197_v54, %v3334_v14  ;;  %v3358_v14 = vld [vmem:[#allocation2 + $0x30a] sm:$0xff] }
 0x46e   : > { %11122 = vst [vmem:[#allocation103_spill] sm:$0xff] %v8205_v35  ;;  %v8233_v35 = vmul.f32 %v11105_v26, %v8140_v27  ;;  %v8253_v27 = vmul.f32 %v11105_v26, %v8166_v37  ;;  %v3353_v37 = vld [vmem:[#allocation2 + $0x2d2] sm:$0xff] }
 0x46f   : > { %11123 = vst [vmem:[#allocation20_spill] sm:$0xff] %v8209_v36  ;;  %v3343_v36 = vld [vmem:[#allocation2 + $0x25a] sm:$0xff] }
 0x470   : > { %11124 = vst [vmem:[#allocation34_spill] sm:$0xff] %v8213_v33  ;;  %v3342_v33 = vld [vmem:[#allocation2 + $0x24a] sm:$0xff] }
 0x471   : > { %11125 = vst [vmem:[#allocation35_spill] sm:$0xff] %v8217_v60  ;;  %v3352_v60 = vld [vmem:[#allocation2 + $0x2c2] sm:$0xff]  ;;  %v3407_v22 = vmul.f32 %v8197_v54, %v3342_v33  ;;  %v3415_v33 = vmul.f32 %v8197_v54, %v3350_v7  ;;  %v3425_v7 = vmul.f32 %v8197_v54, %v3360_v2 }
 0x472   : > { %11126 = vst [vmem:[#allocation95_spill] sm:$0xff] %v8221_v57  ;;  %v8249_v57 = vmul.f32 %v11105_v26, %v8164_v11  ;;  %v3401_v11 = vmul.f32 %v8197_v54, %v3336_v3  ;;  %v3406_v26 = vmul.f32 %v8197_v54, %v3341_v47  ;;  %v3408_v3 = vmul.f32 %v8197_v54, %v3343_v36 }
 0x473   : > { %11127 = vst [vmem:[#allocation105_spill] sm:$0xff] %v8225_v63  ;;  %v3346_v63 = vld [vmem:[#allocation2 + $0x27a] sm:$0xff] }
 0x474   : > { %11128 = vst [vmem:[#allocation40_spill] sm:$0xff] %v8229_v20  ;;  %v3345_v20 = vld [vmem:[#allocation2 + $0x272] sm:$0xff]  ;;  %v3411_v12 = vmul.f32 %v8197_v54, %v3346_v63  ;;  %v3421_v63 = vmul.f32 %v8197_v54, %v3356_v0  ;;  %v8293_v0 = vadd.f32 %v3399_v45, %v7915_v19  ;;  %v8314_v19 = vadd.f32 %v3406_v26, %v7936_v58  ;;  %v11168_v26 = vld [vmem:[#allocation53_spill] sm:$0xff] }
 0x475   : > { %11129 = vst [vmem:[#allocation41_spill] sm:$0xff] %v8233_v35  ;;  %v3349_v35 = vld [vmem:[#allocation2 + $0x2a2] sm:$0xff]  ;;  %v3410_v49 = vmul.f32 %v8197_v54, %v3345_v20  ;;  %v3418_v20 = vmul.f32 %v8197_v54, %v3353_v37  ;;  %v8287_v37 = vadd.f32 %v3397_v18, %v7909_v48  ;;  %v8308_v48 = vadd.f32 %v3404_v29, %v7930_v15  ;;  %v11174_v45 = vld [vmem:[#allocation126_spill] sm:$0xff] }
 0x476   : > { %11130 = vst [vmem:[#allocation136_spill] sm:$0xff] %v8237_v39  ;;  %v3348_v39 = vld [vmem:[#allocation2 + $0x292] sm:$0xff]  ;;  %v3414_v61 = vmul.f32 %v8197_v54, %v3349_v35  ;;  %v3424_v35 = vmul.f32 %v8197_v54, %v3359_v34  ;;  %v8299_v34 = vadd.f32 %v3401_v11, %v7921_v9  ;;  %v8320_v9 = vadd.f32 %v3408_v3, %v7942_v6  ;;  %v8331_v15 = vld [vmem:[#allocation2 + $0x140] sm:$0xff] }
 0x477   : > { %11131 = vst [vmem:[#allocation106_spill] sm:$0xff] %v8241_v62  ;;  %v3398_v62 = vmul.f32 %v8197_v54, %v3333_v30  ;;  %v3405_v30 = vmul.f32 %v8197_v54, %v3340_v32  ;;  %v3412_v32 = vmul.f32 %v8197_v54, %v3347_v8  ;;  %v3413_v47 = vmul.f32 %v8197_v54, %v3348_v39  ;;  %v11170_v11 = vld [vmem:[#allocation67_spill] sm:$0xff]  ;;  %v11176_v29 = vld [vmem:[#allocation56_spill] sm:$0xff] }
 0x478   : > { %11132 = vst [vmem:[#allocation98_spill] sm:$0xff] %v8245_v55  ;;  %v3351_v55 = vld [vmem:[#allocation2 + $0x2ba] sm:$0xff]  ;;  %v3422_v8 = vmul.f32 %v8197_v54, %v3357_v43  ;;  %v3423_v39 = vmul.f32 %v8197_v54, %v3358_v14  ;;  %v8296_v43 = vadd.f32 %v3400_v28, %v7918_v44  ;;  %v8317_v44 = vadd.f32 %v3407_v22, %v7939_v38  ;;  %v11180_v22 = vld [vmem:[#allocation25_spill] sm:$0xff] }
 0x479   : > { %11133 = vst [vmem:[#allocation107_spill] sm:$0xff] %v8249_v57  ;;  %v3402_v57 = vmul.f32 %v8197_v54, %v3337_v16  ;;  %v3409_v16 = vmul.f32 %v8197_v54, %v3344_v24  ;;  %v3416_v36 = vmul.f32 %v8197_v54, %v3351_v55  ;;  %v3417_v24 = vmul.f32 %v8197_v54, %v3352_v60  ;;  %v11166_v28 = vld [vmem:[#allocation124_spill] sm:$0xff] }
 0x47a   : > { %11134 = vst [vmem:[#allocation26_spill] sm:$0xff] %v8253_v27  ;;  %v3354_v27 = vld [vmem:[#allocation2 + $0x2da] sm:$0xff]  ;;  %v3426_v55 = vmul.f32 %v8197_v54, %v3361_v40  ;;  %v3427_v60 = vmul.f32 %v8197_v54, %v3362_v5  ;;  %v8305_v5 = vadd.f32 %v3403_v4, %v7927_v41  ;;  %v8329_v41 = vadd.f32 %v3411_v12, %v7951_v1  ;;  %v8349_v1 = vld [vmem:[#allocation2 + $0x168] sm:$0xff] }
 0x47b   : > { %v3419_v21 = vmul.f32 %v8197_v54, %v3354_v27  ;;  %11135 = vst [vmem:[#allocation27_spill] sm:$0xff] %v8287_v37  ;;  %v8290_v27 = vadd.f32 %v3398_v62, %v7912_v46  ;;  %v8302_v2 = vadd.f32 %v3402_v57, %v7924_v42  ;;  %v8311_v46 = vadd.f32 %v3405_v30, %v7933_v13  ;;  %v11164_v62 = vld [vmem:[#allocation114_spill] sm:$0xff] }
 0x47c   : > { %11137 = vst [vmem:[#allocation108_spill] sm:$0xff] %v8293_v0  ;;  %v8323_v57 = vadd.f32 %v3409_v16, %v7945_v25  ;;  %v8326_v42 = vadd.f32 %v3410_v49, %v7948_v23  ;;  %v8334_v13 = vadd.f32 %v3412_v32, %v7954_v50  ;;  %v8337_v58 = vadd.f32 %v3413_v47, %v7957_v52  ;;  %v8345_v25 = vld [vmem:[#allocation2 + $0x150] sm:$0xff]  ;;  %v8347_v23 = vld [vmem:[#allocation2 + $0x158] sm:$0xff] }
 0x47d   : > { %11136 = vst [vmem:[#allocation101_spill] sm:$0xff] %v8290_v27  ;;  %v8340_v38 = vadd.f32 %v3414_v61, %v7960_v17  ;;  %v8343_v6 = vadd.f32 %v3415_v33, %v7963_v31  ;;  %v8352_v49 = vadd.f32 %v3416_v36, %v7966_v59  ;;  %v8355_v50 = vadd.f32 %v3417_v24, %v7969_v10  ;;  %v11161_v17 = vld [vmem:[#allocation139_spill] sm:$0xff]  ;;  %v8363_v31 = vld [vmem:[#allocation2 + $0x170] sm:$0xff] }
 0x47e   : > { %11138 = vst [vmem:[#allocation48_spill] sm:$0xff] %v8296_v43  ;;  %v8358_v52 = vadd.f32 %v3418_v20, %v7972_v56  ;;  %v8361_v61 = vadd.f32 %v3419_v21, %v11161_v17  ;;  %v8366_v4 = vadd.f32 %v3420_v51, %v11164_v62  ;;  %v8369_v18 = vadd.f32 %v3421_v63, %v11166_v28  ;;  %v11178_v51 = vld [vmem:[#allocation70_spill] sm:$0xff]  ;;  %v11181_v33 = vld [vmem:[#allocation99_spill] sm:$0xff]  ;;  %v4794_v63 = vld [vmem:[#allocation2 + $0x121] sm:$0xff] }
 0x47f   : > { %11139 = vst [vmem:[#allocation49_spill] sm:$0xff] %v8299_v34  ;;  %v8372_v59 = vadd.f32 %v3422_v8, %v11168_v26  ;;  %v8375_v10 = vadd.f32 %v3423_v39, %v11170_v11  ;;  %v8378_v56 = vadd.f32 %v3424_v35, %v11172_v53  ;;  %v8381_v21 = vadd.f32 %v3425_v7, %v11174_v45  ;;  %v4792_v47 = vld [vmem:[#allocation2 + $0x109] sm:$0xff]  ;;  %v4793_v24 = vld [vmem:[#allocation2 + $0x111] sm:$0xff]  ;;  %v4796_v7 = vld [vmem:[#allocation2 + $0x139] sm:$0xff] }
 0x480   : > { %11140 = vst [vmem:[#allocation109_spill] sm:$0xff] %v8302_v2  ;;  %v8384_v30 = vadd.f32 %v3426_v55, %v11176_v29  ;;  %v8387_v14 = vadd.f32 %v3427_v60, %v11178_v51  ;;  %v2490_v3 = vmul.f32 %v11180_v22, %v8331_v15  ;;  %v2491_v16 = vmul.f32 %v11180_v22, %v8345_v25  ;;  %v4795_v39 = vld [vmem:[#allocation2 + $0x129] sm:$0xff]  ;;  %v4797_v60 = vld [vmem:[#allocation2 + $0x141] sm:$0xff]  ;;  %v4798_v62 = vld [vmem:[#allocation2 + $0x151] sm:$0xff] }
 0x481   : > { %11141 = vst [vmem:[#allocation33_spill] sm:$0xff] %v8305_v5  ;;  %v2492_v40 = vmul.f32 %v11180_v22, %v8347_v23  ;;  %v2493_v12 = vmul.f32 %v11180_v22, %v8349_v1  ;;  %v8399_v32 = vmul.f32 %v11180_v22, %v8363_v31  ;;  %v2614_v36 = vmul.f32 %v4792_v47, %v11181_v33  ;;  %v4799_v26 = vld [vmem:[#allocation2 + $0x159] sm:$0xff]  ;;  %v4800_v53 = vld [vmem:[#allocation2 + $0x169] sm:$0xff]  ;;  %v4801_v29 = vld [vmem:[#allocation2 + $0x171] sm:$0xff] }
 0x482   : > { %11142 = vst [vmem:[#allocation30_spill] sm:$0xff] %v8308_v48  ;;  %v2615_v20 = vmul.f32 %v4793_v24, %v11181_v33  ;;  %v2616_v8 = vmul.f32 %v4794_v63, %v11181_v33  ;;  %v2617_v35 = vmul.f32 %v4795_v39, %v11181_v33  ;;  %v2618_v55 = vmul.f32 %v4796_v7, %v11181_v33  ;;  %v11182_v22 = vld [vmem:[#allocation23_spill] sm:$0xff]  ;;  %v11183_v47 = vld [vmem:[#allocation76_spill] sm:$0xff]  ;;  %v11184_v63 = vld [vmem:[#allocation45_spill] sm:$0xff] }
 0x483   : > { %11143 = vst [vmem:[#allocation110_spill] sm:$0xff] %v8311_v46  ;;  %v2619_v17 = vmul.f32 %v4797_v60, %v11181_v33  ;;  %v2620_v28 = vmul.f32 %v4798_v62, %v11181_v33  ;;  %v2621_v11 = vmul.f32 %v4799_v26, %v11181_v33  ;;  %v2622_v45 = vmul.f32 %v4800_v53, %v11181_v33  ;;  %v11185_v39 = vld [vmem:[#allocation68_spill] sm:$0xff]  ;;  %v11189_v26 = vld [vmem:[#allocation134_spill] sm:$0xff] }
 0x484   : > { %11144 = vst [vmem:[#allocation51_spill] sm:$0xff] %v8314_v19  ;;  %v2623_v51 = vmul.f32 %v4801_v29, %v11181_v33  ;;  %v8413_v24 = vadd.f32 %v11183_v47, %v11182_v22  ;;  %v8417_v7 = vadd.f32 %v11185_v39, %v11184_v63  ;;  %v11186_v60 = vld [vmem:[#allocation44_spill] sm:$0xff]  ;;  %v11190_v53 = vld [vmem:[#allocation38_spill] sm:$0xff]  ;;  %v11194_v47 = vld [vmem:[#allocation113_spill] sm:$0xff] }
 0x485   : > { %11145 = vst [vmem:[#allocation52_spill] sm:$0xff] %v8317_v44  ;;  %v11192_v33 = vld [vmem:[#allocation36_spill] sm:$0xff]  ;;  %v11196_v39 = vld [vmem:[#allocation54_spill] sm:$0xff]  ;;  %v11217_v44 = vld [vmem:[#allocation93_spill] sm:$0xff]  ;;  %v8510_v37 = vadd.f32 %v2621_v11, %v2492_v40 }
 0x486   : > { %11146 = vst [vmem:[#allocation31_spill] sm:$0xff] %v8320_v9  ;;  %v11193_v29 = vld [vmem:[#allocation132_spill] sm:$0xff]  ;;  %v11216_v9 = vld [vmem:[#allocation105_spill] sm:$0xff]  ;;  %v11223_v2 = vld [vmem:[#allocation106_spill] sm:$0xff] }
 0x487   : > { %11147 = vst [vmem:[#allocation104_spill] sm:$0xff] %v8323_v57  ;;  %v8433_v22 = vadd.f32 %v11193_v29, %v11192_v33  ;;  %v11204_v29 = vld [vmem:[#allocation92_spill] sm:$0xff]  ;;  %v2727_v57 = vld [vmem:[#allocation2 + $0x52] sm:$0xff]  ;;  %v8481_v19 = vadd.f32 %v11217_v44, %v11216_v9  ;;  %v8495_v34 = vadd.f32 %v2615_v20, %v11223_v2  ;;  %v8512_v2 = vadd.f32 %v2622_v45, %v2493_v12  ;;  %v2734_v20 = vld [vmem:[#allocation2 + $0xaa] sm:$0xff] }
 0x488   : > { %11148 = vst [vmem:[#allocation115_spill] sm:$0xff] %v8326_v42  ;;  %v2730_v5 = vld [vmem:[#allocation2 + $0x7a] sm:$0xff]  ;;  %v11224_v43 = vld [vmem:[#allocation98_spill] sm:$0xff] }
 0x489   : > { %11149 = vst [vmem:[#allocation43_spill] sm:$0xff] %v8329_v41  ;;  %v8498_v44 = vadd.f32 %v2616_v8, %v11224_v43  ;;  %v11225_v9 = vld [vmem:[#allocation107_spill] sm:$0xff]  ;;  %v2736_v8 = vld [vmem:[#allocation2 + $0xc2] sm:$0xff]  ;;  %v11234_v54 = vld [vmem:[#allocation90_spill] sm:$0xff] }
 0x48a   : > { %11150 = vst [vmem:[#allocation138_spill] sm:$0xff] %v8331_v15  ;;  %v8501_v0 = vadd.f32 %v2617_v35, %v11225_v9  ;;  %v2733_v27 = vld [vmem:[#allocation2 + $0x9a] sm:$0xff]  ;;  %v2735_v43 = vld [vmem:[#allocation2 + $0xb2] sm:$0xff]  ;;  %v8515_v35 = vadd.f32 %v2623_v51, %v8399_v32  ;;  %v2737_v9 = vld [vmem:[#allocation2 + $0xca] sm:$0xff]  ;;  %v2792_v45 = vmul.f32 %v11234_v54, %v2727_v57  ;;  %v2799_v57 = vmul.f32 %v11234_v54, %v2734_v20 }
 0x48b   : > { %11151 = vst [vmem:[#allocation46_spill] sm:$0xff] %v8334_v13  ;;  %v2741_v40 = vld [vmem:[#allocation2 + $0xfa] sm:$0xff]  ;;  %v2743_v51 = vld [vmem:[#allocation2 + $0x112] sm:$0xff] }
 0x48c   : > { %11152 = vst [vmem:[#allocation116_spill] sm:$0xff] %v8337_v58  ;;  %v2746_v15 = vld [vmem:[#allocation2 + $0x13a] sm:$0xff]  ;;  %v2808_v20 = vmul.f32 %v11234_v54, %v2743_v51 }
 0x48d   : > { %11153 = vst [vmem:[#allocation57_spill] sm:$0xff] %v8340_v38  ;;  %v11209_v38 = vld [vmem:[#allocation91_spill] sm:$0xff] }
 0x48e   : > { %11154 = vst [vmem:[#allocation58_spill] sm:$0xff] %v8343_v6  ;;  %v2723_v6 = vld [vmem:[#allocation2 + $0x22] sm:$0xff] }
 0x48f   : > { %11155 = vst [vmem:[#allocation37_spill] sm:$0xff] %v8345_v25 }
 0x490   : > { %11156 = vst [vmem:[#allocation118_spill] sm:$0xff] %v8347_v23  ;;  %v2745_v23 = vld [vmem:[#allocation2 + $0x12a] sm:$0xff] }
 0x491   : > { %11157 = vst [vmem:[#allocation47_spill] sm:$0xff] %v8349_v1  ;;  %v2744_v1 = vld [vmem:[#allocation2 + $0x122] sm:$0xff] }
 0x492   : > { %11158 = vst [vmem:[#allocation141_spill] sm:$0xff] %v8352_v49  ;;  %v11207_v49 = vld [vmem:[#allocation82_spill] sm:$0xff] }
 0x493   : > { %11159 = vst [vmem:[#allocation7_spill] sm:$0xff] %v8355_v50  ;;  %v11205_v50 = vld [vmem:[#allocation14_spill] sm:$0xff] }
 0x494   : > { %11160 = vst [vmem:[#allocation61_spill] sm:$0xff] %v8358_v52  ;;  %v11203_v52 = vld [vmem:[#allocation127_spill] sm:$0xff] }
 0x495   : > { %11162 = vst [vmem:[#allocation119_spill] sm:$0xff] %v8361_v61  ;;  %v11201_v61 = vld [vmem:[#allocation12_spill] sm:$0xff] }
 0x496   : > { %11163 = vst [vmem:[#allocation60_spill] sm:$0xff] %v8363_v31 }
 0x497   : > { %11165 = vst [vmem:[#allocation137_spill] sm:$0xff] %v8366_v4  ;;  %v11199_v4 = vld [vmem:[#allocation71_spill] sm:$0xff] }
 0x498   : > { %11167 = vst [vmem:[#allocation50_spill] sm:$0xff] %v8369_v18  ;;  %v11197_v18 = vld [vmem:[#allocation89_spill] sm:$0xff] }
 0x499   : > { %11169 = vst [vmem:[#allocation111_spill] sm:$0xff] %v8372_v59  ;;  %v11195_v59 = vld [vmem:[#allocation10_spill] sm:$0xff] }
 0x49a   : > { %11171 = vst [vmem:[#allocation17_spill] sm:$0xff] %v8375_v10  ;;  %v8437_v63 = vadd.f32 %v11195_v59, %v11194_v47  ;;  %v8457_v59 = vadd.f32 %v11205_v50, %v11204_v29  ;;  %v11206_v47 = vld [vmem:[#allocation103_spill] sm:$0xff]  ;;  %v11215_v29 = vld [vmem:[#allocation13_spill] sm:$0xff] }
 0x49b   : > { %11173 = vst [vmem:[#allocation64_spill] sm:$0xff] %v8378_v56  ;;  %v11191_v56 = vld [vmem:[#allocation77_spill] sm:$0xff]  ;;  %v11214_v50 = vld [vmem:[#allocation95_spill] sm:$0xff] }
 0x49c   : > { %11175 = vst [vmem:[#allocation122_spill] sm:$0xff] %v8381_v21  ;;  %v8429_v10 = vadd.f32 %v11191_v56, %v11190_v53  ;;  %v11202_v53 = vld [vmem:[#allocation29_spill] sm:$0xff]  ;;  %v8477_v42 = vadd.f32 %v11215_v29, %v11214_v50 }
 0x49d   : > { %11177 = vst [vmem:[#allocation63_spill] sm:$0xff] %v8384_v30  ;;  %v11188_v30 = vld [vmem:[#allocation42_spill] sm:$0xff]  ;;  %v8453_v33 = vadd.f32 %v11203_v52, %v11202_v53  ;;  %v11212_v52 = vld [vmem:[#allocation35_spill] sm:$0xff]  ;;  %v2728_v50 = vld [vmem:[#allocation2 + $0x62] sm:$0xff] }
 0x49e   : > { %11179 = vst [vmem:[#allocation100_spill] sm:$0xff] %v8387_v14  ;;  %v11187_v14 = vld [vmem:[#allocation131_spill] sm:$0xff]  ;;  %v8425_v21 = vadd.f32 %v11189_v26, %v11188_v30  ;;  %v11200_v26 = vld [vmem:[#allocation28_spill] sm:$0xff]  ;;  %v2729_v29 = vld [vmem:[#allocation2 + $0x6a] sm:$0xff]  ;;  %v2793_v32 = vmul.f32 %v11234_v54, %v2728_v50  ;;  %v2800_v50 = vmul.f32 %v11234_v54, %v2735_v43  ;;  %v2809_v43 = vmul.f32 %v11234_v54, %v2744_v1 }
 0x49f   : > { %v8421_v62 = vadd.f32 %v11187_v14, %v11186_v60  ;;  %v8441_v14 = vadd.f32 %v11197_v18, %v11196_v39  ;;  %v11198_v60 = vld [vmem:[#allocation55_spill] sm:$0xff]  ;;  %v8449_v56 = vadd.f32 %v11201_v61, %v11200_v26  ;;  %v8461_v18 = vadd.f32 %v11207_v49, %v11206_v47  ;;  %v11210_v61 = vld [vmem:[#allocation34_spill] sm:$0xff]  ;;  %11226 = vst [vmem:[#allocation32_spill] sm:$0xff] %v8501_v0 }
 0x4a0   : > { %v8445_v30 = vadd.f32 %v11199_v4, %v11198_v60  ;;  %v2722_v39 = vld [vmem:[#allocation2 + $0x1a] sm:$0xff]  ;;  %v2724_v4 = vld [vmem:[#allocation2 + $0x32] sm:$0xff]  ;;  %v2726_v47 = vld [vmem:[#allocation2 + $0x4a] sm:$0xff]  ;;  %11231 = vst [vmem:[#allocation53_spill] sm:$0xff] %v8510_v37  ;;  %v2811_v0 = vmul.f32 %v11234_v54, %v2746_v15 }
 0x4a1   : > { %v11208_v60 = vld [vmem:[#allocation20_spill] sm:$0xff]  ;;  %v11211_v26 = vld [vmem:[#allocation22_spill] sm:$0xff]  ;;  %v11213_v53 = vld [vmem:[#allocation19_spill] sm:$0xff]  ;;  %11232 = vst [vmem:[#allocation67_spill] sm:$0xff] %v8512_v2  ;;  %v2787_v31 = vmul.f32 %v11234_v54, %v2722_v39  ;;  %v2791_v11 = vmul.f32 %v11234_v54, %v2726_v47  ;;  %v2794_v39 = vmul.f32 %v11234_v54, %v2729_v29  ;;  %v2798_v47 = vmul.f32 %v11234_v54, %v2733_v27 }
 0x4a2   : > { %v8465_v58 = vadd.f32 %v11209_v38, %v11208_v60  ;;  %v8469_v13 = vadd.f32 %v11211_v26, %v11210_v61  ;;  %v8473_v41 = vadd.f32 %v11213_v53, %v11212_v52  ;;  %v2725_v49 = vld [vmem:[#allocation2 + $0x3a] sm:$0xff]  ;;  %v11220_v61 = vld [vmem:[#allocation41_spill] sm:$0xff]  ;;  %11233 = vst [vmem:[#allocation117_spill] sm:$0xff] %v8515_v35  ;;  %v2801_v2 = vmul.f32 %v11234_v54, %v2736_v8  ;;  %v2751_v29 = vld [vmem:[#allocation2 + $0x172] sm:$0xff] }
 0x4a3   : > { %v11218_v38 = vld [vmem:[#allocation40_spill] sm:$0xff]  ;;  %v11219_v60 = vld [vmem:[#allocation15_spill] sm:$0xff]  ;;  %v11221_v26 = vld [vmem:[#allocation21_spill] sm:$0xff]  ;;  %v2790_v12 = vmul.f32 %v11234_v54, %v2725_v49  ;;  %v2810_v8 = vmul.f32 %v11234_v54, %v2745_v23  ;;  %v8560_v1 = vadd.f32 %v2791_v11, %v8429_v10  ;;  %v8581_v10 = vadd.f32 %v2798_v47, %v8457_v59 }
 0x4a4   : > { %v8485_v46 = vadd.f32 %v11219_v60, %v11218_v38  ;;  %v8489_v48 = vadd.f32 %v11221_v26, %v11220_v61  ;;  %v11222_v52 = vld [vmem:[#allocation136_spill] sm:$0xff]  ;;  %v11227_v38 = vld [vmem:[#allocation26_spill] sm:$0xff]  ;;  %v11258_v47 = vld [vmem:[#allocation87_spill] sm:$0xff] }
 0x4a5   : > { %v8492_v53 = vadd.f32 %v2614_v36, %v11222_v52  ;;  %v8504_v60 = vadd.f32 %v2618_v55, %v11227_v38  ;;  %v2731_v61 = vld [vmem:[#allocation2 + $0x82] sm:$0xff]  ;;  %v2732_v26 = vld [vmem:[#allocation2 + $0x92] sm:$0xff]  ;;  %v8506_v36 = vadd.f32 %v2619_v17, %v2490_v3  ;;  %v8508_v52 = vadd.f32 %v2620_v28, %v2491_v16  ;;  %v2738_v55 = vld [vmem:[#allocation2 + $0xda] sm:$0xff] }
 0x4a6   : > { %v2739_v38 = vld [vmem:[#allocation2 + $0xe2] sm:$0xff]  ;;  %v2788_v3 = vmul.f32 %v11234_v54, %v2723_v6  ;;  %v2789_v16 = vmul.f32 %v11234_v54, %v2724_v4  ;;  %v2740_v17 = vld [vmem:[#allocation2 + $0xf2] sm:$0xff]  ;;  %v2742_v28 = vld [vmem:[#allocation2 + $0x10a] sm:$0xff]  ;;  %v2795_v6 = vmul.f32 %v11234_v54, %v2730_v5  ;;  %v2796_v4 = vmul.f32 %v11234_v54, %v2731_v61 }
 0x4a7   : > { %11228 = vst [vmem:[#allocation139_spill] sm:$0xff] %v8504_v60  ;;  %v2797_v25 = vmul.f32 %v11234_v54, %v2732_v26  ;;  %v2747_v35 = vld [vmem:[#allocation2 + $0x142] sm:$0xff]  ;;  %v2748_v49 = vld [vmem:[#allocation2 + $0x152] sm:$0xff]  ;;  %v2749_v37 = vld [vmem:[#allocation2 + $0x15a] sm:$0xff]  ;;  %v2802_v5 = vmul.f32 %v11234_v54, %v2737_v9  ;;  %v2803_v61 = vmul.f32 %v11234_v54, %v2738_v55  ;;  %v2804_v26 = vmul.f32 %v11234_v54, %v2739_v38 }
 0x4a8   : > { %11229 = vst [vmem:[#allocation114_spill] sm:$0xff] %v8506_v36  ;;  %v2805_v36 = vmul.f32 %v11234_v54, %v2740_v17  ;;  %v2806_v60 = vmul.f32 %v11234_v54, %v2741_v40  ;;  %v2807_v27 = vmul.f32 %v11234_v54, %v2742_v28  ;;  %v2812_v9 = vmul.f32 %v11234_v54, %v2747_v35 }
 0x4a9   : > { %11230 = vst [vmem:[#allocation124_spill] sm:$0xff] %v8508_v52  ;;  %v2750_v52 = vld [vmem:[#allocation2 + $0x16a] sm:$0xff]  ;;  %v2813_v55 = vmul.f32 %v11234_v54, %v2748_v49  ;;  %v2814_v38 = vmul.f32 %v11234_v54, %v2749_v37  ;;  %v2816_v40 = vmul.f32 %v11234_v54, %v2751_v29  ;;  %v8548_v28 = vadd.f32 %v2787_v31, %v8413_v24 }
 0x4aa   : > { %v2815_v17 = vmul.f32 %v11234_v54, %v2750_v52  ;;  %v8551_v51 = vadd.f32 %v2788_v3, %v8417_v7  ;;  %v8554_v23 = vadd.f32 %v2789_v16, %v8421_v62  ;;  %v8557_v15 = vadd.f32 %v2790_v12, %v8425_v21  ;;  %v11252_v3 = vld [vmem:[#allocation75_spill] sm:$0xff]  ;;  %v11253_v16 = vld [vmem:[#allocation140_spill] sm:$0xff] }
 0x4ab   : > { %v8563_v37 = vadd.f32 %v2792_v45, %v8433_v22  ;;  %v8566_v54 = vadd.f32 %v2793_v32, %v8437_v63  ;;  %v8569_v31 = vadd.f32 %v2794_v39, %v8441_v14  ;;  %v8572_v24 = vadd.f32 %v2795_v6, %v8445_v30  ;;  %v11255_v45 = vld [vmem:[#allocation83_spill] sm:$0xff]  ;;  %v11256_v39 = vld [vmem:[#allocation78_spill] sm:$0xff] }
 0x4ac   : > { %v8575_v7 = vadd.f32 %v2796_v4, %v8449_v56  ;;  %v8578_v21 = vadd.f32 %v2797_v25, %v8453_v33  ;;  %v8584_v62 = vadd.f32 %v2799_v57, %v8461_v18  ;;  %v8587_v22 = vadd.f32 %v2800_v50, %v8465_v58  ;;  %v11257_v4 = vld [vmem:[#allocation74_spill] sm:$0xff]  ;;  %v11259_v50 = vld [vmem:[#allocation8_spill] sm:$0xff] }
 0x4ad   : > { %v8590_v63 = vadd.f32 %v2801_v2, %v8469_v13  ;;  %v8593_v14 = vadd.f32 %v2802_v5, %v8473_v41  ;;  %v8596_v30 = vadd.f32 %v2803_v61, %v8477_v42  ;;  %v8599_v25 = vadd.f32 %v2804_v26, %v8481_v19  ;;  %v11238_v42 = vld [vmem:[#allocation32_spill] sm:$0xff]  ;;  %v11260_v5 = vld [vmem:[#allocation135_spill] sm:$0xff] }
 0x4ae   : > { %v8602_v56 = vadd.f32 %v2805_v36, %v8485_v46  ;;  %v8605_v33 = vadd.f32 %v2806_v60, %v8489_v48  ;;  %v8608_v58 = vadd.f32 %v2807_v27, %v8492_v53  ;;  %v8611_v13 = vadd.f32 %v2808_v20, %v8495_v34  ;;  %v11240_v19 = vld [vmem:[#allocation139_spill] sm:$0xff]  ;;  %v11246_v53 = vld [vmem:[#allocation53_spill] sm:$0xff] }
 0x4af   : > { %v8614_v41 = vadd.f32 %v2809_v43, %v8498_v44  ;;  %v8617_v59 = vadd.f32 %v2810_v8, %v11238_v42  ;;  %v8620_v18 = vadd.f32 %v2811_v0, %v11240_v19  ;;  %v11242_v46 = vld [vmem:[#allocation114_spill] sm:$0xff]  ;;  %v8629_v52 = vadd.f32 %v2814_v38, %v11246_v53  ;;  %v11248_v34 = vld [vmem:[#allocation67_spill] sm:$0xff]  ;;  %v11250_v44 = vld [vmem:[#allocation117_spill] sm:$0xff] }
 0x4b0   : > { %11235 = vst [vmem:[#allocation126_spill] sm:$0xff] %v8608_v58  ;;  %v8623_v36 = vadd.f32 %v2812_v9, %v11242_v46  ;;  %v11244_v48 = vld [vmem:[#allocation124_spill] sm:$0xff]  ;;  %v8632_v2 = vadd.f32 %v2815_v17, %v11248_v34  ;;  %v8635_v35 = vadd.f32 %v2816_v40, %v11250_v44  ;;  %v2978_v12 = vmul.f32 %v11253_v16, %v11252_v3  ;;  %v11254_v0 = vld [vmem:[#allocation9_spill] sm:$0xff]  ;;  %v11261_v26 = vld [vmem:[#allocation11_spill] sm:$0xff] }
 0x4b1   : > { %11236 = vst [vmem:[#allocation56_spill] sm:$0xff] %v8611_v13  ;;  %v8626_v60 = vadd.f32 %v2813_v55, %v11244_v48  ;;  %v2979_v11 = vmul.f32 %v11253_v16, %v11254_v0  ;;  %v2980_v32 = vmul.f32 %v11253_v16, %v11255_v45  ;;  %v2981_v6 = vmul.f32 %v11253_v16, %v11256_v39  ;;  %v11262_v20 = vld [vmem:[#allocation125_spill] sm:$0xff]  ;;  %v11263_v8 = vld [vmem:[#allocation79_spill] sm:$0xff]  ;;  %v11265_v17 = vld [vmem:[#allocation86_spill] sm:$0xff] }
 0x4b2   : > { %11237 = vst [vmem:[#allocation70_spill] sm:$0xff] %v8614_v41  ;;  %v2982_v49 = vmul.f32 %v11253_v16, %v11257_v4  ;;  %v2983_v57 = vmul.f32 %v11253_v16, %v11258_v47  ;;  %v2984_v29 = vmul.f32 %v11253_v16, %v11259_v50  ;;  %v2985_v61 = vmul.f32 %v11253_v16, %v11260_v5  ;;  %v11264_v55 = vld [vmem:[#allocation81_spill] sm:$0xff]  ;;  %v11267_v46 = vld [vmem:[#allocation84_spill] sm:$0xff]  ;;  %v11268_v34 = vld [vmem:[#allocation94_spill] sm:$0xff] }
 0x4b3   : > { %11239 = vst [vmem:[#allocation25_spill] sm:$0xff] %v8617_v59  ;;  %v2986_v27 = vmul.f32 %v11253_v16, %v11261_v26  ;;  %v2987_v43 = vmul.f32 %v11253_v16, %v11262_v20  ;;  %v2988_v9 = vmul.f32 %v11253_v16, %v11263_v8  ;;  %v2989_v38 = vmul.f32 %v11253_v16, %v11264_v55  ;;  %v11266_v42 = vld [vmem:[#allocation129_spill] sm:$0xff]  ;;  %v2943_v53 = vld [vmem:[#allocation2 + $0x180] sm:$0xff]  ;;  %v11269_v3 = vld [vmem:[#allocation18_spill] sm:$0xff] }
 0x4b4   : > { %11241 = vst [vmem:[#allocation99_spill] sm:$0xff] %v8620_v18  ;;  %v2990_v40 = vmul.f32 %v11253_v16, %v11265_v17  ;;  %v2991_v19 = vmul.f32 %v11253_v16, %v11266_v42  ;;  %v2992_v48 = vmul.f32 %v11253_v16, %v11267_v46  ;;  %v2993_v44 = vmul.f32 %v11253_v16, %v11268_v34  ;;  %v11270_v45 = vld [vmem:[#allocation85_spill] sm:$0xff]  ;;  %v11272_v5 = vld [vmem:[#allocation96_spill] sm:$0xff] }
 0x4b5   : > { %11243 = vst [vmem:[#allocation23_spill] sm:$0xff] %v8623_v36  ;;  %v2994_v0 = vmul.f32 %v11253_v16, %v11269_v3  ;;  %v2995_v39 = vmul.f32 %v11253_v16, %v11270_v45  ;;  %v11271_v4 = vld [vmem:[#allocation133_spill] sm:$0xff]  ;;  %v2997_v26 = vmul.f32 %v11253_v16, %v11272_v5  ;;  %v11273_v20 = vld [vmem:[#allocation88_spill] sm:$0xff]  ;;  %v11277_v45 = vld [vmem:[#allocation39_spill] sm:$0xff] }
 0x4b6   : > { %11245 = vst [vmem:[#allocation76_spill] sm:$0xff] %v8626_v60  ;;  %v2996_v47 = vmul.f32 %v11253_v16, %v11271_v4  ;;  %v2944_v50 = vld [vmem:[#allocation2 + $0x188] sm:$0xff]  ;;  %v2998_v8 = vmul.f32 %v11253_v16, %v11273_v20  ;;  %v11275_v42 = vld [vmem:[#allocation16_spill] sm:$0xff]  ;;  %v11278_v4 = vld [vmem:[#allocation138_spill] sm:$0xff] }
 0x4b7   : > { %11247 = vst [vmem:[#allocation45_spill] sm:$0xff] %v8629_v52  ;;  %v11274_v55 = vld [vmem:[#allocation97_spill] sm:$0xff]  ;;  %v3000_v46 = vmul.f32 %v11253_v16, %v11275_v42  ;;  %v11276_v34 = vld [vmem:[#allocation112_spill] sm:$0xff]  ;;  %v11280_v60 = vld [vmem:[#allocation118_spill] sm:$0xff]  ;;  %v3009_v59 = vmul.f32 %v11253_v16, %v2944_v50 }
 0x4b8   : > { %11249 = vst [vmem:[#allocation68_spill] sm:$0xff] %v8632_v2  ;;  %v2999_v17 = vmul.f32 %v11253_v16, %v11274_v55  ;;  %v3001_v3 = vmul.f32 %v11253_v16, %v11276_v34  ;;  %v3003_v2 = vmul.f32 %v11253_v16, %v11278_v4  ;;  %v11279_v52 = vld [vmem:[#allocation37_spill] sm:$0xff]  ;;  %v3005_v20 = vmul.f32 %v11253_v16, %v11280_v60  ;;  %v11281_v36 = vld [vmem:[#allocation47_spill] sm:$0xff]  ;;  %v11282_v18 = vld [vmem:[#allocation60_spill] sm:$0xff] }
 0x4b9   : > { %11251 = vst [vmem:[#allocation44_spill] sm:$0xff] %v8635_v35  ;;  %v3002_v35 = vmul.f32 %v11253_v16, %v11277_v45  ;;  %v3004_v5 = vmul.f32 %v11253_v16, %v11279_v52  ;;  %v3006_v55 = vmul.f32 %v11253_v16, %v11281_v36  ;;  %v3007_v42 = vmul.f32 %v11253_v16, %v11282_v18  ;;  %v4802_v45 = vld [vmem:[#allocation2 + $0x1c8] sm:$0xff]  ;;  %v11283_v4 = vld [vmem:[#allocation128_spill] sm:$0xff]  ;;  %v11284_v52 = vld [vmem:[#allocation130_spill] sm:$0xff] }
 0x4ba   : > { %v3008_v34 = vmul.f32 %v11253_v16, %v2943_v53  ;;  %v3010_v41 = vmul.f32 %v4802_v45, %v11253_v16  ;;  %v8701_v13 = vadd.f32 %v2978_v12, %v11283_v4  ;;  %v8704_v58 = vadd.f32 %v2979_v11, %v11284_v52 }
 0x4bb   : > { %v8707_v60 = vadd.f32 %v2980_v32, %v8548_v28  ;;  %v8710_v36 = vadd.f32 %v2981_v6, %v8551_v51  ;;  %v8713_v18 = vadd.f32 %v2982_v49, %v8554_v23  ;;  %v8716_v53 = vadd.f32 %v2983_v57, %v8557_v15  ;;  %v3108_v6 = vld [vmem:[#allocation2 + $0x31] sm:$0xff]  ;;  %v3110_v49 = vld [vmem:[#allocation2 + $0x49] sm:$0xff] }
 0x4bc   : > { %v8719_v16 = vadd.f32 %v2984_v29, %v8560_v1  ;;  %v8722_v12 = vadd.f32 %v2985_v61, %v8563_v37  ;;  %v8725_v11 = vadd.f32 %v2986_v27, %v8566_v54  ;;  %v8728_v28 = vadd.f32 %v2987_v43, %v8569_v31  ;;  %v3106_v37 = vld [vmem:[#allocation2 + $0x19] sm:$0xff]  ;;  %v3112_v29 = vld [vmem:[#allocation2 + $0x61] sm:$0xff]  ;;  %v11287_v27 = vld [vmem:[#allocation126_spill] sm:$0xff] }
 0x4bd   : > { %v8731_v51 = vadd.f32 %v2988_v9, %v8572_v24  ;;  %v8734_v23 = vadd.f32 %v2989_v38, %v8575_v7  ;;  %v8737_v15 = vadd.f32 %v2990_v40, %v8578_v21  ;;  %v8740_v1 = vadd.f32 %v2991_v19, %v8581_v10  ;;  %v3107_v7 = vld [vmem:[#allocation2 + $0x21] sm:$0xff]  ;;  %v3109_v21 = vld [vmem:[#allocation2 + $0x39] sm:$0xff] }
 0x4be   : > { %v8743_v32 = vadd.f32 %v2992_v48, %v8584_v62  ;;  %v8746_v54 = vadd.f32 %v2993_v44, %v8587_v22  ;;  %v8749_v31 = vadd.f32 %v2994_v0, %v8590_v63  ;;  %v8752_v24 = vadd.f32 %v2995_v39, %v8593_v14  ;;  %v3111_v63 = vld [vmem:[#allocation2 + $0x51] sm:$0xff]  ;;  %v3113_v14 = vld [vmem:[#allocation2 + $0x69] sm:$0xff]  ;;  %v3114_v61 = vld [vmem:[#allocation2 + $0x79] sm:$0xff] }
 0x4bf   : > { %v8755_v10 = vadd.f32 %v2996_v47, %v8596_v30  ;;  %v8758_v57 = vadd.f32 %v2997_v26, %v8599_v25  ;;  %v8761_v62 = vadd.f32 %v2998_v8, %v8602_v56  ;;  %v8764_v22 = vadd.f32 %v2999_v17, %v8605_v33  ;;  %v11289_v9 = vld [vmem:[#allocation56_spill] sm:$0xff]  ;;  %v11291_v30 = vld [vmem:[#allocation70_spill] sm:$0xff]  ;;  %v11293_v25 = vld [vmem:[#allocation25_spill] sm:$0xff] }
 0x4c0   : > { %v8767_v43 = vadd.f32 %v3000_v46, %v11287_v27  ;;  %v8770_v38 = vadd.f32 %v3001_v3, %v11289_v9  ;;  %v8773_v40 = vadd.f32 %v3002_v35, %v11291_v30  ;;  %v8776_v19 = vadd.f32 %v3003_v2, %v11293_v25  ;;  %v3115_v56 = vld [vmem:[#allocation2 + $0x81] sm:$0xff]  ;;  %v3116_v48 = vld [vmem:[#allocation2 + $0x91] sm:$0xff]  ;;  %v3117_v33 = vld [vmem:[#allocation2 + $0x99] sm:$0xff] }
 0x4c1   : > { %11285 = vst [vmem:[#allocation131_spill] sm:$0xff] %v8761_v62  ;;  %v11295_v44 = vld [vmem:[#allocation99_spill] sm:$0xff]  ;;  %v11299_v50 = vld [vmem:[#allocation76_spill] sm:$0xff]  ;;  %v11301_v8 = vld [vmem:[#allocation45_spill] sm:$0xff] }
 0x4c2   : > { %11286 = vst [vmem:[#allocation42_spill] sm:$0xff] %v8764_v22  ;;  %v8779_v0 = vadd.f32 %v3004_v5, %v11295_v44  ;;  %v11297_v39 = vld [vmem:[#allocation23_spill] sm:$0xff]  ;;  %v8785_v26 = vadd.f32 %v3006_v55, %v11299_v50  ;;  %v8788_v17 = vadd.f32 %v3007_v42, %v11301_v8  ;;  %v3118_v35 = vld [vmem:[#allocation2 + $0xa9] sm:$0xff]  ;;  %v3120_v3 = vld [vmem:[#allocation2 + $0xc1] sm:$0xff] }
 0x4c3   : > { %11288 = vst [vmem:[#allocation134_spill] sm:$0xff] %v8767_v43  ;;  %v8782_v47 = vadd.f32 %v3005_v20, %v11297_v39  ;;  %v3119_v46 = vld [vmem:[#allocation2 + $0xb1] sm:$0xff]  ;;  %v11303_v2 = vld [vmem:[#allocation68_spill] sm:$0xff]  ;;  %v3121_v20 = vld [vmem:[#allocation2 + $0xc9] sm:$0xff] }
 0x4c4   : > { %11290 = vst [vmem:[#allocation38_spill] sm:$0xff] %v8770_v38  ;;  %v8791_v45 = vadd.f32 %v3008_v34, %v11303_v2  ;;  %v11305_v4 = vld [vmem:[#allocation44_spill] sm:$0xff]  ;;  %v11307_v5 = vld [vmem:[#allocation62_spill] sm:$0xff]  ;;  %v11309_v55 = vld [vmem:[#allocation121_spill] sm:$0xff] }
 0x4c5   : > { %11292 = vst [vmem:[#allocation77_spill] sm:$0xff] %v8773_v40  ;;  %v8794_v52 = vadd.f32 %v3009_v59, %v11305_v4  ;;  %v8797_v27 = vadd.f32 %v3010_v41, %v11307_v5  ;;  %v3122_v9 = vld [vmem:[#allocation2 + $0xd9] sm:$0xff]  ;;  %v3123_v30 = vld [vmem:[#allocation2 + $0xe1] sm:$0xff]  ;;  %v3171_v25 = vmul.f32 %v11309_v55, %v3106_v37  ;;  %v3124_v44 = vld [vmem:[#allocation2 + $0xf1] sm:$0xff]  ;;  %v3172_v50 = vmul.f32 %v11309_v55, %v3107_v7 }
 0x4c6   : > { %11294 = vst [vmem:[#allocation36_spill] sm:$0xff] %v8776_v19  ;;  %v3125_v42 = vld [vmem:[#allocation2 + $0xf9] sm:$0xff]  ;;  %v3126_v39 = vld [vmem:[#allocation2 + $0x109] sm:$0xff]  ;;  %v3173_v8 = vmul.f32 %v11309_v55, %v3108_v6  ;;  %v3174_v34 = vmul.f32 %v11309_v55, %v3109_v21  ;;  %v3175_v59 = vmul.f32 %v11309_v55, %v3110_v49  ;;  %v3127_v2 = vld [vmem:[#allocation2 + $0x111] sm:$0xff]  ;;  %v3176_v5 = vmul.f32 %v11309_v55, %v3111_v63 }
 0x4c7   : > { %11296 = vst [vmem:[#allocation132_spill] sm:$0xff] %v8779_v0  ;;  %v3128_v4 = vld [vmem:[#allocation2 + $0x121] sm:$0xff]  ;;  %v3129_v41 = vld [vmem:[#allocation2 + $0x129] sm:$0xff]  ;;  %v3178_v37 = vmul.f32 %v11309_v55, %v3113_v14  ;;  %v3132_v7 = vld [vmem:[#allocation2 + $0x151] sm:$0xff]  ;;  %v3180_v6 = vmul.f32 %v11309_v55, %v3115_v56  ;;  %v3181_v21 = vmul.f32 %v11309_v55, %v3116_v48  ;;  %v3182_v49 = vmul.f32 %v11309_v55, %v3117_v33 }
 0x4c8   : > { %11298 = vst [vmem:[#allocation113_spill] sm:$0xff] %v8782_v47  ;;  %v3133_v47 = vld [vmem:[#allocation2 + $0x159] sm:$0xff]  ;;  %v3134_v0 = vld [vmem:[#allocation2 + $0x169] sm:$0xff]  ;;  %v3135_v63 = vld [vmem:[#allocation2 + $0x171] sm:$0xff]  ;;  %v3185_v14 = vmul.f32 %v11309_v55, %v3120_v3  ;;  %v3187_v19 = vmul.f32 %v11309_v55, %v3122_v9  ;;  %v3188_v48 = vmul.f32 %v11309_v55, %v3123_v30  ;;  %v3189_v33 = vmul.f32 %v11309_v55, %v3124_v44 }
 0x4c9   : > { %11300 = vst [vmem:[#allocation10_spill] sm:$0xff] %v8785_v26  ;;  %v3183_v26 = vmul.f32 %v11309_v55, %v3118_v35  ;;  %v3136_v40 = vld [vmem:[#allocation2 + $0x181] sm:$0xff]  ;;  %v3137_v38 = vld [vmem:[#allocation2 + $0x189] sm:$0xff]  ;;  %v3190_v35 = vmul.f32 %v11309_v55, %v3125_v42  ;;  %v3191_v43 = vmul.f32 %v11309_v55, %v3126_v39  ;;  %v3192_v22 = vmul.f32 %v11309_v55, %v3127_v2 }
 0x4ca   : > { %11302 = vst [vmem:[#allocation54_spill] sm:$0xff] %v8788_v17  ;;  %v3131_v17 = vld [vmem:[#allocation2 + $0x141] sm:$0xff]  ;;  %v3138_v56 = vld [vmem:[#allocation2 + $0x1c9] sm:$0xff]  ;;  %v3194_v3 = vmul.f32 %v11309_v55, %v3129_v41  ;;  %v3197_v62 = vmul.f32 %v11309_v55, %v3132_v7  ;;  %v3198_v30 = vmul.f32 %v11309_v55, %v3133_v47  ;;  %v3199_v44 = vmul.f32 %v11309_v55, %v3134_v0 }
 0x4cb   : > { %11304 = vst [vmem:[#allocation89_spill] sm:$0xff] %v8791_v45  ;;  %v3130_v45 = vld [vmem:[#allocation2 + $0x139] sm:$0xff]  ;;  %v3196_v9 = vmul.f32 %v11309_v55, %v3131_v17  ;;  %v3200_v42 = vmul.f32 %v11309_v55, %v3135_v63  ;;  %v3201_v39 = vmul.f32 %v11309_v55, %v3136_v40  ;;  %v3202_v2 = vmul.f32 %v11309_v55, %v3137_v38 }
 0x4cc   : > { %11306 = vst [vmem:[#allocation55_spill] sm:$0xff] %v8794_v52  ;;  %v3179_v52 = vmul.f32 %v11309_v55, %v3114_v61  ;;  %v3186_v61 = vmul.f32 %v11309_v55, %v3121_v20  ;;  %v3195_v20 = vmul.f32 %v11309_v55, %v3130_v45  ;;  %v8833_v41 = vadd.f32 %v3171_v25, %v8701_v13  ;;  %v3300_v25 = vld [vmem:[#allocation2 + $0x22] sm:$0xff]  ;;  %v3304_v63 = vld [vmem:[#allocation2 + $0x52] sm:$0xff] }
 0x4cd   : > { %11308 = vst [vmem:[#allocation71_spill] sm:$0xff] %v8797_v27  ;;  %v3177_v27 = vmul.f32 %v11309_v55, %v3112_v29  ;;  %v3184_v29 = vmul.f32 %v11309_v55, %v3119_v46  ;;  %v3193_v46 = vmul.f32 %v11309_v55, %v3128_v4  ;;  %v3203_v4 = vmul.f32 %v11309_v55, %v3138_v56  ;;  %v3498_v56 = vld [vmem:[#allocation2 + $0x68] sm:$0xff] }
 0x4ce   : > { %v8836_v45 = vadd.f32 %v3172_v50, %v8704_v58  ;;  %v8839_v17 = vadd.f32 %v3173_v8, %v8707_v60  ;;  %v8842_v47 = vadd.f32 %v3174_v34, %v8710_v36  ;;  %v8845_v0 = vadd.f32 %v3175_v59, %v8713_v18  ;;  %v3302_v50 = vld [vmem:[#allocation2 + $0x3a] sm:$0xff]  ;;  %v3496_v34 = vld [vmem:[#allocation2 + $0x50] sm:$0xff]  ;;  %v11318_v59 = vld [vmem:[#allocation77_spill] sm:$0xff] }
 0x4cf   : > { %v8848_v40 = vadd.f32 %v3176_v5, %v8716_v53  ;;  %v8851_v38 = vadd.f32 %v3177_v27, %v8719_v16  ;;  %v8854_v13 = vadd.f32 %v3178_v37, %v8722_v12  ;;  %v8857_v58 = vadd.f32 %v3179_v52, %v8725_v11  ;;  %v3494_v8 = vld [vmem:[#allocation2 + $0x38] sm:$0xff] }
 0x4d0   : > { %v8860_v60 = vadd.f32 %v3180_v6, %v8728_v28  ;;  %v8863_v36 = vadd.f32 %v3181_v21, %v8731_v51  ;;  %v8866_v18 = vadd.f32 %v3182_v49, %v8734_v23  ;;  %v8869_v53 = vadd.f32 %v3183_v26, %v8737_v15  ;;  %v11310_v26 = vld [vmem:[#allocation131_spill] sm:$0xff]  ;;  %v11324_v6 = vld [vmem:[#allocation113_spill] sm:$0xff] }
 0x4d1   : > { %v8872_v16 = vadd.f32 %v3184_v29, %v8740_v1  ;;  %v8875_v12 = vadd.f32 %v3185_v14, %v8743_v32  ;;  %v8878_v11 = vadd.f32 %v3186_v61, %v8746_v54  ;;  %v8881_v28 = vadd.f32 %v3187_v19, %v8749_v31  ;;  %v3493_v1 = vld [vmem:[#allocation2 + $0x30] sm:$0xff]  ;;  %v3305_v29 = vld [vmem:[#allocation2 + $0x62] sm:$0xff] }
 0x4d2   : > { %v8884_v51 = vadd.f32 %v3188_v48, %v8752_v24  ;;  %v8887_v23 = vadd.f32 %v3189_v33, %v8755_v10  ;;  %v8890_v15 = vadd.f32 %v3190_v35, %v8758_v57  ;;  %v8893_v52 = vadd.f32 %v3191_v43, %v11310_v26  ;;  %v11312_v32 = vld [vmem:[#allocation42_spill] sm:$0xff]  ;;  %v3299_v24 = vld [vmem:[#allocation2 + $0x1a] sm:$0xff]  ;;  %v3495_v57 = vld [vmem:[#allocation2 + $0x48] sm:$0xff] }
 0x4d3   : > { %v8896_v27 = vadd.f32 %v3192_v22, %v11312_v32  ;;  %v11314_v54 = vld [vmem:[#allocation134_spill] sm:$0xff]  ;;  %v8905_v5 = vadd.f32 %v3195_v20, %v11318_v59  ;;  %v11320_v43 = vld [vmem:[#allocation36_spill] sm:$0xff]  ;;  %v8914_v21 = vadd.f32 %v3198_v30, %v11324_v6  ;;  %v3499_v48 = vld [vmem:[#allocation2 + $0x78] sm:$0xff] }
 0x4d4   : > { %11311 = vst [vmem:[#allocation28_spill] sm:$0xff] %v8893_v52  ;;  %v8899_v55 = vadd.f32 %v3193_v46, %v11314_v54  ;;  %v11316_v31 = vld [vmem:[#allocation38_spill] sm:$0xff]  ;;  %v8908_v37 = vadd.f32 %v3196_v9, %v11320_v43  ;;  %v11322_v22 = vld [vmem:[#allocation132_spill] sm:$0xff]  ;;  %v11330_v20 = vld [vmem:[#allocation89_spill] sm:$0xff] }
 0x4d5   : > { %11313 = vst [vmem:[#allocation12_spill] sm:$0xff] %v8896_v27  ;;  %v8902_v19 = vadd.f32 %v3194_v3, %v11316_v31  ;;  %v3301_v10 = vld [vmem:[#allocation2 + $0x32] sm:$0xff]  ;;  %v8911_v7 = vadd.f32 %v3197_v62, %v11322_v22  ;;  %v3303_v49 = vld [vmem:[#allocation2 + $0x4a] sm:$0xff]  ;;  %v3497_v61 = vld [vmem:[#allocation2 + $0x60] sm:$0xff]  ;;  %v8923_v9 = vadd.f32 %v3201_v39, %v11330_v20 }
 0x4d6   : > { %11315 = vst [vmem:[#allocation29_spill] sm:$0xff] %v8899_v55  ;;  %v3306_v14 = vld [vmem:[#allocation2 + $0x6a] sm:$0xff]  ;;  %v11332_v62 = vld [vmem:[#allocation55_spill] sm:$0xff]  ;;  %v3308_v32 = vld [vmem:[#allocation2 + $0x82] sm:$0xff] }
 0x4d7   : > { %11317 = vst [vmem:[#allocation127_spill] sm:$0xff] %v8902_v19  ;;  %v11326_v33 = vld [vmem:[#allocation10_spill] sm:$0xff]  ;;  %v8926_v26 = vadd.f32 %v3202_v2, %v11332_v62  ;;  %v3307_v30 = vld [vmem:[#allocation2 + $0x7a] sm:$0xff]  ;;  %v3313_v2 = vld [vmem:[#allocation2 + $0xc2] sm:$0xff] }
 0x4d8   : > { %11319 = vst [vmem:[#allocation92_spill] sm:$0xff] %v8905_v5  ;;  %v8917_v35 = vadd.f32 %v3199_v44, %v11326_v33  ;;  %v11328_v46 = vld [vmem:[#allocation54_spill] sm:$0xff]  ;;  %v11334_v31 = vld [vmem:[#allocation71_spill] sm:$0xff]  ;;  %v11336_v44 = vld [vmem:[#allocation120_spill] sm:$0xff] }
 0x4d9   : > { %11321 = vst [vmem:[#allocation14_spill] sm:$0xff] %v8908_v37  ;;  %v8920_v3 = vadd.f32 %v3200_v42, %v11328_v46  ;;  %v3309_v54 = vld [vmem:[#allocation2 + $0x92] sm:$0xff]  ;;  %v8929_v59 = vadd.f32 %v3203_v4, %v11334_v31  ;;  %v3310_v43 = vld [vmem:[#allocation2 + $0x9a] sm:$0xff]  ;;  %v3311_v22 = vld [vmem:[#allocation2 + $0xaa] sm:$0xff]  ;;  %v8932_v33 = vmul.f32 %v11336_v44, %v3493_v1  ;;  %v8935_v42 = vmul.f32 %v11336_v44, %v3494_v8 }
 0x4da   : > { %11323 = vst [vmem:[#allocation103_spill] sm:$0xff] %v8911_v7  ;;  %v3312_v6 = vld [vmem:[#allocation2 + $0xb2] sm:$0xff]  ;;  %v8938_v39 = vmul.f32 %v11336_v44, %v3495_v57  ;;  %v3314_v46 = vld [vmem:[#allocation2 + $0xca] sm:$0xff]  ;;  %v3315_v20 = vld [vmem:[#allocation2 + $0xda] sm:$0xff]  ;;  %v8941_v62 = vmul.f32 %v11336_v44, %v3496_v34  ;;  %v8944_v4 = vmul.f32 %v11336_v44, %v3497_v61  ;;  %v8947_v31 = vmul.f32 %v11336_v44, %v3498_v56 }
 0x4db   : > { %11325 = vst [vmem:[#allocation82_spill] sm:$0xff] %v8914_v21  ;;  %v8950_v1 = vmul.f32 %v11336_v44, %v3499_v48  ;;  %v3316_v8 = vld [vmem:[#allocation2 + $0xe2] sm:$0xff]  ;;  %v11344_v57 = vld [vmem:[#allocation102_spill] sm:$0xff]  ;;  %v3326_v21 = vld [vmem:[#allocation2 + $0x15a] sm:$0xff] }
 0x4dc   : > { %11327 = vst [vmem:[#allocation20_spill] sm:$0xff] %v8917_v35  ;;  %v3367_v34 = vmul.f32 %v11344_v57, %v3302_v50  ;;  %v3320_v61 = vld [vmem:[#allocation2 + $0x112] sm:$0xff]  ;;  %v3368_v56 = vmul.f32 %v11344_v57, %v3303_v49  ;;  %v3370_v48 = vmul.f32 %v11344_v57, %v3305_v29  ;;  %v3322_v44 = vld [vmem:[#allocation2 + $0x12a] sm:$0xff]  ;;  %v3374_v50 = vmul.f32 %v11344_v57, %v3309_v54  ;;  %v3329_v5 = vld [vmem:[#allocation2 + $0x182] sm:$0xff] }
 0x4dd   : > { %11329 = vst [vmem:[#allocation91_spill] sm:$0xff] %v8920_v3  ;;  %v3375_v3 = vmul.f32 %v11344_v57, %v3310_v43  ;;  %v3325_v35 = vld [vmem:[#allocation2 + $0x152] sm:$0xff]  ;;  %v3327_v49 = vld [vmem:[#allocation2 + $0x16a] sm:$0xff]  ;;  %v3377_v29 = vmul.f32 %v11344_v57, %v3312_v6  ;;  %v3379_v7 = vmul.f32 %v11344_v57, %v3314_v46  ;;  %v3381_v54 = vmul.f32 %v11344_v57, %v3316_v8 }
 0x4de   : > { %11331 = vst [vmem:[#allocation34_spill] sm:$0xff] %v8923_v9  ;;  %v3323_v9 = vld [vmem:[#allocation2 + $0x13a] sm:$0xff]  ;;  %v3328_v37 = vld [vmem:[#allocation2 + $0x172] sm:$0xff]  ;;  %v3331_v55 = vld [vmem:[#allocation2 + $0x1ca] sm:$0xff]  ;;  %v3385_v6 = vmul.f32 %v11344_v57, %v3320_v61  ;;  %v3387_v46 = vmul.f32 %v11344_v57, %v3322_v44  ;;  %v3391_v8 = vmul.f32 %v11344_v57, %v3326_v21  ;;  %v8995_v21 = vadd.f32 %v3367_v34, %v8842_v47 }
 0x4df   : > { %11333 = vst [vmem:[#allocation22_spill] sm:$0xff] %v8926_v26  ;;  %v3366_v26 = vmul.f32 %v11344_v57, %v3301_v10  ;;  %v3373_v10 = vmul.f32 %v11344_v57, %v3308_v32  ;;  %v3380_v32 = vmul.f32 %v11344_v57, %v3315_v20  ;;  %v3388_v27 = vmul.f32 %v11344_v57, %v3323_v9 }
 0x4e0   : > { %11335 = vst [vmem:[#allocation35_spill] sm:$0xff] %v8929_v59  ;;  %v3365_v59 = vmul.f32 %v11344_v57, %v3300_v25  ;;  %v3372_v25 = vmul.f32 %v11344_v57, %v3307_v30  ;;  %v3330_v30 = vld [vmem:[#allocation2 + $0x18a] sm:$0xff]  ;;  %v3390_v20 = vmul.f32 %v11344_v57, %v3325_v35  ;;  %v9016_v47 = vadd.f32 %v3374_v50, %v8863_v36 }
 0x4e1   : > { %11337 = vst [vmem:[#allocation19_spill] sm:$0xff] %v8932_v33  ;;  %v3318_v33 = vld [vmem:[#allocation2 + $0xfa] sm:$0xff]  ;;  %v3395_v61 = vmul.f32 %v11344_v57, %v3330_v30  ;;  %v8992_v35 = vadd.f32 %v3366_v26, %v8839_v17  ;;  %v9013_v17 = vadd.f32 %v3373_v10, %v8860_v60  ;;  %v9034_v60 = vadd.f32 %v3380_v32, %v8881_v28 }
 0x4e2   : > { %11338 = vst [vmem:[#allocation95_spill] sm:$0xff] %v8935_v42  ;;  %v3317_v42 = vld [vmem:[#allocation2 + $0xf2] sm:$0xff]  ;;  %v3383_v19 = vmul.f32 %v11344_v57, %v3318_v33  ;;  %v3393_v33 = vmul.f32 %v11344_v57, %v3328_v37  ;;  %v8989_v9 = vadd.f32 %v3365_v59, %v8836_v45  ;;  %v8998_v37 = vadd.f32 %v3368_v56, %v8845_v0  ;;  %v11345_v26 = vld [vmem:[#allocation28_spill] sm:$0xff] }
 0x4e3   : > { %11339 = vst [vmem:[#allocation13_spill] sm:$0xff] %v8938_v39  ;;  %v3364_v39 = vmul.f32 %v11344_v57, %v3299_v24  ;;  %v3324_v24 = vld [vmem:[#allocation2 + $0x142] sm:$0xff]  ;;  %v3382_v43 = vmul.f32 %v11344_v57, %v3317_v42  ;;  %v3392_v42 = vmul.f32 %v11344_v57, %v3327_v49  ;;  %v9010_v45 = vadd.f32 %v3372_v25, %v8857_v58  ;;  %v11355_v56 = vld [vmem:[#allocation103_spill] sm:$0xff]  ;;  %v11357_v50 = vld [vmem:[#allocation82_spill] sm:$0xff] }
 0x4e4   : > { %11340 = vst [vmem:[#allocation105_spill] sm:$0xff] %v8941_v62  ;;  %v3319_v62 = vld [vmem:[#allocation2 + $0x10a] sm:$0xff]  ;;  %v3389_v52 = vmul.f32 %v11344_v57, %v3324_v24  ;;  %v9019_v0 = vadd.f32 %v3375_v3, %v8866_v18  ;;  %v9031_v58 = vadd.f32 %v3379_v7, %v8878_v11  ;;  %v9037_v36 = vadd.f32 %v3381_v54, %v8884_v51  ;;  %v11346_v59 = vld [vmem:[#allocation12_spill] sm:$0xff]  ;;  %v3507_v10 = vld [vmem:[#allocation2 + $0xd8] sm:$0xff] }
 0x4e5   : > { %11341 = vst [vmem:[#allocation93_spill] sm:$0xff] %v8944_v4  ;;  %v3321_v4 = vld [vmem:[#allocation2 + $0x122] sm:$0xff]  ;;  %v8986_v44 = vadd.f32 %v3364_v39, %v8833_v41  ;;  %v9040_v18 = vadd.f32 %v3382_v43, %v8887_v23  ;;  %v3501_v3 = vld [vmem:[#allocation2 + $0x90] sm:$0xff]  ;;  %v9049_v11 = vadd.f32 %v3385_v6, %v11346_v59  ;;  %v3502_v39 = vld [vmem:[#allocation2 + $0x98] sm:$0xff]  ;;  %v9067_v49 = vadd.f32 %v3391_v8, %v11357_v50 }
 0x4e6   : > { %11342 = vst [vmem:[#allocation40_spill] sm:$0xff] %v8947_v31  ;;  %v3369_v31 = vmul.f32 %v11344_v57, %v3304_v63  ;;  %v3376_v63 = vmul.f32 %v11344_v57, %v3311_v22  ;;  %v3384_v22 = vmul.f32 %v11344_v57, %v3319_v62  ;;  %v3394_v62 = vmul.f32 %v11344_v57, %v3329_v5  ;;  %v11347_v7 = vld [vmem:[#allocation29_spill] sm:$0xff]  ;;  %v3505_v24 = vld [vmem:[#allocation2 + $0xc0] sm:$0xff]  ;;  %v3509_v54 = vld [vmem:[#allocation2 + $0xf0] sm:$0xff] }
 0x4e7   : > { %11343 = vst [vmem:[#allocation15_spill] sm:$0xff] %v8950_v1  ;;  %v3371_v1 = vmul.f32 %v11344_v57, %v3306_v14  ;;  %v3378_v14 = vmul.f32 %v11344_v57, %v3313_v2  ;;  %v3386_v2 = vmul.f32 %v11344_v57, %v3321_v4  ;;  %v3396_v4 = vmul.f32 %v11344_v57, %v3331_v55  ;;  %v3503_v51 = vld [vmem:[#allocation2 + $0xa8] sm:$0xff]  ;;  %v11351_v57 = vld [vmem:[#allocation92_spill] sm:$0xff]  ;;  %v3510_v43 = vld [vmem:[#allocation2 + $0xf8] sm:$0xff] }
 0x4e8   : > { %v9001_v5 = vadd.f32 %v3369_v31, %v8848_v40  ;;  %v9004_v55 = vadd.f32 %v3370_v48, %v8851_v38  ;;  %v9022_v40 = vadd.f32 %v3376_v63, %v8869_v53  ;;  %v9025_v38 = vadd.f32 %v3377_v29, %v8872_v16  ;;  %v3500_v53 = vld [vmem:[#allocation2 + $0x80] sm:$0xff]  ;;  %v3504_v31 = vld [vmem:[#allocation2 + $0xb0] sm:$0xff]  ;;  %v3506_v25 = vld [vmem:[#allocation2 + $0xc8] sm:$0xff]  ;;  %11358 = vst [vmem:[#allocation107_spill] sm:$0xff] %v9067_v49 }
 0x4e9   : > { %v9007_v41 = vadd.f32 %v3371_v1, %v8854_v13  ;;  %v9028_v13 = vadd.f32 %v3378_v14, %v8875_v12  ;;  %v9043_v16 = vadd.f32 %v3383_v19, %v8890_v15  ;;  %v9046_v12 = vadd.f32 %v3384_v22, %v11345_v26  ;;  %v11349_v1 = vld [vmem:[#allocation127_spill] sm:$0xff]  ;;  %v11353_v15 = vld [vmem:[#allocation14_spill] sm:$0xff]  ;;  %v11359_v63 = vld [vmem:[#allocation20_spill] sm:$0xff] }
 0x4ea   : > { %v9052_v28 = vadd.f32 %v3386_v2, %v11347_v7  ;;  %v9055_v23 = vadd.f32 %v3387_v46, %v11349_v1  ;;  %v9058_v34 = vadd.f32 %v3388_v27, %v11351_v57  ;;  %v9061_v19 = vadd.f32 %v3389_v52, %v11353_v15  ;;  %v11361_v14 = vld [vmem:[#allocation91_spill] sm:$0xff]  ;;  %v11363_v27 = vld [vmem:[#allocation34_spill] sm:$0xff]  ;;  %v3508_v52 = vld [vmem:[#allocation2 + $0xe0] sm:$0xff] }
 0x4eb   : > { %v9064_v48 = vadd.f32 %v3390_v20, %v11355_v56  ;;  %v9070_v29 = vadd.f32 %v3392_v42, %v11359_v63  ;;  %v9073_v30 = vadd.f32 %v3393_v33, %v11361_v14  ;;  %v9076_v32 = vadd.f32 %v3394_v62, %v11363_v27  ;;  %v11365_v22 = vld [vmem:[#allocation22_spill] sm:$0xff]  ;;  %v11367_v2 = vld [vmem:[#allocation35_spill] sm:$0xff]  ;;  %v3511_v20 = vld [vmem:[#allocation2 + $0x108] sm:$0xff] }
 0x4ec   : > { %11348 = vst [vmem:[#allocation41_spill] sm:$0xff] %v9052_v28  ;;  %v9079_v6 = vadd.f32 %v3395_v61, %v11365_v22  ;;  %v9082_v46 = vadd.f32 %v3396_v4, %v11367_v2  ;;  %v3512_v8 = vld [vmem:[#allocation2 + $0x110] sm:$0xff]  ;;  %v3513_v26 = vld [vmem:[#allocation2 + $0x120] sm:$0xff]  ;;  %v3514_v62 = vld [vmem:[#allocation2 + $0x128] sm:$0xff] }
 0x4ed   : > { %11350 = vst [vmem:[#allocation21_spill] sm:$0xff] %v9055_v23  ;;  %v11369_v42 = vld [vmem:[#allocation120_spill] sm:$0xff]  ;;  %v3515_v7 = vld [vmem:[#allocation2 + $0x138] sm:$0xff]  ;;  %v3519_v14 = vld [vmem:[#allocation2 + $0x168] sm:$0xff] }
 0x4ee   : > { %11352 = vst [vmem:[#allocation136_spill] sm:$0xff] %v9058_v34  ;;  %v9085_v59 = vmul.f32 %v11369_v42, %v3500_v53  ;;  %v9088_v33 = vmul.f32 %v11369_v42, %v3501_v3  ;;  %v3516_v1 = vld [vmem:[#allocation2 + $0x140] sm:$0xff]  ;;  %v9091_v57 = vmul.f32 %v11369_v42, %v3502_v39  ;;  %v9094_v61 = vmul.f32 %v11369_v42, %v3503_v51  ;;  %v3517_v53 = vld [vmem:[#allocation2 + $0x150] sm:$0xff]  ;;  %v11375_v49 = vld [vmem:[#allocation59_spill] sm:$0xff] }
 0x4ef   : > { %11354 = vst [vmem:[#allocation106_spill] sm:$0xff] %v9061_v19  ;;  %v9097_v4 = vmul.f32 %v11369_v42, %v3504_v31  ;;  %v9100_v15 = vmul.f32 %v11369_v42, %v3505_v24  ;;  %v9103_v56 = vmul.f32 %v11369_v42, %v3506_v25  ;;  %v9106_v3 = vmul.f32 %v11369_v42, %v3507_v10  ;;  %v3686_v51 = vld [vmem:[#allocation2 + $0x31] sm:$0xff]  ;;  %v3687_v63 = vld [vmem:[#allocation2 + $0x39] sm:$0xff] }
 0x4f0   : > { %11356 = vst [vmem:[#allocation98_spill] sm:$0xff] %v9064_v48  ;;  %v9109_v50 = vmul.f32 %v11369_v42, %v3508_v52  ;;  %v9112_v39 = vmul.f32 %v11369_v42, %v3509_v54  ;;  %v3518_v31 = vld [vmem:[#allocation2 + $0x158] sm:$0xff]  ;;  %v3520_v27 = vld [vmem:[#allocation2 + $0x170] sm:$0xff]  ;;  %v9115_v24 = vmul.f32 %v11369_v42, %v3510_v43  ;;  %v9118_v25 = vmul.f32 %v11369_v42, %v3511_v20  ;;  %v3522_v54 = vld [vmem:[#allocation2 + $0x188] sm:$0xff] }
 0x4f1   : > { %11360 = vst [vmem:[#allocation26_spill] sm:$0xff] %v9070_v29  ;;  %v11370_v10 = vld [vmem:[#allocation19_spill] sm:$0xff]  ;;  %v9131_v43 = vmul.f32 %v11369_v42, %v3514_v62  ;;  %v9134_v20 = vmul.f32 %v11369_v42, %v3515_v7  ;;  %v3525_v29 = vld [vmem:[#allocation2 + $0x1e0] sm:$0xff]  ;;  %v3751_v48 = vmul.f32 %v11375_v49, %v3686_v51  ;;  %v9144_v62 = vmul.f32 %v11369_v42, %v3517_v53 }
 0x4f2   : > { %11362 = vst [vmem:[#allocation90_spill] sm:$0xff] %v9073_v30  ;;  %v3622_v22 = vadd.f32 %v11370_v10, %v8986_v44  ;;  %v11371_v52 = vld [vmem:[#allocation95_spill] sm:$0xff]  ;;  %v3688_v30 = vld [vmem:[#allocation2 + $0x49] sm:$0xff]  ;;  %v9147_v7 = vmul.f32 %v11369_v42, %v3518_v31  ;;  %v9150_v19 = vmul.f32 %v11369_v42, %v3519_v14  ;;  %v9153_v34 = vmul.f32 %v11369_v42, %v3520_v27  ;;  %v3528_v23 = vld [vmem:[#allocation2 + $0x200] sm:$0xff] }
 0x4f3   : > { %11364 = vst [vmem:[#allocation32_spill] sm:$0xff] %v9076_v32  ;;  %v3623_v2 = vadd.f32 %v11371_v52, %v8989_v9  ;;  %v9128_v32 = vmul.f32 %v11369_v42, %v3513_v26  ;;  %v3526_v44 = vld [vmem:[#allocation2 + $0x1e8] sm:$0xff]  ;;  %v3527_v10 = vld [vmem:[#allocation2 + $0x1f8] sm:$0xff]  ;;  %v9137_v9 = vmul.f32 %v11369_v42, %v3516_v1  ;;  %v3752_v26 = vmul.f32 %v11375_v49, %v3687_v63 }
 0x4f4   : > { %11366 = vst [vmem:[#allocation139_spill] sm:$0xff] %v9079_v6  ;;  %v9125_v6 = vmul.f32 %v11369_v42, %v3512_v8  ;;  %v11374_v52 = vld [vmem:[#allocation13_spill] sm:$0xff]  ;;  %v3879_v1 = vld [vmem:[#allocation2 + $0x32] sm:$0xff]  ;;  %v3753_v53 = vmul.f32 %v11375_v49, %v3688_v30  ;;  %v3815_v63 = vadd.f32 %v3751_v48, %v3622_v22  ;;  %v9163_v14 = vmul.f32 %v11369_v42, %v3525_v29 }
 0x4f5   : > { %11368 = vst [vmem:[#allocation114_spill] sm:$0xff] %v9082_v46  ;;  %v3521_v46 = vld [vmem:[#allocation2 + $0x180] sm:$0xff]  ;;  %v3624_v8 = vadd.f32 %v11374_v52, %v8992_v35  ;;  %v3529_v35 = vld [vmem:[#allocation2 + $0x210] sm:$0xff]  ;;  %v3530_v52 = vld [vmem:[#allocation2 + $0x218] sm:$0xff]  ;;  %v9166_v27 = vmul.f32 %v11369_v42, %v3526_v44 }
 0x4f6   : > { %11372 = vst [vmem:[#allocation124_spill] sm:$0xff] %v9134_v20  ;;  %v9156_v51 = vmul.f32 %v11369_v42, %v3521_v46  ;;  %v3531_v31 = vld [vmem:[#allocation2 + $0x228] sm:$0xff]  ;;  %v3533_v20 = vld [vmem:[#allocation2 + $0x240] sm:$0xff]  ;;  %v9179_v44 = vmul.f32 %v11369_v42, %v3529_v35  ;;  %v3535_v28 = vld [vmem:[#allocation2 + $0x258] sm:$0xff] }
 0x4f7   : > { %11373 = vst [vmem:[#allocation53_spill] sm:$0xff] %v9137_v9  ;;  %v3880_v9 = vld [vmem:[#allocation2 + $0x3a] sm:$0xff]  ;;  %v3881_v46 = vld [vmem:[#allocation2 + $0x4a] sm:$0xff]  ;;  %v9193_v35 = vmul.f32 %v11369_v42, %v3531_v31 }
 0x4f8   : > { %11376 = vst [vmem:[#allocation67_spill] sm:$0xff] %v9144_v62  ;;  %v3816_v62 = vadd.f32 %v3752_v26, %v3623_v2  ;;  %v3534_v30 = vld [vmem:[#allocation2 + $0x248] sm:$0xff]  ;;  %v3817_v2 = vadd.f32 %v3753_v53, %v3624_v8  ;;  %v3537_v8 = vld [vmem:[#allocation2 + $0x270] sm:$0xff] }
 0x4f9   : > { %11377 = vst [vmem:[#allocation117_spill] sm:$0xff] %v9147_v7  ;;  %v9160_v7 = vmul.f32 %v11369_v42, %v3522_v54  ;;  %v11385_v48 = vld [vmem:[#allocation105_spill] sm:$0xff] }
 0x4fa   : > { %11378 = vst [vmem:[#allocation75_spill] sm:$0xff] %v9150_v19  ;;  %v3689_v19 = vld [vmem:[#allocation2 + $0x51] sm:$0xff]  ;;  %v3625_v22 = vadd.f32 %v11385_v48, %v8995_v21  ;;  %v11386_v54 = vld [vmem:[#allocation73_spill] sm:$0xff]  ;;  %v3536_v21 = vld [vmem:[#allocation2 + $0x260] sm:$0xff] }
 0x4fb   : > { %11379 = vst [vmem:[#allocation140_spill] sm:$0xff] %v9153_v34  ;;  %v9169_v34 = vmul.f32 %v11369_v42, %v3527_v10  ;;  %v3944_v26 = vmul.f32 %v11386_v54, %v3879_v1  ;;  %v3945_v29 = vmul.f32 %v11386_v54, %v3880_v9  ;;  %v9182_v10 = vmul.f32 %v11369_v42, %v3530_v52  ;;  %v3691_v48 = vld [vmem:[#allocation2 + $0x69] sm:$0xff] }
 0x4fc   : > { %11380 = vst [vmem:[#allocation9_spill] sm:$0xff] %v9156_v51  ;;  %v3532_v51 = vld [vmem:[#allocation2 + $0x230] sm:$0xff]  ;;  %v3754_v1 = vmul.f32 %v11375_v49, %v3689_v19  ;;  %v3946_v9 = vmul.f32 %v11386_v54, %v3881_v46  ;;  %v3539_v46 = vld [vmem:[#allocation2 + $0x288] sm:$0xff] }
 0x4fd   : > { %11381 = vst [vmem:[#allocation83_spill] sm:$0xff] %v9160_v7  ;;  %v3690_v7 = vld [vmem:[#allocation2 + $0x61] sm:$0xff]  ;;  %v9188_v53 = vadd.f32 %v3944_v26, %v3815_v63  ;;  %v9196_v52 = vmul.f32 %v11369_v42, %v3532_v51  ;;  %v3882_v19 = vld [vmem:[#allocation2 + $0x52] sm:$0xff]  ;;  %v9210_v51 = vmul.f32 %v11369_v42, %v3535_v28 }
 0x4fe   : > { %11382 = vst [vmem:[#allocation78_spill] sm:$0xff] %v9163_v14  ;;  %v9176_v14 = vmul.f32 %v11369_v42, %v3528_v23  ;;  %v9190_v23 = vadd.f32 %v3945_v29, %v3816_v62  ;;  %v11395_v63 = vld [vmem:[#allocation40_spill] sm:$0xff]  ;;  %v3755_v31 = vmul.f32 %v11375_v49, %v3690_v7  ;;  %v3818_v29 = vadd.f32 %v3754_v1, %v3625_v22 }
 0x4ff   : > { %11383 = vst [vmem:[#allocation74_spill] sm:$0xff] %v9166_v27  ;;  %v3627_v62 = vadd.f32 %v11395_v63, %v9001_v5  ;;  %v3692_v26 = vld [vmem:[#allocation2 + $0x79] sm:$0xff]  ;;  %v3540_v5 = vld [vmem:[#allocation2 + $0x290] sm:$0xff]  ;;  %v3756_v7 = vmul.f32 %v11375_v49, %v3691_v48 }
 0x500   : > { %11384 = vst [vmem:[#allocation87_spill] sm:$0xff] %v9169_v34  ;;  %v11389_v34 = vld [vmem:[#allocation93_spill] sm:$0xff]  ;;  %v3541_v63 = vld [vmem:[#allocation2 + $0x2a0] sm:$0xff]  ;;  %v4072_v28 = vadd.f32 %v9190_v23, %v9188_v53  ;;  %v3757_v1 = vmul.f32 %v11375_v49, %v3692_v26  ;;  %v3543_v48 = vld [vmem:[#allocation2 + $0x2b8] sm:$0xff] }
 0x501   : > { %11387 = vst [vmem:[#allocation8_spill] sm:$0xff] %v9179_v44  ;;  %v3626_v27 = vadd.f32 %v11389_v34, %v8998_v37  ;;  %v9199_v37 = vmul.f32 %v11369_v42, %v3533_v20  ;;  %v9202_v34 = vmul.f32 %v11369_v42, %v3534_v30  ;;  %v9213_v20 = vmul.f32 %v11369_v42, %v3536_v21  ;;  %v3693_v44 = vld [vmem:[#allocation2 + $0x81] sm:$0xff] }
 0x502   : > { %11388 = vst [vmem:[#allocation135_spill] sm:$0xff] %v9182_v10  ;;  %v3538_v10 = vld [vmem:[#allocation2 + $0x278] sm:$0xff]  ;;  %v9216_v30 = vmul.f32 %v11369_v42, %v3537_v8  ;;  %v9228_v8 = vmul.f32 %v11369_v42, %v3539_v46  ;;  %v9241_v46 = vmul.f32 %v11369_v42, %v3541_v63  ;;  %v9254_v63 = vmul.f32 %v11369_v42, %v3543_v48 }
 0x503   : > { %11390 = vst [vmem:[#allocation11_spill] sm:$0xff] %v9190_v23  ;;  %v3819_v22 = vadd.f32 %v3755_v31, %v3626_v27  ;;  %v9225_v21 = vmul.f32 %v11369_v42, %v3538_v10  ;;  %v3694_v27 = vld [vmem:[#allocation2 + $0x91] sm:$0xff]  ;;  %v3820_v31 = vadd.f32 %v3756_v7, %v3627_v62  ;;  %v3885_v26 = vld [vmem:[#allocation2 + $0x7a] sm:$0xff] }
 0x504   : > { %11391 = vst [vmem:[#allocation125_spill] sm:$0xff] %v9193_v35  ;;  %v9207_v35 = vadd.f32 %v3946_v9, %v3817_v2  ;;  %v3947_v2 = vmul.f32 %v11386_v54, %v3882_v19  ;;  %v3884_v9 = vld [vmem:[#allocation2 + $0x6a] sm:$0xff]  ;;  %v3695_v7 = vld [vmem:[#allocation2 + $0x99] sm:$0xff] }
 0x505   : > { %11392 = vst [vmem:[#allocation79_spill] sm:$0xff] %v9196_v52  ;;  %v3883_v52 = vld [vmem:[#allocation2 + $0x62] sm:$0xff]  ;;  %v3545_v62 = vld [vmem:[#allocation2 + $0x2d0] sm:$0xff] }
 0x506   : > { %11393 = vst [vmem:[#allocation81_spill] sm:$0xff] %v9199_v37  ;;  %v3948_v19 = vmul.f32 %v11386_v54, %v3883_v52  ;;  %v4073_v10 = vadd.f32 %v4072_v28, %v9207_v35  ;;  %v9267_v48 = vmul.f32 %v11369_v42, %v3545_v62 }
 0x507   : > { %11394 = vst [vmem:[#allocation86_spill] sm:$0xff] %v9202_v34  ;;  %v11398_v34 = vld [vmem:[#allocation15_spill] sm:$0xff] }
 0x508   : > { %11396 = vst [vmem:[#allocation129_spill] sm:$0xff] %v9207_v35  ;;  %v3628_v37 = vadd.f32 %v11398_v34, %v9004_v55  ;;  %v3629_v55 = vadd.f32 %v9085_v59, %v9007_v41  ;;  %v3542_v34 = vld [vmem:[#allocation2 + $0x2a8] sm:$0xff]  ;;  %v3630_v41 = vadd.f32 %v9088_v33, %v9010_v45  ;;  %v3758_v59 = vmul.f32 %v11375_v49, %v3693_v44 }
 0x509   : > { %11397 = vst [vmem:[#allocation84_spill] sm:$0xff] %v9216_v30  ;;  %v9234_v30 = vadd.f32 %v3947_v2, %v3818_v29  ;;  %v3949_v29 = vmul.f32 %v11386_v54, %v3884_v9  ;;  %v9247_v2 = vadd.f32 %v3948_v19, %v3819_v22  ;;  %v9251_v28 = vmul.f32 %v11369_v42, %v3542_v34  ;;  %v3886_v44 = vld [vmem:[#allocation2 + $0x82] sm:$0xff] }
 0x50a   : > { %11399 = vst [vmem:[#allocation94_spill] sm:$0xff] %v9225_v21  ;;  %v9238_v21 = vmul.f32 %v11369_v42, %v3540_v5  ;;  %v3821_v52 = vadd.f32 %v3757_v1, %v3628_v37  ;;  %v3631_v45 = vadd.f32 %v9091_v57, %v9013_v17  ;;  %v3759_v33 = vmul.f32 %v11375_v49, %v3694_v27  ;;  %v3547_v37 = vld [vmem:[#allocation2 + $0x2e8] sm:$0xff]  ;;  %v3887_v27 = vld [vmem:[#allocation2 + $0x92] sm:$0xff] }
 0x50b   : > { %11400 = vst [vmem:[#allocation18_spill] sm:$0xff] %v9228_v8  ;;  %v3544_v8 = vld [vmem:[#allocation2 + $0x2c0] sm:$0xff]  ;;  %v4074_v5 = vadd.f32 %v4073_v10, %v9234_v30  ;;  %v3696_v1 = vld [vmem:[#allocation2 + $0xa9] sm:$0xff]  ;;  %v3822_v9 = vadd.f32 %v3758_v59, %v3629_v55  ;;  %v3950_v22 = vmul.f32 %v11386_v54, %v3885_v26  ;;  %v9260_v19 = vadd.f32 %v3949_v29, %v3820_v31  ;;  %v3697_v59 = vld [vmem:[#allocation2 + $0xb1] sm:$0xff] }
 0x50c   : > { %11401 = vst [vmem:[#allocation85_spill] sm:$0xff] %v9241_v46  ;;  %v3546_v46 = vld [vmem:[#allocation2 + $0x2d8] sm:$0xff]  ;;  %v9264_v10 = vmul.f32 %v11369_v42, %v3544_v8  ;;  %v3632_v17 = vadd.f32 %v9094_v61, %v9016_v47  ;;  %v3760_v57 = vmul.f32 %v11375_v49, %v3695_v7  ;;  %v3549_v55 = vld [vmem:[#allocation2 + $0x300] sm:$0xff]  ;;  %v3823_v26 = vadd.f32 %v3759_v33, %v3630_v41 }
 0x50d   : > { %11402 = vst [vmem:[#allocation133_spill] sm:$0xff] %v9254_v63  ;;  %v4075_v34 = vadd.f32 %v4074_v5, %v9247_v2  ;;  %v3548_v63 = vld [vmem:[#allocation2 + $0x2f0] sm:$0xff]  ;;  %v3951_v31 = vmul.f32 %v11386_v54, %v3886_v44  ;;  %v9273_v29 = vadd.f32 %v3950_v22, %v3821_v52  ;;  %v9277_v5 = vmul.f32 %v11369_v42, %v3546_v46  ;;  %v3888_v7 = vld [vmem:[#allocation2 + $0x9a] sm:$0xff] }
 0x50e   : > { %11403 = vst [vmem:[#allocation96_spill] sm:$0xff] %v9267_v48  ;;  %v9280_v62 = vmul.f32 %v11369_v42, %v3547_v37  ;;  %v3633_v47 = vadd.f32 %v9097_v4, %v9019_v0  ;;  %v3761_v61 = vmul.f32 %v11375_v49, %v3696_v1  ;;  %v3550_v48 = vld [vmem:[#allocation2 + $0x308] sm:$0xff]  ;;  %v3551_v41 = vld [vmem:[#allocation2 + $0x318] sm:$0xff]  ;;  %v3824_v44 = vadd.f32 %v3760_v57, %v3631_v45 }
 0x50f   : > { %v4076_v8 = vadd.f32 %v4075_v34, %v9260_v19  ;;  %v3698_v33 = vld [vmem:[#allocation2 + $0xc1] sm:$0xff]  ;;  %v3952_v52 = vmul.f32 %v11386_v54, %v3887_v27  ;;  %v9286_v22 = vadd.f32 %v3951_v31, %v3822_v9  ;;  %v9290_v34 = vmul.f32 %v11369_v42, %v3548_v63  ;;  %v3889_v1 = vld [vmem:[#allocation2 + $0xaa] sm:$0xff] }
 0x510   : > { %11404 = vst [vmem:[#allocation88_spill] sm:$0xff] %v9280_v62  ;;  %v9293_v37 = vmul.f32 %v11369_v42, %v3549_v55  ;;  %v3634_v0 = vadd.f32 %v9100_v15, %v9022_v40  ;;  %v3762_v4 = vmul.f32 %v11375_v49, %v3697_v59  ;;  %v3699_v62 = vld [vmem:[#allocation2 + $0xc9] sm:$0xff]  ;;  %v3825_v45 = vadd.f32 %v3761_v61, %v3632_v17  ;;  %v3890_v59 = vld [vmem:[#allocation2 + $0xb2] sm:$0xff]  ;;  %v3552_v31 = vld [vmem:[#allocation2 + $0x320] sm:$0xff] }
 0x511   : > { %v4077_v46 = vadd.f32 %v4076_v8, %v9273_v29  ;;  %v3953_v57 = vmul.f32 %v11386_v54, %v3888_v7  ;;  %v9299_v9 = vadd.f32 %v3952_v52, %v3823_v26  ;;  %v9303_v63 = vmul.f32 %v11369_v42, %v3550_v48  ;;  %v3700_v17 = vld [vmem:[#allocation2 + $0xd9] sm:$0xff]  ;;  %v3891_v52 = vld [vmem:[#allocation2 + $0xc2] sm:$0xff] }
 0x512   : > { %v9306_v55 = vmul.f32 %v11369_v42, %v3551_v41  ;;  %v3635_v40 = vadd.f32 %v9103_v56, %v9025_v38  ;;  %v3763_v15 = vmul.f32 %v11375_v49, %v3698_v33  ;;  %v3826_v8 = vadd.f32 %v3762_v4, %v3633_v47  ;;  %v3553_v33 = vld [vmem:[#allocation2 + $0x330] sm:$0xff]  ;;  %v3701_v47 = vld [vmem:[#allocation2 + $0xe1] sm:$0xff] }
 0x513   : > { %v4078_v27 = vadd.f32 %v4077_v46, %v9286_v22  ;;  %v3954_v26 = vmul.f32 %v11386_v54, %v3889_v1  ;;  %v9312_v61 = vadd.f32 %v3953_v57, %v3824_v44  ;;  %v3636_v48 = vadd.f32 %v9106_v3, %v9028_v13  ;;  %v3892_v57 = vld [vmem:[#allocation2 + $0xca] sm:$0xff] }
 0x514   : > { %v3764_v41 = vmul.f32 %v11375_v49, %v3699_v62  ;;  %v4142_v38 = vmul.f32 %v9188_v53, %v9188_v53  ;;  %v4143_v56 = vmul.f32 %v9190_v23, %v9190_v23  ;;  %v3827_v46 = vadd.f32 %v3763_v15, %v3634_v0  ;;  %v3702_v23 = vld [vmem:[#allocation2 + $0xf1] sm:$0xff] }
 0x515   : > { %v4079_v7 = vadd.f32 %v4078_v27, %v9299_v9  ;;  %v3955_v44 = vmul.f32 %v11386_v54, %v3890_v59  ;;  %v9323_v4 = vadd.f32 %v3954_v26, %v3825_v45  ;;  %v9327_v13 = vmul.f32 %v11369_v42, %v3552_v31 }
 0x516   : > { %v3637_v3 = vadd.f32 %v9109_v50, %v9031_v58  ;;  %v3765_v62 = vmul.f32 %v11375_v49, %v3700_v17  ;;  %v4144_v27 = vmul.f32 %v9207_v35, %v9207_v35  ;;  %v3828_v0 = vadd.f32 %v3764_v41, %v3635_v40  ;;  %v3893_v17 = vld [vmem:[#allocation2 + $0xda] sm:$0xff] }
 0x517   : > { %11405 = vst [vmem:[#allocation97_spill] sm:$0xff] %v9323_v4  ;;  %v4080_v1 = vadd.f32 %v4079_v7, %v9312_v61  ;;  %v3956_v15 = vmul.f32 %v11386_v54, %v3891_v52  ;;  %v9335_v45 = vadd.f32 %v3955_v44, %v3826_v8  ;;  %v9339_v31 = vmul.f32 %v11369_v42, %v3553_v33  ;;  %v3703_v7 = vld [vmem:[#allocation2 + $0xf9] sm:$0xff]  ;;  %v3894_v44 = vld [vmem:[#allocation2 + $0xe2] sm:$0xff] }
 0x518   : > { %v3638_v58 = vadd.f32 %v9112_v39, %v9034_v60  ;;  %v3766_v50 = vmul.f32 %v11375_v49, %v3701_v47  ;;  %v4206_v26 = vadd.f32 %v4143_v56, %v4142_v38  ;;  %v3829_v35 = vadd.f32 %v3765_v62, %v3636_v48  ;;  %v3704_v47 = vld [vmem:[#allocation2 + $0x109] sm:$0xff] }
 0x519   : > { %11406 = vst [vmem:[#allocation16_spill] sm:$0xff] %v9335_v45  ;;  %v4081_v59 = vadd.f32 %v4080_v1, %v9323_v4  ;;  %v3957_v40 = vmul.f32 %v11386_v54, %v3892_v57  ;;  %v9345_v41 = vadd.f32 %v3956_v15, %v3827_v46  ;;  %v3639_v52 = vadd.f32 %v9115_v24, %v9037_v36  ;;  %v3895_v24 = vld [vmem:[#allocation2 + $0xf2] sm:$0xff] }
 0x51a   : > { %v3767_v33 = vmul.f32 %v11375_v49, %v3702_v23  ;;  %v4145_v60 = vmul.f32 %v9234_v30, %v9234_v30  ;;  %v4207_v39 = vadd.f32 %v4206_v26, %v4144_v27  ;;  %v3830_v38 = vadd.f32 %v3766_v50, %v3637_v3  ;;  %v3705_v57 = vld [vmem:[#allocation2 + $0x111] sm:$0xff]  ;;  %v3706_v26 = vld [vmem:[#allocation2 + $0x121] sm:$0xff] }
 0x51b   : > { %11407 = vst [vmem:[#allocation112_spill] sm:$0xff] %v9345_v41  ;;  %v4082_v8 = vadd.f32 %v4081_v59, %v9335_v45  ;;  %v3958_v48 = vmul.f32 %v11386_v54, %v3893_v17  ;;  %v9354_v56 = vadd.f32 %v3957_v40, %v3828_v0  ;;  %v3640_v1 = vadd.f32 %v9118_v25, %v9040_v18  ;;  %v3896_v25 = vld [vmem:[#allocation2 + $0xfa] sm:$0xff] }
 0x51c   : > { %v3768_v36 = vmul.f32 %v11375_v49, %v3703_v7  ;;  %v4146_v23 = vmul.f32 %v9247_v2, %v9247_v2  ;;  %v4208_v62 = vadd.f32 %v4207_v39, %v4145_v60  ;;  %v3831_v27 = vadd.f32 %v3767_v33, %v3638_v58  ;;  %v3707_v60 = vld [vmem:[#allocation2 + $0x129] sm:$0xff] }
 0x51d   : > { %11408 = vst [vmem:[#allocation39_spill] sm:$0xff] %v9354_v56  ;;  %v4083_v46 = vadd.f32 %v4082_v8, %v9345_v41  ;;  %v3959_v3 = vmul.f32 %v11386_v54, %v3894_v44  ;;  %v9363_v15 = vadd.f32 %v3958_v48, %v3829_v35  ;;  %v3641_v59 = vadd.f32 %v9125_v6, %v9043_v16  ;;  %v3897_v6 = vld [vmem:[#allocation2 + $0x10a] sm:$0xff] }
 0x51e   : > { %v3769_v18 = vmul.f32 %v11375_v49, %v3704_v47  ;;  %v4147_v50 = vmul.f32 %v9260_v19, %v9260_v19  ;;  %v4209_v17 = vadd.f32 %v4208_v62, %v4146_v23  ;;  %v3832_v7 = vadd.f32 %v3768_v36, %v3639_v52 }
 0x51f   : > { %11409 = vst [vmem:[#allocation138_spill] sm:$0xff] %v9363_v15  ;;  %v4084_v0 = vadd.f32 %v4083_v46, %v9354_v56  ;;  %v3960_v58 = vmul.f32 %v11386_v54, %v3895_v24  ;;  %v9372_v40 = vadd.f32 %v3959_v3, %v3830_v38  ;;  %v3642_v8 = vadd.f32 %v9128_v32, %v9046_v12  ;;  %v3898_v32 = vld [vmem:[#allocation2 + $0x112] sm:$0xff]  ;;  %v11414_v3 = vld [vmem:[#allocation124_spill] sm:$0xff] }
 0x520   : > { %v3770_v16 = vmul.f32 %v11375_v49, %v3705_v57  ;;  %v4148_v33 = vmul.f32 %v9273_v29, %v9273_v29  ;;  %v4210_v44 = vadd.f32 %v4209_v17, %v4147_v50  ;;  %v3833_v39 = vadd.f32 %v3769_v18, %v3640_v1  ;;  %v3708_v24 = vld [vmem:[#allocation2 + $0x139] sm:$0xff]  ;;  %v3709_v50 = vld [vmem:[#allocation2 + $0x141] sm:$0xff] }
 0x521   : > { %11410 = vst [vmem:[#allocation37_spill] sm:$0xff] %v9372_v40  ;;  %v4085_v35 = vadd.f32 %v4084_v0, %v9363_v15  ;;  %v3961_v52 = vmul.f32 %v11386_v54, %v3896_v25  ;;  %v9381_v47 = vadd.f32 %v3960_v58, %v3831_v27  ;;  %v3643_v48 = vadd.f32 %v9131_v43, %v9049_v11  ;;  %v11413_v27 = vld [vmem:[#allocation41_spill] sm:$0xff] }
 0x522   : > { %v3771_v12 = vmul.f32 %v11375_v49, %v3706_v26  ;;  %v4149_v46 = vmul.f32 %v9286_v22, %v9286_v22  ;;  %v4211_v36 = vadd.f32 %v4210_v44, %v4148_v33  ;;  %v3834_v23 = vadd.f32 %v3770_v16, %v3641_v59  ;;  %v3899_v43 = vld [vmem:[#allocation2 + $0x122] sm:$0xff]  ;;  %v3900_v33 = vld [vmem:[#allocation2 + $0x12a] sm:$0xff] }
 0x523   : > { %11411 = vst [vmem:[#allocation118_spill] sm:$0xff] %v9381_v47  ;;  %v4086_v38 = vadd.f32 %v4085_v35, %v9372_v40  ;;  %v3962_v1 = vmul.f32 %v11386_v54, %v3897_v6  ;;  %v9390_v62 = vadd.f32 %v3961_v52, %v3832_v7  ;;  %v3644_v0 = vadd.f32 %v11414_v3, %v11413_v27  ;;  %v11416_v58 = vld [vmem:[#allocation21_spill] sm:$0xff]  ;;  %v3710_v52 = vld [vmem:[#allocation2 + $0x151] sm:$0xff]  ;;  %v3711_v3 = vld [vmem:[#allocation2 + $0x159] sm:$0xff] }
 0x524   : > { %v3772_v11 = vmul.f32 %v11375_v49, %v3707_v60  ;;  %v4150_v18 = vmul.f32 %v9299_v9, %v9299_v9  ;;  %v4212_v25 = vadd.f32 %v4211_v36, %v4149_v46  ;;  %v3835_v17 = vadd.f32 %v3771_v12, %v3642_v8  ;;  %v11417_v35 = vld [vmem:[#allocation53_spill] sm:$0xff]  ;;  %v11420_v46 = vld [vmem:[#allocation67_spill] sm:$0xff] }
 0x525   : > { %11412 = vst [vmem:[#allocation47_spill] sm:$0xff] %v9390_v62  ;;  %v4087_v57 = vadd.f32 %v4086_v38, %v9381_v47  ;;  %v3963_v59 = vmul.f32 %v11386_v54, %v3898_v32  ;;  %v9399_v26 = vadd.f32 %v3962_v1, %v3833_v39  ;;  %v3645_v16 = vadd.f32 %v11417_v35, %v11416_v58  ;;  %v11419_v32 = vld [vmem:[#allocation136_spill] sm:$0xff] }
 0x526   : > { %v3773_v6 = vmul.f32 %v11375_v49, %v3708_v24  ;;  %v4151_v44 = vmul.f32 %v9312_v61, %v9312_v61  ;;  %v4213_v60 = vadd.f32 %v4212_v25, %v4150_v18  ;;  %v3836_v38 = vadd.f32 %v3772_v11, %v3643_v48  ;;  %v11423_v25 = vld [vmem:[#allocation117_spill] sm:$0xff] }
 0x527   : > { %11415 = vst [vmem:[#allocation60_spill] sm:$0xff] %v9399_v26  ;;  %v4088_v7 = vadd.f32 %v4087_v57, %v9390_v62  ;;  %v3964_v8 = vmul.f32 %v11386_v54, %v3899_v43  ;;  %v9408_v12 = vadd.f32 %v3963_v59, %v3834_v23  ;;  %v3646_v36 = vadd.f32 %v11420_v46, %v11419_v32  ;;  %v3901_v57 = vld [vmem:[#allocation2 + $0x13a] sm:$0xff]  ;;  %v11422_v43 = vld [vmem:[#allocation106_spill] sm:$0xff]  ;;  %v3902_v58 = vld [vmem:[#allocation2 + $0x142] sm:$0xff] }
 0x528   : > { %v3774_v1 = vmul.f32 %v11375_v49, %v3709_v50  ;;  %v4152_v24 = vmul.f32 %v9323_v4, %v9323_v4  ;;  %v4214_v27 = vadd.f32 %v4213_v60, %v4151_v44  ;;  %v3837_v18 = vadd.f32 %v3773_v6, %v3644_v0  ;;  %v3712_v32 = vld [vmem:[#allocation2 + $0x169] sm:$0xff]  ;;  %v11426_v60 = vld [vmem:[#allocation75_spill] sm:$0xff] }
 0x529   : > { %11418 = vst [vmem:[#allocation128_spill] sm:$0xff] %v9408_v12  ;;  %v4089_v39 = vadd.f32 %v4088_v7, %v9399_v26  ;;  %v3965_v48 = vmul.f32 %v11386_v54, %v3900_v33  ;;  %v9417_v11 = vadd.f32 %v3964_v8, %v3835_v17  ;;  %v3647_v59 = vadd.f32 %v11423_v25, %v11422_v43  ;;  %v11425_v33 = vld [vmem:[#allocation98_spill] sm:$0xff] }
 0x52a   : > { %v3775_v7 = vmul.f32 %v11375_v49, %v3710_v52  ;;  %v4153_v50 = vmul.f32 %v9335_v45, %v9335_v45  ;;  %v4215_v35 = vadd.f32 %v4214_v27, %v4152_v24  ;;  %v3838_v44 = vadd.f32 %v3774_v1, %v3645_v16  ;;  %v3903_v46 = vld [vmem:[#allocation2 + $0x152] sm:$0xff]  ;;  %v11429_v27 = vld [vmem:[#allocation140_spill] sm:$0xff] }
 0x52b   : > { %11421 = vst [vmem:[#allocation130_spill] sm:$0xff] %v9417_v11  ;;  %v4090_v23 = vadd.f32 %v4089_v39, %v9408_v12  ;;  %v3966_v0 = vmul.f32 %v11386_v54, %v3901_v57  ;;  %v9426_v6 = vadd.f32 %v3965_v48, %v3836_v38  ;;  %v3648_v8 = vadd.f32 %v11426_v60, %v11425_v33  ;;  %v3713_v25 = vld [vmem:[#allocation2 + $0x171] sm:$0xff]  ;;  %v3904_v33 = vld [vmem:[#allocation2 + $0x15a] sm:$0xff] }
 0x52c   : > { %v3776_v39 = vmul.f32 %v11375_v49, %v3711_v3  ;;  %v4154_v52 = vmul.f32 %v9345_v41, %v9345_v41  ;;  %v4216_v43 = vadd.f32 %v4215_v35, %v4153_v50  ;;  %v3839_v24 = vadd.f32 %v3775_v7, %v3646_v36  ;;  %v11428_v57 = vld [vmem:[#allocation107_spill] sm:$0xff]  ;;  %v3714_v41 = vld [vmem:[#allocation2 + $0x181] sm:$0xff] }
 0x52d   : > { %11424 = vst [vmem:[#allocation126_spill] sm:$0xff] %v9426_v6  ;;  %v4091_v17 = vadd.f32 %v4090_v23, %v9417_v11  ;;  %v3967_v16 = vmul.f32 %v11386_v54, %v3902_v58  ;;  %v9435_v1 = vadd.f32 %v3966_v0, %v3837_v18  ;;  %v3649_v48 = vadd.f32 %v11429_v27, %v11428_v57  ;;  %v11431_v58 = vld [vmem:[#allocation26_spill] sm:$0xff]  ;;  %v11432_v35 = vld [vmem:[#allocation9_spill] sm:$0xff] }
 0x52e   : > { %v3777_v23 = vmul.f32 %v11375_v49, %v3712_v32  ;;  %v4155_v3 = vmul.f32 %v9354_v56, %v9354_v56  ;;  %v4217_v60 = vadd.f32 %v4216_v43, %v4154_v52  ;;  %v3840_v50 = vadd.f32 %v3776_v39, %v3647_v59  ;;  %v3905_v57 = vld [vmem:[#allocation2 + $0x16a] sm:$0xff]  ;;  %v11435_v43 = vld [vmem:[#allocation83_spill] sm:$0xff] }
 0x52f   : > { %11427 = vst [vmem:[#allocation56_spill] sm:$0xff] %v9435_v1  ;;  %v4092_v38 = vadd.f32 %v4091_v17, %v9426_v6  ;;  %v3968_v36 = vmul.f32 %v11386_v54, %v3903_v46  ;;  %v9444_v7 = vadd.f32 %v3967_v16, %v3838_v44  ;;  %v3650_v0 = vadd.f32 %v11432_v35, %v11431_v58  ;;  %v3715_v56 = vld [vmem:[#allocation2 + $0x189] sm:$0xff]  ;;  %v3906_v58 = vld [vmem:[#allocation2 + $0x172] sm:$0xff] }
 0x530   : > { %v3778_v17 = vmul.f32 %v11375_v49, %v3713_v25  ;;  %v4156_v32 = vmul.f32 %v9363_v15, %v9363_v15  ;;  %v4218_v27 = vadd.f32 %v4217_v60, %v4155_v3  ;;  %v3841_v52 = vadd.f32 %v3777_v23, %v3648_v8  ;;  %v11434_v46 = vld [vmem:[#allocation90_spill] sm:$0xff]  ;;  %v3554_v15 = vld [vmem:[#allocation2 + $0x338] sm:$0xff]  ;;  %v11438_v60 = vld [vmem:[#allocation72_spill] sm:$0xff] }
 0x531   : > { %11430 = vst [vmem:[#allocation70_spill] sm:$0xff] %v9444_v7  ;;  %v4093_v18 = vadd.f32 %v4092_v38, %v9435_v1  ;;  %v3969_v59 = vmul.f32 %v11386_v54, %v3904_v33  ;;  %v9453_v39 = vadd.f32 %v3968_v36, %v3839_v24  ;;  %v3651_v16 = vadd.f32 %v11435_v43, %v11434_v46  ;;  %v11437_v33 = vld [vmem:[#allocation32_spill] sm:$0xff] }
 0x532   : > { %v3779_v38 = vmul.f32 %v11375_v49, %v3714_v41  ;;  %v4157_v25 = vmul.f32 %v9372_v40, %v9372_v40  ;;  %v4219_v35 = vadd.f32 %v4218_v27, %v4156_v32  ;;  %v3842_v3 = vadd.f32 %v3778_v17, %v3649_v48  ;;  %v3907_v46 = vld [vmem:[#allocation2 + $0x182] sm:$0xff]  ;;  %v11439_v27 = vld [vmem:[#allocation139_spill] sm:$0xff] }
 0x533   : > { %11433 = vst [vmem:[#allocation25_spill] sm:$0xff] %v9453_v39  ;;  %v4094_v44 = vadd.f32 %v4093_v18, %v9444_v7  ;;  %v3970_v8 = vmul.f32 %v11386_v54, %v3905_v57  ;;  %v9462_v23 = vadd.f32 %v3969_v59, %v3840_v50  ;;  %v3652_v36 = vadd.f32 %v11438_v60, %v11437_v33  ;;  %v3555_v40 = vld [vmem:[#allocation2 + $0x348] sm:$0xff]  ;;  %v11440_v59 = vld [vmem:[#allocation66_spill] sm:$0xff] }
 0x534   : > { %v3780_v18 = vmul.f32 %v11375_v49, %v3715_v56  ;;  %v4158_v41 = vmul.f32 %v9381_v47, %v9381_v47  ;;  %v4220_v43 = vadd.f32 %v4219_v35, %v4157_v25  ;;  %v3843_v32 = vadd.f32 %v3779_v38, %v3650_v0  ;;  %v3908_v56 = vld [vmem:[#allocation2 + $0x18a] sm:$0xff] }
 0x535   : > { %11436 = vst [vmem:[#allocation99_spill] sm:$0xff] %v9462_v23  ;;  %v4095_v24 = vadd.f32 %v4094_v44, %v9453_v39  ;;  %v3971_v48 = vmul.f32 %v11386_v54, %v3906_v58  ;;  %v9471_v17 = vadd.f32 %v3970_v8, %v3841_v52  ;;  %v9475_v57 = vmul.f32 %v11369_v42, %v3554_v15  ;;  %v11441_v15 = vld [vmem:[#allocation114_spill] sm:$0xff] }
 0x536   : > { %v3653_v44 = vadd.f32 %v11440_v59, %v11439_v27  ;;  %v4159_v33 = vmul.f32 %v9390_v62, %v9390_v62  ;;  %v4221_v60 = vadd.f32 %v4220_v43, %v4158_v41  ;;  %v3844_v25 = vadd.f32 %v3780_v18, %v3651_v16  ;;  %v11442_v35 = vld [vmem:[#allocation78_spill] sm:$0xff]  ;;  %v11443_v62 = vld [vmem:[#allocation65_spill] sm:$0xff]  ;;  %v11445_v43 = vld [vmem:[#allocation27_spill] sm:$0xff] }
 0x537   : > { %v4096_v50 = vadd.f32 %v4095_v24, %v9462_v23  ;;  %v3972_v0 = vmul.f32 %v11386_v54, %v3907_v46  ;;  %v9482_v38 = vadd.f32 %v3971_v48, %v3842_v3  ;;  %v9486_v58 = vmul.f32 %v11369_v42, %v3555_v40  ;;  %v3718_v24 = vld [vmem:[#allocation2 + $0x1e1] sm:$0xff]  ;;  %v11446_v48 = vld [vmem:[#allocation74_spill] sm:$0xff] }
 0x538   : > { %v3654_v8 = vadd.f32 %v11442_v35, %v11441_v15  ;;  %v4160_v27 = vmul.f32 %v9399_v26, %v9399_v26  ;;  %v4222_v59 = vadd.f32 %v4221_v60, %v4159_v33  ;;  %v3845_v41 = vadd.f32 %v11443_v62, %v3652_v36  ;;  %v4803_v46 = vld [vmem:[#allocation2 + $0x8] sm:$0xff]  ;;  %v3720_v60 = vld [vmem:[#allocation2 + $0x1f9] sm:$0xff] }
 0x539   : > { %v4097_v52 = vadd.f32 %v4096_v50, %v9471_v17  ;;  %v3973_v16 = vmul.f32 %v11386_v54, %v3908_v56  ;;  %v9494_v18 = vadd.f32 %v3972_v0, %v3843_v32  ;;  %v9498_v40 = vmul.f32 %v4803_v46, %v11369_v42  ;;  %v3719_v15 = vld [vmem:[#allocation2 + $0x1e9] sm:$0xff]  ;;  %v11450_v42 = vld [vmem:[#allocation87_spill] sm:$0xff]  ;;  %v11451_v26 = vld [vmem:[#allocation108_spill] sm:$0xff] }
 0x53a   : > { %v3655_v50 = vadd.f32 %v11446_v48, %v11445_v43  ;;  %v4161_v35 = vmul.f32 %v9408_v12, %v9408_v12  ;;  %v4223_v33 = vadd.f32 %v4222_v59, %v4160_v27  ;;  %v3783_v62 = vmul.f32 %v11375_v49, %v3718_v24  ;;  %v11447_v36 = vld [vmem:[#allocation69_spill] sm:$0xff] }
 0x53b   : > { %11444 = vst [vmem:[#allocation23_spill] sm:$0xff] %v9494_v18  ;;  %v4098_v3 = vadd.f32 %v4097_v52, %v9482_v38  ;;  %v3846_v32 = vadd.f32 %v11447_v36, %v3653_v44  ;;  %v9506_v56 = vadd.f32 %v3973_v16, %v3844_v25  ;;  %v11449_v52 = vld [vmem:[#allocation101_spill] sm:$0xff]  ;;  %v3657_v43 = vadd.f32 %v9176_v14, %v11451_v26  ;;  %v11452_v44 = vld [vmem:[#allocation80_spill] sm:$0xff] }
 0x53c   : > { %v3656_v46 = vadd.f32 %v11450_v42, %v11449_v52  ;;  %v3911_v48 = vld [vmem:[#allocation2 + $0x1e2] sm:$0xff]  ;;  %v4162_v12 = vmul.f32 %v9417_v11, %v9417_v11  ;;  %v4224_v27 = vadd.f32 %v4223_v33, %v4161_v35  ;;  %v3784_v24 = vmul.f32 %v11375_v49, %v3719_v15  ;;  %v3912_v14 = vld [vmem:[#allocation2 + $0x1ea] sm:$0xff] }
 0x53d   : > { %11448 = vst [vmem:[#allocation76_spill] sm:$0xff] %v9506_v56  ;;  %v4099_v0 = vadd.f32 %v4098_v3, %v9494_v18  ;;  %v3721_v59 = vld [vmem:[#allocation2 + $0x201] sm:$0xff]  ;;  %v3847_v47 = vadd.f32 %v3783_v62, %v3654_v8  ;;  %v9517_v25 = vadd.f32 %v11452_v44, %v3845_v41  ;;  %v3785_v42 = vmul.f32 %v11375_v49, %v3720_v60  ;;  %v3722_v35 = vld [vmem:[#allocation2 + $0x211] sm:$0xff] }
 0x53e   : > { %v11454_v3 = vld [vmem:[#allocation48_spill] sm:$0xff]  ;;  %v4163_v26 = vmul.f32 %v9426_v6, %v9426_v6  ;;  %v4225_v11 = vadd.f32 %v4224_v27, %v4162_v12  ;;  %v3848_v33 = vadd.f32 %v3784_v24, %v3655_v50  ;;  %v3976_v15 = vmul.f32 %v11386_v54, %v3911_v48  ;;  %v11456_v8 = vld [vmem:[#allocation123_spill] sm:$0xff]  ;;  %v11460_v24 = vld [vmem:[#allocation109_spill] sm:$0xff] }
 0x53f   : > { %11453 = vst [vmem:[#allocation45_spill] sm:$0xff] %v9517_v25  ;;  %v4100_v16 = vadd.f32 %v4099_v0, %v9506_v56  ;;  %v11455_v36 = vld [vmem:[#allocation8_spill] sm:$0xff]  ;;  %v9527_v62 = vadd.f32 %v11456_v8, %v3846_v32  ;;  %v11457_v0 = vld [vmem:[#allocation49_spill] sm:$0xff]  ;;  %v11458_v44 = vld [vmem:[#allocation135_spill] sm:$0xff]  ;;  %v3849_v27 = vadd.f32 %v3785_v42, %v3656_v46  ;;  %v3977_v50 = vmul.f32 %v11386_v54, %v3912_v14 }
 0x540   : > { %v3658_v52 = vadd.f32 %v11455_v36, %v11454_v3  ;;  %v3659_v45 = vadd.f32 %v11458_v44, %v11457_v0  ;;  %v3786_v3 = vmul.f32 %v11375_v49, %v3721_v59  ;;  %v3913_v60 = vld [vmem:[#allocation2 + $0x1fa] sm:$0xff]  ;;  %v4164_v36 = vmul.f32 %v9435_v1, %v9435_v1  ;;  %v3914_v44 = vld [vmem:[#allocation2 + $0x202] sm:$0xff] }
 0x541   : > { %v4101_v41 = vadd.f32 %v4100_v16, %v9517_v25  ;;  %v4226_v6 = vadd.f32 %v4225_v11, %v4163_v26  ;;  %v3723_v12 = vld [vmem:[#allocation2 + $0x219] sm:$0xff]  ;;  %v9536_v48 = vadd.f32 %v3976_v15, %v3847_v47  ;;  %v11461_v16 = vld [vmem:[#allocation125_spill] sm:$0xff]  ;;  %v3787_v0 = vmul.f32 %v11375_v49, %v3722_v35 }
 0x542   : > { %v3660_v8 = vadd.f32 %v11461_v16, %v11460_v24  ;;  %v4165_v59 = vmul.f32 %v9444_v7, %v9444_v7  ;;  %v3724_v1 = vld [vmem:[#allocation2 + $0x229] sm:$0xff]  ;;  %v3850_v11 = vadd.f32 %v3786_v3, %v3657_v43  ;;  %v3978_v46 = vmul.f32 %v11386_v54, %v3913_v60  ;;  %v11463_v26 = vld [vmem:[#allocation79_spill] sm:$0xff] }
 0x543   : > { %11459 = vst [vmem:[#allocation68_spill] sm:$0xff] %v9536_v48  ;;  %v4102_v32 = vadd.f32 %v4101_v41, %v9527_v62  ;;  %v4227_v4 = vadd.f32 %v4226_v6, %v4164_v36  ;;  %v9545_v42 = vadd.f32 %v3977_v50, %v3848_v33  ;;  %v11462_v14 = vld [vmem:[#allocation33_spill] sm:$0xff]  ;;  %v3788_v41 = vmul.f32 %v11375_v49, %v3723_v12  ;;  %v3915_v24 = vld [vmem:[#allocation2 + $0x212] sm:$0xff] }
 0x544   : > { %v3661_v15 = vadd.f32 %v11463_v26, %v11462_v14  ;;  %v4166_v35 = vmul.f32 %v9453_v39, %v9453_v39  ;;  %v3725_v7 = vld [vmem:[#allocation2 + $0x231] sm:$0xff]  ;;  %v3851_v6 = vadd.f32 %v3787_v0, %v3658_v52  ;;  %v3979_v43 = vmul.f32 %v11386_v54, %v3914_v44  ;;  %v11466_v36 = vld [vmem:[#allocation81_spill] sm:$0xff]  ;;  %v3916_v14 = vld [vmem:[#allocation2 + $0x21a] sm:$0xff] }
 0x545   : > { %v4103_v47 = vadd.f32 %v4102_v32, %v9536_v48  ;;  %v4228_v16 = vadd.f32 %v4227_v4, %v4165_v59  ;;  %v9554_v3 = vadd.f32 %v3978_v46, %v3849_v27  ;;  %v11465_v60 = vld [vmem:[#allocation30_spill] sm:$0xff]  ;;  %v3789_v32 = vmul.f32 %v11375_v49, %v3724_v1  ;;  %v3726_v39 = vld [vmem:[#allocation2 + $0x241] sm:$0xff] }
 0x546   : > { %v3662_v50 = vadd.f32 %v11466_v36, %v11465_v60  ;;  %v4167_v12 = vmul.f32 %v9462_v23, %v9462_v23  ;;  %v3852_v4 = vadd.f32 %v3788_v41, %v3659_v45  ;;  %v3980_v52 = vmul.f32 %v11386_v54, %v3915_v24  ;;  %v11467_v44 = vld [vmem:[#allocation110_spill] sm:$0xff]  ;;  %v11470_v24 = vld [vmem:[#allocation51_spill] sm:$0xff] }
 0x547   : > { %11464 = vst [vmem:[#allocation44_spill] sm:$0xff] %v9554_v3  ;;  %v4104_v33 = vadd.f32 %v4103_v47, %v9545_v42  ;;  %v4229_v26 = vadd.f32 %v4228_v16, %v4166_v35  ;;  %v9563_v0 = vadd.f32 %v3979_v43, %v3850_v11  ;;  %v11468_v59 = vld [vmem:[#allocation86_spill] sm:$0xff]  ;;  %v3790_v47 = vmul.f32 %v11375_v49, %v3725_v7 }
 0x548   : > { %v3663_v46 = vadd.f32 %v11468_v59, %v11467_v44  ;;  %v3917_v60 = vld [vmem:[#allocation2 + $0x22a] sm:$0xff]  ;;  %v4168_v1 = vmul.f32 %v9471_v17, %v9471_v17  ;;  %v3853_v35 = vadd.f32 %v3789_v32, %v3660_v8  ;;  %v3981_v45 = vmul.f32 %v11386_v54, %v3916_v14  ;;  %v3728_v59 = vld [vmem:[#allocation2 + $0x259] sm:$0xff] }
 0x549   : > { %v4105_v27 = vadd.f32 %v4104_v33, %v9554_v3  ;;  %v4230_v36 = vadd.f32 %v4229_v26, %v4167_v12  ;;  %v3727_v23 = vld [vmem:[#allocation2 + $0x249] sm:$0xff]  ;;  %v9572_v41 = vadd.f32 %v3980_v52, %v3851_v6  ;;  %v3664_v16 = vadd.f32 %v9210_v51, %v11470_v24  ;;  %v3918_v33 = vld [vmem:[#allocation2 + $0x232] sm:$0xff]  ;;  %v11471_v14 = vld [vmem:[#allocation52_spill] sm:$0xff] }
 0x54a   : > { %v3791_v43 = vmul.f32 %v11375_v49, %v3726_v39  ;;  %v4169_v7 = vmul.f32 %v9482_v38, %v9482_v38  ;;  %v3854_v12 = vadd.f32 %v3790_v47, %v3661_v15  ;;  %v3982_v8 = vmul.f32 %v11386_v54, %v3917_v60  ;;  %v3919_v52 = vld [vmem:[#allocation2 + $0x242] sm:$0xff]  ;;  %v11473_v60 = vld [vmem:[#allocation31_spill] sm:$0xff] }
 0x54b   : > { %11469 = vst [vmem:[#allocation62_spill] sm:$0xff] %v9572_v41  ;;  %v4106_v11 = vadd.f32 %v4105_v27, %v9563_v0  ;;  %v4231_v44 = vadd.f32 %v4230_v36, %v4168_v1  ;;  %v9581_v32 = vadd.f32 %v3981_v45, %v3852_v4  ;;  %v3665_v26 = vadd.f32 %v9213_v20, %v11471_v14  ;;  %v3729_v24 = vld [vmem:[#allocation2 + $0x261] sm:$0xff] }
 0x54c   : > { %v3792_v51 = vmul.f32 %v11375_v49, %v3727_v23  ;;  %v4170_v39 = vmul.f32 %v9494_v18, %v9494_v18  ;;  %v3855_v1 = vadd.f32 %v3791_v43, %v3662_v50  ;;  %v3983_v15 = vmul.f32 %v11386_v54, %v3918_v33  ;;  %v11474_v36 = vld [vmem:[#allocation84_spill] sm:$0xff]  ;;  %v3730_v18 = vld [vmem:[#allocation2 + $0x271] sm:$0xff] }
 0x54d   : > { %v4107_v6 = vadd.f32 %v4106_v11, %v9572_v41  ;;  %v4232_v27 = vadd.f32 %v4231_v44, %v4169_v7  ;;  %v9590_v47 = vadd.f32 %v3982_v8, %v3853_v35  ;;  %v3666_v45 = vadd.f32 %v11474_v36, %v11473_v60  ;;  %v3920_v11 = vld [vmem:[#allocation2 + $0x24a] sm:$0xff]  ;;  %v11475_v33 = vld [vmem:[#allocation104_spill] sm:$0xff] }
 0x54e   : > { %v3793_v20 = vmul.f32 %v11375_v49, %v3728_v59  ;;  %v4171_v23 = vmul.f32 %v9506_v56, %v9506_v56  ;;  %v3856_v7 = vadd.f32 %v3792_v51, %v3663_v46  ;;  %v3984_v50 = vmul.f32 %v11386_v54, %v3919_v52  ;;  %v11476_v44 = vld [vmem:[#allocation94_spill] sm:$0xff]  ;;  %v3921_v60 = vld [vmem:[#allocation2 + $0x25a] sm:$0xff] }
 0x54f   : > { %11472 = vst [vmem:[#allocation121_spill] sm:$0xff] %v9590_v47  ;;  %v4108_v4 = vadd.f32 %v4107_v6, %v9581_v32  ;;  %v4233_v14 = vadd.f32 %v4232_v27, %v4170_v39  ;;  %v9599_v43 = vadd.f32 %v3983_v15, %v3854_v12  ;;  %v3667_v8 = vadd.f32 %v11476_v44, %v11475_v33  ;;  %v3731_v56 = vld [vmem:[#allocation2 + $0x279] sm:$0xff]  ;;  %v11478_v27 = vld [vmem:[#allocation18_spill] sm:$0xff]  ;;  %v3922_v33 = vld [vmem:[#allocation2 + $0x262] sm:$0xff] }
 0x550   : > { %v3794_v6 = vmul.f32 %v11375_v49, %v3729_v24  ;;  %v4172_v59 = vmul.f32 %v9517_v25, %v9517_v25  ;;  %v3857_v39 = vadd.f32 %v3793_v20, %v3664_v16  ;;  %v3985_v46 = vmul.f32 %v11386_v54, %v3920_v11  ;;  %v11477_v52 = vld [vmem:[#allocation115_spill] sm:$0xff]  ;;  %v3732_v25 = vld [vmem:[#allocation2 + $0x289] sm:$0xff] }
 0x551   : > { %v4109_v35 = vadd.f32 %v4108_v4, %v9590_v47  ;;  %v4234_v36 = vadd.f32 %v4233_v14, %v4171_v23  ;;  %v9608_v51 = vadd.f32 %v3984_v50, %v3855_v1  ;;  %v3668_v15 = vadd.f32 %v11478_v27, %v11477_v52  ;;  %v11479_v11 = vld [vmem:[#allocation43_spill] sm:$0xff] }
 0x552   : > { %v3795_v4 = vmul.f32 %v11375_v49, %v3730_v18  ;;  %v4173_v24 = vmul.f32 %v9527_v62, %v9527_v62  ;;  %v3858_v23 = vadd.f32 %v3794_v6, %v3665_v26  ;;  %v3986_v16 = vmul.f32 %v11386_v54, %v3921_v60  ;;  %v3733_v27 = vld [vmem:[#allocation2 + $0x291] sm:$0xff] }
 0x553   : > { %v4110_v12 = vadd.f32 %v4109_v35, %v9599_v43  ;;  %v4235_v44 = vadd.f32 %v4234_v36, %v4172_v59  ;;  %v9617_v20 = vadd.f32 %v3985_v46, %v3856_v7  ;;  %v3669_v14 = vadd.f32 %v9238_v21, %v11479_v11  ;;  %v3923_v35 = vld [vmem:[#allocation2 + $0x272] sm:$0xff]  ;;  %v11481_v36 = vld [vmem:[#allocation85_spill] sm:$0xff] }
 0x554   : > { %v3796_v50 = vmul.f32 %v11375_v49, %v3731_v56  ;;  %v4174_v18 = vmul.f32 %v9536_v48, %v9536_v48  ;;  %v3859_v59 = vadd.f32 %v3795_v4, %v3666_v45  ;;  %v3987_v26 = vmul.f32 %v11386_v54, %v3922_v33  ;;  %v11480_v60 = vld [vmem:[#allocation46_spill] sm:$0xff]  ;;  %v3734_v48 = vld [vmem:[#allocation2 + $0x2a1] sm:$0xff] }
 0x555   : > { %v4111_v1 = vadd.f32 %v4110_v12, %v9608_v51  ;;  %v4236_v52 = vadd.f32 %v4235_v44, %v4173_v24  ;;  %v9626_v6 = vadd.f32 %v3986_v16, %v3857_v39  ;;  %v3670_v46 = vadd.f32 %v11481_v36, %v11480_v60  ;;  %v3924_v12 = vld [vmem:[#allocation2 + $0x27a] sm:$0xff]  ;;  %v3735_v36 = vld [vmem:[#allocation2 + $0x2a9] sm:$0xff] }
 0x556   : > { %v3797_v21 = vmul.f32 %v11375_v49, %v3732_v25  ;;  %v4175_v56 = vmul.f32 %v9545_v42, %v9545_v42  ;;  %v3860_v24 = vadd.f32 %v3796_v50, %v3667_v8  ;;  %v3988_v45 = vmul.f32 %v11386_v54, %v3923_v35  ;;  %v11482_v33 = vld [vmem:[#allocation116_spill] sm:$0xff]  ;;  %v11483_v35 = vld [vmem:[#allocation57_spill] sm:$0xff] }
 0x557   : > { %v4112_v7 = vadd.f32 %v4111_v1, %v9617_v20  ;;  %v4237_v11 = vadd.f32 %v4236_v52, %v4174_v18  ;;  %v9635_v4 = vadd.f32 %v3987_v26, %v3858_v23  ;;  %v3671_v44 = vadd.f32 %v9251_v28, %v11482_v33  ;;  %v3925_v1 = vld [vmem:[#allocation2 + $0x28a] sm:$0xff] }
 0x558   : > { %v3798_v16 = vmul.f32 %v11375_v49, %v3733_v27  ;;  %v4176_v25 = vmul.f32 %v9554_v3, %v9554_v3  ;;  %v3861_v18 = vadd.f32 %v3797_v21, %v3668_v15  ;;  %v3989_v8 = vmul.f32 %v11386_v54, %v3924_v12  ;;  %v11484_v52 = vld [vmem:[#allocation133_spill] sm:$0xff]  ;;  %v3736_v3 = vld [vmem:[#allocation2 + $0x2b9] sm:$0xff]  ;;  %v11485_v12 = vld [vmem:[#allocation58_spill] sm:$0xff] }
 0x559   : > { %v4113_v39 = vadd.f32 %v4112_v7, %v9626_v6  ;;  %v4238_v60 = vadd.f32 %v4237_v11, %v4175_v56  ;;  %v9644_v50 = vadd.f32 %v3988_v45, %v3859_v59  ;;  %v3672_v26 = vadd.f32 %v11484_v52, %v11483_v35  ;;  %v3926_v7 = vld [vmem:[#allocation2 + $0x292] sm:$0xff]  ;;  %v3737_v52 = vld [vmem:[#allocation2 + $0x2c1] sm:$0xff] }
 0x55a   : > { %v3799_v28 = vmul.f32 %v11375_v49, %v3734_v48  ;;  %v4177_v27 = vmul.f32 %v9563_v0, %v9563_v0  ;;  %v3862_v56 = vadd.f32 %v3798_v16, %v3669_v14  ;;  %v3990_v15 = vmul.f32 %v11386_v54, %v3925_v1  ;;  %v11486_v1 = vld [vmem:[#allocation141_spill] sm:$0xff] }
 0x55b   : > { %v4114_v23 = vadd.f32 %v4113_v39, %v9635_v4  ;;  %v4239_v33 = vadd.f32 %v4238_v60, %v4176_v25  ;;  %v9653_v21 = vadd.f32 %v3989_v8, %v3860_v24  ;;  %v3673_v11 = vadd.f32 %v9264_v10, %v11485_v12  ;;  %v3927_v39 = vld [vmem:[#allocation2 + $0x2a2] sm:$0xff] }
 0x55c   : > { %v3800_v45 = vmul.f32 %v11375_v49, %v3735_v36  ;;  %v4178_v48 = vmul.f32 %v9572_v41, %v9572_v41  ;;  %v3863_v25 = vadd.f32 %v3799_v28, %v3670_v46  ;;  %v3991_v14 = vmul.f32 %v11386_v54, %v3926_v7  ;;  %v11487_v60 = vld [vmem:[#allocation96_spill] sm:$0xff]  ;;  %v3738_v41 = vld [vmem:[#allocation2 + $0x2d1] sm:$0xff] }
 0x55d   : > { %v4115_v59 = vadd.f32 %v4114_v23, %v9644_v50  ;;  %v4240_v35 = vadd.f32 %v4239_v33, %v4177_v27  ;;  %v9662_v16 = vadd.f32 %v3990_v15, %v3861_v18  ;;  %v3674_v8 = vadd.f32 %v11487_v60, %v11486_v1  ;;  %v3928_v23 = vld [vmem:[#allocation2 + $0x2aa] sm:$0xff]  ;;  %v11488_v7 = vld [vmem:[#allocation7_spill] sm:$0xff] }
 0x55e   : > { %v3801_v10 = vmul.f32 %v11375_v49, %v3736_v3  ;;  %v4179_v36 = vmul.f32 %v9581_v32, %v9581_v32  ;;  %v3864_v27 = vadd.f32 %v3800_v45, %v3671_v44  ;;  %v3992_v46 = vmul.f32 %v11386_v54, %v3927_v39  ;;  %v3739_v60 = vld [vmem:[#allocation2 + $0x2d9] sm:$0xff]  ;;  %v11490_v39 = vld [vmem:[#allocation61_spill] sm:$0xff] }
 0x55f   : > { %v4116_v24 = vadd.f32 %v4115_v59, %v9653_v21  ;;  %v4241_v12 = vadd.f32 %v4240_v35, %v4178_v48  ;;  %v9671_v28 = vadd.f32 %v3991_v14, %v3862_v56  ;;  %v3675_v33 = vadd.f32 %v9277_v5, %v11488_v7  ;;  %v3929_v59 = vld [vmem:[#allocation2 + $0x2ba] sm:$0xff] }
 0x560   : > { %v3802_v15 = vmul.f32 %v11375_v49, %v3737_v52  ;;  %v4180_v3 = vmul.f32 %v9590_v47, %v9590_v47  ;;  %v3865_v48 = vadd.f32 %v3801_v10, %v3672_v26  ;;  %v3993_v44 = vmul.f32 %v11386_v54, %v3928_v23  ;;  %v11491_v35 = vld [vmem:[#allocation88_spill] sm:$0xff]  ;;  %v3740_v47 = vld [vmem:[#allocation2 + $0x2e9] sm:$0xff]  ;;  %v11492_v23 = vld [vmem:[#allocation119_spill] sm:$0xff] }
 0x561   : > { %v4117_v18 = vadd.f32 %v4116_v24, %v9662_v16  ;;  %v4242_v1 = vadd.f32 %v4241_v12, %v4179_v36  ;;  %v9680_v45 = vadd.f32 %v3992_v46, %v3863_v25  ;;  %v3676_v14 = vadd.f32 %v11491_v35, %v11490_v39  ;;  %v3930_v24 = vld [vmem:[#allocation2 + $0x2c2] sm:$0xff]  ;;  %v3741_v35 = vld [vmem:[#allocation2 + $0x2f1] sm:$0xff] }
 0x562   : > { %v3803_v5 = vmul.f32 %v11375_v49, %v3738_v41  ;;  %v4181_v52 = vmul.f32 %v9599_v43, %v9599_v43  ;;  %v3866_v36 = vadd.f32 %v3802_v15, %v3673_v11  ;;  %v3994_v26 = vmul.f32 %v11386_v54, %v3929_v59  ;;  %v11493_v59 = vld [vmem:[#allocation137_spill] sm:$0xff] }
 0x563   : > { %11489 = vst [vmem:[#allocation131_spill] sm:$0xff] %v9680_v45  ;;  %v4118_v56 = vadd.f32 %v4117_v18, %v9671_v28  ;;  %v4243_v7 = vadd.f32 %v4242_v1, %v4180_v3  ;;  %v9689_v10 = vadd.f32 %v3993_v44, %v3864_v27  ;;  %v3677_v12 = vadd.f32 %v9290_v34, %v11492_v23  ;;  %v3931_v18 = vld [vmem:[#allocation2 + $0x2d2] sm:$0xff]  ;;  %v3932_v44 = vld [vmem:[#allocation2 + $0x2da] sm:$0xff] }
 0x564   : > { %v3804_v46 = vmul.f32 %v11375_v49, %v3739_v60  ;;  %v4182_v41 = vmul.f32 %v9608_v51, %v9608_v51  ;;  %v3867_v3 = vadd.f32 %v3803_v5, %v3674_v8  ;;  %v3995_v11 = vmul.f32 %v11386_v54, %v3930_v24  ;;  %v3742_v23 = vld [vmem:[#allocation2 + $0x301] sm:$0xff]  ;;  %v11494_v24 = vld [vmem:[#allocation50_spill] sm:$0xff] }
 0x565   : > { %v4119_v25 = vadd.f32 %v4118_v56, %v9680_v45  ;;  %v4244_v39 = vadd.f32 %v4243_v7, %v4181_v52  ;;  %v9698_v15 = vadd.f32 %v3994_v26, %v3865_v48  ;;  %v3678_v1 = vadd.f32 %v9293_v37, %v11493_v59  ;;  %v3933_v26 = vld [vmem:[#allocation2 + $0x2ea] sm:$0xff] }
 0x566   : > { %v3805_v34 = vmul.f32 %v11375_v49, %v3740_v47  ;;  %v4183_v60 = vmul.f32 %v9617_v20, %v9617_v20  ;;  %v3868_v52 = vadd.f32 %v3804_v46, %v3675_v33  ;;  %v3996_v8 = vmul.f32 %v11386_v54, %v3931_v18  ;;  %v3743_v59 = vld [vmem:[#allocation2 + $0x309] sm:$0xff]  ;;  %v11495_v18 = vld [vmem:[#allocation111_spill] sm:$0xff] }
 0x567   : > { %v4120_v27 = vadd.f32 %v4119_v25, %v9689_v10  ;;  %v4245_v56 = vadd.f32 %v4244_v39, %v4182_v41  ;;  %v9707_v5 = vadd.f32 %v3995_v11, %v3866_v36  ;;  %v3679_v7 = vadd.f32 %v9303_v63, %v11494_v24  ;;  %v3934_v11 = vld [vmem:[#allocation2 + $0x2f2] sm:$0xff] }
 0x568   : > { %v3806_v37 = vmul.f32 %v11375_v49, %v3741_v35  ;;  %v4184_v47 = vmul.f32 %v9626_v6, %v9626_v6  ;;  %v3869_v41 = vadd.f32 %v3805_v34, %v3676_v14  ;;  %v3997_v33 = vmul.f32 %v11386_v54, %v3932_v44  ;;  %v3744_v24 = vld [vmem:[#allocation2 + $0x319] sm:$0xff]  ;;  %v11496_v44 = vld [vmem:[#allocation17_spill] sm:$0xff] }
 0x569   : > { %v4121_v48 = vadd.f32 %v4120_v27, %v9698_v15  ;;  %v4246_v25 = vadd.f32 %v4245_v56, %v4183_v60  ;;  %v9716_v46 = vadd.f32 %v3996_v8, %v3867_v3  ;;  %v3680_v39 = vadd.f32 %v9306_v55, %v11495_v18  ;;  %v3935_v8 = vld [vmem:[#allocation2 + $0x302] sm:$0xff] }
 0x56a   : > { %v3807_v63 = vmul.f32 %v11375_v49, %v3742_v23  ;;  %v4185_v35 = vmul.f32 %v9635_v4, %v9635_v4  ;;  %v3870_v60 = vadd.f32 %v3806_v37, %v3677_v12  ;;  %v3998_v14 = vmul.f32 %v11386_v54, %v3933_v26  ;;  %v3745_v18 = vld [vmem:[#allocation2 + $0x321] sm:$0xff] }
 0x56b   : > { %v4122_v36 = vadd.f32 %v4121_v48, %v9707_v5  ;;  %v4247_v27 = vadd.f32 %v4246_v25, %v4184_v47  ;;  %v9725_v34 = vadd.f32 %v3997_v33, %v3868_v52  ;;  %v3681_v56 = vadd.f32 %v9327_v13, %v11496_v44  ;;  %v11497_v26 = vld [vmem:[#allocation64_spill] sm:$0xff]  ;;  %v3936_v33 = vld [vmem:[#allocation2 + $0x30a] sm:$0xff] }
 0x56c   : > { %v3808_v55 = vmul.f32 %v11375_v49, %v3743_v59  ;;  %v4186_v23 = vmul.f32 %v9644_v50, %v9644_v50  ;;  %v3871_v47 = vadd.f32 %v3807_v63, %v3678_v1  ;;  %v3999_v12 = vmul.f32 %v11386_v54, %v3934_v11  ;;  %v3746_v44 = vld [vmem:[#allocation2 + $0x331] sm:$0xff] }
 0x56d   : > { %v4123_v3 = vadd.f32 %v4122_v36, %v9716_v46  ;;  %v4248_v48 = vadd.f32 %v4247_v27, %v4185_v35  ;;  %v9734_v37 = vadd.f32 %v3998_v14, %v3869_v41  ;;  %v3682_v25 = vadd.f32 %v9339_v31, %v11497_v26  ;;  %v11498_v11 = vld [vmem:[#allocation122_spill] sm:$0xff]  ;;  %v3937_v14 = vld [vmem:[#allocation2 + $0x31a] sm:$0xff] }
 0x56e   : > { %v3809_v13 = vmul.f32 %v11375_v49, %v3744_v24  ;;  %v4187_v59 = vmul.f32 %v9653_v21, %v9653_v21  ;;  %v3872_v35 = vadd.f32 %v3808_v55, %v3679_v7  ;;  %v4000_v1 = vmul.f32 %v11386_v54, %v3935_v8  ;;  %v3748_v26 = vld [vmem:[#allocation2 + $0x349] sm:$0xff]  ;;  %v11499_v8 = vld [vmem:[#allocation63_spill] sm:$0xff] }
 0x56f   : > { %v4124_v52 = vadd.f32 %v4123_v3, %v9725_v34  ;;  %v4249_v36 = vadd.f32 %v4248_v48, %v4186_v23  ;;  %v9743_v63 = vadd.f32 %v3999_v12, %v3870_v60  ;;  %v3683_v27 = vadd.f32 %v9475_v57, %v11498_v11  ;;  %v3747_v23 = vld [vmem:[#allocation2 + $0x339] sm:$0xff] }
 0x570   : > { %v3810_v31 = vmul.f32 %v11375_v49, %v3745_v18  ;;  %v4188_v24 = vmul.f32 %v9662_v16, %v9662_v16  ;;  %v3873_v48 = vadd.f32 %v3809_v13, %v3680_v39  ;;  %v4001_v7 = vmul.f32 %v11386_v54, %v3936_v33  ;;  %v3938_v18 = vld [vmem:[#allocation2 + $0x322] sm:$0xff] }
 0x571   : > { %v4125_v41 = vadd.f32 %v4124_v52, %v9734_v37  ;;  %v4250_v3 = vadd.f32 %v4249_v36, %v4187_v59  ;;  %v9752_v55 = vadd.f32 %v4000_v1, %v3871_v47  ;;  %v3684_v12 = vadd.f32 %v9486_v58, %v11499_v8  ;;  %v3749_v59 = vld [vmem:[#allocation2 + $0x351] sm:$0xff] }
 0x572   : > { %v3811_v57 = vmul.f32 %v11375_v49, %v3746_v44  ;;  %v4189_v52 = vmul.f32 %v9671_v28, %v9671_v28  ;;  %v3874_v36 = vadd.f32 %v3810_v31, %v3681_v56  ;;  %v4002_v39 = vmul.f32 %v11386_v54, %v3937_v14  ;;  %v3939_v58 = vld [vmem:[#allocation2 + $0x332] sm:$0xff]  ;;  %v11500_v31 = vld [vmem:[#allocation100_spill] sm:$0xff] }
 0x573   : > { %v4126_v60 = vadd.f32 %v4125_v41, %v9743_v63  ;;  %v4251_v11 = vadd.f32 %v4250_v3, %v4188_v24  ;;  %v9761_v13 = vadd.f32 %v4001_v7, %v3872_v35  ;;  %v3812_v33 = vmul.f32 %v11375_v49, %v3747_v23  ;;  %v3941_v35 = vld [vmem:[#allocation2 + $0x34a] sm:$0xff]  ;;  %v3940_v7 = vld [vmem:[#allocation2 + $0x33a] sm:$0xff] }
 0x574   : > { %v3813_v1 = vmul.f32 %v11375_v49, %v3748_v26  ;;  %v4190_v44 = vmul.f32 %v9680_v45, %v9680_v45  ;;  %v3875_v8 = vadd.f32 %v3811_v57, %v3682_v25  ;;  %v4003_v24 = vmul.f32 %v11386_v54, %v3938_v18  ;;  %v3942_v18 = vld [vmem:[#allocation2 + $0x352] sm:$0xff] }
 0x575   : > { %v4127_v47 = vadd.f32 %v4126_v60, %v9752_v55  ;;  %v4252_v41 = vadd.f32 %v4251_v11, %v4189_v52  ;;  %v9769_v3 = vadd.f32 %v4002_v39, %v3873_v48  ;;  %v3685_v14 = vadd.f32 %v9498_v40, %v11500_v31 }
 0x576   : > { %v3814_v23 = vmul.f32 %v11375_v49, %v3749_v59  ;;  %v4191_v26 = vmul.f32 %v9689_v10, %v9689_v10  ;;  %v3876_v45 = vadd.f32 %v3812_v33, %v3683_v27  ;;  %v4004_v25 = vmul.f32 %v11386_v54, %v3939_v58 }
 0x577   : > { %v4128_v56 = vadd.f32 %v4127_v47, %v9761_v13  ;;  %v4253_v60 = vadd.f32 %v4252_v41, %v4190_v44  ;;  %v9778_v57 = vadd.f32 %v4003_v24, %v3874_v36  ;;  %v3877_v52 = vadd.f32 %v3813_v1, %v3684_v12 }
 0x578   : > { %v4192_v11 = vmul.f32 %v9698_v15, %v9698_v15  ;;  %v4005_v49 = vmul.f32 %v11386_v54, %v3940_v7  ;;  %v4006_v59 = vmul.f32 %v11386_v54, %v3941_v35  ;;  %v9785_v39 = vadd.f32 %v4004_v25, %v3875_v8 }
 0x579   : > { %v4129_v48 = vadd.f32 %v4128_v56, %v9769_v3  ;;  %v4254_v40 = vadd.f32 %v4253_v60, %v4191_v26  ;;  %v4193_v36 = vmul.f32 %v9707_v5, %v9707_v5  ;;  %v3878_v33 = vadd.f32 %v3814_v23, %v3685_v14 }
 0x57a   : > { %v4007_v58 = vmul.f32 %v11386_v54, %v3942_v18  ;;  %v9791_v12 = vadd.f32 %v4005_v49, %v3876_v45  ;;  %v4194_v44 = vmul.f32 %v9716_v46, %v9716_v46  ;;  %v9796_v24 = vadd.f32 %v4006_v59, %v3877_v52 }
 0x57b   : > { %v4130_v27 = vadd.f32 %v4129_v48, %v9778_v57  ;;  %v4255_v47 = vadd.f32 %v4254_v40, %v4192_v11  ;;  %v4195_v56 = vmul.f32 %v9725_v34, %v9725_v34  ;;  %v4196_v45 = vmul.f32 %v9734_v37, %v9734_v37 }
 0x57c   : > { %v9801_v31 = vadd.f32 %v4007_v58, %v3878_v33  ;;  %v4197_v7 = vmul.f32 %v9743_v63, %v9743_v63  ;;  %v4198_v25 = vmul.f32 %v9752_v55, %v9752_v55  ;;  %v4199_v18 = vmul.f32 %v9761_v13, %v9761_v13 }
 0x57d   : > { %v4131_v1 = vadd.f32 %v4130_v27, %v9785_v39  ;;  %v4256_v41 = vadd.f32 %v4255_v47, %v4193_v36  ;;  %v4200_v40 = vmul.f32 %v9769_v3, %v9769_v3  ;;  %v4201_v59 = vmul.f32 %v9778_v57, %v9778_v57 }
 0x57e   : > { %v4202_v47 = vmul.f32 %v9785_v39, %v9785_v39  ;;  %v4203_v58 = vmul.f32 %v9791_v12, %v9791_v12 }
 0x57f   : > { %v4132_v8 = vadd.f32 %v4131_v1, %v9791_v12  ;;  %v4257_v35 = vadd.f32 %v4256_v41, %v4194_v44  ;;  %v4204_v41 = vmul.f32 %v9796_v24, %v9796_v24 }
 0x581   : > { %v4133_v54 = vadd.f32 %v4132_v8, %v9796_v24  ;;  %v4258_v14 = vadd.f32 %v4257_v35, %v4195_v56  ;;  %v4205_v56 = vmul.f32 %v9801_v31, %v9801_v31 }
 0x583   : > { %v4134_v23 = vadd.f32 %v4133_v54, %v9801_v31  ;;  %v4259_v26 = vadd.f32 %v4258_v14, %v4196_v45 }
 0x585   : > { %v4135_v60 = vrot.slane %v4134_v23, 4  ;;  %v4260_v48 = vadd.f32 %v4259_v26, %v4197_v7 }
 0x587   : > { %v4261_v52 = vadd.f32 %v4260_v48, %v4198_v25  ;;  %v4136_v11 = vadd.f32 %v4135_v60, %v4134_v23  ;;  %v11501_v60 = vld [vmem:[#allocation24_spill] sm:$0xff] }
 0x589   : > { %v4262_v49 = vadd.f32 %v4261_v52, %v4199_v18  ;;  %v4137_v36 = vrot.slane %v4136_v11, 2 }
 0x58b   : > { %v4263_v27 = vadd.f32 %v4262_v49, %v4200_v40  ;;  %v4138_v44 = vadd.f32 %v4137_v36, %v4136_v11 }
 0x58d   : > { %v4264_v33 = vadd.f32 %v4263_v27, %v4201_v59  ;;  %v4139_v54 = vrot.slane %v4138_v44, 1 }
 0x58f   : > { %v4265_v1 = vadd.f32 %v4264_v33, %v4202_v47  ;;  %v4140_v23 = vadd.f32 %v4139_v54, %v4138_v44 }
 0x591   : > { %v4266_v8 = vadd.f32 %v4265_v1, %v4203_v58  ;;  %v4141_v25 = vmul.f32 %v4140_v23, %v11501_v60  ;;  %v4276_v1 = vld [vmem:[%s6955_s22 + $0x2] sm:$0x1] }
 0x593   : > { %v4267_v35 = vadd.f32 %v4266_v8, %v4204_v41  ;;  %v4277_v11 = vmul.f32 %v4141_v25, %v4141_v25 }
 0x595   : > { %v4268_v45 = vadd.f32 %v4267_v35, %v4205_v56  ;;  %v4291_v56 = vld [vmem:[%s6955_s22 + $0x3] sm:$0x1] }
 0x597   : > { %v4269_v14 = vrot.slane %v4268_v45, 4 }
 0x599   : > { %v4270_v7 = vadd.f32 %v4269_v14, %v4268_v45 }
 0x59b   : > { %v4271_v26 = vrot.slane %v4270_v7, 2 }
 0x59d   : > { %v4272_v48 = vadd.f32 %v4271_v26, %v4270_v7 }
 0x59f   : > { %v4273_v18 = vrot.slane %v4272_v48, 1 }
 0x5a1   : > { %v4274_v52 = vadd.f32 %v4273_v18, %v4272_v48 }
 0x5a3   : > { %v4275_v40 = vmul.f32 %v4274_v52, %v11501_v60 }
 0x5a5   : > { %v4278_v49 = vsub.f32 %v4275_v40, %v4277_v11 }
 0x5a7   : > { %v4279_v59 = vadd.f32 1e-05, %v4278_v49 }
 0x5a9   : > { %4742 = vrsqrt.f32 %v4279_v59  ;;  %vm4286_vm5 = vweird.f32 %v4279_v59 }
 0x5af   : > { %v4743_v27 = vpop.eup %4742 }
 0x5b0   : > { %v4281_v36 = vmul.f32 %v4743_v27, %v4279_v59  ;;  %vm4287_vm4 = vweird.f32 %v4743_v27 }
 0x5b1   : > { %vm4288_vm6 = vmor %vm4286_vm5, %vm4287_vm4 }
 0x5b2   : > { %v4282_v47 = vmul.f32 %v4743_v27, %v4281_v36 }
 0x5b4   : > { %v4283_v33 = vmul.f32 0.5, %v4282_v47  ;;  %v4805_v47 = vld [vmem:[#allocation2 + $0x309] sm:$0xff] }
 0x5b6   : > { %v4284_v58 = vsub.f32 1.5, %v4283_v33 }
 0x5b8   : > { %v4285_v44 = vmul.f32 %v4743_v27, %v4284_v58  ;;  %v4806_v58 = vld [vmem:[#allocation2 + $0x319] sm:$0xff] }
 0x5ba   : > { %v4289_v41 = vsel %vm4288_vm6, %v4743_v27, %v4285_v44  ;;  %v4804_v27 = vld [vmem:[#allocation2 + $0x2e9] sm:$0xff]  ;;  %v4807_v44 = vld [vmem:[#allocation2 + $0x321] sm:$0xff] }
 0x5bb   : > { %v4290_v8 = vmul.f32 %v4289_v41, %v4276_v1 }
 0x5bd   : > { %v4292_v35 = vmul.f32 %v4290_v8, %v4141_v25  ;;  %v9829_v54 = vperm.slane %v4290_v8, 0  ;;  %v4808_v8 = vld [vmem:[#allocation2 + $0x331] sm:$0xff] }
 0x5bf   : > { %v4293_v45 = vsub.f32 %v4291_v56, %v4292_v35  ;;  %v4351_v14 = vmul.f32 %v9829_v54, %v9752_v55  ;;  %v4354_v23 = vmul.f32 %v9829_v54, %v9778_v57  ;;  %v4355_v7 = vmul.f32 %v9829_v54, %v9785_v39  ;;  %v11502_v57 = vld [vmem:[#allocation11_spill] sm:$0xff]  ;;  %v11503_v39 = vld [vmem:[#allocation129_spill] sm:$0xff] }
 0x5c0   : > { %v4356_v26 = vmul.f32 %v9829_v54, %v9791_v12  ;;  %v4357_v60 = vmul.f32 %v9829_v54, %v9796_v24  ;;  %v4358_v25 = vmul.f32 %v9829_v54, %v9801_v31  ;;  %v9845_v48 = vmul.f32 %v9829_v54, %v9188_v53  ;;  %v4809_v35 = vld [vmem:[#allocation2 + $0x339] sm:$0xff] }
 0x5c1   : > { %v9848_v55 = vperm.slane %v4293_v45, 0  ;;  %v9852_v18 = vmul.f32 %v9829_v54, %v11502_v57  ;;  %v9856_v12 = vmul.f32 %v9829_v54, %v11503_v39  ;;  %v9860_v24 = vmul.f32 %v9829_v54, %v9234_v30  ;;  %v11509_v57 = vld [vmem:[#allocation138_spill] sm:$0xff] }
 0x5c2   : > { %v9864_v31 = vmul.f32 %v9829_v54, %v9247_v2  ;;  %v9868_v53 = vmul.f32 %v9829_v54, %v9260_v19  ;;  %v9872_v52 = vmul.f32 %v9829_v54, %v9273_v29  ;;  %v9876_v11 = vmul.f32 %v9829_v54, %v9286_v22 }
 0x5c3   : > { %v4416_v40 = vadd.f32 %v9848_v55, %v4351_v14  ;;  %v4419_v30 = vadd.f32 %v9848_v55, %v4354_v23  ;;  %v4420_v49 = vadd.f32 %v9848_v55, %v4355_v7  ;;  %v4421_v2 = vadd.f32 %v9848_v55, %v4356_v26  ;;  %v11504_v14 = vld [vmem:[#allocation97_spill] sm:$0xff]  ;;  %v11505_v23 = vld [vmem:[#allocation16_spill] sm:$0xff] }
 0x5c4   : > { %v4422_v59 = vadd.f32 %v9848_v55, %v4357_v60  ;;  %v4423_v19 = vadd.f32 %v9848_v55, %v4358_v25  ;;  %v9886_v29 = vmul.f32 %v9829_v54, %v9299_v9  ;;  %v9890_v22 = vmul.f32 %v9829_v54, %v9312_v61  ;;  %v11506_v7 = vld [vmem:[#allocation112_spill] sm:$0xff]  ;;  %v11507_v60 = vld [vmem:[#allocation39_spill] sm:$0xff] }
 0x5c5   : > { %v4480_v36 = vmax.f32 %v4804_v27, %v4416_v40  ;;  %v4483_v33 = vmax.f32 %v4805_v47, %v4419_v30  ;;  %v4484_v1 = vmax.f32 %v4806_v58, %v4420_v49  ;;  %v4485_v41 = vmax.f32 %v4807_v44, %v4421_v2  ;;  %v11511_v40 = vld [vmem:[#allocation37_spill] sm:$0xff]  ;;  %v11513_v49 = vld [vmem:[#allocation118_spill] sm:$0xff]  ;;  %v11515_v27 = vld [vmem:[#allocation60_spill] sm:$0xff] }
 0x5c6   : > { %v4486_v56 = vmax.f32 %v4808_v8, %v4422_v59  ;;  %v4487_v45 = vmax.f32 %v4809_v35, %v4423_v19  ;;  %v9894_v9 = vmul.f32 %v9829_v54, %v11504_v14  ;;  %v9898_v61 = vmul.f32 %v9829_v54, %v11505_v23  ;;  %v11514_v59 = vld [vmem:[#allocation47_spill] sm:$0xff]  ;;  %v11516_v47 = vld [vmem:[#allocation128_spill] sm:$0xff]  ;;  %v11517_v44 = vld [vmem:[#allocation130_spill] sm:$0xff] }
 0x5c7   : > { %4544 = vst [vmem:[%s9902_s30 + $0x1c0] sm:$0xff] %v4480_v36  ;;  %v9907_v26 = vmul.f32 %v9829_v54, %v11506_v7  ;;  %v9911_v25 = vmul.f32 %v9829_v54, %v11507_v60  ;;  %v9915_v39 = vmul.f32 %v9829_v54, %v11509_v57  ;;  %v9919_v30 = vmul.f32 %v9829_v54, %v11511_v40  ;;  %v11518_v35 = vld [vmem:[#allocation126_spill] sm:$0xff]  ;;  %v11519_v14 = vld [vmem:[#allocation56_spill] sm:$0xff]  ;;  %v11521_v57 = vld [vmem:[#allocation25_spill] sm:$0xff] }
 0x5c8   : > { %4547 = vst [vmem:[%s9902_s30 + $0x1d8] sm:$0xff] %v4483_v33  ;;  %v4311_v2 = vmul.f32 %v9829_v54, %v11513_v49  ;;  %v4312_v19 = vmul.f32 %v9829_v54, %v11514_v59  ;;  %v4313_v36 = vmul.f32 %v9829_v54, %v11515_v27  ;;  %v4314_v58 = vmul.f32 %v9829_v54, %v11516_v47  ;;  %v11520_v7 = vld [vmem:[#allocation70_spill] sm:$0xff]  ;;  %v11522_v49 = vld [vmem:[#allocation99_spill] sm:$0xff] }
 0x5c9   : > { %11508 = vst [vmem:[#allocation42_spill] sm:$0xff] %v9911_v25  ;;  %v4315_v8 = vmul.f32 %v9829_v54, %v11517_v44  ;;  %v4316_v33 = vmul.f32 %v9829_v54, %v11518_v35  ;;  %v4317_v23 = vmul.f32 %v9829_v54, %v11519_v14  ;;  %v4318_v60 = vmul.f32 %v9829_v54, %v11520_v7  ;;  %v11523_v47 = vld [vmem:[#allocation23_spill] sm:$0xff]  ;;  %v11524_v35 = vld [vmem:[#allocation76_spill] sm:$0xff] }
 0x5ca   : > { %11510 = vst [vmem:[#allocation134_spill] sm:$0xff] %v9915_v39  ;;  %v4319_v40 = vmul.f32 %v9829_v54, %v11521_v57  ;;  %v4320_v59 = vmul.f32 %v9829_v54, %v11522_v49  ;;  %v4322_v27 = vmul.f32 %v9829_v54, %v9482_v38  ;;  %v4323_v44 = vmul.f32 %v9829_v54, %v11523_v47  ;;  %v11526_v49 = vld [vmem:[#allocation68_spill] sm:$0xff]  ;;  %v11530_v25 = vld [vmem:[#allocation131_spill] sm:$0xff] }
 0x5cb   : > { %11512 = vst [vmem:[#allocation38_spill] sm:$0xff] %v9919_v30  ;;  %v4324_v14 = vmul.f32 %v9829_v54, %v11524_v35  ;;  %v4326_v57 = vmul.f32 %v9829_v54, %v9527_v62  ;;  %v4328_v38 = vmul.f32 %v9829_v54, %v9545_v42  ;;  %v4330_v47 = vmul.f32 %v9829_v54, %v9563_v0  ;;  %v11528_v35 = vld [vmem:[#allocation62_spill] sm:$0xff]  ;;  %v11529_v62 = vld [vmem:[#allocation121_spill] sm:$0xff] }
 0x5cc   : > { %4548 = vst [vmem:[%s9902_s30 + $0x1e0] sm:$0xff] %v4484_v1  ;;  %v4321_v1 = vmul.f32 %v9829_v54, %v9471_v17  ;;  %v4327_v17 = vmul.f32 %v9829_v54, %v11526_v49  ;;  %v4331_v39 = vmul.f32 %v9829_v54, %v11528_v35  ;;  %v4334_v49 = vmul.f32 %v9829_v54, %v9599_v43 }
 0x5cd   : > { %4549 = vst [vmem:[%s9902_s30 + $0x1e8] sm:$0xff] %v4485_v41  ;;  %v11525_v41 = vld [vmem:[#allocation45_spill] sm:$0xff]  ;;  %v4335_v42 = vmul.f32 %v9829_v54, %v9608_v51  ;;  %v4337_v0 = vmul.f32 %v9829_v54, %v9626_v6  ;;  %v4338_v35 = vmul.f32 %v9829_v54, %v9635_v4  ;;  %v4341_v43 = vmul.f32 %v9829_v54, %v9662_v16 }
 0x5ce   : > { %4550 = vst [vmem:[%s9902_s30 + $0x1f0] sm:$0xff] %v4486_v56  ;;  %v4325_v7 = vmul.f32 %v9829_v54, %v11525_v41  ;;  %v11527_v56 = vld [vmem:[#allocation44_spill] sm:$0xff]  ;;  %v4332_v41 = vmul.f32 %v9829_v54, %v9581_v32  ;;  %v4339_v32 = vmul.f32 %v9829_v54, %v9644_v50  ;;  %v4342_v51 = vmul.f32 %v9829_v54, %v9671_v28 }
 0x5cf   : > { %4551 = vst [vmem:[%s9902_s30 + $0x1f8] sm:$0xff] %v4487_v45  ;;  %v4329_v30 = vmul.f32 %v9829_v54, %v11527_v56  ;;  %v4333_v45 = vmul.f32 %v9829_v54, %v11529_v62  ;;  %v4336_v56 = vmul.f32 %v9829_v54, %v9617_v20  ;;  %v4340_v62 = vmul.f32 %v9829_v54, %v9653_v21 }
 0x5d0   : > { %v4343_v20 = vmul.f32 %v9829_v54, %v11530_v25  ;;  %v4344_v6 = vmul.f32 %v9829_v54, %v9689_v10  ;;  %v4345_v4 = vmul.f32 %v9829_v54, %v9698_v15  ;;  %v4346_v50 = vmul.f32 %v9829_v54, %v9707_v5 }
 0x5d1   : > { %v4347_v21 = vmul.f32 %v9829_v54, %v9716_v46  ;;  %v4348_v16 = vmul.f32 %v9829_v54, %v9725_v34  ;;  %v4349_v28 = vmul.f32 %v9829_v54, %v9734_v37  ;;  %v4350_v25 = vmul.f32 %v9829_v54, %v9743_v63 }
 0x5d2   : > { %v4352_v10 = vmul.f32 %v9829_v54, %v9761_v13  ;;  %v4353_v15 = vmul.f32 %v9829_v54, %v9769_v3  ;;  %v10012_v5 = vadd.f32 %v9848_v55, %v9845_v48  ;;  %v10016_v46 = vadd.f32 %v9848_v55, %v9852_v18 }
 0x5d3   : > { %v10020_v34 = vadd.f32 %v9848_v55, %v9856_v12  ;;  %v10024_v37 = vadd.f32 %v9848_v55, %v9860_v24  ;;  %v10028_v63 = vadd.f32 %v9848_v55, %v9864_v31  ;;  %v10032_v13 = vadd.f32 %v9848_v55, %v9868_v53  ;;  %v11532_v53 = vld [vmem:[#allocation42_spill] sm:$0xff] }
 0x5d4   : > { %v10036_v3 = vadd.f32 %v9848_v55, %v9872_v52  ;;  %v10040_v54 = vadd.f32 %v9848_v55, %v9876_v11  ;;  %v10044_v48 = vadd.f32 %v9848_v55, %v9886_v29  ;;  %v10048_v18 = vadd.f32 %v9848_v55, %v9890_v22  ;;  %v11534_v11 = vld [vmem:[#allocation134_spill] sm:$0xff] }
 0x5d5   : > { %v10052_v12 = vadd.f32 %v9848_v55, %v9894_v9  ;;  %v10056_v24 = vadd.f32 %v9848_v55, %v9898_v61  ;;  %v10060_v31 = vadd.f32 %v9848_v55, %v9907_v26  ;;  %v10064_v52 = vadd.f32 %v9848_v55, %v11532_v53  ;;  %v11535_v22 = vld [vmem:[#allocation38_spill] sm:$0xff] }
 0x5d6   : > { %v10068_v29 = vadd.f32 %v9848_v55, %v11534_v11  ;;  %v10072_v9 = vadd.f32 %v9848_v55, %v11535_v22  ;;  %v10078_v61 = vadd.f32 %v9848_v55, %v4312_v19  ;;  %v10081_v26 = vadd.f32 %v9848_v55, %v4313_v36 }
 0x5d7   : > { %11531 = vst [vmem:[#allocation77_spill] sm:$0xff] %v10052_v12  ;;  %v10075_v12 = vadd.f32 %v9848_v55, %v4311_v2  ;;  %v10084_v53 = vadd.f32 %v9848_v55, %v4314_v58  ;;  %v10090_v11 = vadd.f32 %v9848_v55, %v4316_v33  ;;  %v10093_v22 = vadd.f32 %v9848_v55, %v4317_v23 }
 0x5d8   : > { %11533 = vst [vmem:[#allocation36_spill] sm:$0xff] %v10064_v52  ;;  %v10087_v52 = vadd.f32 %v9848_v55, %v4315_v8  ;;  %v10096_v2 = vadd.f32 %v9848_v55, %v4318_v60  ;;  %v10099_v19 = vadd.f32 %v9848_v55, %v4319_v40  ;;  %v10102_v36 = vadd.f32 %v9848_v55, %v4320_v59 }
 0x5d9   : > { %v10105_v58 = vadd.f32 %v9848_v55, %v4321_v1  ;;  %v10108_v8 = vadd.f32 %v9848_v55, %v4322_v27  ;;  %v10111_v33 = vadd.f32 %v9848_v55, %v4323_v44  ;;  %v10114_v23 = vadd.f32 %v9848_v55, %v4324_v14 }
 0x5da   : > { %v10117_v60 = vadd.f32 %v9848_v55, %v4325_v7  ;;  %v10120_v40 = vadd.f32 %v9848_v55, %v4326_v57  ;;  %v10123_v59 = vadd.f32 %v9848_v55, %v4327_v17  ;;  %v10126_v1 = vadd.f32 %v9848_v55, %v4328_v38 }
 0x5db   : > { %v10129_v27 = vadd.f32 %v9848_v55, %v4329_v30  ;;  %v10132_v44 = vadd.f32 %v9848_v55, %v4330_v47  ;;  %v10135_v14 = vadd.f32 %v9848_v55, %v4331_v39  ;;  %v10138_v7 = vadd.f32 %v9848_v55, %v4332_v41 }
 0x5dc   : > { %v10141_v57 = vadd.f32 %v9848_v55, %v4333_v45  ;;  %v10144_v17 = vadd.f32 %v9848_v55, %v4334_v49  ;;  %v10147_v38 = vadd.f32 %v9848_v55, %v4335_v42  ;;  %v10150_v30 = vadd.f32 %v9848_v55, %v4336_v56 }
 0x5dd   : > { %v10153_v47 = vadd.f32 %v9848_v55, %v4337_v0  ;;  %v10156_v39 = vadd.f32 %v9848_v55, %v4338_v35  ;;  %v10159_v41 = vadd.f32 %v9848_v55, %v4339_v32  ;;  %v10162_v45 = vadd.f32 %v9848_v55, %v4340_v62 }
 0x5de   : > { %v10165_v49 = vadd.f32 %v9848_v55, %v4341_v43  ;;  %v10168_v42 = vadd.f32 %v9848_v55, %v4342_v51  ;;  %v10171_v56 = vadd.f32 %v9848_v55, %v4343_v20  ;;  %v10174_v0 = vadd.f32 %v9848_v55, %v4344_v6 }
 0x5df   : > { %v10177_v35 = vadd.f32 %v9848_v55, %v4345_v4  ;;  %v10180_v32 = vadd.f32 %v9848_v55, %v4346_v50  ;;  %v10183_v62 = vadd.f32 %v9848_v55, %v4347_v21  ;;  %v10186_v43 = vadd.f32 %v9848_v55, %v4348_v16  ;;  %v4810_v50 = vld [vmem:[#allocation2 + $0x19] sm:$0xff] }
 0x5e0   : > { %v10189_v51 = vadd.f32 %v9848_v55, %v4349_v28  ;;  %v10192_v20 = vadd.f32 %v9848_v55, %v4350_v25  ;;  %v10195_v6 = vadd.f32 %v9848_v55, %v4352_v10  ;;  %v10198_v4 = vadd.f32 %v9848_v55, %v4353_v15  ;;  %v4812_v28 = vld [vmem:[#allocation2 + $0x31] sm:$0xff]  ;;  %v4813_v25 = vld [vmem:[#allocation2 + $0x39] sm:$0xff]  ;;  %v4814_v10 = vld [vmem:[#allocation2 + $0x49] sm:$0xff] }
 0x5e1   : > { %11536 = vst [vmem:[#allocation132_spill] sm:$0xff] %v10183_v62  ;;  %v4424_v21 = vmax.f32 %v4810_v50, %v10012_v5  ;;  %v4811_v62 = vld [vmem:[#allocation2 + $0x21] sm:$0xff]  ;;  %v4815_v55 = vld [vmem:[#allocation2 + $0x51] sm:$0xff] }
 0x5e2   : > { %11537 = vst [vmem:[#allocation113_spill] sm:$0xff] %v10189_v51  ;;  %v4425_v16 = vmax.f32 %v4811_v62, %v10016_v46  ;;  %v4426_v51 = vmax.f32 %v4812_v28, %v10020_v34  ;;  %v4429_v15 = vmax.f32 %v4815_v55, %v10032_v13  ;;  %v4816_v5 = vld [vmem:[#allocation2 + $0x61] sm:$0xff]  ;;  %v4817_v34 = vld [vmem:[#allocation2 + $0x69] sm:$0xff] }
 0x5e3   : > { %11538 = vst [vmem:[#allocation10_spill] sm:$0xff] %v10192_v20  ;;  %v4427_v20 = vmax.f32 %v4813_v25, %v10024_v37  ;;  %v4430_v46 = vmax.f32 %v4816_v5, %v10036_v3  ;;  %v4431_v62 = vmax.f32 %v4817_v34, %v10040_v54  ;;  %v4818_v37 = vld [vmem:[#allocation2 + $0x79] sm:$0xff]  ;;  %v4819_v50 = vld [vmem:[#allocation2 + $0x81] sm:$0xff]  ;;  %v4825_v55 = vld [vmem:[#allocation2 + $0xc9] sm:$0xff] }
 0x5e4   : > { %11539 = vst [vmem:[#allocation54_spill] sm:$0xff] %v10195_v6  ;;  %v4428_v6 = vmax.f32 %v4814_v10, %v10028_v63  ;;  %v4432_v63 = vmax.f32 %v4818_v37, %v10044_v48  ;;  %v4433_v13 = vmax.f32 %v4819_v50, %v10048_v18  ;;  %v11541_v28 = vld [vmem:[#allocation36_spill] sm:$0xff]  ;;  %v4828_v34 = vld [vmem:[#allocation2 + $0xf1] sm:$0xff]  ;;  %v4830_v37 = vld [vmem:[#allocation2 + $0x109] sm:$0xff] }
 0x5e5   : > { %4488 = vst [vmem:[%s9902_s30] sm:$0xff] %v4424_v21  ;;  %v4820_v21 = vld [vmem:[#allocation2 + $0x91] sm:$0xff]  ;;  %v4824_v25 = vld [vmem:[#allocation2 + $0xc1] sm:$0xff] }
 0x5e6   : > { %4489 = vst [vmem:[%s9902_s30 + $0x8] sm:$0xff] %v4425_v16  ;;  %v11540_v16 = vld [vmem:[#allocation77_spill] sm:$0xff]  ;;  %v4438_v10 = vmax.f32 %v4824_v25, %v10068_v29  ;;  %v4442_v29 = vmax.f32 %v4828_v34, %v10081_v26 }
 0x5e7   : > { %4490 = vst [vmem:[%s9902_s30 + $0x10] sm:$0xff] %v4426_v51  ;;  %v4434_v3 = vmax.f32 %v4820_v21, %v11540_v16  ;;  %v4821_v51 = vld [vmem:[#allocation2 + $0x99] sm:$0xff]  ;;  %v4827_v5 = vld [vmem:[#allocation2 + $0xe1] sm:$0xff] }
 0x5e8   : > { %4491 = vst [vmem:[%s9902_s30 + $0x18] sm:$0xff] %v4427_v20  ;;  %v4435_v54 = vmax.f32 %v4821_v51, %v10056_v24  ;;  %v4822_v20 = vld [vmem:[#allocation2 + $0xa9] sm:$0xff]  ;;  %v4439_v24 = vmax.f32 %v4825_v55, %v10072_v9  ;;  %v4832_v50 = vld [vmem:[#allocation2 + $0x121] sm:$0xff]  ;;  %v4834_v21 = vld [vmem:[#allocation2 + $0x139] sm:$0xff] }
 0x5e9   : > { %4492 = vst [vmem:[%s9902_s30 + $0x20] sm:$0xff] %v4428_v6  ;;  %v4436_v48 = vmax.f32 %v4822_v20, %v10060_v31  ;;  %v4823_v6 = vld [vmem:[#allocation2 + $0xb1] sm:$0xff]  ;;  %v4446_v26 = vmax.f32 %v4832_v50, %v10093_v22  ;;  %v4835_v16 = vld [vmem:[#allocation2 + $0x141] sm:$0xff]  ;;  %v4837_v51 = vld [vmem:[#allocation2 + $0x159] sm:$0xff] }
 0x5ea   : > { %4493 = vst [vmem:[%s9902_s30 + $0x28] sm:$0xff] %v4429_v15  ;;  %v4437_v18 = vmax.f32 %v4823_v6, %v11541_v28  ;;  %v4826_v15 = vld [vmem:[#allocation2 + $0xd9] sm:$0xff]  ;;  %v4839_v20 = vld [vmem:[#allocation2 + $0x171] sm:$0xff]  ;;  %v4841_v6 = vld [vmem:[#allocation2 + $0x189] sm:$0xff] }
 0x5eb   : > { %4494 = vst [vmem:[%s9902_s30 + $0x30] sm:$0xff] %v4430_v46  ;;  %v4440_v31 = vmax.f32 %v4826_v15, %v10075_v12  ;;  %v4441_v46 = vmax.f32 %v4827_v5, %v10078_v61  ;;  %v4444_v12 = vmax.f32 %v4830_v37, %v10087_v52  ;;  %v4448_v52 = vmax.f32 %v4834_v21, %v10099_v19  ;;  %v4842_v28 = vld [vmem:[#allocation2 + $0x1c9] sm:$0xff]  ;;  %v4844_v25 = vld [vmem:[#allocation2 + $0x1e1] sm:$0xff]  ;;  %v4846_v55 = vld [vmem:[#allocation2 + $0x1f9] sm:$0xff] }
 0x5ec   : > { %4495 = vst [vmem:[%s9902_s30 + $0x38] sm:$0xff] %v4431_v62  ;;  %v4829_v62 = vld [vmem:[#allocation2 + $0xf9] sm:$0xff]  ;;  %v4848_v15 = vld [vmem:[#allocation2 + $0x211] sm:$0xff]  ;;  %v4850_v5 = vld [vmem:[#allocation2 + $0x229] sm:$0xff] }
 0x5ed   : > { %4496 = vst [vmem:[%s9902_s30 + $0x40] sm:$0xff] %v4432_v63  ;;  %v4443_v9 = vmax.f32 %v4829_v62, %v10084_v53  ;;  %v4831_v63 = vld [vmem:[#allocation2 + $0x111] sm:$0xff]  ;;  %v4852_v34 = vld [vmem:[#allocation2 + $0x241] sm:$0xff]  ;;  %v4854_v62 = vld [vmem:[#allocation2 + $0x259] sm:$0xff] }
 0x5ee   : > { %4497 = vst [vmem:[%s9902_s30 + $0x48] sm:$0xff] %v4433_v13  ;;  %v4445_v61 = vmax.f32 %v4831_v63, %v10090_v11  ;;  %v4833_v13 = vld [vmem:[#allocation2 + $0x129] sm:$0xff]  ;;  %v4449_v11 = vmax.f32 %v4835_v16, %v10102_v36  ;;  %v4453_v36 = vmax.f32 %v4839_v20, %v10114_v23  ;;  %v4856_v37 = vld [vmem:[#allocation2 + $0x271] sm:$0xff]  ;;  %v4860_v50 = vld [vmem:[#allocation2 + $0x2a1] sm:$0xff] }
 0x5ef   : > { %4498 = vst [vmem:[%s9902_s30 + $0x50] sm:$0xff] %v4434_v3  ;;  %v4447_v53 = vmax.f32 %v4833_v13, %v10096_v2  ;;  %v4836_v3 = vld [vmem:[#allocation2 + $0x151] sm:$0xff]  ;;  %v4451_v2 = vmax.f32 %v4837_v51, %v10108_v8  ;;  %v4455_v8 = vmax.f32 %v4841_v6, %v10120_v40  ;;  %v4858_v63 = vld [vmem:[#allocation2 + $0x289] sm:$0xff]  ;;  %v4862_v13 = vld [vmem:[#allocation2 + $0x2b9] sm:$0xff] }
 0x5f0   : > { %4499 = vst [vmem:[%s9902_s30 + $0x58] sm:$0xff] %v4435_v54  ;;  %v4450_v22 = vmax.f32 %v4836_v3, %v10105_v58  ;;  %v4838_v54 = vld [vmem:[#allocation2 + $0x169] sm:$0xff] }
 0x5f1   : > { %4500 = vst [vmem:[%s9902_s30 + $0x60] sm:$0xff] %v4436_v48  ;;  %v4452_v19 = vmax.f32 %v4838_v54, %v10111_v33  ;;  %v4840_v48 = vld [vmem:[#allocation2 + $0x181] sm:$0xff]  ;;  %v4456_v33 = vmax.f32 %v4842_v28, %v10123_v59  ;;  %v4460_v59 = vmax.f32 %v4846_v55, %v10135_v14  ;;  %v4464_v14 = vmax.f32 %v4850_v5, %v10147_v38  ;;  %v11545_v51 = vld [vmem:[#allocation54_spill] sm:$0xff] }
 0x5f2   : > { %4501 = vst [vmem:[%s9902_s30 + $0x68] sm:$0xff] %v4437_v18  ;;  %v4454_v58 = vmax.f32 %v4840_v48, %v10117_v60  ;;  %v4843_v18 = vld [vmem:[#allocation2 + $0x1d1] sm:$0xff]  ;;  %v4458_v60 = vmax.f32 %v4844_v25, %v10129_v27  ;;  %v4462_v27 = vmax.f32 %v4848_v15, %v10141_v57  ;;  %v4466_v57 = vmax.f32 %v4852_v34, %v10153_v47 }
 0x5f3   : > { %4502 = vst [vmem:[%s9902_s30 + $0x70] sm:$0xff] %v4438_v10  ;;  %v4457_v23 = vmax.f32 %v4843_v18, %v10126_v1  ;;  %v4845_v10 = vld [vmem:[#allocation2 + $0x1e9] sm:$0xff]  ;;  %v4468_v38 = vmax.f32 %v4854_v62, %v10159_v41  ;;  %v4470_v47 = vmax.f32 %v4856_v37, %v10165_v49  ;;  %v4472_v41 = vmax.f32 %v4858_v63, %v10171_v56  ;;  %v11542_v56 = vld [vmem:[#allocation132_spill] sm:$0xff] }
 0x5f4   : > { %4503 = vst [vmem:[%s9902_s30 + $0x78] sm:$0xff] %v4439_v24  ;;  %v4459_v40 = vmax.f32 %v4845_v10, %v10132_v44  ;;  %v4847_v24 = vld [vmem:[#allocation2 + $0x201] sm:$0xff]  ;;  %v4474_v49 = vmax.f32 %v4860_v50, %v10177_v35  ;;  %v4864_v35 = vld [vmem:[#allocation2 + $0x2d1] sm:$0xff] }
 0x5f5   : > { %4504 = vst [vmem:[%s9902_s30 + $0x80] sm:$0xff] %v4440_v31  ;;  %v4461_v1 = vmax.f32 %v4847_v24, %v10138_v7  ;;  %v4849_v31 = vld [vmem:[#allocation2 + $0x219] sm:$0xff] }
 0x5f6   : > { %4505 = vst [vmem:[%s9902_s30 + $0x88] sm:$0xff] %v4441_v46  ;;  %v4463_v44 = vmax.f32 %v4849_v31, %v10144_v17  ;;  %v4851_v46 = vld [vmem:[#allocation2 + $0x231] sm:$0xff] }
 0x5f7   : > { %4506 = vst [vmem:[%s9902_s30 + $0x90] sm:$0xff] %v4442_v29  ;;  %v4465_v7 = vmax.f32 %v4851_v46, %v10150_v30  ;;  %v4853_v29 = vld [vmem:[#allocation2 + $0x249] sm:$0xff] }
 0x5f8   : > { %4507 = vst [vmem:[%s9902_s30 + $0x98] sm:$0xff] %v4443_v9  ;;  %v4467_v17 = vmax.f32 %v4853_v29, %v10156_v39  ;;  %v4855_v9 = vld [vmem:[#allocation2 + $0x261] sm:$0xff] }
 0x5f9   : > { %4508 = vst [vmem:[%s9902_s30 + $0xa0] sm:$0xff] %v4444_v12  ;;  %v4469_v30 = vmax.f32 %v4855_v9, %v10162_v45  ;;  %v4857_v12 = vld [vmem:[#allocation2 + $0x279] sm:$0xff] }
 0x5fa   : > { %4509 = vst [vmem:[%s9902_s30 + $0xa8] sm:$0xff] %v4445_v61  ;;  %v4471_v39 = vmax.f32 %v4857_v12, %v10168_v42  ;;  %v4859_v61 = vld [vmem:[#allocation2 + $0x291] sm:$0xff] }
 0x5fb   : > { %4510 = vst [vmem:[%s9902_s30 + $0xb0] sm:$0xff] %v4446_v26  ;;  %v4473_v45 = vmax.f32 %v4859_v61, %v10174_v0  ;;  %v4861_v26 = vld [vmem:[#allocation2 + $0x2a9] sm:$0xff]  ;;  %v4863_v0 = vld [vmem:[#allocation2 + $0x2c1] sm:$0xff] }
 0x5fc   : > { %4511 = vst [vmem:[%s9902_s30 + $0xb8] sm:$0xff] %v4447_v53  ;;  %v4475_v42 = vmax.f32 %v4861_v26, %v10180_v32  ;;  %v4476_v53 = vmax.f32 %v4862_v13, %v11542_v56  ;;  %v4477_v21 = vmax.f32 %v4863_v0, %v10186_v43  ;;  %v4865_v32 = vld [vmem:[#allocation2 + $0x2d9] sm:$0xff]  ;;  %v4867_v43 = vld [vmem:[#allocation2 + $0x301] sm:$0xff] }
 0x5fd   : > { %4512 = vst [vmem:[%s9902_s30 + $0xc0] sm:$0xff] %v4448_v52  ;;  %v11543_v52 = vld [vmem:[#allocation113_spill] sm:$0xff]  ;;  %v4482_v54 = vmax.f32 %v4867_v43, %v10198_v4 }
 0x5fe   : > { %4513 = vst [vmem:[%s9902_s30 + $0xc8] sm:$0xff] %v4449_v11  ;;  %v4478_v16 = vmax.f32 %v4864_v35, %v11543_v52  ;;  %v11544_v11 = vld [vmem:[#allocation10_spill] sm:$0xff] }
 0x5ff   : > { %4514 = vst [vmem:[%s9902_s30 + $0xd0] sm:$0xff] %v4450_v22  ;;  %v4479_v3 = vmax.f32 %v4865_v32, %v11544_v11  ;;  %v4866_v22 = vld [vmem:[#allocation2 + $0x2f1] sm:$0xff] }
 0x600   : > { %4515 = vst [vmem:[%s9902_s30 + $0xd8] sm:$0xff] %v4451_v2  ;;  %v4481_v2 = vmax.f32 %v4866_v22, %v11545_v51 }
 0x601   : > { %4516 = vst [vmem:[%s9902_s30 + $0xe0] sm:$0xff] %v4452_v19 }
 0x602   : > { %4517 = vst [vmem:[%s9902_s30 + $0xe8] sm:$0xff] %v4453_v36 }
 0x603   : > { %4518 = vst [vmem:[%s9902_s30 + $0xf0] sm:$0xff] %v4454_v58 }
 0x604   : > { %4519 = vst [vmem:[%s9902_s30 + $0xf8] sm:$0xff] %v4455_v8 }
 0x605   : > { %4520 = vst [vmem:[%s9902_s30 + $0x100] sm:$0xff] %v4456_v33 }
 0x606   : > { %4521 = vst [vmem:[%s9902_s30 + $0x108] sm:$0xff] %v4457_v23 }
 0x607   : > { %4522 = vst [vmem:[%s9902_s30 + $0x110] sm:$0xff] %v4458_v60 }
 0x608   : > { %4523 = vst [vmem:[%s9902_s30 + $0x118] sm:$0xff] %v4459_v40 }
 0x609   : > { %4524 = vst [vmem:[%s9902_s30 + $0x120] sm:$0xff] %v4460_v59 }
 0x60a   : > { %4525 = vst [vmem:[%s9902_s30 + $0x128] sm:$0xff] %v4461_v1 }
 0x60b   : > { %4526 = vst [vmem:[%s9902_s30 + $0x130] sm:$0xff] %v4462_v27 }
 0x60c   : > { %4527 = vst [vmem:[%s9902_s30 + $0x138] sm:$0xff] %v4463_v44 }
 0x60d   : > { %4528 = vst [vmem:[%s9902_s30 + $0x140] sm:$0xff] %v4464_v14 }
 0x60e   : > { %4529 = vst [vmem:[%s9902_s30 + $0x148] sm:$0xff] %v4465_v7 }
 0x60f   : > { %4530 = vst [vmem:[%s9902_s30 + $0x150] sm:$0xff] %v4466_v57 }
 0x610   : > { %4531 = vst [vmem:[%s9902_s30 + $0x158] sm:$0xff] %v4467_v17 }
 0x611   : > { %4532 = vst [vmem:[%s9902_s30 + $0x160] sm:$0xff] %v4468_v38 }
 0x612   : > { %4533 = vst [vmem:[%s9902_s30 + $0x168] sm:$0xff] %v4469_v30 }
 0x613   : > { %4534 = vst [vmem:[%s9902_s30 + $0x170] sm:$0xff] %v4470_v47 }
 0x614   : > { %4535 = vst [vmem:[%s9902_s30 + $0x178] sm:$0xff] %v4471_v39 }
 0x615   : > { %4536 = vst [vmem:[%s9902_s30 + $0x180] sm:$0xff] %v4472_v41 }
 0x616   : > { %4537 = vst [vmem:[%s9902_s30 + $0x188] sm:$0xff] %v4473_v45 }
 0x617   : > { %4538 = vst [vmem:[%s9902_s30 + $0x190] sm:$0xff] %v4474_v49 }
 0x618   : > { %4539 = vst [vmem:[%s9902_s30 + $0x198] sm:$0xff] %v4475_v42 }
 0x619   : > { %4540 = vst [vmem:[%s9902_s30 + $0x1a0] sm:$0xff] %v4476_v53 }
 0x61a   : > { %4541 = vst [vmem:[%s9902_s30 + $0x1a8] sm:$0xff] %v4477_v21 }
 0x61b   : > { %4542 = vst [vmem:[%s9902_s30 + $0x1b0] sm:$0xff] %v4478_v16 }
 0x61c   : > { %4543 = vst [vmem:[%s9902_s30 + $0x1b8] sm:$0xff] %v4479_v3 }
 0x61d   : > { %4545 = vst [vmem:[%s9902_s30 + $0x1c8] sm:$0xff] %v4481_v2 }
 0x61e   : > { %4546 = vst [vmem:[%s9902_s30 + $0x1d0] sm:$0xff] %v4482_v54 }
 0x61f   : > { %4895 = shalt.err (!%p4892_p7)
}
 0x620   : > { %s4938_s23 = smov 128   ;;  %s4939_s28 = smov 256  }
 0x621   : > { %s4940_s29 = smov 8  }
 0x622   : > { %4673 = dma.vmem_to_hbm [thread:$0]  (%p5005_p6), %s4565_s8, 8192, %s4567_s9, %s4553_s10, %s4938_s23, %s4939_s28, %s4940_s29  }
 0x623 PF: > { %s4581_s30 = sand.u32 1, %s4918_s15   ;;  %p4676_p10 = pnand %p4661_p9, %p5009_p8 }
 0x624   : > { %s4582_s5 = scalar_lea.sflag [#allocation5], %s4581_s30 }
 0x625   : > { %p4677_p11 = pneg %p4676_p10 }
 0x627   : > { %4913 = dma.done.wait (%p4677_p11), %s4582_s5, 8192  }
 0x628   : > { %4915 = vsyncadd (%p4677_p11), %s4582_s5, 4294959104  ;;  %p14_p12 = scmp.ge.s32.totalorder %s4991_s21, 4   ;;  %s11546_s15 = smov %s4922_s16 }
 0x629   : > { %s11547_s16 = smov %s4926_s17  ;;  %s11548_s17 = smov %s5003_s24 }
 0x62a   : > { %s11549_s18 = smov %s4991_s21  ;;  %16 = sbr.rel (!%p14_p12) target bundleno = 3 (0x3), region = 126 }
 0x62f   :  { %4588 = vsyncpa [#allocation5], 1 }
 0x630   :  { %4590 = vsyncpa [#allocation5 + $0x1], 1 }

</bundles_post_ra>
